<compile_context>
chip_gen: v7x
topology: tpu7x:2x2x1
jax: 0.10.0
libtpu: 0.0.40
codegen_flags: <defaults>
</compile_context>

<pallas_src>
import functools

import jax
import jax.numpy as jnp
from jax.experimental import pallas as pl
from jax.experimental.pallas import tpu as pltpu

_VMEM_LIMIT = 32 * 1024 * 1024  # safe on v5e/v6e (128 MiB phys) and v7x (64 MiB phys)


def _round_up(x, m):
    return ((x + m - 1) // m) * m


def _choose_block_m(m, max_block=512, min_tiles=2):
    """Row-tile size: multiple of 8, <= max_block, and at least `min_tiles`
    tiles when M is big enough (keeps both v7x TensorCores fed via the
    'parallel' grid axis)."""
    if m <= 64:
        return _round_up(m, 8)
    tiles = max(min_tiles, -(-m // max_block))
    return _round_up(-(-m // tiles), 8)


# ----------------------------------------------------------------------------
# Pallas kernels
# ----------------------------------------------------------------------------
def _matmul_bias_kernel(x_ref, w_ref, b_ref, o_ref, *, activation):
    acc = jnp.dot(x_ref[...], w_ref[...], preferred_element_type=jnp.float32)
    acc = acc + b_ref[...]
    if activation == "tanh":
        acc = jnp.tanh(acc)
    o_ref[...] = acc


def matmul_bias(x, w, b, activation="none"):
    """(M, K) @ (K, N) + b, optional tanh.  bf16 operands, f32 accumulate."""
    M, K = x.shape
    K2, N = w.shape
    assert K == K2
    bm = _choose_block_m(M)
    m_pad = _round_up(M, bm)
    x = x.astype(jnp.bfloat16)
    if m_pad != M:
        x = jnp.pad(x, ((0, m_pad - M), (0, 0)))
    w = w.astype(jnp.bfloat16)
    b2 = b.reshape(1, N).astype(jnp.float32)

    out = pl.pallas_call(
        functools.partial(_matmul_bias_kernel, activation=activation),
        out_shape=jax.ShapeDtypeStruct((m_pad, N), jnp.float32),
        grid_spec=pltpu.PrefetchScalarGridSpec(
            num_scalar_prefetch=0,
            grid=(m_pad // bm,),
            in_specs=[
                pl.BlockSpec((bm, K), lambda i: (i, 0)),
                pl.BlockSpec((K, N), lambda i: (0, 0)),
                pl.BlockSpec((1, N), lambda i: (0, 0)),
            ],
            out_specs=pl.BlockSpec((bm, N), lambda i: (i, 0)),
        ),
        compiler_params=pltpu.CompilerParams(
            dimension_semantics=("parallel",), vmem_limit_bytes=_VMEM_LIMIT),
    )(x, w, b2)
    return out[:M]


def _bn_stats_kernel(x_ref, s_ref):
    @pl.when(pl.program_id(0) == 0)
    def _():
        s_ref[...] = jnp.zeros_like(s_ref)
    x = x_ref[...]
    upd = jnp.concatenate(
        [jnp.sum(x, axis=0, keepdims=True),
         jnp.sum(x * x, axis=0, keepdims=True),
         jnp.zeros((6, x.shape[1]), jnp.float32)],
        axis=0)
    s_ref[...] += upd


def _bn_apply_kernel(x_ref, s_ref, g_ref, b_ref, o_ref, *, count, eps, relu):
    inv_n = 1.0 / count
    mean = s_ref[0:1, :] * inv_n
    var = s_ref[1:2, :] * inv_n - mean * mean          # biased var (torch training BN)
    a = g_ref[...] * jax.lax.rsqrt(var + eps)
    c = b_ref[...] - mean * a
    y = x_ref[...] * a + c
    if relu:
        y = jnp.maximum(y, 0.0)
    o_ref[...] = y.astype(o_ref.dtype)


def batchnorm(x_rows, gamma, beta, relu=False, eps=1e-5, out_dtype=jnp.bfloat16):
    """Training-mode BatchNorm over a (B*H*W, C) slab, row-tiled two-pass:
    pass 1 accumulates per-channel sum / sumsq, pass 2 normalizes (+ReLU) and
    emits bf16 for the next layer's matmul operand."""
    R, C = x_rows.shape
    bm = _choose_block_m(R)
    r_pad = _round_up(R, bm)
    xf = x_rows.astype(jnp.float32)
    if r_pad != R:
        xf = jnp.pad(xf, ((0, r_pad - R), (0, 0)))     # zero rows don't perturb sums
    grid = (r_pad // bm,)

    stats = pl.pallas_call(
        _bn_stats_kernel,
        out_shape=jax.ShapeDtypeStruct((8, C), jnp.float32),
        grid_spec=pltpu.PrefetchScalarGridSpec(
            num_scalar_prefetch=0, grid=grid,
            in_specs=[pl.BlockSpec((bm, C), lambda i: (i, 0))],
            out_specs=pl.BlockSpec((8, C), lambda i: (0, 0))),
        compiler_params=pltpu.CompilerParams(
            dimension_semantics=("arbitrary",), vmem_limit_bytes=_VMEM_LIMIT),
    )(xf)

    out = pl.pallas_call(
        functools.partial(_bn_apply_kernel, count=float(R), eps=eps, relu=relu),
        out_shape=jax.ShapeDtypeStruct((r_pad, C), out_dtype),
        grid_spec=pltpu.PrefetchScalarGridSpec(
            num_scalar_prefetch=0, grid=grid,
            in_specs=[
                pl.BlockSpec((bm, C), lambda i: (i, 0)),
                pl.BlockSpec((8, C), lambda i: (0, 0)),
                pl.BlockSpec((1, C), lambda i: (0, 0)),
                pl.BlockSpec((1, C), lambda i: (0, 0)),
            ],
            out_specs=pl.BlockSpec((bm, C), lambda i: (i, 0))),
        compiler_params=pltpu.CompilerParams(
            dimension_semantics=("parallel",), vmem_limit_bytes=_VMEM_LIMIT),
    )(xf, stats,
      gamma.reshape(1, C).astype(jnp.float32),
      beta.reshape(1, C).astype(jnp.float32))
    return out[:R]


# ----------------------------------------------------------------------------
# JAX glue: patch extraction / phase interleave (pure data movement)
# ----------------------------------------------------------------------------
def _extract_patches(x_nhwc, k):
    B, H, W, C = x_nhwc.shape
    OH, OW = H - k + 1, W - k + 1
    cols = []
    for kh in range(k):
        for kw in range(k):
            cols.append(x_nhwc[:, kh:kh + OH, kw:kw + OW, :])
    patches = jnp.concatenate(cols, axis=-1)          # column order: (kh, kw, cin)
    return patches.reshape(B * OH * OW, k * k * C), (OH, OW)


def _deconv_phase_weights(wt):
    """ConvTranspose2d(k=4, s=2, p=1) -> fused 2x2 per-phase conv weights.
    wt: (Cin, Cout, 4, 4) -> (4*Cin, 4*Cout); column blocks are output phases
    (rh, rw) in order (0,0),(0,1),(1,0),(1,1); rows ordered (dh, dw, cin)."""
    Cin, Cout = wt.shape[0], wt.shape[1]
    cols = []
    for rh in (0, 1):
        for rw in (0, 1):
            w_sub = wt[:, :, 3 - rh::-2, 3 - rw::-2]   # kernel taps for (dh, dw)
            cols.append(w_sub.transpose(2, 3, 0, 1).reshape(4 * Cin, Cout))
    return jnp.concatenate(cols, axis=1)


def conv_transpose2d_s2k4p1(x_nhwc, wt, bias):
    """torch.nn.ConvTranspose2d(Cin, Cout, 4, stride=2, padding=1) via sub-pixel
    (phase) decomposition: pad-by-1, 2x2 patches, one fused matmul, interleave."""
    B, H, W, Cin = x_nhwc.shape
    Cout = wt.shape[1]
    xp = jnp.pad(x_nhwc, ((0, 0), (1, 1), (1, 1), (0, 0)))
    patches, _ = _extract_patches(xp, 2)                    # (B*(H+1)*(W+1), 4*Cin)
    w_all = _deconv_phase_weights(wt)                       # (4*Cin, 4*Cout)
    b_all = jnp.concatenate([bias] * 4)
    out = matmul_bias(patches, w_all, b_all)                # (B*(H+1)*(W+1), 4*Cout)
    out = out.reshape(B, H + 1, W + 1, 4, Cout)
    y00 = out[:, :H, :W, 0, :]
    y01 = out[:, :H, 1:, 1, :]
    y10 = out[:, 1:, :W, 2, :]
    y11 = out[:, 1:, 1:, 3, :]
    y = jnp.stack([jnp.stack([y00, y01], axis=3),
                   jnp.stack([y10, y11], axis=3)], axis=3)  # (B, H, W, rh, rw, Cout)
    return y.transpose(0, 1, 3, 2, 4, 5).reshape(B, 2 * H, 2 * W, Cout)


def conv2d(x_nhwc, w, bias, padding, activation="none", n_pad=128):
    """torch.nn.Conv2d (stride 1). w: (Cout, Cin, k, k).  Output N is zero-padded
    to a lane-dense width so stores are unmasked; pad sliced off afterwards."""
    B, H, W, Cin = x_nhwc.shape
    Cout, _, k, _ = w.shape
    xp = jnp.pad(x_nhwc, ((0, 0), (padding, padding), (padding, padding), (0, 0)))
    # TODO(synk): do the k^2 im2col inside the Pallas kernel (shifted VMEM views
    # accumulated over a (kh,kw) grid axis) to avoid the k^2-duplicated HBM slab.
    patches, (OH, OW) = _extract_patches(xp, k)
    w_flat = w.transpose(2, 3, 1, 0).reshape(k * k * Cin, Cout)
    n_out = max(Cout, n_pad)
    if n_out != Cout:
        w_flat = jnp.pad(w_flat, ((0, 0), (0, n_out - Cout)))
        bias = jnp.pad(bias, (0, n_out - Cout))
    out = matmul_bias(patches, w_flat, bias, activation=activation)
    return out[:, :Cout].reshape(B, OH, OW, Cout)


# ----------------------------------------------------------------------------
# Generator forward
# ----------------------------------------------------------------------------
def generator_forward(z, params):
    B = z.shape[0]
    init = 7

    # fc: (B, latent) -> (B, 128*7*7); torch .view(B, 128, 7, 7) then -> NHWC
    out = matmul_bias(z, params["fc_w"].T, params["fc_b"])           # (B, 6272) f32
    x = out.reshape(B, 128, init, init).transpose(0, 2, 3, 1)        # (B, 7, 7, 128)

    # BatchNorm2d(128)  (no ReLU after bn1 in the reference Sequential)
    x = batchnorm(x.reshape(B * init * init, 128),
                  params["bn1_g"], params["bn1_b"]).reshape(B, init, init, 128)

    # ConvTranspose2d(128, 128, 4, 2, 1) -> (B, 14, 14, 128); BN + ReLU
    x = conv_transpose2d_s2k4p1(x, params["dc1_w"], params["dc1_b"])
    x = batchnorm(x.reshape(-1, 128), params["bn2_g"], params["bn2_b"],
                  relu=True).reshape(B, 14, 14, 128)

    # ConvTranspose2d(128, 64, 4, 2, 1) -> (B, 28, 28, 64); BN + ReLU
    x = conv_transpose2d_s2k4p1(x, params["dc2_w"], params["dc2_b"])
    x = batchnorm(x.reshape(-1, 64), params["bn3_g"], params["bn3_b"],
                  relu=True).reshape(B, 28, 28, 64)

    # Conv2d(64, 1, 7, 1, 3) + Tanh -> (B, 28, 28, 1)
    x = conv2d(x, params["cv_w"], params["cv_b"], padding=3, activation="tanh")

    return x.transpose(0, 3, 1, 2).astype(jnp.float32)               # NCHW (B, 1, 28, 28)


def init_params(key, latent_dim):
    ks = jax.random.split(key, 8)
    s = 0.05
    return {
        "fc_w": s * jax.random.normal(ks[0], (128 * 7 * 7, latent_dim), jnp.float32),
        "fc_b": s * jax.random.normal(ks[1], (128 * 7 * 7,), jnp.float32),
        "bn1_g": jnp.ones((128,), jnp.float32),
        "bn1_b": jnp.zeros((128,), jnp.float32),
        "dc1_w": s * jax.random.normal(ks[2], (128, 128, 4, 4), jnp.float32),
        "dc1_b": s * jax.random.normal(ks[3], (128,), jnp.float32),
        "bn2_g": jnp.ones((128,), jnp.float32),
        "bn2_b": jnp.zeros((128,), jnp.float32),
        "dc2_w": s * jax.random.normal(ks[4], (128, 64, 4, 4), jnp.float32),
        "dc2_b": s * jax.random.normal(ks[5], (64,), jnp.float32),
        "bn3_g": jnp.ones((64,), jnp.float32),
        "bn3_b": jnp.zeros((64,), jnp.float32),
        "cv_w": s * jax.random.normal(ks[6], (1, 64, 7, 7), jnp.float32),
        "cv_b": s * jax.random.normal(ks[7], (1,), jnp.float32),
    }


if __name__ == "__main__":
    key = jax.random.PRNGKey(0)
    k_param, k_z = jax.random.split(key)

    latent_dim = 32
    batch = 2
    params = init_params(k_param, latent_dim)
    z = jax.random.normal(k_z, (batch, latent_dim), jnp.float32)

    fwd = jax.jit(generator_forward)
    img = fwd(z, params)
    jax.block_until_ready(img)

    assert img.shape == (batch, 1, 28, 28), img.shape
    assert bool(jnp.all(jnp.isfinite(img)))
    print("KERNEL_OK")
</pallas_src>

<mosaic_0001>
module attributes {stable_mosaic.version = 11 : i64} {
  func.func @_matmul_bias_kernel(%arg0: i32, %arg1: memref<8x32xbf16, #tpu.memory_space<vmem>>, %arg2: memref<32x6272xbf16, #tpu.memory_space<vmem>>, %arg3: memref<1x6272xf32, #tpu.memory_space<vmem>>, %arg4: memref<8x6272xf32, #tpu.memory_space<vmem>>) attributes {dimension_semantics = [#tpu.dimension_semantics<parallel>], iteration_bounds = array<i64: 1>, scalar_prefetch = 0 : i64, scratch_operands = 0 : i64, tpu.core_type = #tpu.core_type<tc>, window_params = [{transform_indices = @transform_0, window_bounds = array<i64: 8, 32>}, {pipeline_mode = #tpu.pipeline_mode<synchronous>, transform_indices = @transform_1, window_bounds = array<i64: 32, 6272>}, {pipeline_mode = #tpu.pipeline_mode<synchronous>, transform_indices = @transform_2, window_bounds = array<i64: 1, 6272>}, {transform_indices = @transform_3, window_bounds = array<i64: 8, 6272>}]} {
    %c0 = arith.constant 0 : index
    %c0_0 = arith.constant 0 : index
    %0 = vector.load %arg1[%c0, %c0_0] : memref<8x32xbf16, #tpu.memory_space<vmem>>, vector<8x32xbf16>
    %c0_1 = arith.constant 0 : index
    %c0_2 = arith.constant 0 : index
    %1 = vector.load %arg2[%c0_1, %c0_2] : memref<32x6272xbf16, #tpu.memory_space<vmem>>, vector<32x6272xbf16>
    %cst = arith.constant dense<0.000000e+00> : vector<8x6272xf32>
    %2 = tpu.matmul %0, %1, %cst {dimension_numbers = #tpu.dot_dimension_numbers<[1], [0], [0], [1], [0, 0, 1, 1], [], []>} : vector<8x32xbf16>, vector<32x6272xbf16>, vector<8x6272xf32> -> vector<8x6272xf32>
    %c0_3 = arith.constant 0 : index
    %c0_4 = arith.constant 0 : index
    %3 = vector.load %arg3[%c0_3, %c0_4] : memref<1x6272xf32, #tpu.memory_space<vmem>>, vector<1x6272xf32>
    %4 = vector.broadcast %3 : vector<1x6272xf32> to vector<8x6272xf32>
    %5 = arith.addf %2, %4 : vector<8x6272xf32>
    %c0_5 = arith.constant 0 : index
    %c0_6 = arith.constant 0 : index
    %6 = vector.load %arg4[%c0_5, %c0_6] : memref<8x6272xf32, #tpu.memory_space<vmem>>, vector<8x6272xf32>
    tpu.vector_store %arg4[%c0_5, %c0_6], %5 {strides = array<i32>} : memref<8x6272xf32, #tpu.memory_space<vmem>>, vector<8x6272xf32>,
    return
  }
  func.func @transform_0(%arg0: i32) -> (i32, i32) {
    %c0_i32 = arith.constant 0 : i32
    %c0_i32_0 = arith.constant 0 : i32
    return %arg0, %c0_i32 : i32, i32
  }
  func.func @transform_1(%arg0: i32) -> (i32, i32) {
    %c0_i32 = arith.constant 0 : i32
    %c0_i32_0 = arith.constant 0 : i32
    %c0_i32_1 = arith.constant 0 : i32
    return %c0_i32, %c0_i32_0 : i32, i32
  }
  func.func @transform_2(%arg0: i32) -> (i32, i32) {
    %c0_i32 = arith.constant 0 : i32
    %c0_i32_0 = arith.constant 0 : i32
    %c0_i32_1 = arith.constant 0 : i32
    return %c0_i32, %c0_i32_0 : i32, i32
  }
  func.func @transform_3(%arg0: i32) -> (i32, i32) {
    %c0_i32 = arith.constant 0 : i32
    %c0_i32_0 = arith.constant 0 : i32
    return %arg0, %c0_i32 : i32, i32
  }
}

module attributes {stable_mosaic.version = 11 : i64} {
  func.func @_bn_stats_kernel(%arg0: i32, %arg1: memref<56x128xf32, #tpu.memory_space<vmem>>, %arg2: memref<8x128xf32, #tpu.memory_space<vmem>>) attributes {dimension_semantics = [#tpu.dimension_semantics<arbitrary>], iteration_bounds = array<i64: 2>, scalar_prefetch = 0 : i64, scratch_operands = 0 : i64, tpu.core_type = #tpu.core_type<tc>, window_params = [{transform_indices = @transform_0, window_bounds = array<i64: 56, 128>}, {pipeline_mode = #tpu.pipeline_mode<synchronous>, transform_indices = @transform_1, window_bounds = array<i64: 8, 128>}]} {
    %c0_i32 = arith.constant 0 : i32
    %0 = arith.cmpi eq, %arg0, %c0_i32 : i32
    %1 = arith.extui %0 : i1 to i32
    %c0_i32_0 = arith.constant 0 : i32
    %2 = arith.cmpi ne, %1, %c0_i32_0 : i32
    scf.if %2 {
      %cst_8 = arith.constant 0.000000e+00 : f32
      %14 = vector.broadcast %cst_8 : f32 to vector<8x128xf32>
      %c0_9 = arith.constant 0 : index
      %c0_10 = arith.constant 0 : index
      %15 = vector.load %arg2[%c0_9, %c0_10] : memref<8x128xf32, #tpu.memory_space<vmem>>, vector<8x128xf32>
      tpu.vector_store %arg2[%c0_9, %c0_10], %14 {strides = array<i32>} : memref<8x128xf32, #tpu.memory_space<vmem>>, vector<8x128xf32>,
    } else {
    }
    %c0 = arith.constant 0 : index
    %c0_1 = arith.constant 0 : index
    %3 = vector.load %arg1[%c0, %c0_1] : memref<56x128xf32, #tpu.memory_space<vmem>>, vector<56x128xf32>
    %cst = arith.constant dense<0.000000e+00> : vector<128xf32>
    %4 = vector.multi_reduction <add>, %3, %cst [0] : vector<56x128xf32> to vector<128xf32>
    %5 = vector.shape_cast %4 : vector<128xf32> to vector<1x128xf32>
    %6 = arith.mulf %3, %3 : vector<56x128xf32>
    %cst_2 = arith.constant dense<0.000000e+00> : vector<128xf32>
    %7 = vector.multi_reduction <add>, %6, %cst_2 [0] : vector<56x128xf32> to vector<128xf32>
    %8 = vector.shape_cast %7 : vector<128xf32> to vector<1x128xf32>
    %cst_3 = arith.constant 0.000000e+00 : f32
    %9 = vector.broadcast %cst_3 : f32 to vector<6x128xf32>
    %10 = tpu.concatenate %5, %8, %9 in 0 : vector<1x128xf32>, vector<1x128xf32>, vector<6x128xf32> -> vector<8x128xf32>
    %c0_4 = arith.constant 0 : index
    %c0_5 = arith.constant 0 : index
    %11 = vector.load %arg2[%c0_4, %c0_5] : memref<8x128xf32, #tpu.memory_space<vmem>>, vector<8x128xf32>
    %12 = arith.addf %11, %10 : vector<8x128xf32>
    %c0_6 = arith.constant 0 : index
    %c0_7 = arith.constant 0 : index
    %13 = vector.load %arg2[%c0_6, %c0_7] : memref<8x128xf32, #tpu.memory_space<vmem>>, vector<8x128xf32>
    tpu.vector_store %arg2[%c0_6, %c0_7], %12 {strides = array<i32>} : memref<8x128xf32, #tpu.memory_space<vmem>>, vector<8x128xf32>,
    return
  }
  func.func @transform_0(%arg0: i32) -> (i32, i32) {
    %c0_i32 = arith.constant 0 : i32
    %c0_i32_0 = arith.constant 0 : i32
    return %arg0, %c0_i32 : i32, i32
  }
  func.func @transform_1(%arg0: i32) -> (i32, i32) {
    %c0_i32 = arith.constant 0 : i32
    %c0_i32_0 = arith.constant 0 : i32
    %c0_i32_1 = arith.constant 0 : i32
    return %c0_i32, %c0_i32_0 : i32, i32
  }
}

module attributes {stable_mosaic.version = 11 : i64} {
  func.func @_bn_apply_kernel(%arg0: i32, %arg1: memref<56x128xf32, #tpu.memory_space<vmem>>, %arg2: memref<8x128xf32, #tpu.memory_space<vmem>>, %arg3: memref<1x128xf32, #tpu.memory_space<vmem>>, %arg4: memref<1x128xf32, #tpu.memory_space<vmem>>, %arg5: memref<56x128xbf16, #tpu.memory_space<vmem>>) attributes {dimension_semantics = [#tpu.dimension_semantics<parallel>], iteration_bounds = array<i64: 2>, scalar_prefetch = 0 : i64, scratch_operands = 0 : i64, tpu.core_type = #tpu.core_type<tc>, window_params = [{transform_indices = @transform_0, window_bounds = array<i64: 56, 128>}, {pipeline_mode = #tpu.pipeline_mode<synchronous>, transform_indices = @transform_1, window_bounds = array<i64: 8, 128>}, {pipeline_mode = #tpu.pipeline_mode<synchronous>, transform_indices = @transform_2, window_bounds = array<i64: 1, 128>}, {pipeline_mode = #tpu.pipeline_mode<synchronous>, transform_indices = @transform_3, window_bounds = array<i64: 1, 128>}, {transform_indices = @transform_4, window_bounds = array<i64: 56, 128>}]} {
    %c0 = arith.constant 0 : index
    %c0_0 = arith.constant 0 : index
    %0 = vector.load %arg2[%c0, %c0_0] : memref<8x128xf32, #tpu.memory_space<vmem>>, vector<1x128xf32>
    %cst = arith.constant 0.0102040814 : f32
    %1 = vector.broadcast %cst : f32 to vector<1x128xf32>
    %2 = arith.mulf %0, %1 : vector<1x128xf32>
    %c1 = arith.constant 1 : index
    %c0_1 = arith.constant 0 : index
    %3 = vector.load %arg2[%c1, %c0_1] : memref<8x128xf32, #tpu.memory_space<vmem>>, vector<1x128xf32>
    %cst_2 = arith.constant 0.0102040814 : f32
    %4 = vector.broadcast %cst_2 : f32 to vector<1x128xf32>
    %5 = arith.mulf %3, %4 : vector<1x128xf32>
    %6 = arith.mulf %2, %2 : vector<1x128xf32>
    %7 = arith.subf %5, %6 : vector<1x128xf32>
    %c0_3 = arith.constant 0 : index
    %c0_4 = arith.constant 0 : index
    %8 = vector.load %arg3[%c0_3, %c0_4] : memref<1x128xf32, #tpu.memory_space<vmem>>, vector<1x128xf32>
    %cst_5 = arith.constant 9.99999974E-6 : f32
    %9 = vector.broadcast %cst_5 : f32 to vector<1x128xf32>
    %10 = arith.addf %7, %9 : vector<1x128xf32>
    %11 = math.rsqrt %10 : vector<1x128xf32>
    %12 = arith.mulf %8, %11 : vector<1x128xf32>
    %c0_6 = arith.constant 0 : index
    %c0_7 = arith.constant 0 : index
    %13 = vector.load %arg4[%c0_6, %c0_7] : memref<1x128xf32, #tpu.memory_space<vmem>>, vector<1x128xf32>
    %14 = arith.mulf %2, %12 : vector<1x128xf32>
    %15 = arith.subf %13, %14 : vector<1x128xf32>
    %c0_8 = arith.constant 0 : index
    %c0_9 = arith.constant 0 : index
    %16 = vector.load %arg1[%c0_8, %c0_9] : memref<56x128xf32, #tpu.memory_space<vmem>>, vector<56x128xf32>
    %17 = vector.broadcast %12 : vector<1x128xf32> to vector<56x128xf32>
    %18 = arith.mulf %16, %17 : vector<56x128xf32>
    %19 = vector.broadcast %15 : vector<1x128xf32> to vector<56x128xf32>
    %20 = arith.addf %18, %19 : vector<56x128xf32>
    %21 = arith.truncf %20 : vector<56x128xf32> to vector<56x128xbf16>
    %c0_10 = arith.constant 0 : index
    %c0_11 = arith.constant 0 : index
    %22 = vector.load %arg5[%c0_10, %c0_11] : memref<56x128xbf16, #tpu.memory_space<vmem>>, vector<56x128xbf16>
    tpu.vector_store %arg5[%c0_10, %c0_11], %21 {strides = array<i32>} : memref<56x128xbf16, #tpu.memory_space<vmem>>, vector<56x128xbf16>,
    return
  }
  func.func @transform_0(%arg0: i32) -> (i32, i32) {
    %c0_i32 = arith.constant 0 : i32
    %c0_i32_0 = arith.constant 0 : i32
    return %arg0, %c0_i32 : i32, i32
  }
  func.func @transform_1(%arg0: i32) -> (i32, i32) {
    %c0_i32 = arith.constant 0 : i32
    %c0_i32_0 = arith.constant 0 : i32
    %c0_i32_1 = arith.constant 0 : i32
    return %c0_i32, %c0_i32_0 : i32, i32
  }
  func.func @transform_2(%arg0: i32) -> (i32, i32) {
    %c0_i32 = arith.constant 0 : i32
    %c0_i32_0 = arith.constant 0 : i32
    %c0_i32_1 = arith.constant 0 : i32
    return %c0_i32, %c0_i32_0 : i32, i32
  }
  func.func @transform_3(%arg0: i32) -> (i32, i32) {
    %c0_i32 = arith.constant 0 : i32
    %c0_i32_0 = arith.constant 0 : i32
    %c0_i32_1 = arith.constant 0 : i32
    return %c0_i32, %c0_i32_0 : i32, i32
  }
  func.func @transform_4(%arg0: i32) -> (i32, i32) {
    %c0_i32 = arith.constant 0 : i32
    %c0_i32_0 = arith.constant 0 : i32
    return %arg0, %c0_i32 : i32, i32
  }
}

module attributes {stable_mosaic.version = 11 : i64} {
  func.func @_matmul_bias_kernel(%arg0: i32, %arg1: memref<64x512xbf16, #tpu.memory_space<vmem>>, %arg2: memref<512x512xbf16, #tpu.memory_space<vmem>>, %arg3: memref<1x512xf32, #tpu.memory_space<vmem>>, %arg4: memref<64x512xf32, #tpu.memory_space<vmem>>) attributes {dimension_semantics = [#tpu.dimension_semantics<parallel>], iteration_bounds = array<i64: 2>, scalar_prefetch = 0 : i64, scratch_operands = 0 : i64, tpu.core_type = #tpu.core_type<tc>, window_params = [{transform_indices = @transform_0, window_bounds = array<i64: 64, 512>}, {pipeline_mode = #tpu.pipeline_mode<synchronous>, transform_indices = @transform_1, window_bounds = array<i64: 512, 512>}, {pipeline_mode = #tpu.pipeline_mode<synchronous>, transform_indices = @transform_2, window_bounds = array<i64: 1, 512>}, {transform_indices = @transform_3, window_bounds = array<i64: 64, 512>}]} {
    %c0 = arith.constant 0 : index
    %c0_0 = arith.constant 0 : index
    %0 = vector.load %arg1[%c0, %c0_0] : memref<64x512xbf16, #tpu.memory_space<vmem>>, vector<64x512xbf16>
    %c0_1 = arith.constant 0 : index
    %c0_2 = arith.constant 0 : index
    %1 = vector.load %arg2[%c0_1, %c0_2] : memref<512x512xbf16, #tpu.memory_space<vmem>>, vector<512x512xbf16>
    %cst = arith.constant dense<0.000000e+00> : vector<64x512xf32>
    %2 = tpu.matmul %0, %1, %cst {dimension_numbers = #tpu.dot_dimension_numbers<[1], [0], [0], [1], [0, 0, 1, 1], [], []>} : vector<64x512xbf16>, vector<512x512xbf16>, vector<64x512xf32> -> vector<64x512xf32>
    %c0_3 = arith.constant 0 : index
    %c0_4 = arith.constant 0 : index
    %3 = vector.load %arg3[%c0_3, %c0_4] : memref<1x512xf32, #tpu.memory_space<vmem>>, vector<1x512xf32>
    %4 = vector.broadcast %3 : vector<1x512xf32> to vector<64x512xf32>
    %5 = arith.addf %2, %4 : vector<64x512xf32>
    %c0_5 = arith.constant 0 : index
    %c0_6 = arith.constant 0 : index
    %6 = vector.load %arg4[%c0_5, %c0_6] : memref<64x512xf32, #tpu.memory_space<vmem>>, vector<64x512xf32>
    tpu.vector_store %arg4[%c0_5, %c0_6], %5 {strides = array<i32>} : memref<64x512xf32, #tpu.memory_space<vmem>>, vector<64x512xf32>,
    return
  }
  func.func @transform_0(%arg0: i32) -> (i32, i32) {
    %c0_i32 = arith.constant 0 : i32
    %c0_i32_0 = arith.constant 0 : i32
    return %arg0, %c0_i32 : i32, i32
  }
  func.func @transform_1(%arg0: i32) -> (i32, i32) {
    %c0_i32 = arith.constant 0 : i32
    %c0_i32_0 = arith.constant 0 : i32
    %c0_i32_1 = arith.constant 0 : i32
    return %c0_i32, %c0_i32_0 : i32, i32
  }
  func.func @transform_2(%arg0: i32) -> (i32, i32) {
    %c0_i32 = arith.constant 0 : i32
    %c0_i32_0 = arith.constant 0 : i32
    %c0_i32_1 = arith.constant 0 : i32
    return %c0_i32, %c0_i32_0 : i32, i32
  }
  func.func @transform_3(%arg0: i32) -> (i32, i32) {
    %c0_i32 = arith.constant 0 : i32
    %c0_i32_0 = arith.constant 0 : i32
    return %arg0, %c0_i32 : i32, i32
  }
}

module attributes {stable_mosaic.version = 11 : i64} {
  func.func @_bn_stats_kernel(%arg0: i32, %arg1: memref<200x128xf32, #tpu.memory_space<vmem>>, %arg2: memref<8x128xf32, #tpu.memory_space<vmem>>) attributes {dimension_semantics = [#tpu.dimension_semantics<arbitrary>], iteration_bounds = array<i64: 2>, scalar_prefetch = 0 : i64, scratch_operands = 0 : i64, tpu.core_type = #tpu.core_type<tc>, window_params = [{transform_indices = @transform_0, window_bounds = array<i64: 200, 128>}, {pipeline_mode = #tpu.pipeline_mode<synchronous>, transform_indices = @transform_1, window_bounds = array<i64: 8, 128>}]} {
    %c0_i32 = arith.constant 0 : i32
    %0 = arith.cmpi eq, %arg0, %c0_i32 : i32
    %1 = arith.extui %0 : i1 to i32
    %c0_i32_0 = arith.constant 0 : i32
    %2 = arith.cmpi ne, %1, %c0_i32_0 : i32
    scf.if %2 {
      %cst_8 = arith.constant 0.000000e+00 : f32
      %14 = vector.broadcast %cst_8 : f32 to vector<8x128xf32>
      %c0_9 = arith.constant 0 : index
      %c0_10 = arith.constant 0 : index
      %15 = vector.load %arg2[%c0_9, %c0_10] : memref<8x128xf32, #tpu.memory_space<vmem>>, vector<8x128xf32>
      tpu.vector_store %arg2[%c0_9, %c0_10], %14 {strides = array<i32>} : memref<8x128xf32, #tpu.memory_space<vmem>>, vector<8x128xf32>,
    } else {
    }
    %c0 = arith.constant 0 : index
    %c0_1 = arith.constant 0 : index
    %3 = vector.load %arg1[%c0, %c0_1] : memref<200x128xf32, #tpu.memory_space<vmem>>, vector<200x128xf32>
    %cst = arith.constant dense<0.000000e+00> : vector<128xf32>
    %4 = vector.multi_reduction <add>, %3, %cst [0] : vector<200x128xf32> to vector<128xf32>
    %5 = vector.shape_cast %4 : vector<128xf32> to vector<1x128xf32>
    %6 = arith.mulf %3, %3 : vector<200x128xf32>
    %cst_2 = arith.constant dense<0.000000e+00> : vector<128xf32>
    %7 = vector.multi_reduction <add>, %6, %cst_2 [0] : vector<200x128xf32> to vector<128xf32>
    %8 = vector.shape_cast %7 : vector<128xf32> to vector<1x128xf32>
    %cst_3 = arith.constant 0.000000e+00 : f32
    %9 = vector.broadcast %cst_3 : f32 to vector<6x128xf32>
    %10 = tpu.concatenate %5, %8, %9 in 0 : vector<1x128xf32>, vector<1x128xf32>, vector<6x128xf32> -> vector<8x128xf32>
    %c0_4 = arith.constant 0 : index
    %c0_5 = arith.constant 0 : index
    %11 = vector.load %arg2[%c0_4, %c0_5] : memref<8x128xf32, #tpu.memory_space<vmem>>, vector<8x128xf32>
    %12 = arith.addf %11, %10 : vector<8x128xf32>
    %c0_6 = arith.constant 0 : index
    %c0_7 = arith.constant 0 : index
    %13 = vector.load %arg2[%c0_6, %c0_7] : memref<8x128xf32, #tpu.memory_space<vmem>>, vector<8x128xf32>
    tpu.vector_store %arg2[%c0_6, %c0_7], %12 {strides = array<i32>} : memref<8x128xf32, #tpu.memory_space<vmem>>, vector<8x128xf32>,
    return
  }
  func.func @transform_0(%arg0: i32) -> (i32, i32) {
    %c0_i32 = arith.constant 0 : i32
    %c0_i32_0 = arith.constant 0 : i32
    return %arg0, %c0_i32 : i32, i32
  }
  func.func @transform_1(%arg0: i32) -> (i32, i32) {
    %c0_i32 = arith.constant 0 : i32
    %c0_i32_0 = arith.constant 0 : i32
    %c0_i32_1 = arith.constant 0 : i32
    return %c0_i32, %c0_i32_0 : i32, i32
  }
}

module attributes {stable_mosaic.version = 11 : i64} {
  func.func @_bn_apply_kernel(%arg0: i32, %arg1: memref<200x128xf32, #tpu.memory_space<vmem>>, %arg2: memref<8x128xf32, #tpu.memory_space<vmem>>, %arg3: memref<1x128xf32, #tpu.memory_space<vmem>>, %arg4: memref<1x128xf32, #tpu.memory_space<vmem>>, %arg5: memref<200x128xbf16, #tpu.memory_space<vmem>>) attributes {dimension_semantics = [#tpu.dimension_semantics<parallel>], iteration_bounds = array<i64: 2>, scalar_prefetch = 0 : i64, scratch_operands = 0 : i64, tpu.core_type = #tpu.core_type<tc>, window_params = [{transform_indices = @transform_0, window_bounds = array<i64: 200, 128>}, {pipeline_mode = #tpu.pipeline_mode<synchronous>, transform_indices = @transform_1, window_bounds = array<i64: 8, 128>}, {pipeline_mode = #tpu.pipeline_mode<synchronous>, transform_indices = @transform_2, window_bounds = array<i64: 1, 128>}, {pipeline_mode = #tpu.pipeline_mode<synchronous>, transform_indices = @transform_3, window_bounds = array<i64: 1, 128>}, {transform_indices = @transform_4, window_bounds = array<i64: 200, 128>}]} {
    %c0 = arith.constant 0 : index
    %c0_0 = arith.constant 0 : index
    %0 = vector.load %arg2[%c0, %c0_0] : memref<8x128xf32, #tpu.memory_space<vmem>>, vector<1x128xf32>
    %cst = arith.constant 0.00255102036 : f32
    %1 = vector.broadcast %cst : f32 to vector<1x128xf32>
    %2 = arith.mulf %0, %1 : vector<1x128xf32>
    %c1 = arith.constant 1 : index
    %c0_1 = arith.constant 0 : index
    %3 = vector.load %arg2[%c1, %c0_1] : memref<8x128xf32, #tpu.memory_space<vmem>>, vector<1x128xf32>
    %cst_2 = arith.constant 0.00255102036 : f32
    %4 = vector.broadcast %cst_2 : f32 to vector<1x128xf32>
    %5 = arith.mulf %3, %4 : vector<1x128xf32>
    %6 = arith.mulf %2, %2 : vector<1x128xf32>
    %7 = arith.subf %5, %6 : vector<1x128xf32>
    %c0_3 = arith.constant 0 : index
    %c0_4 = arith.constant 0 : index
    %8 = vector.load %arg3[%c0_3, %c0_4] : memref<1x128xf32, #tpu.memory_space<vmem>>, vector<1x128xf32>
    %cst_5 = arith.constant 9.99999974E-6 : f32
    %9 = vector.broadcast %cst_5 : f32 to vector<1x128xf32>
    %10 = arith.addf %7, %9 : vector<1x128xf32>
    %11 = math.rsqrt %10 : vector<1x128xf32>
    %12 = arith.mulf %8, %11 : vector<1x128xf32>
    %c0_6 = arith.constant 0 : index
    %c0_7 = arith.constant 0 : index
    %13 = vector.load %arg4[%c0_6, %c0_7] : memref<1x128xf32, #tpu.memory_space<vmem>>, vector<1x128xf32>
    %14 = arith.mulf %2, %12 : vector<1x128xf32>
    %15 = arith.subf %13, %14 : vector<1x128xf32>
    %c0_8 = arith.constant 0 : index
    %c0_9 = arith.constant 0 : index
    %16 = vector.load %arg1[%c0_8, %c0_9] : memref<200x128xf32, #tpu.memory_space<vmem>>, vector<200x128xf32>
    %17 = vector.broadcast %12 : vector<1x128xf32> to vector<200x128xf32>
    %18 = arith.mulf %16, %17 : vector<200x128xf32>
    %19 = vector.broadcast %15 : vector<1x128xf32> to vector<200x128xf32>
    %20 = arith.addf %18, %19 : vector<200x128xf32>
    %cst_10 = arith.constant 0.000000e+00 : f32
    %21 = vector.broadcast %cst_10 : f32 to vector<200x128xf32>
    %22 = arith.maximumf %20, %21 : vector<200x128xf32>
    %23 = arith.truncf %22 : vector<200x128xf32> to vector<200x128xbf16>
    %c0_11 = arith.constant 0 : index
    %c0_12 = arith.constant 0 : index
    %24 = vector.load %arg5[%c0_11, %c0_12] : memref<200x128xbf16, #tpu.memory_space<vmem>>, vector<200x128xbf16>
    tpu.vector_store %arg5[%c0_11, %c0_12], %23 {strides = array<i32>} : memref<200x128xbf16, #tpu.memory_space<vmem>>, vector<200x128xbf16>,
    return
  }
  func.func @transform_0(%arg0: i32) -> (i32, i32) {
    %c0_i32 = arith.constant 0 : i32
    %c0_i32_0 = arith.constant 0 : i32
    return %arg0, %c0_i32 : i32, i32
  }
  func.func @transform_1(%arg0: i32) -> (i32, i32) {
    %c0_i32 = arith.constant 0 : i32
    %c0_i32_0 = arith.constant 0 : i32
    %c0_i32_1 = arith.constant 0 : i32
    return %c0_i32, %c0_i32_0 : i32, i32
  }
  func.func @transform_2(%arg0: i32) -> (i32, i32) {
    %c0_i32 = arith.constant 0 : i32
    %c0_i32_0 = arith.constant 0 : i32
    %c0_i32_1 = arith.constant 0 : i32
    return %c0_i32, %c0_i32_0 : i32, i32
  }
  func.func @transform_3(%arg0: i32) -> (i32, i32) {
    %c0_i32 = arith.constant 0 : i32
    %c0_i32_0 = arith.constant 0 : i32
    %c0_i32_1 = arith.constant 0 : i32
    return %c0_i32, %c0_i32_0 : i32, i32
  }
  func.func @transform_4(%arg0: i32) -> (i32, i32) {
    %c0_i32 = arith.constant 0 : i32
    %c0_i32_0 = arith.constant 0 : i32
    return %arg0, %c0_i32 : i32, i32
  }
}

module attributes {stable_mosaic.version = 11 : i64} {
  func.func @_matmul_bias_kernel(%arg0: i32, %arg1: memref<232x512xbf16, #tpu.memory_space<vmem>>, %arg2: memref<512x256xbf16, #tpu.memory_space<vmem>>, %arg3: memref<1x256xf32, #tpu.memory_space<vmem>>, %arg4: memref<232x256xf32, #tpu.memory_space<vmem>>) attributes {dimension_semantics = [#tpu.dimension_semantics<parallel>], iteration_bounds = array<i64: 2>, scalar_prefetch = 0 : i64, scratch_operands = 0 : i64, tpu.core_type = #tpu.core_type<tc>, window_params = [{transform_indices = @transform_0, window_bounds = array<i64: 232, 512>}, {pipeline_mode = #tpu.pipeline_mode<synchronous>, transform_indices = @transform_1, window_bounds = array<i64: 512, 256>}, {pipeline_mode = #tpu.pipeline_mode<synchronous>, transform_indices = @transform_2, window_bounds = array<i64: 1, 256>}, {transform_indices = @transform_3, window_bounds = array<i64: 232, 256>}]} {
    %c0 = arith.constant 0 : index
    %c0_0 = arith.constant 0 : index
    %0 = vector.load %arg1[%c0, %c0_0] : memref<232x512xbf16, #tpu.memory_space<vmem>>, vector<232x512xbf16>
    %c0_1 = arith.constant 0 : index
    %c0_2 = arith.constant 0 : index
    %1 = vector.load %arg2[%c0_1, %c0_2] : memref<512x256xbf16, #tpu.memory_space<vmem>>, vector<512x256xbf16>
    %cst = arith.constant dense<0.000000e+00> : vector<232x256xf32>
    %2 = tpu.matmul %0, %1, %cst {dimension_numbers = #tpu.dot_dimension_numbers<[1], [0], [0], [1], [0, 0, 1, 1], [], []>} : vector<232x512xbf16>, vector<512x256xbf16>, vector<232x256xf32> -> vector<232x256xf32>
    %c0_3 = arith.constant 0 : index
    %c0_4 = arith.constant 0 : index
    %3 = vector.load %arg3[%c0_3, %c0_4] : memref<1x256xf32, #tpu.memory_space<vmem>>, vector<1x256xf32>
    %4 = vector.broadcast %3 : vector<1x256xf32> to vector<232x256xf32>
    %5 = arith.addf %2, %4 : vector<232x256xf32>
    %c0_5 = arith.constant 0 : index
    %c0_6 = arith.constant 0 : index
    %6 = vector.load %arg4[%c0_5, %c0_6] : memref<232x256xf32, #tpu.memory_space<vmem>>, vector<232x256xf32>
    tpu.vector_store %arg4[%c0_5, %c0_6], %5 {strides = array<i32>} : memref<232x256xf32, #tpu.memory_space<vmem>>, vector<232x256xf32>,
    return
  }
  func.func @transform_0(%arg0: i32) -> (i32, i32) {
    %c0_i32 = arith.constant 0 : i32
    %c0_i32_0 = arith.constant 0 : i32
    return %arg0, %c0_i32 : i32, i32
  }
  func.func @transform_1(%arg0: i32) -> (i32, i32) {
    %c0_i32 = arith.constant 0 : i32
    %c0_i32_0 = arith.constant 0 : i32
    %c0_i32_1 = arith.constant 0 : i32
    return %c0_i32, %c0_i32_0 : i32, i32
  }
  func.func @transform_2(%arg0: i32) -> (i32, i32) {
    %c0_i32 = arith.constant 0 : i32
    %c0_i32_0 = arith.constant 0 : i32
    %c0_i32_1 = arith.constant 0 : i32
    return %c0_i32, %c0_i32_0 : i32, i32
  }
  func.func @transform_3(%arg0: i32) -> (i32, i32) {
    %c0_i32 = arith.constant 0 : i32
    %c0_i32_0 = arith.constant 0 : i32
    return %arg0, %c0_i32 : i32, i32
  }
}

module attributes {stable_mosaic.version = 11 : i64} {
  func.func @_bn_stats_kernel(%arg0: i32, %arg1: memref<392x64xf32, #tpu.memory_space<vmem>>, %arg2: memref<8x64xf32, #tpu.memory_space<vmem>>) attributes {dimension_semantics = [#tpu.dimension_semantics<arbitrary>], iteration_bounds = array<i64: 4>, scalar_prefetch = 0 : i64, scratch_operands = 0 : i64, tpu.core_type = #tpu.core_type<tc>, window_params = [{transform_indices = @transform_0, window_bounds = array<i64: 392, 64>}, {pipeline_mode = #tpu.pipeline_mode<synchronous>, transform_indices = @transform_1, window_bounds = array<i64: 8, 64>}]} {
    %c0_i32 = arith.constant 0 : i32
    %0 = arith.cmpi eq, %arg0, %c0_i32 : i32
    %1 = arith.extui %0 : i1 to i32
    %c0_i32_0 = arith.constant 0 : i32
    %2 = arith.cmpi ne, %1, %c0_i32_0 : i32
    scf.if %2 {
      %cst_8 = arith.constant 0.000000e+00 : f32
      %14 = vector.broadcast %cst_8 : f32 to vector<8x64xf32>
      %c0_9 = arith.constant 0 : index
      %c0_10 = arith.constant 0 : index
      %15 = vector.load %arg2[%c0_9, %c0_10] : memref<8x64xf32, #tpu.memory_space<vmem>>, vector<8x64xf32>
      tpu.vector_store %arg2[%c0_9, %c0_10], %14 {strides = array<i32>} : memref<8x64xf32, #tpu.memory_space<vmem>>, vector<8x64xf32>,
    } else {
    }
    %c0 = arith.constant 0 : index
    %c0_1 = arith.constant 0 : index
    %3 = vector.load %arg1[%c0, %c0_1] : memref<392x64xf32, #tpu.memory_space<vmem>>, vector<392x64xf32>
    %cst = arith.constant dense<0.000000e+00> : vector<64xf32>
    %4 = vector.multi_reduction <add>, %3, %cst [0] : vector<392x64xf32> to vector<64xf32>
    %5 = vector.shape_cast %4 : vector<64xf32> to vector<1x64xf32>
    %6 = arith.mulf %3, %3 : vector<392x64xf32>
    %cst_2 = arith.constant dense<0.000000e+00> : vector<64xf32>
    %7 = vector.multi_reduction <add>, %6, %cst_2 [0] : vector<392x64xf32> to vector<64xf32>
    %8 = vector.shape_cast %7 : vector<64xf32> to vector<1x64xf32>
    %cst_3 = arith.constant 0.000000e+00 : f32
    %9 = vector.broadcast %cst_3 : f32 to vector<6x64xf32>
    %10 = tpu.concatenate %5, %8, %9 in 0 : vector<1x64xf32>, vector<1x64xf32>, vector<6x64xf32> -> vector<8x64xf32>
    %c0_4 = arith.constant 0 : index
    %c0_5 = arith.constant 0 : index
    %11 = vector.load %arg2[%c0_4, %c0_5] : memref<8x64xf32, #tpu.memory_space<vmem>>, vector<8x64xf32>
    %12 = arith.addf %11, %10 : vector<8x64xf32>
    %c0_6 = arith.constant 0 : index
    %c0_7 = arith.constant 0 : index
    %13 = vector.load %arg2[%c0_6, %c0_7] : memref<8x64xf32, #tpu.memory_space<vmem>>, vector<8x64xf32>
    tpu.vector_store %arg2[%c0_6, %c0_7], %12 {strides = array<i32>} : memref<8x64xf32, #tpu.memory_space<vmem>>, vector<8x64xf32>,
    return
  }
  func.func @transform_0(%arg0: i32) -> (i32, i32) {
    %c0_i32 = arith.constant 0 : i32
    %c0_i32_0 = arith.constant 0 : i32
    return %arg0, %c0_i32 : i32, i32
  }
  func.func @transform_1(%arg0: i32) -> (i32, i32) {
    %c0_i32 = arith.constant 0 : i32
    %c0_i32_0 = arith.constant 0 : i32
    %c0_i32_1 = arith.constant 0 : i32
    return %c0_i32, %c0_i32_0 : i32, i32
  }
}

module attributes {stable_mosaic.version = 11 : i64} {
  func.func @_bn_apply_kernel(%arg0: i32, %arg1: memref<392x64xf32, #tpu.memory_space<vmem>>, %arg2: memref<8x64xf32, #tpu.memory_space<vmem>>, %arg3: memref<1x64xf32, #tpu.memory_space<vmem>>, %arg4: memref<1x64xf32, #tpu.memory_space<vmem>>, %arg5: memref<392x64xbf16, #tpu.memory_space<vmem>>) attributes {dimension_semantics = [#tpu.dimension_semantics<parallel>], iteration_bounds = array<i64: 4>, scalar_prefetch = 0 : i64, scratch_operands = 0 : i64, tpu.core_type = #tpu.core_type<tc>, window_params = [{transform_indices = @transform_0, window_bounds = array<i64: 392, 64>}, {pipeline_mode = #tpu.pipeline_mode<synchronous>, transform_indices = @transform_1, window_bounds = array<i64: 8, 64>}, {pipeline_mode = #tpu.pipeline_mode<synchronous>, transform_indices = @transform_2, window_bounds = array<i64: 1, 64>}, {pipeline_mode = #tpu.pipeline_mode<synchronous>, transform_indices = @transform_3, window_bounds = array<i64: 1, 64>}, {transform_indices = @transform_4, window_bounds = array<i64: 392, 64>}]} {
    %c0 = arith.constant 0 : index
    %c0_0 = arith.constant 0 : index
    %0 = vector.load %arg2[%c0, %c0_0] : memref<8x64xf32, #tpu.memory_space<vmem>>, vector<1x64xf32>
    %cst = arith.constant 6.37755089E-4 : f32
    %1 = vector.broadcast %cst : f32 to vector<1x64xf32>
    %2 = arith.mulf %0, %1 : vector<1x64xf32>
    %c1 = arith.constant 1 : index
    %c0_1 = arith.constant 0 : index
    %3 = vector.load %arg2[%c1, %c0_1] : memref<8x64xf32, #tpu.memory_space<vmem>>, vector<1x64xf32>
    %cst_2 = arith.constant 6.37755089E-4 : f32
    %4 = vector.broadcast %cst_2 : f32 to vector<1x64xf32>
    %5 = arith.mulf %3, %4 : vector<1x64xf32>
    %6 = arith.mulf %2, %2 : vector<1x64xf32>
    %7 = arith.subf %5, %6 : vector<1x64xf32>
    %c0_3 = arith.constant 0 : index
    %c0_4 = arith.constant 0 : index
    %8 = vector.load %arg3[%c0_3, %c0_4] : memref<1x64xf32, #tpu.memory_space<vmem>>, vector<1x64xf32>
    %cst_5 = arith.constant 9.99999974E-6 : f32
    %9 = vector.broadcast %cst_5 : f32 to vector<1x64xf32>
    %10 = arith.addf %7, %9 : vector<1x64xf32>
    %11 = math.rsqrt %10 : vector<1x64xf32>
    %12 = arith.mulf %8, %11 : vector<1x64xf32>
    %c0_6 = arith.constant 0 : index
    %c0_7 = arith.constant 0 : index
    %13 = vector.load %arg4[%c0_6, %c0_7] : memref<1x64xf32, #tpu.memory_space<vmem>>, vector<1x64xf32>
    %14 = arith.mulf %2, %12 : vector<1x64xf32>
    %15 = arith.subf %13, %14 : vector<1x64xf32>
    %c0_8 = arith.constant 0 : index
    %c0_9 = arith.constant 0 : index
    %16 = vector.load %arg1[%c0_8, %c0_9] : memref<392x64xf32, #tpu.memory_space<vmem>>, vector<392x64xf32>
    %17 = vector.broadcast %12 : vector<1x64xf32> to vector<392x64xf32>
    %18 = arith.mulf %16, %17 : vector<392x64xf32>
    %19 = vector.broadcast %15 : vector<1x64xf32> to vector<392x64xf32>
    %20 = arith.addf %18, %19 : vector<392x64xf32>
    %cst_10 = arith.constant 0.000000e+00 : f32
    %21 = vector.broadcast %cst_10 : f32 to vector<392x64xf32>
    %22 = arith.maximumf %20, %21 : vector<392x64xf32>
    %23 = arith.truncf %22 : vector<392x64xf32> to vector<392x64xbf16>
    %c0_11 = arith.constant 0 : index
    %c0_12 = arith.constant 0 : index
    %24 = vector.load %arg5[%c0_11, %c0_12] : memref<392x64xbf16, #tpu.memory_space<vmem>>, vector<392x64xbf16>
    tpu.vector_store %arg5[%c0_11, %c0_12], %23 {strides = array<i32>} : memref<392x64xbf16, #tpu.memory_space<vmem>>, vector<392x64xbf16>,
    return
  }
  func.func @transform_0(%arg0: i32) -> (i32, i32) {
    %c0_i32 = arith.constant 0 : i32
    %c0_i32_0 = arith.constant 0 : i32
    return %arg0, %c0_i32 : i32, i32
  }
  func.func @transform_1(%arg0: i32) -> (i32, i32) {
    %c0_i32 = arith.constant 0 : i32
    %c0_i32_0 = arith.constant 0 : i32
    %c0_i32_1 = arith.constant 0 : i32
    return %c0_i32, %c0_i32_0 : i32, i32
  }
  func.func @transform_2(%arg0: i32) -> (i32, i32) {
    %c0_i32 = arith.constant 0 : i32
    %c0_i32_0 = arith.constant 0 : i32
    %c0_i32_1 = arith.constant 0 : i32
    return %c0_i32, %c0_i32_0 : i32, i32
  }
  func.func @transform_3(%arg0: i32) -> (i32, i32) {
    %c0_i32 = arith.constant 0 : i32
    %c0_i32_0 = arith.constant 0 : i32
    %c0_i32_1 = arith.constant 0 : i32
    return %c0_i32, %c0_i32_0 : i32, i32
  }
  func.func @transform_4(%arg0: i32) -> (i32, i32) {
    %c0_i32 = arith.constant 0 : i32
    %c0_i32_0 = arith.constant 0 : i32
    return %arg0, %c0_i32 : i32, i32
  }
}

module attributes {stable_mosaic.version = 11 : i64} {
  func.func @_matmul_bias_kernel(%arg0: i32, %arg1: memref<392x3136xbf16, #tpu.memory_space<vmem>>, %arg2: memref<3136x128xbf16, #tpu.memory_space<vmem>>, %arg3: memref<1x128xf32, #tpu.memory_space<vmem>>, %arg4: memref<392x128xf32, #tpu.memory_space<vmem>>) attributes {dimension_semantics = [#tpu.dimension_semantics<parallel>], iteration_bounds = array<i64: 4>, scalar_prefetch = 0 : i64, scratch_operands = 0 : i64, tpu.core_type = #tpu.core_type<tc>, window_params = [{transform_indices = @transform_0, window_bounds = array<i64: 392, 3136>}, {pipeline_mode = #tpu.pipeline_mode<synchronous>, transform_indices = @transform_1, window_bounds = array<i64: 3136, 128>}, {pipeline_mode = #tpu.pipeline_mode<synchronous>, transform_indices = @transform_2, window_bounds = array<i64: 1, 128>}, {transform_indices = @transform_3, window_bounds = array<i64: 392, 128>}]} {
    %c0 = arith.constant 0 : index
    %c0_0 = arith.constant 0 : index
    %0 = vector.load %arg1[%c0, %c0_0] : memref<392x3136xbf16, #tpu.memory_space<vmem>>, vector<392x3136xbf16>
    %c0_1 = arith.constant 0 : index
    %c0_2 = arith.constant 0 : index
    %1 = vector.load %arg2[%c0_1, %c0_2] : memref<3136x128xbf16, #tpu.memory_space<vmem>>, vector<3136x128xbf16>
    %cst = arith.constant dense<0.000000e+00> : vector<392x128xf32>
    %2 = tpu.matmul %0, %1, %cst {dimension_numbers = #tpu.dot_dimension_numbers<[1], [0], [0], [1], [0, 0, 1, 1], [], []>} : vector<392x3136xbf16>, vector<3136x128xbf16>, vector<392x128xf32> -> vector<392x128xf32>
    %c0_3 = arith.constant 0 : index
    %c0_4 = arith.constant 0 : index
    %3 = vector.load %arg3[%c0_3, %c0_4] : memref<1x128xf32, #tpu.memory_space<vmem>>, vector<1x128xf32>
    %4 = vector.broadcast %3 : vector<1x128xf32> to vector<392x128xf32>
    %5 = arith.addf %2, %4 : vector<392x128xf32>
    %6 = math.tanh %5 : vector<392x128xf32>
    %c0_5 = arith.constant 0 : index
    %c0_6 = arith.constant 0 : index
    %7 = vector.load %arg4[%c0_5, %c0_6] : memref<392x128xf32, #tpu.memory_space<vmem>>, vector<392x128xf32>
    tpu.vector_store %arg4[%c0_5, %c0_6], %6 {strides = array<i32>} : memref<392x128xf32, #tpu.memory_space<vmem>>, vector<392x128xf32>,
    return
  }
  func.func @transform_0(%arg0: i32) -> (i32, i32) {
    %c0_i32 = arith.constant 0 : i32
    %c0_i32_0 = arith.constant 0 : i32
    return %arg0, %c0_i32 : i32, i32
  }
  func.func @transform_1(%arg0: i32) -> (i32, i32) {
    %c0_i32 = arith.constant 0 : i32
    %c0_i32_0 = arith.constant 0 : i32
    %c0_i32_1 = arith.constant 0 : i32
    return %c0_i32, %c0_i32_0 : i32, i32
  }
  func.func @transform_2(%arg0: i32) -> (i32, i32) {
    %c0_i32 = arith.constant 0 : i32
    %c0_i32_0 = arith.constant 0 : i32
    %c0_i32_1 = arith.constant 0 : i32
    return %c0_i32, %c0_i32_0 : i32, i32
  }
  func.func @transform_3(%arg0: i32) -> (i32, i32) {
    %c0_i32 = arith.constant 0 : i32
    %c0_i32_0 = arith.constant 0 : i32
    return %arg0, %c0_i32 : i32, i32
  }
}

</mosaic_0001>

<bundles_post_ra>
// kernel: generator_forward.11
= control target key start
LH: loop header
LB: loop body
LE: loop exit
PB: predicated region body
PF: predicated region fallthrough
CT: control target
= control target key end

     0   :  { %s218_s6 = smov 0   ;;  %s241_s0 = inlined_call_operand.vmem [shape: f32[112,128], index: 0, kind: input, shape index: {}]   ;;  %s242_s1 = inlined_call_operand.vmem [shape: f32[8,128], index: 1, kind: output, shape index: {}]  }
   0x1 LB: > { %s182_s7 = sadd.s32 4294967295, %s205_s6   ;;  %p185_p0 = scmp.ge.s32.totalorder %s205_s6, 1  ;;  %s205_s6 = sphi %s218_s6, %s11_s6  }
   0x2   : > { %p83_p1 = scmp.lt.s32.totalorder %s205_s6, 3 }
   0x4   : > { %p84_p2 = pnand %p185_p0, %p83_p1 }
   0x5   : > { %s98_s8 = smul.u32 (!%p84_p2), 7, %s182_s7  ;;  %p187_p4 = scmp.ne.s32.totalorder (!%p84_p2), %s182_s7, 0 }
   0x6   : > { %87 = sbr.rel (%p84_p2) target bundleno = 52 (0x34), region = 24 }
   0x7   : > { %p99_p3 = scmp.lt.s32.totalorder (!%p84_p2), %s98_s8, 13 }
   0xd   : > { %s244_s8 = smov (!%p99_p3, %s98_s8), 13  ;;  %107 = sbr.rel (%p187_p4) target bundleno = 20 (0x14), region = 28 }
   0xe   : > { %s186_s9 = sshll.u32 %s244_s8, 3  ;;  %v207_v0 = vmov (!%p187_p4), 0.0  }
   0xf   : > { %s102_s12 = scalar_lea.vmem %s241_s0, %s186_s9  ;;  %108 = vst [vmem:[%s242_s1] sm:$0xff] (!%p187_p4), %v207_v0 }
  0x14 PF: > { %v109_v1 = vld [vmem:[%s102_s12] sm:$0xff]  ;;  %v110_v2 = vld [vmem:[%s102_s12 + $0x8] sm:$0xff]  ;;  %v111_v3 = vld [vmem:[%s102_s12 + $0x10] sm:$0xff]  ;;  %vm147_vm0 = vcmask 1040384   ;;  %vm149_vm1 = vcmask 1041408  }
  0x15   : > { %v112_v4 = vld [vmem:[%s102_s12 + $0x18] sm:$0xff]  ;;  %v116_v5 = vadd.f32 %v110_v2, %v109_v1  ;;  %v128_v6 = vmul.f32 %v109_v1, %v109_v1  ;;  %v129_v7 = vmul.f32 %v110_v2, %v110_v2  ;;  %v130_v8 = vmul.f32 %v111_v3, %v111_v3  ;;  %v113_v9 = vld [vmem:[%s102_s12 + $0x20] sm:$0xff]  ;;  %v114_v13 = vld [vmem:[%s102_s12 + $0x28] sm:$0xff] }
  0x16   : > { %v131_v11 = vmul.f32 %v112_v4, %v112_v4  ;;  %v132_v15 = vmul.f32 %v113_v9, %v113_v9  ;;  %v115_v17 = vld [vmem:[%s102_s12 + $0x30] sm:$0xff]  ;;  %v133_v19 = vmul.f32 %v114_v13, %v114_v13  ;;  %v151_v39 = vld [vmem:[%s242_s1] sm:$0xff] }
  0x17   : > { %v117_v10 = vadd.f32 %v116_v5, %v111_v3  ;;  %v135_v12 = vadd.f32 %v129_v7, %v128_v6  ;;  %v134_v22 = vmul.f32 %v115_v17, %v115_v17 }
  0x19   : > { %v118_v14 = vadd.f32 %v117_v10, %v112_v4  ;;  %v136_v16 = vadd.f32 %v135_v12, %v130_v8 }
  0x1b   : > { %v119_v18 = vadd.f32 %v118_v14, %v113_v9  ;;  %v137_v20 = vadd.f32 %v136_v16, %v131_v11 }
  0x1d   : > { %v120_v21 = vadd.f32 %v119_v18, %v114_v13  ;;  %v138_v23 = vadd.f32 %v137_v20, %v132_v15 }
  0x1f   : > { %v121_v24 = vadd.f32 %v120_v21, %v115_v17  ;;  %v139_v25 = vadd.f32 %v138_v23, %v133_v19 }
  0x21   : > { %v122_v26 = vrot.slane %v121_v24, 4  ;;  %v140_v27 = vadd.f32 %v139_v25, %v134_v22 }
  0x23   : > { %v123_v28 = vadd.f32 %v122_v26, %v121_v24  ;;  %v141_v29 = vrot.slane %v140_v27, 4 }
  0x25   : > { %v124_v30 = vrot.slane %v123_v28, 2  ;;  %v142_v31 = vadd.f32 %v141_v29, %v140_v27 }
  0x27   : > { %v125_v32 = vadd.f32 %v124_v30, %v123_v28  ;;  %v143_v33 = vrot.slane %v142_v31, 2 }
  0x29   : > { %v126_v34 = vrot.slane %v125_v32, 1  ;;  %v144_v35 = vadd.f32 %v143_v33, %v142_v31 }
  0x2b   : > { %v127_v36 = vadd.f32 %v126_v34, %v125_v32  ;;  %v145_v37 = vrot.slane %v144_v35, 1 }
  0x2d   : > { %v146_v38 = vadd.f32 %v145_v37, %v144_v35 }
  0x2f   : > { %v148_v40 = vsel %vm147_vm0, %v127_v36, %v146_v38 }
  0x30   : > { %v150_v41 = vsel %vm149_vm1, %v148_v40, 0.0 }
  0x31   : > { %v152_v42 = vadd.f32 %v151_v39, %v150_v41 }
  0x33   : > { %153 = vst [vmem:[%s242_s1] sm:$0xff] %v152_v42 }
  0x34 PF: > { %s11_s6 = sadd.s32 1, %s205_s6  }
  0x35   : > { %p8_p5 = scmp.ge.s32.totalorder %s11_s6, 4  }
  0x37   :  { %10 = sbr.rel (!%p8_p5) target bundleno = 1 (0x1), region = 54 }

// kernel: generator_forward.12
= control target key start
LH: loop header
LB: loop body
LE: loop exit
PB: predicated region body
PF: predicated region fallthrough
CT: control target
= control target key end

     0   :  { %9 = vsyncpa [#allocation3], 0  ;;  %s668_s0 = inlined_call_operand.vmem [shape: f32[112,128], index: 0, kind: input, shape index: {}]   ;;  %s669_s1 = inlined_call_operand.vmem [shape: f32[8,128], index: 1, kind: input, shape index: {}]   ;;  %s670_s2 = inlined_call_operand.hbm [shape: f32[1,128], index: 2, kind: input, shape index: {}]   ;;  %s671_s3 = inlined_call_operand.hbm [shape: f32[1,128], index: 3, kind: input, shape index: {}]   ;;  %s672_s4 = inlined_call_operand.vmem [shape: bf16[112,128], index: 4, kind: output, shape index: {}]  }
   0x1   :  { %10 = vsyncpa [#allocation5], 0  ;;  %s561_s15 = smov 0  }
   0x2 LB: > { %s387_s16 = sadd.s32 4294967295, %s532_s15   ;;  %p389_p0 = scmp.ge.s32.totalorder %s532_s15, 1  ;;  %s532_s15 = sphi %s561_s15, %s16_s15  }
   0x3   : > { %p136_p1 = scmp.lt.s32.totalorder %s532_s15, 3  ;;  %p571_p2 = scmp.eq.s32.totalorder %s387_s16, 0 }
   0x4   : > { %s534_s19 = smov [#allocation2]   ;;  %s535_s21 = smov [#allocation4]  }
   0x5   : > { %s676_s17 = scalar_select %p571_p2, 1, 0 }
   0x6   : > { %p575_p3 = pnand %p389_p0, %p136_p1  ;;  %s152_s20 = sshll.u32 %s534_s19, 4  ;;  %s153_s20 = int_to_ptr.vmem [resolvable:$true] %s152_s20 }
   0x7   : > { %s163_s22 = sshll.u32 %s535_s21, 4  ;;  %s462_s26 = scalar_lea.hbm %s670_s2, 16  ;;  %s587_s22 = int_to_ptr.vmem [resolvable:$true] %s163_s22 }
   0x8   : > { %s677_s18 = scalar_select %p575_p3, 1, 0 }
   0x9   : > { %p439_p4 = pneg %p575_p3  ;;  %p463_p6 = scmp.ne.s32.totalorder %s670_s2, %s462_s26 }
   0xa   : > { %p469_p10 = scmp.lt.u32.totalorder %s462_s26, %s670_s2 }
   0xb   : > { %p583_p5 = pnand %p571_p2, %p439_p4 }
   0xd   : > { %p464_p7 = pneg %p583_p5 }
   0xf   : > { %p465_p8 = pnand %p464_p7, %p463_p6 }
  0x11   : > { %p466_p9 = pneg %p465_p8 }
  0x13   : > { %p471_p11 = pnand %p469_p10, %p466_p9 }
  0x15   : > { %474 = shalt.err (!%p471_p11)
}
  0x16   : > { %s475_s5 = scalar_lea.vmem %s153_s20, 16  ;;  %s482_s6 = scalar_lea.vmem %s153_s20, 32 }
  0x17   : > { %p476_p12 = scmp.ne.s32.totalorder %s153_s20, %s475_s5  ;;  %p483_p1 = scmp.lt.s32.totalorder %s153_s20, %s153_s20 }
  0x18   : > { %p484_p4 = scmp.lt.s32.totalorder %s482_s6, %s475_s5 }
  0x19   : > { %p478_p13 = pnand %p476_p12, %p464_p7 }
  0x1a   : > { %p485_p2 = por %p484_p4, %p483_p1 }
  0x1b   : > { %p479_p0 = pneg %p478_p13 }
  0x1d   : > { %p486_p3 = pnand %p485_p2, %p479_p0 }
  0x1f   : > { %489 = shalt.err (!%p486_p3)
}
  0x20   : > { %442 = dma.hbm_to_vmem [thread:$0]  (!%p583_p5), %s670_s2, 16, %s153_s20, [#allocation3]  }
  0x21   : > { %s490_s11 = scalar_lea.hbm %s671_s3, 16 }
  0x22   : > { %p491_p6 = scmp.ne.s32.totalorder %s671_s3, %s490_s11  ;;  %p497_p3 = scmp.lt.u32.totalorder %s490_s11, %s671_s3 }
  0x24   : > { %p493_p8 = pnand %p491_p6, %p464_p7 }
  0x26   : > { %p494_p2 = pneg %p493_p8 }
  0x28   : > { %p499_p9 = pnand %p497_p3, %p494_p2 }
  0x2a   : > { %502 = shalt.err (!%p499_p9)
}
  0x2b   : > { %s503_s20 = scalar_lea.vmem %s587_s22, 16  ;;  %s510_s21 = scalar_lea.vmem %s587_s22, 32 }
  0x2c   : > { %p504_p10 = scmp.ne.s32.totalorder %s587_s22, %s503_s20  ;;  %p511_p13 = scmp.lt.s32.totalorder %s587_s22, %s587_s22 }
  0x2d   : > { %p512_p0 = scmp.lt.s32.totalorder %s510_s21, %s503_s20 }
  0x2e   : > { %p506_p11 = pnand %p504_p10, %p464_p7 }
  0x2f   : > { %p513_p1 = por %p512_p0, %p511_p13 }
  0x30   : > { %p507_p12 = pneg %p506_p11 }
  0x32   : > { %p514_p4 = pnand %p513_p1, %p507_p12 }
  0x34   : > { %517 = shalt.err (!%p514_p4)
}
  0x35   : > { %445 = dma.hbm_to_vmem [thread:$0]  (!%p583_p5), %s671_s3, 16, %s587_s22, [#allocation5]  }
  0x36   : > { %p679_p6 = scmp.ne.s32.totalorder %s677_s18, 0 }
  0x37   : > { %p680_p7 = scmp.ne.s32.totalorder (!%p679_p6), %s676_s17, 0 }
  0x38   : > { %185 = sbr.rel (%p679_p6) target bundleno = 100 (0x64), region = 36 }
  0x3f   : > { %523 = dma.done.wait (%p680_p7), [#allocation3], 16  }
  0x40   : > { %525 = vsyncadd (%p680_p7), [#allocation3], 4294967280 }
  0x41   : > { %527 = dma.done.wait (%p680_p7), [#allocation5], 16  }
  0x42   : > { %529 = vsyncadd (%p680_p7), [#allocation5], 4294967280  ;;  %v227_v0 = vld [vmem:[%s669_s1] sm:$0x1]  ;;  %v229_v1 = vld [vmem:[%s669_s1 + $0x1] sm:$0x1]  ;;  %v248_v7 = vlaneseq }
  0x43   : > { %v228_v2 = vmul.f32 0.010204081, %v227_v0  ;;  %v230_v3 = vmul.f32 0.010204081, %v229_v1  ;;  %s215_s27 = smul.u32 7, %s387_s16 }
  0x44   : > { %v249_v8 = vshrl.u32 %v248_v7, 7  ;;  %v233_v9 = vld [vmem:[#allocation2] sm:$0x1]  ;;  %v237_v13 = vld [vmem:[#allocation4] sm:$0x1] }
  0x45   : > { %v231_v4 = vmul.f32 %v228_v2, %v228_v2  ;;  %p216_p5 = scmp.lt.s32.totalorder %s215_s27, 13 }
  0x46   : > { %v250_v10 = vsub.s32 0, %v249_v8 }
  0x47   : > { %v232_v5 = vsub.f32 %v230_v3, %v231_v4  ;;  %s682_s27 = smov (!%p216_p5, %s215_s27), 13 }
  0x48   : > { %s396_s17 = sshll.u32 %s682_s27, 3  ;;  %s397_s16 = sshll.u32 %s682_s27, 2 }
  0x49   : > { %v234_v6 = vadd.f32 1e-05, %v232_v5  ;;  %s219_s30 = scalar_lea.vmem %s668_s0, %s396_s17  ;;  %s225_s7 = scalar_lea.vmem %s672_s4, %s397_s16 }
  0x4a   : > { %v240_v14 = vld [vmem:[%s219_s30] sm:$0xff]  ;;  %v241_v15 = vld [vmem:[%s219_s30 + $0x8] sm:$0xff]  ;;  %v242_v16 = vld [vmem:[%s219_s30 + $0x10] sm:$0xff] }
  0x4b   : > { %460 = vrsqrt.f32 %v234_v6  ;;  %v243_v17 = vld [vmem:[%s219_s30 + $0x18] sm:$0xff]  ;;  %v244_v20 = vld [vmem:[%s219_s30 + $0x20] sm:$0xff]  ;;  %v245_v21 = vld [vmem:[%s219_s30 + $0x28] sm:$0xff] }
  0x4c   : > { %v246_v22 = vld [vmem:[%s219_s30 + $0x30] sm:$0xff] }
  0x55   : > { %v461_v11 = vpop.eup %460 }
  0x56   : > { %v236_v12 = vmul.f32 %v461_v11, %v233_v9 }
  0x58   : > { %v238_v18 = vmul.f32 %v236_v12, %v228_v2  ;;  %v251_v19 = vrot.slane %v236_v12, %v250_v10 }
  0x5a   : > { %v239_v23 = vsub.f32 %v237_v13, %v238_v18  ;;  %v253_v24 = vmul.f32 %v251_v19, %v240_v14  ;;  %v254_v25 = vmul.f32 %v251_v19, %v241_v15  ;;  %v255_v26 = vmul.f32 %v251_v19, %v242_v16 }
  0x5b   : > { %v256_v27 = vmul.f32 %v251_v19, %v243_v17  ;;  %v257_v28 = vmul.f32 %v251_v19, %v244_v20  ;;  %v258_v29 = vmul.f32 %v251_v19, %v245_v21  ;;  %v259_v30 = vmul.f32 %v251_v19, %v246_v22 }
  0x5c   : > { %v264_v31 = vrot.slane %v239_v23, %v250_v10 }
  0x5e   : > { %v266_v32 = vadd.f32 %v264_v31, %v253_v24  ;;  %v267_v33 = vadd.f32 %v264_v31, %v254_v25  ;;  %v268_v34 = vadd.f32 %v264_v31, %v255_v26  ;;  %v269_v35 = vadd.f32 %v264_v31, %v256_v27 }
  0x5f   : > { %v270_v36 = vadd.f32 %v264_v31, %v257_v28  ;;  %v271_v37 = vadd.f32 %v264_v31, %v258_v29  ;;  %v272_v38 = vadd.f32 %v264_v31, %v259_v30 }
  0x60   : > { %v417_v39 = vpack.c.bf16 %v267_v33, %v266_v32  ;;  %v422_v40 = vpack.c.bf16 %v269_v35, %v268_v34 }
  0x61   : > { %v427_v41 = vpack.c.bf16 %v271_v37, %v270_v36  ;;  %v413_v42 = vpack.c.bf16 %v272_v38, %v272_v38 }
  0x62   : > { %418 = vst [vmem:[%s225_s7] sm:$0xff] %v417_v39   ;;  %429 = vst [vmem:[%s225_s7 + $0x8] sm:$0xff] %v422_v40  }
  0x63   : > { %430 = vst [vmem:[%s225_s7 + $0x10] sm:$0xff] %v427_v41   ;;  %308 = vst [vmem:[%s225_s7 + $0x18] sm:$0xf] %v413_v42 }
  0x64 PF: > { %s16_s15 = sadd.s32 1, %s532_s15  }
  0x65   : > { %p13_p8 = scmp.ge.s32.totalorder %s16_s15, 4  }
  0x67   :  { %15 = sbr.rel (!%p13_p8) target bundleno = 2 (0x2), region = 75 }
  0x6e   :  { %331 = vsyncpa [#allocation3], 1 }
  0x6f   :  { %333 = vsyncpa [#allocation3 + $0x1], 1 }
  0x70   :  { %334 = vsyncpa [#allocation5], 1 }

// kernel: generator_forward.10
= control target key start
LH: loop header
LB: loop body
LE: loop exit
PB: predicated region body
PF: predicated region fallthrough
CT: control target
= control target key end

     0   :  { %v2232_v1 = vmov 0   ;;  %vm867_vm0 = vcmask 261120   ;;  %vm2234_vm1 = vmmov 0   ;;  %s2860_s1 = inlined_call_operand.vmem [shape: bf16[32,6272], index: 1, kind: input, shape index: {}]   ;;  %s2861_s0 = inlined_call_operand.vmem [shape: bf16[8,32], index: 0, kind: input, shape index: {}]   ;;  %s2862_s2 = inlined_call_operand.vmem [shape: f32[1,6272], index: 2, kind: input, shape index: {}]   ;;  %s2863_s3 = inlined_call_operand.vmem [shape: f32[8,6272], index: 3, kind: output, shape index: {}]  }
   0x1   :  { %v2086_v0 = vld [vmem:[%s2860_s1 + $0x4] ss:$196 sps:$4 sm:$0xff]   ;;  %903 = vmatprep.mubr.bf16.mxu0 %v2232_v1  ;;  %944 = vmatprep.mubr.bf16.mxu1 %v2232_v1  ;;  %v2089_v3 = vld [vmem:[%s2860_s1 + $0x18c] ss:$196 sps:$4 sm:$0xff]   ;;  %v2278_v7 = vld [vmem:[%s2861_s0] sm:$0xf] }
   0x2   :  { %v2088_v2 = vld [vmem:[%s2860_s1] ss:$196 sps:$4 sm:$0xff]   ;;  %871 = vmatprep.subr.bf16.mxu0 %v2086_v0  ;;  %v2091_v4 = vld [vmem:[%s2860_s1 + $0x188] ss:$196 sps:$4 sm:$0xff]   ;;  %v2097_v8 = vld [vmem:[%s2860_s1 + $0x14] ss:$196 sps:$4 sm:$0xff]  }
   0x3   :  { %872 = vmatpush1.bf16.msra.mxu0 %v2088_v2  ;;  %v2092_v5 = vld [vmem:[%s2860_s1 + $0xc] ss:$196 sps:$4 sm:$0xff]   ;;  %v2098_v9 = vld [vmem:[%s2860_s1 + $0x194] ss:$196 sps:$4 sm:$0xff]   ;;  %v2103_v12 = vld [vmem:[%s2860_s1 + $0x19c] ss:$196 sps:$4 sm:$0xff]  }
   0x4   :  { %v2094_v6 = vld [vmem:[%s2860_s1 + $0x8] ss:$196 sps:$4 sm:$0xff]   ;;  %873 = vmatprep.subr.bf16.mxu0 %v2089_v3  ;;  %912 = vmatprep.subr.bf16.mxu1 %v2092_v5  ;;  %v2100_v10 = vld [vmem:[%s2860_s1 + $0x190] ss:$196 sps:$4 sm:$0xff]   ;;  %v2106_v13 = vld [vmem:[%s2860_s1 + $0x1c] ss:$196 sps:$4 sm:$0xff]  }
   0x5   :  { %913 = vmatpush1.bf16.msra.mxu1 %v2094_v6  ;;  %v2095_v11 = vld [vmem:[%s2860_s1 + $0x10] ss:$196 sps:$4 sm:$0xff]   ;;  %v2101_v14 = vld [vmem:[%s2860_s1 + $0x198] ss:$196 sps:$4 sm:$0xff]   ;;  %v2109_v16 = vld [vmem:[%s2860_s1 + $0x24] ss:$196 sps:$4 sm:$0xff]  }
   0x6   :  { %914 = vmatprep.subr.bf16.mxu1 %v2098_v9  ;;  %v2104_v15 = vld [vmem:[%s2860_s1 + $0x18] ss:$196 sps:$4 sm:$0xff]   ;;  %v2112_v17 = vld [vmem:[%s2860_s1 + $0x1a4] ss:$196 sps:$4 sm:$0xff]   ;;  %v2118_v20 = vld [vmem:[%s2860_s1 + $0x2c] ss:$196 sps:$4 sm:$0xff]  }
   0x7   :  { %874 = vmatpush1.bf16.msra.mxu0 %v2091_v4  ;;  %v2107_v18 = vld [vmem:[%s2860_s1 + $0x20] ss:$196 sps:$4 sm:$0xff]   ;;  %v2115_v21 = vld [vmem:[%s2860_s1 + $0x1ac] ss:$196 sps:$4 sm:$0xff]   ;;  %v2124_v24 = vld [vmem:[%s2860_s1 + $0x1b4] ss:$196 sps:$4 sm:$0xff]  }
   0x8   :  { %953 = vmatprep.subr.bf16.mxu0 %v2097_v8  ;;  %v2110_v19 = vld [vmem:[%s2860_s1 + $0x1a0] ss:$196 sps:$4 sm:$0xff]   ;;  %v2113_v22 = vld [vmem:[%s2860_s1 + $0x1a8] ss:$196 sps:$4 sm:$0xff]   ;;  %v2121_v25 = vld [vmem:[%s2860_s1 + $0x34] ss:$196 sps:$4 sm:$0xff]  }
   0x9   :  { %915 = vmatpush1.bf16.msra.mxu1 %v2100_v10  ;;  %v2116_v23 = vld [vmem:[%s2860_s1 + $0x28] ss:$196 sps:$4 sm:$0xff]   ;;  %v2119_v26 = vld [vmem:[%s2860_s1 + $0x30] ss:$196 sps:$4 sm:$0xff]   ;;  %v2130_v28 = vld [vmem:[%s2860_s1 + $0x3c] ss:$196 sps:$4 sm:$0xff]  }
   0xa   :  { %2047 = vmatmul.mubr.msk.bf16.vlgmr.msra.gmra.mrb[0].mxu0 %vm867_vm0, %v2278_v7  ;;  %994 = vmatprep.subr.bf16.mxu1 %v2106_v13  ;;  %v2122_v27 = vld [vmem:[%s2860_s1 + $0x1b0] ss:$196 sps:$4 sm:$0xff]   ;;  %v2127_v29 = vld [vmem:[%s2860_s1 + $0x1bc] ss:$196 sps:$4 sm:$0xff]   ;;  %v2136_v32 = vld [vmem:[%s2860_s1 + $0x1c4] ss:$196 sps:$4 sm:$0xff]  }
   0xb   :  { %954 = vmatpush1.bf16.msra.mxu0 %v2095_v11  ;;  %985 = vmatprep.mubr.bf16.mxu0 %v2232_v1  ;;  %v2125_v30 = vld [vmem:[%s2860_s1 + $0x1b8] ss:$196 sps:$4 sm:$0xff]   ;;  %v2133_v33 = vld [vmem:[%s2860_s1 + $0x44] ss:$196 sps:$4 sm:$0xff]   ;;  %v2142_v36 = vld [vmem:[%s2860_s1 + $0x4c] ss:$196 sps:$4 sm:$0xff]  }
   0xc   :  { %955 = vmatprep.subr.bf16.mxu0 %v2103_v12  ;;  %2048 = vmatmul.mubr.msk.bf16.vlgmr.msra.gmra.mrb[0].mxu1 %vm867_vm0, %v2278_v7  ;;  %v2128_v31 = vld [vmem:[%s2860_s1 + $0x38] ss:$196 sps:$4 sm:$0xff]   ;;  %v2131_v34 = vld [vmem:[%s2860_s1 + $0x40] ss:$196 sps:$4 sm:$0xff]   ;;  %v2139_v37 = vld [vmem:[%s2860_s1 + $0x1cc] ss:$196 sps:$4 sm:$0xff]  }
   0xd   :  { %995 = vmatpush1.bf16.msra.mxu1 %v2104_v15  ;;  %1026 = vmatprep.mubr.bf16.mxu1 %v2232_v1  ;;  %v2134_v35 = vld [vmem:[%s2860_s1 + $0x1c0] ss:$196 sps:$4 sm:$0xff]   ;;  %v2137_v38 = vld [vmem:[%s2860_s1 + $0x1c8] ss:$196 sps:$4 sm:$0xff]   ;;  %v2148_v40 = vld [vmem:[%s2860_s1 + $0x1d4] ss:$196 sps:$4 sm:$0xff]  }
   0xe   :  { %996 = vmatprep.subr.bf16.mxu1 %v2112_v17  ;;  %v2140_v39 = vld [vmem:[%s2860_s1 + $0x48] ss:$196 sps:$4 sm:$0xff]   ;;  %v2145_v41 = vld [vmem:[%s2860_s1 + $0x54] ss:$196 sps:$4 sm:$0xff]   ;;  %v2154_v44 = vld [vmem:[%s2860_s1 + $0x5c] ss:$196 sps:$4 sm:$0xff]  }
   0xf   :  { %956 = vmatpush1.bf16.msra.mxu0 %v2101_v14  ;;  %v2143_v42 = vld [vmem:[%s2860_s1 + $0x50] ss:$196 sps:$4 sm:$0xff]   ;;  %v2151_v45 = vld [vmem:[%s2860_s1 + $0x1dc] ss:$196 sps:$4 sm:$0xff]   ;;  %v2160_v48 = vld [vmem:[%s2860_s1 + $0x1e4] ss:$196 sps:$4 sm:$0xff]  }
  0x10   :  { %1035 = vmatprep.subr.bf16.mxu0 %v2109_v16  ;;  %v2146_v43 = vld [vmem:[%s2860_s1 + $0x1d0] ss:$196 sps:$4 sm:$0xff]   ;;  %v2149_v46 = vld [vmem:[%s2860_s1 + $0x1d8] ss:$196 sps:$4 sm:$0xff]   ;;  %v2157_v49 = vld [vmem:[%s2860_s1 + $0x64] ss:$196 sps:$4 sm:$0xff]  }
  0x11   :  { %997 = vmatpush1.bf16.msra.mxu1 %v2110_v19  ;;  %v2152_v47 = vld [vmem:[%s2860_s1 + $0x58] ss:$196 sps:$4 sm:$0xff]   ;;  %v2155_v50 = vld [vmem:[%s2860_s1 + $0x60] ss:$196 sps:$4 sm:$0xff]   ;;  %v2166_v52 = vld [vmem:[%s2860_s1 + $0x6c] ss:$196 sps:$4 sm:$0xff]  }
  0x12   :  { %2049 = vmatmul.mubr.msk.bf16.vlgmr.msra.gmra.mrb[4].mxu0 %vm867_vm0, %v2278_v7  ;;  %1076 = vmatprep.subr.bf16.mxu1 %v2118_v20  ;;  %v2158_v51 = vld [vmem:[%s2860_s1 + $0x1e0] ss:$196 sps:$4 sm:$0xff]   ;;  %v2163_v53 = vld [vmem:[%s2860_s1 + $0x1ec] ss:$196 sps:$4 sm:$0xff]   ;;  %v2172_v56 = vld [vmem:[%s2860_s1 + $0x1f4] ss:$196 sps:$4 sm:$0xff]  }
  0x13   :  { %1036 = vmatpush1.bf16.msra.mxu0 %v2107_v18  ;;  %1067 = vmatprep.mubr.bf16.mxu0 %v2232_v1  ;;  %v2161_v54 = vld [vmem:[%s2860_s1 + $0x1e8] ss:$196 sps:$4 sm:$0xff]   ;;  %v2169_v57 = vld [vmem:[%s2860_s1 + $0x74] ss:$196 sps:$4 sm:$0xff]   ;;  %v2178_v60 = vld [vmem:[%s2860_s1 + $0x7c] ss:$196 sps:$4 sm:$0xff]  }
  0x14   :  { %1037 = vmatprep.subr.bf16.mxu0 %v2115_v21  ;;  %2050 = vmatmul.mubr.msk.bf16.vlgmr.msra.gmra.mrb[4].mxu1 %vm867_vm0, %v2278_v7  ;;  %v2164_v55 = vld [vmem:[%s2860_s1 + $0x68] ss:$196 sps:$4 sm:$0xff]   ;;  %v2167_v58 = vld [vmem:[%s2860_s1 + $0x70] ss:$196 sps:$4 sm:$0xff]   ;;  %v2175_v61 = vld [vmem:[%s2860_s1 + $0x1fc] ss:$196 sps:$4 sm:$0xff]  }
  0x15   :  { %1077 = vmatpush1.bf16.msra.mxu1 %v2116_v23  ;;  %1108 = vmatprep.mubr.bf16.mxu1 %v2232_v1  ;;  %v2170_v59 = vld [vmem:[%s2860_s1 + $0x1f0] ss:$196 sps:$4 sm:$0xff]   ;;  %v2173_v62 = vld [vmem:[%s2860_s1 + $0x1f8] ss:$196 sps:$4 sm:$0xff]   ;;  %v2184_v0 = vld [vmem:[%s2860_s1 + $0x204] ss:$196 sps:$4 sm:$0xff]  }
  0x16   :  { %1078 = vmatprep.subr.bf16.mxu1 %v2124_v24  ;;  %v2176_v63 = vld [vmem:[%s2860_s1 + $0x78] ss:$196 sps:$4 sm:$0xff]   ;;  %v2181_v2 = vld [vmem:[%s2860_s1 + $0x84] ss:$196 sps:$4 sm:$0xff]   ;;  %v2190_v5 = vld [vmem:[%s2860_s1 + $0x8c] ss:$196 sps:$4 sm:$0xff]  }
  0x17   :  { %1038 = vmatpush1.bf16.msra.mxu0 %v2113_v22  ;;  %v2179_v3 = vld [vmem:[%s2860_s1 + $0x80] ss:$196 sps:$4 sm:$0xff]   ;;  %v2187_v6 = vld [vmem:[%s2860_s1 + $0x20c] ss:$196 sps:$4 sm:$0xff]   ;;  %v2196_v10 = vld [vmem:[%s2860_s1 + $0x214] ss:$196 sps:$4 sm:$0xff]  }
  0x18   :  { %1117 = vmatprep.subr.bf16.mxu0 %v2121_v25  ;;  %v2182_v4 = vld [vmem:[%s2860_s1 + $0x200] ss:$196 sps:$4 sm:$0xff]   ;;  %v2188_v8 = vld [vmem:[%s2860_s1 + $0x88] ss:$196 sps:$4 sm:$0xff]   ;;  %v2193_v11 = vld [vmem:[%s2860_s1 + $0x94] ss:$196 sps:$4 sm:$0xff]  }
  0x19   :  { %1079 = vmatpush1.bf16.msra.mxu1 %v2122_v27  ;;  %v2185_v9 = vld [vmem:[%s2860_s1 + $0x208] ss:$196 sps:$4 sm:$0xff]   ;;  %v2194_v12 = vld [vmem:[%s2860_s1 + $0x210] ss:$196 sps:$4 sm:$0xff]   ;;  %v2202_v14 = vld [vmem:[%s2860_s1 + $0x9c] ss:$196 sps:$4 sm:$0xff]  }
  0x1a   :  { %2051 = vmatmul.mubr.msk.bf16.vlgmr.msra.gmra.mrb[8].mxu0 %vm867_vm0, %v2278_v7  ;;  %1158 = vmatprep.subr.bf16.mxu1 %v2130_v28  ;;  %v2191_v13 = vld [vmem:[%s2860_s1 + $0x90] ss:$196 sps:$4 sm:$0xff]   ;;  %v2199_v15 = vld [vmem:[%s2860_s1 + $0x21c] ss:$196 sps:$4 sm:$0xff]   ;;  %v2208_v18 = vld [vmem:[%s2860_s1 + $0x224] ss:$196 sps:$4 sm:$0xff]  }
  0x1b   :  { %1118 = vmatpush1.bf16.msra.mxu0 %v2119_v26  ;;  %1149 = vmatprep.mubr.bf16.mxu0 %v2232_v1  ;;  %v2200_v16 = vld [vmem:[%s2860_s1 + $0x98] ss:$196 sps:$4 sm:$0xff]   ;;  %v2205_v19 = vld [vmem:[%s2860_s1 + $0xa4] ss:$196 sps:$4 sm:$0xff]   ;;  %v2214_v22 = vld [vmem:[%s2860_s1 + $0xac] ss:$196 sps:$4 sm:$0xff]  }
  0x1c   :  { %1119 = vmatprep.subr.bf16.mxu0 %v2127_v29  ;;  %2052 = vmatmul.mubr.msk.bf16.vlgmr.msra.gmra.mrb[8].mxu1 %vm867_vm0, %v2278_v7  ;;  %v2197_v17 = vld [vmem:[%s2860_s1 + $0x218] ss:$196 sps:$4 sm:$0xff]   ;;  %v2206_v20 = vld [vmem:[%s2860_s1 + $0x220] ss:$196 sps:$4 sm:$0xff]   ;;  %v2211_v23 = vld [vmem:[%s2860_s1 + $0x22c] ss:$196 sps:$4 sm:$0xff]  }
  0x1d   :  { %1159 = vmatpush1.bf16.msra.mxu1 %v2128_v31  ;;  %1190 = vmatprep.mubr.bf16.mxu1 %v2232_v1  ;;  %v2203_v21 = vld [vmem:[%s2860_s1 + $0xa0] ss:$196 sps:$4 sm:$0xff]   ;;  %v2212_v24 = vld [vmem:[%s2860_s1 + $0xa8] ss:$196 sps:$4 sm:$0xff]   ;;  %v2220_v26 = vld [vmem:[%s2860_s1 + $0x234] ss:$196 sps:$4 sm:$0xff]  }
  0x1e   :  { %1160 = vmatprep.subr.bf16.mxu1 %v2136_v32  ;;  %v2209_v25 = vld [vmem:[%s2860_s1 + $0x228] ss:$196 sps:$4 sm:$0xff]   ;;  %v2217_v27 = vld [vmem:[%s2860_s1 + $0xb4] ss:$196 sps:$4 sm:$0xff]   ;;  %v2223_v31 = vld [vmem:[%s2860_s1 + $0x23c] ss:$196 sps:$4 sm:$0xff]  }
  0x1f   :  { %1120 = vmatpush1.bf16.msra.mxu0 %v2125_v30  ;;  %v2218_v28 = vld [vmem:[%s2860_s1 + $0x230] ss:$196 sps:$4 sm:$0xff]   ;;  %v2226_v30 = vld [vmem:[%s2860_s1 + $0xbc] ss:$196 sps:$4 sm:$0xff]  }
  0x20   :  { %1199 = vmatprep.subr.bf16.mxu0 %v2133_v33  ;;  %v2215_v29 = vld [vmem:[%s2860_s1 + $0xb0] ss:$196 sps:$4 sm:$0xff]   ;;  %v2224_v32 = vld [vmem:[%s2860_s1 + $0xb8] ss:$196 sps:$4 sm:$0xff]  }
  0x21   :  { %1161 = vmatpush1.bf16.msra.mxu1 %v2134_v35  ;;  %v2221_v33 = vld [vmem:[%s2860_s1 + $0x238] ss:$196 sps:$4 sm:$0xff]   ;;  %v2227_v35 = vld [vmem:[%s2860_s1 + $0x240] ss:$196 sps:$4 sm:$0xff]  }
  0x22   :  { %2053 = vmatmul.mubr.msk.bf16.vlgmr.msra.gmra.mrb[12].mxu0 %vm867_vm0, %v2278_v7  ;;  %1240 = vmatprep.subr.bf16.mxu1 %v2142_v36  ;;  %v2230_v36 = vld [vmem:[%s2860_s1 + $0xc0] ss:$196 sps:$4 sm:$0xff]  }
  0x23   :  { %1200 = vmatpush1.bf16.msra.mxu0 %v2131_v34  ;;  %1231 = vmatprep.mubr.bf16.mxu0 %v2232_v1  ;;  %v2229_v34 = vld [vmem:[%s2860_s1 + $0x244] ss:$196 sps:$4 sm:$0xff]  }
  0x24   :  { %1201 = vmatprep.subr.bf16.mxu0 %v2139_v37  ;;  %2054 = vmatmul.mubr.msk.bf16.vlgmr.msra.gmra.mrb[12].mxu1 %vm867_vm0, %v2278_v7  ;;  %v2233_v37 = vmov 0.0  }
  0x25   :  { %1241 = vmatpush1.bf16.msra.mxu1 %v2140_v39  ;;  %1272 = vmatprep.mubr.bf16.mxu1 %v2232_v1 }
  0x26   :  { %1242 = vmatprep.subr.bf16.mxu1 %v2148_v40 }
  0x27   :  { %1202 = vmatpush1.bf16.msra.mxu0 %v2137_v38  ;;  %v2231_v38 = vld [vmem:[%s2860_s1 + $0x248] ss:$196 sps:$4 sm:$0xff]  }
  0x28   :  { %1281 = vmatprep.subr.bf16.mxu0 %v2145_v41  ;;  %v116_v41 = vld [vmem:[%s2862_s2] sm:$0xff] }
  0x29   :  { %1243 = vmatpush1.bf16.msra.mxu1 %v2146_v43 }
  0x2a   :  { %2055 = vmatmul.mubr.msk.bf16.vlgmr.msra.gmra.mrb[16].mxu0 %vm867_vm0, %v2278_v7  ;;  %1322 = vmatprep.subr.bf16.mxu1 %v2154_v44 }
  0x2b   :  { %1282 = vmatpush1.bf16.msra.mxu0 %v2143_v42  ;;  %1313 = vmatprep.mubr.bf16.mxu0 %v2232_v1 }
  0x2c   :  { %1283 = vmatprep.subr.bf16.mxu0 %v2151_v45  ;;  %2056 = vmatmul.mubr.msk.bf16.vlgmr.msra.gmra.mrb[16].mxu1 %vm867_vm0, %v2278_v7 }
  0x2d   :  { %1323 = vmatpush1.bf16.msra.mxu1 %v2152_v47  ;;  %1354 = vmatprep.mubr.bf16.mxu1 %v2232_v1 }
  0x2e   :  { %1324 = vmatprep.subr.bf16.mxu1 %v2160_v48 }
  0x2f   :  { %1284 = vmatpush1.bf16.msra.mxu0 %v2149_v46 }
  0x30   :  { %1363 = vmatprep.subr.bf16.mxu0 %v2157_v49 }
  0x31   :  { %1325 = vmatpush1.bf16.msra.mxu1 %v2158_v51 }
  0x32   :  { %2057 = vmatmul.mubr.msk.bf16.vlgmr.msra.gmra.mrb[20].mxu0 %vm867_vm0, %v2278_v7  ;;  %1404 = vmatprep.subr.bf16.mxu1 %v2166_v52 }
  0x33   :  { %1364 = vmatpush1.bf16.msra.mxu0 %v2155_v50  ;;  %1395 = vmatprep.mubr.bf16.mxu0 %v2232_v1 }
  0x34   :  { %1365 = vmatprep.subr.bf16.mxu0 %v2163_v53  ;;  %2058 = vmatmul.mubr.msk.bf16.vlgmr.msra.gmra.mrb[20].mxu1 %vm867_vm0, %v2278_v7 }
  0x35   :  { %1405 = vmatpush1.bf16.msra.mxu1 %v2164_v55  ;;  %1436 = vmatprep.mubr.bf16.mxu1 %v2232_v1 }
  0x36   :  { %1406 = vmatprep.subr.bf16.mxu1 %v2172_v56 }
  0x37   :  { %1366 = vmatpush1.bf16.msra.mxu0 %v2161_v54 }
  0x38   :  { %1445 = vmatprep.subr.bf16.mxu0 %v2169_v57 }
  0x39   :  { %1407 = vmatpush1.bf16.msra.mxu1 %v2170_v59 }
  0x3a   :  { %2059 = vmatmul.mubr.msk.bf16.vlgmr.msra.gmra.mrb[24].mxu0 %vm867_vm0, %v2278_v7  ;;  %1486 = vmatprep.subr.bf16.mxu1 %v2178_v60 }
  0x3b   :  { %1446 = vmatpush1.bf16.msra.mxu0 %v2167_v58  ;;  %1477 = vmatprep.mubr.bf16.mxu0 %v2232_v1 }
  0x3c   :  { %1447 = vmatprep.subr.bf16.mxu0 %v2175_v61  ;;  %2060 = vmatmul.mubr.msk.bf16.vlgmr.msra.gmra.mrb[24].mxu1 %vm867_vm0, %v2278_v7 }
  0x3d   :  { %1487 = vmatpush1.bf16.msra.mxu1 %v2176_v63  ;;  %1518 = vmatprep.mubr.bf16.mxu1 %v2232_v1 }
  0x3e   :  { %1488 = vmatprep.subr.bf16.mxu1 %v2184_v0 }
  0x3f   :  { %1448 = vmatpush1.bf16.msra.mxu0 %v2173_v62 }
  0x40   :  { %1527 = vmatprep.subr.bf16.mxu0 %v2181_v2 }
  0x41   :  { %1489 = vmatpush1.bf16.msra.mxu1 %v2182_v4 }
  0x42   :  { %2061 = vmatmul.mubr.msk.bf16.vlgmr.msra.gmra.mrb[28].mxu0 %vm867_vm0, %v2278_v7  ;;  %1568 = vmatprep.subr.bf16.mxu1 %v2190_v5 }
  0x43   :  { %1528 = vmatpush1.bf16.msra.mxu0 %v2179_v3  ;;  %1559 = vmatprep.mubr.bf16.mxu0 %v2232_v1 }
  0x44   :  { %1529 = vmatprep.subr.bf16.mxu0 %v2187_v6  ;;  %2062 = vmatmul.mubr.msk.bf16.vlgmr.msra.gmra.mrb[28].mxu1 %vm867_vm0, %v2278_v7 }
  0x45   :  { %1569 = vmatpush1.bf16.msra.mxu1 %v2188_v8  ;;  %1600 = vmatprep.mubr.bf16.mxu1 %v2232_v1 }
  0x46   :  { %1570 = vmatprep.subr.bf16.mxu1 %v2196_v10 }
  0x47   :  { %1530 = vmatpush1.bf16.msra.mxu0 %v2185_v9 }
  0x48   :  { %1609 = vmatprep.subr.bf16.mxu0 %v2193_v11  ;;  %v117_v11 = vld [vmem:[%s2862_s2 + $0x8] sm:$0xff] }
  0x49   :  { %1571 = vmatpush1.bf16.msra.mxu1 %v2194_v12 }
  0x4a   :  { %2063 = vmatmul.mubr.msk.bf16.vlgmr.msra.gmra.mrb[32].mxu0 %vm867_vm0, %v2278_v7  ;;  %1650 = vmatprep.subr.bf16.mxu1 %v2202_v14 }
  0x4b   :  { %1610 = vmatpush1.bf16.msra.mxu0 %v2191_v13  ;;  %1641 = vmatprep.mubr.bf16.mxu0 %v2232_v1 }
  0x4c   :  { %1611 = vmatprep.subr.bf16.mxu0 %v2199_v15  ;;  %2064 = vmatmul.mubr.msk.bf16.vlgmr.msra.gmra.mrb[32].mxu1 %vm867_vm0, %v2278_v7 }
  0x4d   :  { %1651 = vmatpush1.bf16.msra.mxu1 %v2200_v16  ;;  %1682 = vmatprep.mubr.bf16.mxu1 %v2232_v1 }
  0x4e   :  { %1652 = vmatprep.subr.bf16.mxu1 %v2208_v18 }
  0x4f   :  { %1612 = vmatpush1.bf16.msra.mxu0 %v2197_v17 }
  0x50   :  { %1691 = vmatprep.subr.bf16.mxu0 %v2205_v19 }
  0x51   :  { %1653 = vmatpush1.bf16.msra.mxu1 %v2206_v20 }
  0x52   :  { %2065 = vmatmul.mubr.msk.bf16.vlgmr.msra.gmra.mrb[36].mxu0 %vm867_vm0, %v2278_v7  ;;  %1732 = vmatprep.subr.bf16.mxu1 %v2214_v22 }
  0x53   :  { %1692 = vmatpush1.bf16.msra.mxu0 %v2203_v21  ;;  %1723 = vmatprep.mubr.bf16.mxu0 %v2232_v1 }
  0x54   :  { %1693 = vmatprep.subr.bf16.mxu0 %v2211_v23  ;;  %2066 = vmatmul.mubr.msk.bf16.vlgmr.msra.gmra.mrb[36].mxu1 %vm867_vm0, %v2278_v7 }
  0x55   :  { %1733 = vmatpush1.bf16.msra.mxu1 %v2212_v24  ;;  %1764 = vmatprep.mubr.bf16.mxu1 %v2232_v1 }
  0x56   :  { %1734 = vmatprep.subr.bf16.mxu1 %v2220_v26 }
  0x57   :  { %1694 = vmatpush1.bf16.msra.mxu0 %v2209_v25 }
  0x58   :  { %1773 = vmatprep.subr.bf16.mxu0 %v2217_v27 }
  0x59   :  { %1735 = vmatpush1.bf16.msra.mxu1 %v2218_v28 }
  0x5a   :  { %2067 = vmatmul.mubr.msk.bf16.vlgmr.msra.gmra.mrb[40].mxu0 %vm867_vm0, %v2278_v7  ;;  %1814 = vmatprep.subr.bf16.mxu1 %v2226_v30 }
  0x5b   :  { %1774 = vmatpush1.bf16.msra.mxu0 %v2215_v29  ;;  %1805 = vmatprep.mubr.bf16.mxu0 %v2232_v1 }
  0x5c   :  { %1775 = vmatprep.subr.bf16.mxu0 %v2223_v31  ;;  %2068 = vmatmul.mubr.msk.bf16.vlgmr.msra.gmra.mrb[40].mxu1 %vm867_vm0, %v2278_v7 }
  0x5d   :  { %1815 = vmatpush1.bf16.msra.mxu1 %v2224_v32  ;;  %1846 = vmatprep.mubr.bf16.mxu1 %v2232_v1  ;;  %v130_v1 = vlaneseq }
  0x5e   :  { %1816 = vmatprep.subr.bf16.mxu1 %v2229_v34 }
  0x5f   :  { %1776 = vmatpush1.bf16.msra.mxu0 %v2221_v33  ;;  %v131_v39 = vshrl.u32 %v130_v1, 7 }
  0x60   :  { %2075 = vmatprep.subr.bf16.mxu0 %v2233_v37 }
  0x61   :  { %1817 = vmatpush1.bf16.msra.mxu1 %v2227_v35  ;;  %v2628_v40 = vsub.s32 0, %v131_v39  ;;  %v2633_v42 = vsub.s32 1, %v131_v39  ;;  %v2635_v43 = vsub.s32 2, %v131_v39  ;;  %v2638_v45 = vsub.s32 3, %v131_v39 }
  0x62   :  { %2069 = vmatmul.mubr.msk.bf16.vlgmr.msra.gmra.mrb[44].mxu0 %vm867_vm0, %v2278_v7  ;;  %v2643_v51 = vsub.s32 4, %v131_v39  ;;  %v2645_v54 = vsub.s32 5, %v131_v39  ;;  %v2653_v59 = vsub.s32 6, %v131_v39  ;;  %v2656_v63 = vsub.s32 7, %v131_v39 }
  0x63   :  { %2076 = vmatpush3.bf16.msra.mxu0 %v2230_v36  ;;  %2079 = vmatprep.mubr.msk.bf16.mxu0 %vm2234_vm1, %v2233_v37  ;;  %v133_v44 = vrot.slane %v116_v41, %v2628_v40  ;;  %v137_v46 = vrot.slane %v116_v41, %v2633_v42  ;;  %v145_v50 = vrot.slane %v116_v41, %v2638_v45 }
  0x64   :  { %2077 = vmatprep.subr.bf16.mxu0 %v2233_v37  ;;  %2070 = vmatmul.mubr.msk.bf16.vlgmr.msra.gmra.mrb[44].mxu1 %vm867_vm0, %v2278_v7  ;;  %v149_v62 = vrot.slane %v116_v41, %v2643_v51  ;;  %v153_v2 = vrot.slane %v116_v41, %v2645_v54  ;;  %v157_v4 = vrot.slane %v116_v41, %v2653_v59 }
  0x65   :  { %v161_v8 = vrot.slane %v116_v41, %v2656_v63  ;;  %v165_v18 = vrot.slane %v117_v11, %v2628_v40  ;;  %v169_v20 = vrot.slane %v117_v11, %v2633_v42  ;;  %v173_v22 = vrot.slane %v117_v11, %v2635_v43 }
  0x66   :  { %v177_v25 = vrot.slane %v117_v11, %v2638_v45  ;;  %v181_v34 = vrot.slane %v117_v11, %v2643_v51  ;;  %v185_v36 = vrot.slane %v117_v11, %v2645_v54 }
  0x67   :  { %2078 = vmatpush3.bf16.msra.mxu0 %v2231_v38  ;;  %v189_v38 = vrot.slane %v117_v11, %v2653_v59 }
  0x6a   :  { %2080 = vmatmul.mubr.msk.bf16.vlgmr.msra.gmra.mrb[48].mxu0 %vm867_vm0, %v2278_v7  ;;  %v141_v7 = vrot.slane %v116_v41, %v2635_v43  ;;  %v193_v41 = vrot.slane %v117_v11, %v2656_v63 }
  0xdd   :  { %v905_v47 = vpop.f32.mrb[0].mxu0 }
  0xde   :  { %v906_v48 = vadd.f32 %v905_v47, %v133_v44  ;;  %v907_v49 = vpop.f32.mrb[1].mxu0  ;;  %v118_v47 = vld [vmem:[%s2862_s2 + $0x10] sm:$0xff] }
  0xdf   :  { %v908_v52 = vadd.f32 %v907_v49, %v137_v46  ;;  %v909_v53 = vpop.f32.mrb[2].mxu0  ;;  %v946_v56 = vpop.f32.mrb[0].mxu1  ;;  %v213_v11 = vrot.slane %v118_v47, %v2643_v51 }
  0xe0   :  { %1895 = vst [vmem:[%s2863_s3] sm:$0xff] %v906_v48  ;;  %v910_v55 = vpop.f32.mrb[3].mxu0  ;;  %v947_v57 = vadd.f32 %v946_v56, %v141_v7  ;;  %v948_v58 = vpop.f32.mrb[1].mxu1 }
  0xe1   :  { %1896 = vst [vmem:[%s2863_s3 + $0x8] sm:$0xff] %v908_v52  ;;  %v949_v60 = vadd.f32 %v948_v58, %v145_v50  ;;  %v950_v61 = vpop.f32.mrb[2].mxu1  ;;  %v197_v55 = vrot.slane %v118_v47, %v2628_v40 }
  0xe2   :  { %1897 = vst [vmem:[%s2863_s3 + $0x10] sm:$0xff] %v947_v57  ;;  %v951_v0 = vpop.f32.mrb[3].mxu1  ;;  %v201_v57 = vrot.slane %v118_v47, %v2633_v42 }
  0xe3   :  { %1898 = vst [vmem:[%s2863_s3 + $0x18] sm:$0xff] %v949_v60  ;;  %v205_v60 = vrot.slane %v118_v47, %v2635_v43  ;;  %v209_v0 = vrot.slane %v118_v47, %v2638_v45 }
  0xe5   :  { %v987_v3 = vpop.f32.mrb[4].mxu0 }
  0xe6   :  { %v988_v5 = vadd.f32 %v987_v3, %v149_v62  ;;  %v989_v6 = vpop.f32.mrb[5].mxu0 }
  0xe7   :  { %v990_v9 = vadd.f32 %v989_v6, %v153_v2  ;;  %v991_v10 = vpop.f32.mrb[6].mxu0  ;;  %v1028_v13 = vpop.f32.mrb[4].mxu1 }
  0xe8   :  { %1899 = vst [vmem:[%s2863_s3 + $0x20] sm:$0xff] %v988_v5  ;;  %v992_v12 = vpop.f32.mrb[7].mxu0  ;;  %v1029_v14 = vadd.f32 %v1028_v13, %v157_v4  ;;  %v1030_v15 = vpop.f32.mrb[5].mxu1  ;;  %v217_v13 = vrot.slane %v118_v47, %v2645_v54 }
  0xe9   :  { %1900 = vst [vmem:[%s2863_s3 + $0x28] sm:$0xff] %v990_v9  ;;  %v1031_v16 = vadd.f32 %v1030_v15, %v161_v8  ;;  %v1032_v17 = vpop.f32.mrb[6].mxu1  ;;  %v221_v15 = vrot.slane %v118_v47, %v2653_v59 }
  0xea   :  { %1901 = vst [vmem:[%s2863_s3 + $0x30] sm:$0xff] %v1029_v14  ;;  %v1033_v19 = vpop.f32.mrb[7].mxu1 }
  0xeb   :  { %1902 = vst [vmem:[%s2863_s3 + $0x38] sm:$0xff] %v1031_v16 }
  0xed   :  { %v1069_v21 = vpop.f32.mrb[8].mxu0 }
  0xee   :  { %v1070_v23 = vadd.f32 %v1069_v21, %v165_v18  ;;  %v1071_v24 = vpop.f32.mrb[9].mxu0  ;;  %v225_v18 = vrot.slane %v118_v47, %v2656_v63  ;;  %v119_v21 = vld [vmem:[%s2862_s2 + $0x18] sm:$0xff] }
  0xef   :  { %v1072_v26 = vadd.f32 %v1071_v24, %v169_v20  ;;  %v1073_v27 = vpop.f32.mrb[10].mxu0  ;;  %v1110_v29 = vpop.f32.mrb[8].mxu1  ;;  %v245_v47 = vrot.slane %v119_v21, %v2643_v51 }
  0xf0   :  { %1903 = vst [vmem:[%s2863_s3 + $0x40] sm:$0xff] %v1070_v23  ;;  %v1074_v28 = vpop.f32.mrb[11].mxu0  ;;  %v1111_v30 = vadd.f32 %v1110_v29, %v173_v22  ;;  %v1112_v31 = vpop.f32.mrb[9].mxu1 }
  0xf1   :  { %1904 = vst [vmem:[%s2863_s3 + $0x48] sm:$0xff] %v1072_v26  ;;  %v1113_v32 = vadd.f32 %v1112_v31, %v177_v25  ;;  %v1114_v33 = vpop.f32.mrb[10].mxu1  ;;  %v229_v28 = vrot.slane %v119_v21, %v2628_v40 }
  0xf2   :  { %1905 = vst [vmem:[%s2863_s3 + $0x50] sm:$0xff] %v1111_v30  ;;  %v1115_v35 = vpop.f32.mrb[11].mxu1  ;;  %v233_v30 = vrot.slane %v119_v21, %v2633_v42 }
  0xf3   :  { %1906 = vst [vmem:[%s2863_s3 + $0x58] sm:$0xff] %v1113_v32  ;;  %v237_v32 = vrot.slane %v119_v21, %v2635_v43  ;;  %v241_v35 = vrot.slane %v119_v21, %v2638_v45 }
  0xf5   :  { %v1151_v37 = vpop.f32.mrb[12].mxu0 }
  0xf6   :  { %v1152_v1 = vadd.f32 %v1151_v37, %v181_v34  ;;  %v1153_v39 = vpop.f32.mrb[13].mxu0 }
  0xf7   :  { %v1154_v44 = vadd.f32 %v1153_v39, %v185_v36  ;;  %v1155_v46 = vpop.f32.mrb[14].mxu0  ;;  %v1192_v48 = vpop.f32.mrb[12].mxu1 }
  0xf8   :  { %1907 = vst [vmem:[%s2863_s3 + $0x60] sm:$0xff] %v1152_v1  ;;  %v1156_v7 = vpop.f32.mrb[15].mxu0  ;;  %v1193_v49 = vadd.f32 %v1192_v48, %v189_v38  ;;  %v1194_v50 = vpop.f32.mrb[13].mxu1  ;;  %v249_v48 = vrot.slane %v119_v21, %v2645_v54 }
  0xf9   :  { %1908 = vst [vmem:[%s2863_s3 + $0x68] sm:$0xff] %v1154_v44  ;;  %v1195_v52 = vadd.f32 %v1194_v50, %v193_v41  ;;  %v1196_v53 = vpop.f32.mrb[14].mxu1  ;;  %v253_v50 = vrot.slane %v119_v21, %v2653_v59 }
  0xfa   :  { %1909 = vst [vmem:[%s2863_s3 + $0x70] sm:$0xff] %v1193_v49  ;;  %v1197_v56 = vpop.f32.mrb[15].mxu1 }
  0xfb   :  { %1910 = vst [vmem:[%s2863_s3 + $0x78] sm:$0xff] %v1195_v52 }
  0xfd   :  { %v1233_v58 = vpop.f32.mrb[16].mxu0 }
  0xfe   :  { %v1234_v61 = vadd.f32 %v1233_v58, %v197_v55  ;;  %v1235_v62 = vpop.f32.mrb[17].mxu0  ;;  %v257_v55 = vrot.slane %v119_v21, %v2656_v63  ;;  %v120_v58 = vld [vmem:[%s2862_s2 + $0x20] sm:$0xff] }
  0xff   :  { %v1236_v2 = vadd.f32 %v1235_v62, %v201_v57  ;;  %v1237_v3 = vpop.f32.mrb[18].mxu0  ;;  %v1274_v5 = vpop.f32.mrb[16].mxu1  ;;  %v277_v21 = vrot.slane %v120_v58, %v2643_v51 }
 0x100   :  { %1911 = vst [vmem:[%s2863_s3 + $0x80] sm:$0xff] %v1234_v61  ;;  %v1238_v4 = vpop.f32.mrb[19].mxu0  ;;  %v1275_v6 = vadd.f32 %v1274_v5, %v205_v60  ;;  %v1276_v8 = vpop.f32.mrb[17].mxu1 }
 0x101   :  { %1912 = vst [vmem:[%s2863_s3 + $0x88] sm:$0xff] %v1236_v2  ;;  %v1277_v9 = vadd.f32 %v1276_v8, %v209_v0  ;;  %v1278_v10 = vpop.f32.mrb[18].mxu1  ;;  %v261_v4 = vrot.slane %v120_v58, %v2628_v40 }
 0x102   :  { %1913 = vst [vmem:[%s2863_s3 + $0x90] sm:$0xff] %v1275_v6  ;;  %v1279_v12 = vpop.f32.mrb[19].mxu1  ;;  %v265_v6 = vrot.slane %v120_v58, %v2633_v42 }
 0x103   :  { %1914 = vst [vmem:[%s2863_s3 + $0x98] sm:$0xff] %v1277_v9  ;;  %v269_v9 = vrot.slane %v120_v58, %v2635_v43  ;;  %v273_v12 = vrot.slane %v120_v58, %v2638_v45 }
 0x105   :  { %v1315_v14 = vpop.f32.mrb[20].mxu0 }
 0x106   :  { %v1316_v16 = vadd.f32 %v1315_v14, %v213_v11  ;;  %v1317_v17 = vpop.f32.mrb[21].mxu0 }
 0x107   :  { %v1318_v19 = vadd.f32 %v1317_v17, %v217_v13  ;;  %v1319_v20 = vpop.f32.mrb[22].mxu0  ;;  %v1356_v23 = vpop.f32.mrb[20].mxu1 }
 0x108   :  { %1915 = vst [vmem:[%s2863_s3 + $0xa0] sm:$0xff] %v1316_v16  ;;  %v1320_v22 = vpop.f32.mrb[23].mxu0  ;;  %v1357_v24 = vadd.f32 %v1356_v23, %v221_v15  ;;  %v1358_v25 = vpop.f32.mrb[21].mxu1  ;;  %v281_v23 = vrot.slane %v120_v58, %v2645_v54 }
 0x109   :  { %1916 = vst [vmem:[%s2863_s3 + $0xa8] sm:$0xff] %v1318_v19  ;;  %v1359_v26 = vadd.f32 %v1358_v25, %v225_v18  ;;  %v1360_v27 = vpop.f32.mrb[22].mxu1  ;;  %v285_v25 = vrot.slane %v120_v58, %v2653_v59 }
 0x10a   :  { %1917 = vst [vmem:[%s2863_s3 + $0xb0] sm:$0xff] %v1357_v24  ;;  %v1361_v29 = vpop.f32.mrb[23].mxu1 }
 0x10b   :  { %1918 = vst [vmem:[%s2863_s3 + $0xb8] sm:$0xff] %v1359_v26 }
 0x10d   :  { %v1397_v31 = vpop.f32.mrb[24].mxu0 }
 0x10e   :  { %v1398_v33 = vadd.f32 %v1397_v31, %v229_v28  ;;  %v1399_v34 = vpop.f32.mrb[25].mxu0  ;;  %v289_v28 = vrot.slane %v120_v58, %v2656_v63  ;;  %v121_v31 = vld [vmem:[%s2862_s2 + $0x28] sm:$0xff] }
 0x10f   :  { %v1400_v36 = vadd.f32 %v1399_v34, %v233_v30  ;;  %v1401_v37 = vpop.f32.mrb[26].mxu0  ;;  %v1438_v1 = vpop.f32.mrb[24].mxu1  ;;  %v317_v58 = vrot.slane %v121_v31, %v2653_v59 }
 0x110   :  { %1919 = vst [vmem:[%s2863_s3 + $0xc0] sm:$0xff] %v1398_v33  ;;  %v1402_v38 = vpop.f32.mrb[27].mxu0  ;;  %v1439_v39 = vadd.f32 %v1438_v1, %v237_v32  ;;  %v1440_v41 = vpop.f32.mrb[25].mxu1 }
 0x111   :  { %1920 = vst [vmem:[%s2863_s3 + $0xc8] sm:$0xff] %v1400_v36  ;;  %v1441_v44 = vadd.f32 %v1440_v41, %v241_v35  ;;  %v1442_v46 = vpop.f32.mrb[26].mxu1  ;;  %v293_v38 = vrot.slane %v121_v31, %v2628_v40 }
 0x112   :  { %1921 = vst [vmem:[%s2863_s3 + $0xd0] sm:$0xff] %v1439_v39  ;;  %v1443_v7 = vpop.f32.mrb[27].mxu1  ;;  %v297_v39 = vrot.slane %v121_v31, %v2633_v42 }
 0x113   :  { %1922 = vst [vmem:[%s2863_s3 + $0xd8] sm:$0xff] %v1441_v44  ;;  %v301_v44 = vrot.slane %v121_v31, %v2635_v43  ;;  %v305_v7 = vrot.slane %v121_v31, %v2638_v45 }
 0x115   :  { %v1479_v49 = vpop.f32.mrb[28].mxu0 }
 0x116   :  { %v1480_v52 = vadd.f32 %v1479_v49, %v245_v47  ;;  %v1481_v53 = vpop.f32.mrb[29].mxu0 }
 0x117   :  { %v1482_v56 = vadd.f32 %v1481_v53, %v249_v48  ;;  %v1483_v57 = vpop.f32.mrb[30].mxu0  ;;  %v1520_v61 = vpop.f32.mrb[28].mxu1 }
 0x118   :  { %1923 = vst [vmem:[%s2863_s3 + $0xe0] sm:$0xff] %v1480_v52  ;;  %v1484_v60 = vpop.f32.mrb[31].mxu0  ;;  %v1521_v62 = vadd.f32 %v1520_v61, %v253_v50  ;;  %v1522_v0 = vpop.f32.mrb[29].mxu1 }
 0x119   :  { %1924 = vst [vmem:[%s2863_s3 + $0xe8] sm:$0xff] %v1482_v56  ;;  %v1523_v2 = vadd.f32 %v1522_v0, %v257_v55  ;;  %v1524_v3 = vpop.f32.mrb[30].mxu1  ;;  %v309_v55 = vrot.slane %v121_v31, %v2643_v51  ;;  %v313_v56 = vrot.slane %v121_v31, %v2645_v54 }
 0x11a   :  { %1925 = vst [vmem:[%s2863_s3 + $0xf0] sm:$0xff] %v1521_v62  ;;  %v1525_v5 = vpop.f32.mrb[31].mxu1  ;;  %v321_v62 = vrot.slane %v121_v31, %v2656_v63 }
 0x11b   :  { %1926 = vst [vmem:[%s2863_s3 + $0xf8] sm:$0xff] %v1523_v2 }
 0x11d   :  { %v1561_v8 = vpop.f32.mrb[32].mxu0 }
 0x11e   :  { %v1562_v10 = vadd.f32 %v1561_v8, %v261_v4  ;;  %v1563_v11 = vpop.f32.mrb[33].mxu0 }
 0x11f   :  { %v1564_v13 = vadd.f32 %v1563_v11, %v265_v6  ;;  %v1565_v14 = vpop.f32.mrb[34].mxu0  ;;  %v1602_v16 = vpop.f32.mrb[32].mxu1  ;;  %v1948_v6 = vld [vmem:[%s2862_s2 + $0x30] ss:$0 sm:$0xff] }
 0x120   :  { %1927 = vst [vmem:[%s2863_s3 + $0x100] sm:$0xff] %v1562_v10  ;;  %v1566_v15 = vpop.f32.mrb[35].mxu0  ;;  %v1603_v17 = vadd.f32 %v1602_v16, %v269_v9  ;;  %v1604_v18 = vpop.f32.mrb[33].mxu1 }
 0x121   :  { %1928 = vst [vmem:[%s2863_s3 + $0x108] sm:$0xff] %v1564_v13  ;;  %v1605_v19 = vadd.f32 %v1604_v18, %v273_v12  ;;  %v1606_v20 = vpop.f32.mrb[34].mxu1 }
 0x122   :  { %1929 = vst [vmem:[%s2863_s3 + $0x110] sm:$0xff] %v1603_v17  ;;  %v1607_v22 = vpop.f32.mrb[35].mxu1 }
 0x123   :  { %1930 = vst [vmem:[%s2863_s3 + $0x118] sm:$0xff] %v1605_v19 }
 0x125   :  { %v1643_v24 = vpop.f32.mrb[36].mxu0 }
 0x126   :  { %v1644_v26 = vadd.f32 %v1643_v24, %v277_v21  ;;  %v1645_v27 = vpop.f32.mrb[37].mxu0 }
 0x127   :  { %v1646_v29 = vadd.f32 %v1645_v27, %v281_v23  ;;  %v1647_v30 = vpop.f32.mrb[38].mxu0  ;;  %v1684_v33 = vpop.f32.mrb[36].mxu1 }
 0x128   :  { %1931 = vst [vmem:[%s2863_s3 + $0x120] sm:$0xff] %v1644_v26  ;;  %v1648_v32 = vpop.f32.mrb[39].mxu0  ;;  %v1685_v34 = vadd.f32 %v1684_v33, %v285_v25  ;;  %v1686_v35 = vpop.f32.mrb[37].mxu1 }
 0x129   :  { %1932 = vst [vmem:[%s2863_s3 + $0x128] sm:$0xff] %v1646_v29  ;;  %v1687_v36 = vadd.f32 %v1686_v35, %v289_v28  ;;  %v1688_v37 = vpop.f32.mrb[38].mxu1 }
 0x12a   :  { %1933 = vst [vmem:[%s2863_s3 + $0x130] sm:$0xff] %v1685_v34  ;;  %v1689_v1 = vpop.f32.mrb[39].mxu1 }
 0x12b   :  { %1934 = vst [vmem:[%s2863_s3 + $0x138] sm:$0xff] %v1687_v36 }
 0x12d   :  { %v1725_v41 = vpop.f32.mrb[40].mxu0 }
 0x12e   :  { %v1726_v46 = vadd.f32 %v1725_v41, %v293_v38  ;;  %v1727_v47 = vpop.f32.mrb[41].mxu0 }
 0x12f   :  { %v1728_v48 = vadd.f32 %v1727_v47, %v297_v39  ;;  %v1729_v40 = vpop.f32.mrb[42].mxu0  ;;  %v1766_v50 = vpop.f32.mrb[40].mxu1 }
 0x130   :  { %1935 = vst [vmem:[%s2863_s3 + $0x140] sm:$0xff] %v1726_v46  ;;  %v1730_v49 = vpop.f32.mrb[43].mxu0  ;;  %v1767_v42 = vadd.f32 %v1766_v50, %v301_v44  ;;  %v1768_v52 = vpop.f32.mrb[41].mxu1 }
 0x131   :  { %1936 = vst [vmem:[%s2863_s3 + $0x148] sm:$0xff] %v1728_v48  ;;  %v1769_v53 = vadd.f32 %v1768_v52, %v305_v7  ;;  %v1770_v43 = vpop.f32.mrb[42].mxu1 }
 0x132   :  { %1937 = vst [vmem:[%s2863_s3 + $0x150] sm:$0xff] %v1767_v42  ;;  %v1771_v45 = vpop.f32.mrb[43].mxu1 }
 0x133   :  { %1938 = vst [vmem:[%s2863_s3 + $0x158] sm:$0xff] %v1769_v53 }
 0x135   :  { %v1807_v57 = vpop.f32.mrb[44].mxu0 }
 0x136   :  { %v1808_v60 = vadd.f32 %v1807_v57, %v309_v55  ;;  %v1809_v61 = vpop.f32.mrb[45].mxu0 }
 0x137   :  { %v1810_v0 = vadd.f32 %v1809_v61, %v313_v56  ;;  %v1811_v51 = vpop.f32.mrb[46].mxu0  ;;  %v1848_v3 = vpop.f32.mrb[44].mxu1 }
 0x138   :  { %1939 = vst [vmem:[%s2863_s3 + $0x160] sm:$0xff] %v1808_v60  ;;  %v1812_v2 = vpop.f32.mrb[47].mxu0  ;;  %v1849_v54 = vadd.f32 %v1848_v3, %v317_v58  ;;  %v1850_v4 = vpop.f32.mrb[45].mxu1 }
 0x139   :  { %1940 = vst [vmem:[%s2863_s3 + $0x168] sm:$0xff] %v1810_v0  ;;  %v1851_v5 = vadd.f32 %v1850_v4, %v321_v62  ;;  %v1852_v59 = vpop.f32.mrb[46].mxu1 }
 0x13a   :  { %1941 = vst [vmem:[%s2863_s3 + $0x170] sm:$0xff] %v1849_v54  ;;  %v1853_v63 = vpop.f32.mrb[47].mxu1 }
 0x13b   :  { %1942 = vst [vmem:[%s2863_s3 + $0x178] sm:$0xff] %v1851_v5 }
 0x13d   :  { %v1889_v8 = vpop.f32.mrb[48].mxu0 }
 0x13e   :  { %v1890_v9 = vadd.f32 %v1948_v6, %v1889_v8  ;;  %v2081_v10 = vpop.f32.mrb[49].mxu0 }
 0x13f   :  { %v1892_v11 = vpop.f32.mrb[50].mxu0 }
 0x140   :  { %1943 = vst [vmem:[%s2863_s3 + $0x180] sm:$0xff] %v1890_v9  ;;  %v2082_v12 = vpop.f32.mrb[51].mxu0 }

// kernel: generator_forward.13
= control target key start
LH: loop header
LB: loop body
LE: loop exit
PB: predicated region body
PF: predicated region fallthrough
CT: control target
= control target key end

     0   :  { %s1922_s12 = smov 0   ;;  %s2424_s0 = inlined_call_operand.vmem [shape: bf16[128,512], index: 0, kind: input, shape index: {}]   ;;  %s2425_s1 = inlined_call_operand.vmem [shape: bf16[512,512], index: 1, kind: input, shape index: {}]   ;;  %s2426_s2 = inlined_call_operand.vmem [shape: f32[1,512], index: 2, kind: input, shape index: {}]   ;;  %s2427_s3 = inlined_call_operand.vmem [shape: f32[128,512], index: 3, kind: output, shape index: {}]  }
   0x1 LB: > { %s1447_s13 = sadd.s32 4294967295, %s1900_s12   ;;  %p1451_p0 = scmp.ge.s32.totalorder %s1900_s12, 1  ;;  %s1900_s12 = sphi %s1922_s12, %s13_s12  }
   0x2   : > { %p139_p1 = scmp.lt.s32.totalorder %s1900_s12, 3 }
   0x4   : > { %p140_p2 = pnand %p1451_p0, %p139_p1 }
   0x5   : > { %v1678_v0 = vld [vmem:[%s2425_s1 + $0x4] ss:$16 sps:$4 sm:$0xff] (!%p140_p2)   ;;  %v1680_v1 = vld [vmem:[%s2425_s1 + $0xc] ss:$16 sps:$4 sm:$0xff] (!%p140_p2)   ;;  %v1682_v2 = vld [vmem:[%s2425_s1] ss:$16 sps:$4 sm:$0xff] (!%p140_p2)  }
   0x6   : > { %143 = sbr.rel (%p140_p2) target bundleno = 376 (0x178), region = 32  ;;  %1065 = vmatprep.subr.bf16.mxu0 (!%p140_p2), %v1678_v0  ;;  %v1683_v3 = vld [vmem:[%s2425_s1 + $0x8] ss:$16 sps:$4 sm:$0xff] (!%p140_p2)   ;;  %1211 = vmatprep.subr.bf16.mxu1 (!%p140_p2), %v1680_v1  ;;  %v1684_v4 = vld [vmem:[%s2425_s1 + $0x24] ss:$16 sps:$4 sm:$0xff] (!%p140_p2)   ;;  %s1452_s24 = sshll.u32 (!%p140_p2), %s1447_s13, 3 }
   0x7   : > { %1066 = vmatpush1.bf16.msra.mxu0 (!%p140_p2), %v1682_v2  ;;  %1212 = vmatpush1.bf16.msra.mxu1 (!%p140_p2), %v1683_v3  ;;  %v1686_v5 = vld [vmem:[%s2425_s1 + $0x2c] ss:$16 sps:$4 sm:$0xff] (!%p140_p2)   ;;  %v1688_v6 = vld [vmem:[%s2425_s1 + $0x20] ss:$16 sps:$4 sm:$0xff] (!%p140_p2)   ;;  %v1689_v7 = vld [vmem:[%s2425_s1 + $0x28] ss:$16 sps:$4 sm:$0xff] (!%p140_p2)  }
   0x8   : > { %1067 = vmatprep.subr.bf16.mxu0 (!%p140_p2), %v1684_v4  ;;  %1213 = vmatprep.subr.bf16.mxu1 (!%p140_p2), %v1686_v5  ;;  %v1690_v8 = vld [vmem:[%s2425_s1 + $0x44] ss:$16 sps:$4 sm:$0xff] (!%p140_p2)   ;;  %v1692_v9 = vld [vmem:[%s2425_s1 + $0x4c] ss:$16 sps:$4 sm:$0xff] (!%p140_p2)   ;;  %v1694_v10 = vld [vmem:[%s2425_s1 + $0x40] ss:$16 sps:$4 sm:$0xff] (!%p140_p2)  }
   0x9   : > { %v1695_v11 = vld [vmem:[%s2425_s1 + $0x48] ss:$16 sps:$4 sm:$0xff] (!%p140_p2)   ;;  %v1696_v12 = vld [vmem:[%s2425_s1 + $0x64] ss:$16 sps:$4 sm:$0xff] (!%p140_p2)   ;;  %v1698_v13 = vld [vmem:[%s2425_s1 + $0x6c] ss:$16 sps:$4 sm:$0xff] (!%p140_p2)  }
   0xa   : > { %v1700_v14 = vld [vmem:[%s2425_s1 + $0x60] ss:$16 sps:$4 sm:$0xff] (!%p140_p2)   ;;  %v1701_v15 = vld [vmem:[%s2425_s1 + $0x68] ss:$16 sps:$4 sm:$0xff] (!%p140_p2)   ;;  %v1702_v16 = vld [vmem:[%s2425_s1 + $0x84] ss:$16 sps:$4 sm:$0xff] (!%p140_p2)  }
   0xb   : > { %1068 = vmatpush1.bf16.msra.mxu0 (!%p140_p2), %v1688_v6  ;;  %1214 = vmatpush1.bf16.msra.mxu1 (!%p140_p2), %v1689_v7  ;;  %v1704_v17 = vld [vmem:[%s2425_s1 + $0x8c] ss:$16 sps:$4 sm:$0xff] (!%p140_p2)   ;;  %v1706_v18 = vld [vmem:[%s2425_s1 + $0x80] ss:$16 sps:$4 sm:$0xff] (!%p140_p2)   ;;  %v1707_v19 = vld [vmem:[%s2425_s1 + $0x88] ss:$16 sps:$4 sm:$0xff] (!%p140_p2)  }
   0xc   : > { %1069 = vmatprep.subr.bf16.mxu0 (!%p140_p2), %v1690_v8  ;;  %1215 = vmatprep.subr.bf16.mxu1 (!%p140_p2), %v1692_v9  ;;  %v1708_v20 = vld [vmem:[%s2425_s1 + $0xa4] ss:$16 sps:$4 sm:$0xff] (!%p140_p2)   ;;  %v1710_v21 = vld [vmem:[%s2425_s1 + $0xac] ss:$16 sps:$4 sm:$0xff] (!%p140_p2)   ;;  %v1712_v22 = vld [vmem:[%s2425_s1 + $0xa0] ss:$16 sps:$4 sm:$0xff] (!%p140_p2)  }
   0xd   : > { %v1713_v23 = vld [vmem:[%s2425_s1 + $0xa8] ss:$16 sps:$4 sm:$0xff]   ;;  %v1714_v24 = vld [vmem:[%s2425_s1 + $0xc4] ss:$16 sps:$4 sm:$0xff]   ;;  %v1716_v25 = vld [vmem:[%s2425_s1 + $0xcc] ss:$16 sps:$4 sm:$0xff]  }
   0xe   : > { %v1718_v26 = vld [vmem:[%s2425_s1 + $0xc0] ss:$16 sps:$4 sm:$0xff]   ;;  %v1719_v27 = vld [vmem:[%s2425_s1 + $0xc8] ss:$16 sps:$4 sm:$0xff]   ;;  %v1720_v28 = vld [vmem:[%s2425_s1 + $0xe4] ss:$16 sps:$4 sm:$0xff]  }
   0xf   : > { %1070 = vmatpush1.bf16.msra.mxu0 %v1694_v10  ;;  %1216 = vmatpush1.bf16.msra.mxu1 %v1695_v11  ;;  %v1722_v29 = vld [vmem:[%s2425_s1 + $0xec] ss:$16 sps:$4 sm:$0xff]   ;;  %v1724_v30 = vld [vmem:[%s2425_s1 + $0xe0] ss:$16 sps:$4 sm:$0xff]   ;;  %v1725_v31 = vld [vmem:[%s2425_s1 + $0xe8] ss:$16 sps:$4 sm:$0xff]  }
  0x10   : > { %1071 = vmatprep.subr.bf16.mxu0 %v1696_v12  ;;  %1217 = vmatprep.subr.bf16.mxu1 %v1698_v13  ;;  %v1726_v32 = vld [vmem:[%s2425_s1 + $0x104] ss:$16 sps:$4 sm:$0xff]   ;;  %v1728_v33 = vld [vmem:[%s2425_s1 + $0x10c] ss:$16 sps:$4 sm:$0xff]   ;;  %p166_p3 = scmp.lt.s32.totalorder %s1452_s24, 15 }
  0x11   : > { %v1730_v34 = vld [vmem:[%s2425_s1 + $0x100] ss:$16 sps:$4 sm:$0xff]   ;;  %v1731_v35 = vld [vmem:[%s2425_s1 + $0x108] ss:$16 sps:$4 sm:$0xff]   ;;  %v1732_v36 = vld [vmem:[%s2425_s1 + $0x124] ss:$16 sps:$4 sm:$0xff]  }
  0x12   : > { %v1734_v37 = vld [vmem:[%s2425_s1 + $0x12c] ss:$16 sps:$4 sm:$0xff]   ;;  %s2429_s24 = smov (!%p166_p3, %s1452_s24), 15  ;;  %v1736_v38 = vld [vmem:[%s2425_s1 + $0x120] ss:$16 sps:$4 sm:$0xff]  }
  0x13   : > { %1072 = vmatpush1.bf16.msra.mxu0 %v1700_v14  ;;  %1218 = vmatpush1.bf16.msra.mxu1 %v1701_v15  ;;  %v1737_v39 = vld [vmem:[%s2425_s1 + $0x128] ss:$16 sps:$4 sm:$0xff]   ;;  %v1738_v40 = vld [vmem:[%s2425_s1 + $0x144] ss:$16 sps:$4 sm:$0xff]   ;;  %v1740_v41 = vld [vmem:[%s2425_s1 + $0x14c] ss:$16 sps:$4 sm:$0xff]  }
  0x14   : > { %1073 = vmatprep.subr.bf16.mxu0 %v1702_v16  ;;  %1219 = vmatprep.subr.bf16.mxu1 %v1704_v17  ;;  %s1604_s23 = sshll.u32 %s2429_s24, 4  ;;  %v1742_v42 = vld [vmem:[%s2425_s1 + $0x140] ss:$16 sps:$4 sm:$0xff]   ;;  %v1743_v43 = vld [vmem:[%s2425_s1 + $0x148] ss:$16 sps:$4 sm:$0xff]   ;;  %s1605_s6 = sshll.u32 %s2429_s24, 5 }
  0x15   : > { %v1744_v44 = vld [vmem:[%s2425_s1 + $0x164] ss:$16 sps:$4 sm:$0xff]   ;;  %s2073_s13 = scalar_lea.vmem %s2424_s0, %s1604_s23  ;;  %v1746_v45 = vld [vmem:[%s2425_s1 + $0x16c] ss:$16 sps:$4 sm:$0xff]   ;;  %v1748_v46 = vld [vmem:[%s2425_s1 + $0x160] ss:$16 sps:$4 sm:$0xff]   ;;  %s2355_s8 = scalar_lea.vmem %s2427_s3, %s1605_s6 }
  0x16   : > { %v1749_v47 = vld [vmem:[%s2425_s1 + $0x168] ss:$16 sps:$4 sm:$0xff]   ;;  %v1776_v48 = vld [vmem:[%s2073_s13 + $0x4] ss:$16 sps:$4 sm:$0xff]   ;;  %v1752_v50 = vld [vmem:[%s2425_s1 + $0x18c] ss:$16 sps:$4 sm:$0xff]  }
  0x17   : > { %1074 = vmatpush1.bf16.msra.mxu0 %v1706_v18  ;;  %1220 = vmatpush1.bf16.msra.mxu1 %v1707_v19  ;;  %v1750_v49 = vld [vmem:[%s2425_s1 + $0x184] ss:$16 sps:$4 sm:$0xff]   ;;  %v1754_v51 = vld [vmem:[%s2425_s1 + $0x180] ss:$16 sps:$4 sm:$0xff]   ;;  %v1755_v52 = vld [vmem:[%s2425_s1 + $0x188] ss:$16 sps:$4 sm:$0xff]  }
  0x18   : > { %1075 = vmatprep.subr.bf16.mxu0 %v1708_v20  ;;  %1221 = vmatprep.subr.bf16.mxu1 %v1710_v21  ;;  %v1756_v53 = vld [vmem:[%s2425_s1 + $0x1a4] ss:$16 sps:$4 sm:$0xff]   ;;  %v1758_v54 = vld [vmem:[%s2425_s1 + $0x1ac] ss:$16 sps:$4 sm:$0xff]   ;;  %v1760_v55 = vld [vmem:[%s2425_s1 + $0x1a0] ss:$16 sps:$4 sm:$0xff]  }
  0x19   : > { %1097 = vmatprep.mubr.bf16.mxu0 %v1776_v48  ;;  %1243 = vmatprep.mubr.bf16.mxu1 %v1776_v48  ;;  %v1761_v56 = vld [vmem:[%s2425_s1 + $0x1a8] ss:$16 sps:$4 sm:$0xff]   ;;  %v1762_v57 = vld [vmem:[%s2425_s1 + $0x1c4] ss:$16 sps:$4 sm:$0xff]   ;;  %v1764_v58 = vld [vmem:[%s2425_s1 + $0x1cc] ss:$16 sps:$4 sm:$0xff]  }
  0x1a   : > { %v1766_v59 = vld [vmem:[%s2425_s1 + $0x1c0] ss:$16 sps:$4 sm:$0xff]   ;;  %v1767_v60 = vld [vmem:[%s2425_s1 + $0x1c8] ss:$16 sps:$4 sm:$0xff]   ;;  %v1768_v61 = vld [vmem:[%s2425_s1 + $0x1e4] ss:$16 sps:$4 sm:$0xff]  }
  0x1b   : > { %1076 = vmatpush1.bf16.msra.mxu0 %v1712_v22  ;;  %1222 = vmatpush1.bf16.msra.mxu1 %v1713_v23  ;;  %v1770_v62 = vld [vmem:[%s2425_s1 + $0x1ec] ss:$16 sps:$4 sm:$0xff]   ;;  %v1772_v63 = vld [vmem:[%s2425_s1 + $0x1e0] ss:$16 sps:$4 sm:$0xff]   ;;  %v1773_v0 = vld [vmem:[%s2425_s1 + $0x1e8] ss:$16 sps:$4 sm:$0xff]  }
  0x1c   : > { %1077 = vmatprep.subr.bf16.mxu0 %v1714_v24  ;;  %1223 = vmatprep.subr.bf16.mxu1 %v1716_v25  ;;  %v1779_v1 = vld [vmem:[%s2425_s1 + $0x204] ss:$16 sps:$4 sm:$0xff]   ;;  %v1782_v2 = vld [vmem:[%s2425_s1 + $0x20c] ss:$16 sps:$4 sm:$0xff]   ;;  %v1774_v3 = vld [vmem:[%s2073_s13] ss:$16 sps:$4 sm:$0xff]  }
  0x1d   : > { %v1777_v4 = vld [vmem:[%s2425_s1 + $0x200] ss:$16 sps:$4 sm:$0xff]   ;;  %v1780_v5 = vld [vmem:[%s2425_s1 + $0x208] ss:$16 sps:$4 sm:$0xff]   ;;  %v1785_v6 = vld [vmem:[%s2425_s1 + $0x224] ss:$16 sps:$4 sm:$0xff]  }
  0x1e   : > { %v1788_v7 = vld [vmem:[%s2425_s1 + $0x22c] ss:$16 sps:$4 sm:$0xff]   ;;  %v1783_v8 = vld [vmem:[%s2425_s1 + $0x220] ss:$16 sps:$4 sm:$0xff]   ;;  %v1786_v9 = vld [vmem:[%s2425_s1 + $0x228] ss:$16 sps:$4 sm:$0xff]  }
  0x1f   : > { %1078 = vmatpush1.bf16.msra.mxu0 %v1718_v26  ;;  %1224 = vmatpush1.bf16.msra.mxu1 %v1719_v27  ;;  %v1791_v10 = vld [vmem:[%s2425_s1 + $0x244] ss:$16 sps:$4 sm:$0xff]   ;;  %v1794_v11 = vld [vmem:[%s2425_s1 + $0x24c] ss:$16 sps:$4 sm:$0xff]   ;;  %v1789_v12 = vld [vmem:[%s2425_s1 + $0x240] ss:$16 sps:$4 sm:$0xff]  }
  0x20   : > { %1079 = vmatprep.subr.bf16.mxu0 %v1720_v28  ;;  %1225 = vmatprep.subr.bf16.mxu1 %v1722_v29  ;;  %v1792_v13 = vld [vmem:[%s2425_s1 + $0x248] ss:$16 sps:$4 sm:$0xff]   ;;  %v1837_v14 = vld [vmem:[%s2073_s13 + $0x24] ss:$16 sps:$4 sm:$0xff]   ;;  %v1839_v15 = vld [vmem:[%s2073_s13 + $0x20] ss:$16 sps:$4 sm:$0xff]  }
  0x21   : > { %v1797_v16 = vld [vmem:[%s2425_s1 + $0x264] ss:$16 sps:$4 sm:$0xff]   ;;  %v1800_v17 = vld [vmem:[%s2425_s1 + $0x26c] ss:$16 sps:$4 sm:$0xff]   ;;  %v1795_v18 = vld [vmem:[%s2425_s1 + $0x260] ss:$16 sps:$4 sm:$0xff]  }
  0x22   : > { %v1798_v19 = vld [vmem:[%s2425_s1 + $0x268] ss:$16 sps:$4 sm:$0xff]   ;;  %v1803_v20 = vld [vmem:[%s2425_s1 + $0x284] ss:$16 sps:$4 sm:$0xff]   ;;  %v1806_v21 = vld [vmem:[%s2425_s1 + $0x28c] ss:$16 sps:$4 sm:$0xff]  }
  0x23   : > { %1080 = vmatpush1.bf16.msra.mxu0 %v1724_v30  ;;  %1226 = vmatpush1.bf16.msra.mxu1 %v1725_v31  ;;  %v1801_v22 = vld [vmem:[%s2425_s1 + $0x280] ss:$16 sps:$4 sm:$0xff]   ;;  %v1852_v23 = vld [vmem:[%s2073_s13 + $0x44] ss:$16 sps:$4 sm:$0xff]   ;;  %v1804_v24 = vld [vmem:[%s2425_s1 + $0x288] ss:$16 sps:$4 sm:$0xff]  }
  0x24   : > { %1081 = vmatprep.subr.bf16.mxu0 %v1726_v32  ;;  %1227 = vmatprep.subr.bf16.mxu1 %v1728_v33  ;;  %v1854_v25 = vld [vmem:[%s2073_s13 + $0x40] ss:$16 sps:$4 sm:$0xff]   ;;  %v1809_v26 = vld [vmem:[%s2425_s1 + $0x2a4] ss:$16 sps:$4 sm:$0xff]   ;;  %v1812_v27 = vld [vmem:[%s2425_s1 + $0x2ac] ss:$16 sps:$4 sm:$0xff]  }
  0x25   : > { %v1807_v28 = vld [vmem:[%s2425_s1 + $0x2a0] ss:$16 sps:$4 sm:$0xff]   ;;  %v1810_v29 = vld [vmem:[%s2425_s1 + $0x2a8] ss:$16 sps:$4 sm:$0xff]   ;;  %v1815_v30 = vld [vmem:[%s2425_s1 + $0x2c4] ss:$16 sps:$4 sm:$0xff]  }
  0x26   : > { %v1867_v31 = vld [vmem:[%s2073_s13 + $0x64] ss:$16 sps:$4 sm:$0xff]   ;;  %v1818_v32 = vld [vmem:[%s2425_s1 + $0x2cc] ss:$16 sps:$4 sm:$0xff]   ;;  %v1813_v33 = vld [vmem:[%s2425_s1 + $0x2c0] ss:$16 sps:$4 sm:$0xff]  }
  0x27   : > { %1082 = vmatpush1.bf16.msra.mxu0 %v1730_v34  ;;  %1228 = vmatpush1.bf16.msra.mxu1 %v1731_v35  ;;  %v1816_v34 = vld [vmem:[%s2425_s1 + $0x2c8] ss:$16 sps:$4 sm:$0xff]   ;;  %v1869_v35 = vld [vmem:[%s2073_s13 + $0x60] ss:$16 sps:$4 sm:$0xff]  }
  0x28   : > { %1083 = vmatprep.subr.bf16.mxu0 %v1732_v36  ;;  %1229 = vmatprep.subr.bf16.mxu1 %v1734_v37  ;;  %v1821_v36 = vld [vmem:[%s2425_s1 + $0x2e4] ss:$16 sps:$4 sm:$0xff]   ;;  %v1824_v37 = vld [vmem:[%s2425_s1 + $0x2ec] ss:$16 sps:$4 sm:$0xff]   ;;  %v1834_v48 = vld [vmem:[%s2425_s1 + $0x328] ss:$16 sps:$4 sm:$0xff]  }
  0x2b   : > { %1084 = vmatpush1.bf16.msra.mxu0 %v1736_v38  ;;  %1230 = vmatpush1.bf16.msra.mxu1 %v1737_v39  ;;  %v1819_v38 = vld [vmem:[%s2425_s1 + $0x2e0] ss:$16 sps:$4 sm:$0xff]   ;;  %v1822_v39 = vld [vmem:[%s2425_s1 + $0x2e8] ss:$16 sps:$4 sm:$0xff]  }
  0x2c   : > { %1085 = vmatprep.subr.bf16.mxu0 %v1738_v40  ;;  %1231 = vmatprep.subr.bf16.mxu1 %v1740_v41  ;;  %v1884_v40 = vld [vmem:[%s2073_s13 + $0xc] ss:$16 sps:$4 sm:$0xff]   ;;  %v1827_v41 = vld [vmem:[%s2425_s1 + $0x304] ss:$16 sps:$4 sm:$0xff]  }
  0x2f   : > { %1086 = vmatpush1.bf16.msra.mxu0 %v1742_v42  ;;  %1232 = vmatpush1.bf16.msra.mxu1 %v1743_v43  ;;  %v1830_v42 = vld [vmem:[%s2425_s1 + $0x30c] ss:$16 sps:$4 sm:$0xff]   ;;  %v1825_v43 = vld [vmem:[%s2425_s1 + $0x300] ss:$16 sps:$4 sm:$0xff]  }
  0x30   : > { %1087 = vmatprep.subr.bf16.mxu0 %v1744_v44  ;;  %1233 = vmatprep.subr.bf16.mxu1 %v1746_v45  ;;  %v1828_v44 = vld [vmem:[%s2425_s1 + $0x308] ss:$16 sps:$4 sm:$0xff]   ;;  %v1833_v45 = vld [vmem:[%s2425_s1 + $0x324] ss:$16 sps:$4 sm:$0xff]  }
  0x33   : > { %1088 = vmatpush1.bf16.msra.mxu0 %v1748_v46  ;;  %1234 = vmatpush1.bf16.msra.mxu1 %v1749_v47  ;;  %v1836_v46 = vld [vmem:[%s2425_s1 + $0x32c] ss:$16 sps:$4 sm:$0xff]   ;;  %v1831_v47 = vld [vmem:[%s2425_s1 + $0x320] ss:$16 sps:$4 sm:$0xff]  }
  0x34   : > { %1089 = vmatprep.subr.bf16.mxu0 %v1750_v49  ;;  %1235 = vmatprep.subr.bf16.mxu1 %v1752_v50  ;;  %v1842_v49 = vld [vmem:[%s2425_s1 + $0x344] ss:$16 sps:$4 sm:$0xff]   ;;  %v1845_v50 = vld [vmem:[%s2425_s1 + $0x34c] ss:$16 sps:$4 sm:$0xff]  }
  0x37   : > { %1090 = vmatpush1.bf16.msra.mxu0 %v1754_v51  ;;  %1236 = vmatpush1.bf16.msra.mxu1 %v1755_v52  ;;  %v1840_v51 = vld [vmem:[%s2425_s1 + $0x340] ss:$16 sps:$4 sm:$0xff]   ;;  %v1843_v52 = vld [vmem:[%s2425_s1 + $0x348] ss:$16 sps:$4 sm:$0xff]  }
  0x38   : > { %1091 = vmatprep.subr.bf16.mxu0 %v1756_v53  ;;  %1237 = vmatprep.subr.bf16.mxu1 %v1758_v54  ;;  %v1848_v53 = vld [vmem:[%s2425_s1 + $0x364] ss:$16 sps:$4 sm:$0xff]   ;;  %v1851_v54 = vld [vmem:[%s2425_s1 + $0x36c] ss:$16 sps:$4 sm:$0xff]  }
  0x3b   : > { %1092 = vmatpush1.bf16.msra.mxu0 %v1760_v55  ;;  %1238 = vmatpush1.bf16.msra.mxu1 %v1761_v56  ;;  %v1846_v55 = vld [vmem:[%s2425_s1 + $0x360] ss:$16 sps:$4 sm:$0xff]   ;;  %v1849_v56 = vld [vmem:[%s2425_s1 + $0x368] ss:$16 sps:$4 sm:$0xff]  }
  0x3c   : > { %1093 = vmatprep.subr.bf16.mxu0 %v1762_v57  ;;  %1239 = vmatprep.subr.bf16.mxu1 %v1764_v58  ;;  %v1857_v57 = vld [vmem:[%s2425_s1 + $0x384] ss:$16 sps:$4 sm:$0xff]   ;;  %v1860_v58 = vld [vmem:[%s2425_s1 + $0x38c] ss:$16 sps:$4 sm:$0xff]  }
  0x3f   : > { %1094 = vmatpush1.bf16.msra.mxu0 %v1766_v59  ;;  %1240 = vmatpush1.bf16.msra.mxu1 %v1767_v60  ;;  %v1855_v59 = vld [vmem:[%s2425_s1 + $0x380] ss:$16 sps:$4 sm:$0xff]   ;;  %v1858_v60 = vld [vmem:[%s2425_s1 + $0x388] ss:$16 sps:$4 sm:$0xff]  }
  0x40   : > { %1095 = vmatprep.subr.bf16.mxu0 %v1768_v61  ;;  %1241 = vmatprep.subr.bf16.mxu1 %v1770_v62  ;;  %v1863_v61 = vld [vmem:[%s2425_s1 + $0x3a4] ss:$16 sps:$4 sm:$0xff]   ;;  %v1866_v62 = vld [vmem:[%s2425_s1 + $0x3ac] ss:$16 sps:$4 sm:$0xff]  }
  0x43   : > { %1096 = vmatpush1.bf16.msra.mxu0 %v1772_v63  ;;  %1242 = vmatpush1.bf16.msra.mxu1 %v1773_v0  ;;  %v1861_v63 = vld [vmem:[%s2425_s1 + $0x3a0] ss:$16 sps:$4 sm:$0xff]   ;;  %v1864_v0 = vld [vmem:[%s2425_s1 + $0x3a8] ss:$16 sps:$4 sm:$0xff]  }
  0x44   : > { %1138 = vmatprep.subr.bf16.mxu0 %v1779_v1  ;;  %1284 = vmatprep.subr.bf16.mxu1 %v1782_v2  ;;  %v1872_v1 = vld [vmem:[%s2425_s1 + $0x3c4] ss:$16 sps:$4 sm:$0xff]   ;;  %v1875_v2 = vld [vmem:[%s2425_s1 + $0x3cc] ss:$16 sps:$4 sm:$0xff]  }
  0x46   : > { %1098 = vmatmul.mubr.bf16.vlgmr.msra.gmra.mrb[0].mxu0 %v1774_v3  ;;  %1244 = vmatmul.mubr.bf16.vlgmr.msra.gmra.mrb[0].mxu1 %v1774_v3  ;;  %v1870_v3 = vld [vmem:[%s2425_s1 + $0x3c0] ss:$16 sps:$4 sm:$0xff]  }
  0x47   : > { %1139 = vmatpush1.bf16.msra.mxu0 %v1777_v4  ;;  %1285 = vmatpush1.bf16.msra.mxu1 %v1780_v5  ;;  %v1873_v4 = vld [vmem:[%s2425_s1 + $0x3c8] ss:$16 sps:$4 sm:$0xff]   ;;  %v1878_v5 = vld [vmem:[%s2425_s1 + $0x3e4] ss:$16 sps:$4 sm:$0xff]  }
  0x48   : > { %1140 = vmatprep.subr.bf16.mxu0 %v1785_v6  ;;  %1286 = vmatprep.subr.bf16.mxu1 %v1788_v7  ;;  %v1881_v6 = vld [vmem:[%s2425_s1 + $0x3ec] ss:$16 sps:$4 sm:$0xff]   ;;  %v1876_v7 = vld [vmem:[%s2425_s1 + $0x3e0] ss:$16 sps:$4 sm:$0xff]  }
  0x49   : > { %1107 = vmatprep.mubr.bf16.mxu0 %v1837_v14  ;;  %1253 = vmatprep.mubr.bf16.mxu1 %v1837_v14  ;;  %v1891_v14 = vld [vmem:[%s2073_s13 + $0x6c] ss:$16 sps:$4 sm:$0xff]  }
  0x4b   : > { %1141 = vmatpush1.bf16.msra.mxu0 %v1783_v8  ;;  %1287 = vmatpush1.bf16.msra.mxu1 %v1786_v9  ;;  %v1879_v8 = vld [vmem:[%s2425_s1 + $0x3e8] ss:$16 sps:$4 sm:$0xff]  }
  0x4c   : > { %1142 = vmatprep.subr.bf16.mxu0 %v1791_v10  ;;  %1288 = vmatprep.subr.bf16.mxu1 %v1794_v11  ;;  %v1882_v9 = vld [vmem:[%s2073_s13 + $0x8] ss:$16 sps:$4 sm:$0xff]   ;;  %v1885_v10 = vld [vmem:[%s2073_s13 + $0x2c] ss:$16 sps:$4 sm:$0xff]  }
  0x4d   : > { %v1887_v11 = vld [vmem:[%s2073_s13 + $0x28] ss:$16 sps:$4 sm:$0xff]  }
  0x4e   : > { %1108 = vmatmul.mubr.bf16.gmra.mrb[4].mxu0 %v1839_v15  ;;  %1254 = vmatmul.mubr.bf16.gmra.mrb[4].mxu1 %v1839_v15  ;;  %v1893_v15 = vld [vmem:[%s2073_s13 + $0x68] ss:$16 sps:$4 sm:$0xff]  }
  0x4f   : > { %1143 = vmatpush1.bf16.msra.mxu0 %v1789_v12  ;;  %1289 = vmatpush1.bf16.msra.mxu1 %v1792_v13  ;;  %v1888_v12 = vld [vmem:[%s2073_s13 + $0x4c] ss:$16 sps:$4 sm:$0xff]   ;;  %v1890_v13 = vld [vmem:[%s2073_s13 + $0x48] ss:$16 sps:$4 sm:$0xff]  }
  0x50   : > { %1144 = vmatprep.subr.bf16.mxu0 %v1797_v16  ;;  %1290 = vmatprep.subr.bf16.mxu1 %v1800_v17  ;;  %v325_v16 = vlaneseq }
  0x51   : > { %1117 = vmatprep.mubr.bf16.mxu0 %v1852_v23  ;;  %1263 = vmatprep.mubr.bf16.mxu1 %v1852_v23 }
  0x52   : > { %v326_v17 = vshrl.u32 %v325_v16, 7 }
  0x53   : > { %1145 = vmatpush1.bf16.msra.mxu0 %v1795_v18  ;;  %1291 = vmatpush1.bf16.msra.mxu1 %v1798_v19 }
  0x54   : > { %1146 = vmatprep.subr.bf16.mxu0 %v1803_v20  ;;  %1292 = vmatprep.subr.bf16.mxu1 %v1806_v21  ;;  %v327_v18 = vsub.s32 0, %v326_v17  ;;  %v335_v19 = vsub.s32 2, %v326_v17  ;;  %v323_v20 = vld [vmem:[%s2426_s2] sm:$0xf]  ;;  %v331_v21 = vsub.s32 1, %v326_v17 }
  0x56   : > { %1118 = vmatmul.mubr.bf16.gmra.mrb[8].mxu0 %v1854_v25  ;;  %1264 = vmatmul.mubr.bf16.gmra.mrb[8].mxu1 %v1854_v25  ;;  %v2344_v23 = vrot.slane %v323_v20, %v327_v18  ;;  %v2348_v25 = vrot.slane %v323_v20, %v331_v21 }
  0x57   : > { %1147 = vmatpush1.bf16.msra.mxu0 %v1801_v22  ;;  %1293 = vmatpush1.bf16.msra.mxu1 %v1804_v24  ;;  %v339_v22 = vsub.s32 3, %v326_v17  ;;  %v2346_v24 = vrot.slane %v323_v20, %v335_v19 }
  0x58   : > { %1148 = vmatprep.subr.bf16.mxu0 %v1809_v26  ;;  %1294 = vmatprep.subr.bf16.mxu1 %v1812_v27 }
  0x59   : > { %1127 = vmatprep.mubr.bf16.mxu0 %v1867_v31  ;;  %1273 = vmatprep.mubr.bf16.mxu1 %v1867_v31  ;;  %v2350_v26 = vrot.slane %v323_v20, %v339_v22 }
  0x5b   : > { %1149 = vmatpush1.bf16.msra.mxu0 %v1807_v28  ;;  %1295 = vmatpush1.bf16.msra.mxu1 %v1810_v29 }
  0x5c   : > { %1150 = vmatprep.subr.bf16.mxu0 %v1815_v30  ;;  %1296 = vmatprep.subr.bf16.mxu1 %v1818_v32 }
  0x5e   : > { %1128 = vmatmul.mubr.bf16.gmra.mrb[12].mxu0 %v1869_v35  ;;  %1274 = vmatmul.mubr.bf16.gmra.mrb[12].mxu1 %v1869_v35 }
  0x5f   : > { %1151 = vmatpush1.bf16.msra.mxu0 %v1813_v33  ;;  %1297 = vmatpush1.bf16.msra.mxu1 %v1816_v34 }
  0x60   : > { %1152 = vmatprep.subr.bf16.mxu0 %v1821_v36  ;;  %1298 = vmatprep.subr.bf16.mxu1 %v1824_v37 }
  0x61   : > { %1170 = vmatprep.mubr.bf16.mxu0 %v1884_v40  ;;  %1316 = vmatprep.mubr.bf16.mxu1 %v1884_v40 }
  0x63   : > { %1153 = vmatpush1.bf16.msra.mxu0 %v1819_v38  ;;  %1299 = vmatpush1.bf16.msra.mxu1 %v1822_v39 }
  0x64   : > { %1154 = vmatprep.subr.bf16.mxu0 %v1827_v41  ;;  %1300 = vmatprep.subr.bf16.mxu1 %v1830_v42 }
  0x67   : > { %1155 = vmatpush1.bf16.msra.mxu0 %v1825_v43  ;;  %1301 = vmatpush1.bf16.msra.mxu1 %v1828_v44 }
  0x68   : > { %1156 = vmatprep.subr.bf16.mxu0 %v1833_v45  ;;  %1302 = vmatprep.subr.bf16.mxu1 %v1836_v46 }
  0x6b   : > { %1157 = vmatpush1.bf16.msra.mxu0 %v1831_v47  ;;  %1303 = vmatpush1.bf16.msra.mxu1 %v1834_v48 }
  0x6c   : > { %1158 = vmatprep.subr.bf16.mxu0 %v1842_v49  ;;  %1304 = vmatprep.subr.bf16.mxu1 %v1845_v50 }
  0x6f   : > { %1159 = vmatpush1.bf16.msra.mxu0 %v1840_v51  ;;  %1305 = vmatpush1.bf16.msra.mxu1 %v1843_v52 }
  0x70   : > { %1160 = vmatprep.subr.bf16.mxu0 %v1848_v53  ;;  %1306 = vmatprep.subr.bf16.mxu1 %v1851_v54 }
  0x73   : > { %1161 = vmatpush1.bf16.msra.mxu0 %v1846_v55  ;;  %1307 = vmatpush1.bf16.msra.mxu1 %v1849_v56 }
  0x74   : > { %1162 = vmatprep.subr.bf16.mxu0 %v1857_v57  ;;  %1308 = vmatprep.subr.bf16.mxu1 %v1860_v58 }
  0x77   : > { %1163 = vmatpush1.bf16.msra.mxu0 %v1855_v59  ;;  %1309 = vmatpush1.bf16.msra.mxu1 %v1858_v60 }
  0x78   : > { %1164 = vmatprep.subr.bf16.mxu0 %v1863_v61  ;;  %1310 = vmatprep.subr.bf16.mxu1 %v1866_v62 }
  0x7b   : > { %1165 = vmatpush1.bf16.msra.mxu0 %v1861_v63  ;;  %1311 = vmatpush1.bf16.msra.mxu1 %v1864_v0 }
  0x7c   : > { %1166 = vmatprep.subr.bf16.mxu0 %v1872_v1  ;;  %1312 = vmatprep.subr.bf16.mxu1 %v1875_v2 }
  0x7f   : > { %1167 = vmatpush1.bf16.msra.mxu0 %v1870_v3  ;;  %1313 = vmatpush1.bf16.msra.mxu1 %v1873_v4 }
  0x80   : > { %1168 = vmatprep.subr.bf16.mxu0 %v1878_v5  ;;  %1314 = vmatprep.subr.bf16.mxu1 %v1881_v6 }
  0x83   : > { %1169 = vmatpush1.bf16.msra.mxu0 %v1876_v7  ;;  %1315 = vmatpush1.bf16.msra.mxu1 %v1879_v8 }
  0x86   : > { %1171 = vmatmul.mubr.bf16.vlgmr.msra.gmra.mrb[0].mxu0 %v1882_v9  ;;  %1317 = vmatmul.mubr.bf16.vlgmr.msra.gmra.mrb[0].mxu1 %v1882_v9 }
  0x87   : > { %1180 = vmatprep.mubr.bf16.mxu0 %v1885_v10  ;;  %1326 = vmatprep.mubr.bf16.mxu1 %v1885_v10 }
  0x8e   : > { %1181 = vmatmul.mubr.bf16.gmra.mrb[4].mxu0 %v1887_v11  ;;  %1327 = vmatmul.mubr.bf16.gmra.mrb[4].mxu1 %v1887_v11 }
  0x8f   : > { %1190 = vmatprep.mubr.bf16.mxu0 %v1888_v12  ;;  %1336 = vmatprep.mubr.bf16.mxu1 %v1888_v12 }
  0x96   : > { %1191 = vmatmul.mubr.bf16.gmra.mrb[8].mxu0 %v1890_v13  ;;  %1337 = vmatmul.mubr.bf16.gmra.mrb[8].mxu1 %v1890_v13 }
  0x97   : > { %1200 = vmatprep.mubr.bf16.mxu0 %v1891_v14  ;;  %1346 = vmatprep.mubr.bf16.mxu1 %v1891_v14 }
  0x9e   : > { %1201 = vmatmul.mubr.bf16.gmra.mrb[12].mxu0 %v1893_v15  ;;  %1347 = vmatmul.mubr.bf16.gmra.mrb[12].mxu1 %v1893_v15 }
 0x159   : > { %v1172_v27 = vpop.f32.mrb[0].mxu0  ;;  %v1318_v28 = vpop.f32.mrb[0].mxu1 }
 0x15a   : > { %v1606_v29 = vadd.f32 %v1172_v27, %v2344_v23  ;;  %v1622_v30 = vadd.f32 %v1318_v28, %v2346_v24  ;;  %v1174_v31 = vpop.f32.mrb[1].mxu0  ;;  %v1320_v32 = vpop.f32.mrb[1].mxu1 }
 0x15b   : > { %v1607_v33 = vadd.f32 %v1174_v31, %v2348_v25  ;;  %v1623_v34 = vadd.f32 %v1320_v32, %v2350_v26  ;;  %v1176_v35 = vpop.f32.mrb[2].mxu0  ;;  %v1322_v36 = vpop.f32.mrb[2].mxu1 }
 0x15c   : > { %1357 = vst [vmem:[%s2355_s8] sm:$0xff] %v1606_v29  ;;  %1359 = vst [vmem:[%s2355_s8 + $0x10] sm:$0xff] %v1622_v30  ;;  %v1608_v37 = vadd.f32 %v1176_v35, %v2344_v23  ;;  %v1624_v38 = vadd.f32 %v1322_v36, %v2346_v24  ;;  %v1178_v39 = vpop.f32.mrb[3].mxu0  ;;  %v1324_v40 = vpop.f32.mrb[3].mxu1 }
 0x15d   : > { %1358 = vst [vmem:[%s2355_s8 + $0x8] sm:$0xff] %v1607_v33  ;;  %1360 = vst [vmem:[%s2355_s8 + $0x18] sm:$0xff] %v1623_v34  ;;  %v1609_v41 = vadd.f32 %v1178_v39, %v2348_v25  ;;  %v1625_v42 = vadd.f32 %v1324_v40, %v2350_v26 }
 0x15e   : > { %1361 = vst [vmem:[%s2355_s8 + $0x20] sm:$0xff] %v1608_v37  ;;  %1363 = vst [vmem:[%s2355_s8 + $0x30] sm:$0xff] %v1624_v38 }
 0x15f   : > { %1362 = vst [vmem:[%s2355_s8 + $0x28] sm:$0xff] %v1609_v41  ;;  %1364 = vst [vmem:[%s2355_s8 + $0x38] sm:$0xff] %v1625_v42 }
 0x161   : > { %v1182_v43 = vpop.f32.mrb[4].mxu0  ;;  %v1328_v44 = vpop.f32.mrb[4].mxu1 }
 0x162   : > { %v1610_v45 = vadd.f32 %v1182_v43, %v2344_v23  ;;  %v1626_v46 = vadd.f32 %v1328_v44, %v2346_v24  ;;  %v1184_v47 = vpop.f32.mrb[5].mxu0  ;;  %v1330_v48 = vpop.f32.mrb[5].mxu1 }
 0x163   : > { %v1611_v49 = vadd.f32 %v1184_v47, %v2348_v25  ;;  %v1627_v50 = vadd.f32 %v1330_v48, %v2350_v26  ;;  %v1186_v51 = vpop.f32.mrb[6].mxu0  ;;  %v1332_v52 = vpop.f32.mrb[6].mxu1 }
 0x164   : > { %1365 = vst [vmem:[%s2355_s8 + $0x40] sm:$0xff] %v1610_v45  ;;  %1367 = vst [vmem:[%s2355_s8 + $0x50] sm:$0xff] %v1626_v46  ;;  %v1612_v53 = vadd.f32 %v1186_v51, %v2344_v23  ;;  %v1628_v54 = vadd.f32 %v1332_v52, %v2346_v24  ;;  %v1188_v55 = vpop.f32.mrb[7].mxu0  ;;  %v1334_v56 = vpop.f32.mrb[7].mxu1 }
 0x165   : > { %1366 = vst [vmem:[%s2355_s8 + $0x48] sm:$0xff] %v1611_v49  ;;  %1368 = vst [vmem:[%s2355_s8 + $0x58] sm:$0xff] %v1627_v50  ;;  %v1613_v57 = vadd.f32 %v1188_v55, %v2348_v25  ;;  %v1629_v58 = vadd.f32 %v1334_v56, %v2350_v26 }
 0x166   : > { %1369 = vst [vmem:[%s2355_s8 + $0x60] sm:$0xff] %v1612_v53  ;;  %1371 = vst [vmem:[%s2355_s8 + $0x70] sm:$0xff] %v1628_v54 }
 0x167   : > { %1370 = vst [vmem:[%s2355_s8 + $0x68] sm:$0xff] %v1613_v57  ;;  %1372 = vst [vmem:[%s2355_s8 + $0x78] sm:$0xff] %v1629_v58 }
 0x169   : > { %v1192_v59 = vpop.f32.mrb[8].mxu0  ;;  %v1338_v60 = vpop.f32.mrb[8].mxu1 }
 0x16a   : > { %v1614_v61 = vadd.f32 %v1192_v59, %v2344_v23  ;;  %v1630_v62 = vadd.f32 %v1338_v60, %v2346_v24  ;;  %v1194_v63 = vpop.f32.mrb[9].mxu0  ;;  %v1340_v0 = vpop.f32.mrb[9].mxu1 }
 0x16b   : > { %v1615_v1 = vadd.f32 %v1194_v63, %v2348_v25  ;;  %v1631_v2 = vadd.f32 %v1340_v0, %v2350_v26  ;;  %v1196_v3 = vpop.f32.mrb[10].mxu0  ;;  %v1342_v4 = vpop.f32.mrb[10].mxu1 }
 0x16c   : > { %1373 = vst [vmem:[%s2355_s8 + $0x80] sm:$0xff] %v1614_v61  ;;  %1375 = vst [vmem:[%s2355_s8 + $0x90] sm:$0xff] %v1630_v62  ;;  %v1616_v5 = vadd.f32 %v1196_v3, %v2344_v23  ;;  %v1632_v6 = vadd.f32 %v1342_v4, %v2346_v24  ;;  %v1198_v7 = vpop.f32.mrb[11].mxu0  ;;  %v1344_v8 = vpop.f32.mrb[11].mxu1 }
 0x16d   : > { %1374 = vst [vmem:[%s2355_s8 + $0x88] sm:$0xff] %v1615_v1  ;;  %1376 = vst [vmem:[%s2355_s8 + $0x98] sm:$0xff] %v1631_v2  ;;  %v1617_v9 = vadd.f32 %v1198_v7, %v2348_v25  ;;  %v1633_v10 = vadd.f32 %v1344_v8, %v2350_v26 }
 0x16e   : > { %1377 = vst [vmem:[%s2355_s8 + $0xa0] sm:$0xff] %v1616_v5  ;;  %1379 = vst [vmem:[%s2355_s8 + $0xb0] sm:$0xff] %v1632_v6 }
 0x16f   : > { %1378 = vst [vmem:[%s2355_s8 + $0xa8] sm:$0xff] %v1617_v9  ;;  %1380 = vst [vmem:[%s2355_s8 + $0xb8] sm:$0xff] %v1633_v10 }
 0x171   : > { %v1202_v11 = vpop.f32.mrb[12].mxu0  ;;  %v1348_v12 = vpop.f32.mrb[12].mxu1 }
 0x172   : > { %v1618_v13 = vadd.f32 %v1202_v11, %v2344_v23  ;;  %v1634_v14 = vadd.f32 %v1348_v12, %v2346_v24  ;;  %v1204_v15 = vpop.f32.mrb[13].mxu0  ;;  %v1350_v16 = vpop.f32.mrb[13].mxu1 }
 0x173   : > { %v1619_v17 = vadd.f32 %v1204_v15, %v2348_v25  ;;  %v1635_v18 = vadd.f32 %v1350_v16, %v2350_v26  ;;  %v1206_v19 = vpop.f32.mrb[14].mxu0  ;;  %v1352_v20 = vpop.f32.mrb[14].mxu1 }
 0x174   : > { %1381 = vst [vmem:[%s2355_s8 + $0xc0] sm:$0xff] %v1618_v13  ;;  %1383 = vst [vmem:[%s2355_s8 + $0xd0] sm:$0xff] %v1634_v14  ;;  %v1620_v21 = vadd.f32 %v1206_v19, %v2344_v23  ;;  %v1636_v22 = vadd.f32 %v1352_v20, %v2346_v24  ;;  %v1208_v27 = vpop.f32.mrb[15].mxu0  ;;  %v1354_v28 = vpop.f32.mrb[15].mxu1 }
 0x175   : > { %1382 = vst [vmem:[%s2355_s8 + $0xc8] sm:$0xff] %v1619_v17  ;;  %1384 = vst [vmem:[%s2355_s8 + $0xd8] sm:$0xff] %v1635_v18  ;;  %v1621_v29 = vadd.f32 %v1208_v27, %v2348_v25  ;;  %v1637_v30 = vadd.f32 %v1354_v28, %v2350_v26 }
 0x176   : > { %1385 = vst [vmem:[%s2355_s8 + $0xe0] sm:$0xff] %v1620_v21  ;;  %1387 = vst [vmem:[%s2355_s8 + $0xf0] sm:$0xff] %v1636_v22 }
 0x177   : > { %1386 = vst [vmem:[%s2355_s8 + $0xe8] sm:$0xff] %v1621_v29  ;;  %1388 = vst [vmem:[%s2355_s8 + $0xf8] sm:$0xff] %v1637_v30 }
 0x178 PF: > { %s13_s12 = sadd.s32 1, %s1900_s12  }
 0x179   : > { %p10_p4 = scmp.ge.s32.totalorder %s13_s12, 4  }
 0x17b   :  { %12 = sbr.rel (!%p10_p4) target bundleno = 1 (0x1), region = 62 }

// kernel: generator_forward.14
= control target key start
LH: loop header
LB: loop body
LE: loop exit
PB: predicated region body
PF: predicated region fallthrough
CT: control target
= control target key end

     0   :  { %s290_s6 = smov 0   ;;  %s340_s0 = inlined_call_operand.vmem [shape: f32[400,128], index: 0, kind: input, shape index: {}]   ;;  %s341_s1 = inlined_call_operand.vmem [shape: f32[8,128], index: 1, kind: output, shape index: {}]  }
   0x1 LB: > { %s254_s7 = sadd.s32 4294967295, %s277_s6   ;;  %p257_p0 = scmp.ge.s32.totalorder %s277_s6, 1  ;;  %s277_s6 = sphi %s290_s6, %s11_s6  }
   0x2   : > { %p83_p1 = scmp.lt.s32.totalorder %s277_s6, 3 }
   0x4   : > { %p84_p2 = pnand %p257_p0, %p83_p1 }
   0x5   : > { %s98_s8 = smul.u32 (!%p84_p2), 25, %s254_s7  ;;  %p259_p4 = scmp.ne.s32.totalorder (!%p84_p2), %s254_s7, 0 }
   0x6   : > { %87 = sbr.rel (%p84_p2) target bundleno = 88 (0x58), region = 24 }
   0x7   : > { %p99_p3 = scmp.lt.s32.totalorder (!%p84_p2), %s98_s8, 49 }
   0xd   : > { %s343_s8 = smov (!%p99_p3, %s98_s8), 49  ;;  %107 = sbr.rel (%p259_p4) target bundleno = 20 (0x14), region = 28 }
   0xe   : > { %s258_s9 = sshll.u32 %s343_s8, 3  ;;  %v279_v0 = vmov (!%p259_p4), 0.0  }
   0xf   : > { %s301_s12 = scalar_lea.vmem %s340_s0, %s258_s9  ;;  %108 = vst [vmem:[%s341_s1] sm:$0xff] (!%p259_p4), %v279_v0 }
  0x14 PF: > { %v109_v1 = vld [vmem:[%s301_s12] sm:$0xff]  ;;  %v110_v2 = vld [vmem:[%s301_s12 + $0x8] sm:$0xff]  ;;  %v111_v3 = vld [vmem:[%s301_s12 + $0x10] sm:$0xff]  ;;  %vm219_vm0 = vcmask 1040384   ;;  %vm221_vm1 = vcmask 1041408  }
  0x15   : > { %v112_v4 = vld [vmem:[%s301_s12 + $0x18] sm:$0xff]  ;;  %v134_v5 = vadd.f32 %v110_v2, %v109_v1  ;;  %v164_v6 = vmul.f32 %v109_v1, %v109_v1  ;;  %v165_v7 = vmul.f32 %v110_v2, %v110_v2  ;;  %v166_v8 = vmul.f32 %v111_v3, %v111_v3  ;;  %v113_v9 = vld [vmem:[%s301_s12 + $0x20] sm:$0xff]  ;;  %v114_v13 = vld [vmem:[%s301_s12 + $0x28] sm:$0xff] }
  0x16   : > { %v167_v11 = vmul.f32 %v112_v4, %v112_v4  ;;  %v168_v15 = vmul.f32 %v113_v9, %v113_v9  ;;  %v115_v17 = vld [vmem:[%s301_s12 + $0x30] sm:$0xff]  ;;  %v169_v19 = vmul.f32 %v114_v13, %v114_v13  ;;  %v116_v21 = vld [vmem:[%s301_s12 + $0x38] sm:$0xff]  ;;  %v117_v25 = vld [vmem:[%s301_s12 + $0x40] sm:$0xff] }
  0x17   : > { %v135_v10 = vadd.f32 %v134_v5, %v111_v3  ;;  %v189_v12 = vadd.f32 %v165_v7, %v164_v6  ;;  %v170_v23 = vmul.f32 %v115_v17, %v115_v17  ;;  %v171_v27 = vmul.f32 %v116_v21, %v116_v21  ;;  %v118_v29 = vld [vmem:[%s301_s12 + $0x48] sm:$0xff]  ;;  %v119_v33 = vld [vmem:[%s301_s12 + $0x50] sm:$0xff]  ;;  %v120_v37 = vld [vmem:[%s301_s12 + $0x58] sm:$0xff] }
  0x18   : > { %v172_v31 = vmul.f32 %v117_v25, %v117_v25  ;;  %v173_v35 = vmul.f32 %v118_v29, %v118_v29  ;;  %v174_v39 = vmul.f32 %v119_v33, %v119_v33  ;;  %v121_v41 = vld [vmem:[%s301_s12 + $0x60] sm:$0xff]  ;;  %v175_v43 = vmul.f32 %v120_v37, %v120_v37  ;;  %v122_v45 = vld [vmem:[%s301_s12 + $0x68] sm:$0xff]  ;;  %v123_v49 = vld [vmem:[%s301_s12 + $0x70] sm:$0xff] }
  0x19   : > { %v136_v14 = vadd.f32 %v135_v10, %v112_v4  ;;  %v190_v16 = vadd.f32 %v189_v12, %v166_v8  ;;  %v176_v47 = vmul.f32 %v121_v41, %v121_v41  ;;  %v177_v51 = vmul.f32 %v122_v45, %v122_v45  ;;  %v124_v53 = vld [vmem:[%s301_s12 + $0x78] sm:$0xff]  ;;  %v125_v57 = vld [vmem:[%s301_s12 + $0x80] sm:$0xff]  ;;  %v126_v61 = vld [vmem:[%s301_s12 + $0x88] sm:$0xff] }
  0x1a   : > { %v178_v55 = vmul.f32 %v123_v49, %v123_v49  ;;  %v179_v59 = vmul.f32 %v124_v53, %v124_v53  ;;  %v180_v63 = vmul.f32 %v125_v57, %v125_v57  ;;  %v127_v1 = vld [vmem:[%s301_s12 + $0x90] sm:$0xff]  ;;  %v181_v3 = vmul.f32 %v126_v61, %v126_v61  ;;  %v128_v5 = vld [vmem:[%s301_s12 + $0x98] sm:$0xff] }
  0x1b   : > { %v137_v18 = vadd.f32 %v136_v14, %v113_v9  ;;  %v191_v20 = vadd.f32 %v190_v16, %v167_v11  ;;  %v182_v7 = vmul.f32 %v127_v1, %v127_v1  ;;  %v129_v9 = vld [vmem:[%s301_s12 + $0xa0] sm:$0xff]  ;;  %v183_v11 = vmul.f32 %v128_v5, %v128_v5 }
  0x1d   : > { %v138_v22 = vadd.f32 %v137_v18, %v114_v13  ;;  %v192_v24 = vadd.f32 %v191_v20, %v168_v15  ;;  %v130_v13 = vld [vmem:[%s301_s12 + $0xa8] sm:$0xff]  ;;  %v184_v15 = vmul.f32 %v129_v9, %v129_v9 }
  0x1f   : > { %v139_v26 = vadd.f32 %v138_v22, %v115_v17  ;;  %v193_v28 = vadd.f32 %v192_v24, %v169_v19  ;;  %v131_v17 = vld [vmem:[%s301_s12 + $0xb0] sm:$0xff]  ;;  %v185_v19 = vmul.f32 %v130_v13, %v130_v13 }
  0x21   : > { %v140_v30 = vadd.f32 %v139_v26, %v116_v21  ;;  %v194_v32 = vadd.f32 %v193_v28, %v170_v23  ;;  %v132_v21 = vld [vmem:[%s301_s12 + $0xb8] sm:$0xff]  ;;  %v186_v23 = vmul.f32 %v131_v17, %v131_v17 }
  0x23   : > { %v141_v34 = vadd.f32 %v140_v30, %v117_v25  ;;  %v195_v36 = vadd.f32 %v194_v32, %v171_v27  ;;  %v133_v25 = vld [vmem:[%s301_s12 + $0xc0] sm:$0xff]  ;;  %v187_v27 = vmul.f32 %v132_v21, %v132_v21 }
  0x24   : > { %v188_v30 = vmul.f32 %v133_v25, %v133_v25 }
  0x25   : > { %v142_v38 = vadd.f32 %v141_v34, %v118_v29  ;;  %v196_v40 = vadd.f32 %v195_v36, %v172_v31 }
  0x27   : > { %v143_v42 = vadd.f32 %v142_v38, %v119_v33  ;;  %v197_v44 = vadd.f32 %v196_v40, %v173_v35 }
  0x29   : > { %v144_v46 = vadd.f32 %v143_v42, %v120_v37  ;;  %v198_v48 = vadd.f32 %v197_v44, %v174_v39 }
  0x2b   : > { %v145_v50 = vadd.f32 %v144_v46, %v121_v41  ;;  %v199_v52 = vadd.f32 %v198_v48, %v175_v43 }
  0x2d   : > { %v146_v54 = vadd.f32 %v145_v50, %v122_v45  ;;  %v200_v56 = vadd.f32 %v199_v52, %v176_v47  ;;  %v223_v47 = vld [vmem:[%s341_s1] sm:$0xff] }
  0x2f   : > { %v147_v58 = vadd.f32 %v146_v54, %v123_v49  ;;  %v201_v60 = vadd.f32 %v200_v56, %v177_v51 }
  0x31   : > { %v148_v62 = vadd.f32 %v147_v58, %v124_v53  ;;  %v202_v0 = vadd.f32 %v201_v60, %v178_v55 }
  0x33   : > { %v149_v2 = vadd.f32 %v148_v62, %v125_v57  ;;  %v203_v4 = vadd.f32 %v202_v0, %v179_v59 }
  0x35   : > { %v150_v6 = vadd.f32 %v149_v2, %v126_v61  ;;  %v204_v8 = vadd.f32 %v203_v4, %v180_v63 }
  0x37   : > { %v151_v10 = vadd.f32 %v150_v6, %v127_v1  ;;  %v205_v12 = vadd.f32 %v204_v8, %v181_v3 }
  0x39   : > { %v152_v14 = vadd.f32 %v151_v10, %v128_v5  ;;  %v206_v16 = vadd.f32 %v205_v12, %v182_v7 }
  0x3b   : > { %v153_v18 = vadd.f32 %v152_v14, %v129_v9  ;;  %v207_v20 = vadd.f32 %v206_v16, %v183_v11 }
  0x3d   : > { %v154_v22 = vadd.f32 %v153_v18, %v130_v13  ;;  %v208_v24 = vadd.f32 %v207_v20, %v184_v15 }
  0x3f   : > { %v155_v26 = vadd.f32 %v154_v22, %v131_v17  ;;  %v209_v28 = vadd.f32 %v208_v24, %v185_v19 }
  0x41   : > { %v156_v29 = vadd.f32 %v155_v26, %v132_v21  ;;  %v210_v31 = vadd.f32 %v209_v28, %v186_v23 }
  0x43   : > { %v157_v32 = vadd.f32 %v156_v29, %v133_v25  ;;  %v211_v33 = vadd.f32 %v210_v31, %v187_v27 }
  0x45   : > { %v158_v34 = vrot.slane %v157_v32, 4  ;;  %v212_v35 = vadd.f32 %v211_v33, %v188_v30 }
  0x47   : > { %v159_v36 = vadd.f32 %v158_v34, %v157_v32  ;;  %v213_v37 = vrot.slane %v212_v35, 4 }
  0x49   : > { %v160_v38 = vrot.slane %v159_v36, 2  ;;  %v214_v39 = vadd.f32 %v213_v37, %v212_v35 }
  0x4b   : > { %v161_v40 = vadd.f32 %v160_v38, %v159_v36  ;;  %v215_v41 = vrot.slane %v214_v39, 2 }
  0x4d   : > { %v162_v42 = vrot.slane %v161_v40, 1  ;;  %v216_v43 = vadd.f32 %v215_v41, %v214_v39 }
  0x4f   : > { %v163_v44 = vadd.f32 %v162_v42, %v161_v40  ;;  %v217_v45 = vrot.slane %v216_v43, 1 }
  0x51   : > { %v218_v46 = vadd.f32 %v217_v45, %v216_v43 }
  0x53   : > { %v220_v48 = vsel %vm219_vm0, %v163_v44, %v218_v46 }
  0x54   : > { %v222_v49 = vsel %vm221_vm1, %v220_v48, 0.0 }
  0x55   : > { %v224_v50 = vadd.f32 %v223_v47, %v222_v49 }
  0x57   : > { %225 = vst [vmem:[%s341_s1] sm:$0xff] %v224_v50 }
  0x58 PF: > { %s11_s6 = sadd.s32 1, %s277_s6  }
  0x59   : > { %p8_p5 = scmp.ge.s32.totalorder %s11_s6, 4  }
  0x5b   :  { %10 = sbr.rel (!%p8_p5) target bundleno = 1 (0x1), region = 54 }

// kernel: generator_forward.15
= control target key start
LH: loop header
LB: loop body
LE: loop exit
PB: predicated region body
PF: predicated region fallthrough
CT: control target
= control target key end

     0   :  { %s681_s15 = smov 0   ;;  %s810_s0 = inlined_call_operand.vmem [shape: f32[400,128], index: 0, kind: input, shape index: {}]   ;;  %s811_s1 = inlined_call_operand.vmem [shape: f32[8,128], index: 1, kind: input, shape index: {}]   ;;  %s812_s2 = inlined_call_operand.vmem [shape: f32[1,128], index: 2, kind: input, shape index: {}]   ;;  %s813_s3 = inlined_call_operand.vmem [shape: f32[1,128], index: 3, kind: input, shape index: {}]   ;;  %s814_s4 = inlined_call_operand.vmem [shape: bf16[400,128], index: 4, kind: output, shape index: {}]  }
   0x1 LB: > { %s508_s16 = sadd.s32 4294967295, %s654_s15   ;;  %p512_p0 = scmp.ge.s32.totalorder %s654_s15, 1  ;;  %s654_s15 = sphi %s681_s15, %s14_s15  }
   0x2   : > { %p163_p1 = scmp.lt.s32.totalorder %s654_s15, 3 }
   0x4   : > { %p164_p2 = pnand %p512_p0, %p163_p1 }
   0x5   : > { %v201_v0 = vld [vmem:[%s811_s1] sm:$0x1] (!%p164_p2)  ;;  %v203_v1 = vld [vmem:[%s811_s1 + $0x1] sm:$0x1] (!%p164_p2)  ;;  %s189_s21 = smul.u32 (!%p164_p2), 25, %s508_s16  ;;  %v240_v7 = vlaneseq (!%p164_p2) }
   0x6   : > { %167 = sbr.rel (%p164_p2) target bundleno = 57 (0x39), region = 36  ;;  %v202_v2 = vmul.f32 (!%p164_p2), 0.0025510204, %v201_v0  ;;  %v204_v3 = vmul.f32 (!%p164_p2), 0.0025510204, %v203_v1 }
   0x7   : > { %p190_p3 = scmp.lt.s32.totalorder (!%p164_p2), %s189_s21, 49  ;;  %v241_v8 = vshrl.u32 (!%p164_p2), %v240_v7, 7  ;;  %v207_v9 = vld [vmem:[%s812_s2] sm:$0x1] (!%p164_p2) }
   0x8   : > { %v205_v4 = vmul.f32 (!%p164_p2), %v202_v2, %v202_v2  ;;  %v211_v13 = vld [vmem:[%s813_s3] sm:$0x1] (!%p164_p2) }
   0x9   : > { %v242_v10 = vsub.s32 (!%p164_p2), 0, %v241_v8 }
   0xa   : > { %v206_v5 = vsub.f32 (!%p164_p2), %v204_v3, %v205_v4 }
   0xc   : > { %v208_v6 = vadd.f32 (!%p164_p2), 1e-05, %v206_v5 }
   0xd   : > { %s816_s21 = smov (!%p190_p3, %s189_s21), 49 }
   0xe   : > { %646 = vrsqrt.f32 %v208_v6  ;;  %s513_s22 = sshll.u32 %s816_s21, 3  ;;  %s514_s30 = sshll.u32 %s816_s21, 2 }
   0xf   : > { %s701_s25 = scalar_lea.vmem %s810_s0, %s513_s22  ;;  %s753_s7 = scalar_lea.vmem %s814_s4, %s514_s30 }
  0x10   : > { %v214_v14 = vld [vmem:[%s701_s25] sm:$0xff]  ;;  %v215_v15 = vld [vmem:[%s701_s25 + $0x8] sm:$0xff]  ;;  %v216_v16 = vld [vmem:[%s701_s25 + $0x10] sm:$0xff] }
  0x11   : > { %v217_v17 = vld [vmem:[%s701_s25 + $0x18] sm:$0xff]  ;;  %v218_v18 = vld [vmem:[%s701_s25 + $0x20] sm:$0xff]  ;;  %v219_v21 = vld [vmem:[%s701_s25 + $0x28] sm:$0xff] }
  0x12   : > { %v220_v22 = vld [vmem:[%s701_s25 + $0x30] sm:$0xff]  ;;  %v221_v23 = vld [vmem:[%s701_s25 + $0x38] sm:$0xff]  ;;  %v222_v24 = vld [vmem:[%s701_s25 + $0x40] sm:$0xff] }
  0x13   : > { %v223_v25 = vld [vmem:[%s701_s25 + $0x48] sm:$0xff]  ;;  %v224_v26 = vld [vmem:[%s701_s25 + $0x50] sm:$0xff]  ;;  %v225_v31 = vld [vmem:[%s701_s25 + $0x58] sm:$0xff] }
  0x14   : > { %v226_v32 = vld [vmem:[%s701_s25 + $0x60] sm:$0xff]  ;;  %v227_v33 = vld [vmem:[%s701_s25 + $0x68] sm:$0xff]  ;;  %v229_v3 = vld [vmem:[%s701_s25 + $0x78] sm:$0xff] }
  0x15   : > { %v230_v8 = vld [vmem:[%s701_s25 + $0x80] sm:$0xff] }
  0x18   : > { %v647_v11 = vpop.eup %646 }
  0x19   : > { %v210_v12 = vmul.f32 %v647_v11, %v207_v9 }
  0x1b   : > { %v212_v19 = vmul.f32 %v210_v12, %v202_v2  ;;  %v714_v20 = vrot.slane %v210_v12, %v242_v10  ;;  %v228_v2 = vld [vmem:[%s701_s25 + $0x70] sm:$0xff] }
  0x1d   : > { %v213_v27 = vsub.f32 %v211_v13, %v212_v19  ;;  %v245_v28 = vmul.f32 %v714_v20, %v214_v14  ;;  %v246_v29 = vmul.f32 %v714_v20, %v215_v15  ;;  %v247_v30 = vmul.f32 %v714_v20, %v216_v16  ;;  %v231_v13 = vld [vmem:[%s701_s25 + $0x88] sm:$0xff]  ;;  %v233_v19 = vld [vmem:[%s701_s25 + $0x98] sm:$0xff] }
  0x1e   : > { %v248_v34 = vmul.f32 %v714_v20, %v217_v17  ;;  %v249_v35 = vmul.f32 %v714_v20, %v218_v18  ;;  %v250_v36 = vmul.f32 %v714_v20, %v219_v21  ;;  %v251_v37 = vmul.f32 %v714_v20, %v220_v22  ;;  %v232_v18 = vld [vmem:[%s701_s25 + $0x90] sm:$0xff] }
  0x1f   : > { %v732_v38 = vrot.slane %v213_v27, %v242_v10  ;;  %v252_v39 = vmul.f32 %v714_v20, %v221_v23  ;;  %v253_v40 = vmul.f32 %v714_v20, %v222_v24  ;;  %v254_v41 = vmul.f32 %v714_v20, %v223_v25  ;;  %v234_v25 = vld [vmem:[%s701_s25 + $0xa0] sm:$0xff] }
  0x20   : > { %v255_v42 = vmul.f32 %v714_v20, %v224_v26  ;;  %v256_v43 = vmul.f32 %v714_v20, %v225_v31  ;;  %v257_v44 = vmul.f32 %v714_v20, %v226_v32  ;;  %v258_v45 = vmul.f32 %v714_v20, %v227_v33 }
  0x21   : > { %v276_v46 = vadd.f32 %v732_v38, %v245_v28  ;;  %v277_v47 = vadd.f32 %v732_v38, %v246_v29  ;;  %v278_v48 = vadd.f32 %v732_v38, %v247_v30  ;;  %v279_v49 = vadd.f32 %v732_v38, %v248_v34  ;;  %v235_v30 = vld [vmem:[%s701_s25 + $0xa8] sm:$0xff] }
  0x22   : > { %v280_v50 = vadd.f32 %v732_v38, %v249_v35  ;;  %v281_v51 = vadd.f32 %v732_v38, %v250_v36  ;;  %v282_v52 = vadd.f32 %v732_v38, %v251_v37  ;;  %v283_v53 = vadd.f32 %v732_v38, %v252_v39  ;;  %v236_v35 = vld [vmem:[%s701_s25 + $0xb0] sm:$0xff] }
  0x23   : > { %v301_v54 = vmax.f32 %v276_v46, 0.0  ;;  %v302_v55 = vmax.f32 %v277_v47, 0.0  ;;  %v303_v56 = vmax.f32 %v278_v48, 0.0  ;;  %v304_v57 = vmax.f32 %v279_v49, 0.0  ;;  %v238_v46 = vld [vmem:[%s701_s25 + $0xc0] sm:$0xff] }
  0x24   : > { %v305_v58 = vmax.f32 %v280_v50, 0.0  ;;  %v306_v59 = vmax.f32 %v281_v51, 0.0  ;;  %v307_v60 = vmax.f32 %v282_v52, 0.0  ;;  %v308_v61 = vmax.f32 %v283_v53, 0.0 }
  0x25   : > { %v570_v62 = vpack.c.bf16 %v302_v55, %v301_v54  ;;  %v575_v63 = vpack.c.bf16 %v304_v57, %v303_v56  ;;  %v284_v0 = vadd.f32 %v732_v38, %v253_v40  ;;  %v285_v1 = vadd.f32 %v732_v38, %v254_v41  ;;  %v237_v41 = vld [vmem:[%s701_s25 + $0xb8] sm:$0xff] }
  0x26   : > { %v580_v4 = vpack.c.bf16 %v306_v59, %v305_v58  ;;  %v585_v5 = vpack.c.bf16 %v308_v61, %v307_v60  ;;  %v286_v6 = vadd.f32 %v732_v38, %v255_v42  ;;  %v287_v7 = vadd.f32 %v732_v38, %v256_v43 }
  0x27   : > { %571 = vst [vmem:[%s753_s7] sm:$0xff] %v570_v62   ;;  %627 = vst [vmem:[%s753_s7 + $0x8] sm:$0xff] %v575_v63   ;;  %v309_v9 = vmax.f32 %v284_v0, 0.0  ;;  %v310_v10 = vmax.f32 %v285_v1, 0.0  ;;  %v288_v11 = vadd.f32 %v732_v38, %v257_v44  ;;  %v289_v12 = vadd.f32 %v732_v38, %v258_v45 }
  0x28   : > { %628 = vst [vmem:[%s753_s7 + $0x10] sm:$0xff] %v580_v4   ;;  %629 = vst [vmem:[%s753_s7 + $0x18] sm:$0xff] %v585_v5   ;;  %v311_v14 = vmax.f32 %v286_v6, 0.0  ;;  %v312_v15 = vmax.f32 %v287_v7, 0.0  ;;  %v259_v16 = vmul.f32 %v714_v20, %v228_v2  ;;  %v260_v17 = vmul.f32 %v714_v20, %v229_v3 }
  0x29   : > { %v590_v21 = vpack.c.bf16 %v310_v10, %v309_v9  ;;  %v313_v22 = vmax.f32 %v288_v11, 0.0  ;;  %v314_v23 = vmax.f32 %v289_v12, 0.0  ;;  %v261_v24 = vmul.f32 %v714_v20, %v230_v8 }
  0x2a   : > { %v595_v26 = vpack.c.bf16 %v312_v15, %v311_v14  ;;  %v290_v27 = vadd.f32 %v732_v38, %v259_v16  ;;  %v291_v28 = vadd.f32 %v732_v38, %v260_v17  ;;  %v262_v29 = vmul.f32 %v714_v20, %v231_v13 }
  0x2b   : > { %630 = vst [vmem:[%s753_s7 + $0x20] sm:$0xff] %v590_v21   ;;  %v600_v31 = vpack.c.bf16 %v314_v23, %v313_v22  ;;  %v292_v32 = vadd.f32 %v732_v38, %v261_v24  ;;  %v263_v33 = vmul.f32 %v714_v20, %v232_v18  ;;  %v264_v34 = vmul.f32 %v714_v20, %v233_v19 }
  0x2c   : > { %631 = vst [vmem:[%s753_s7 + $0x28] sm:$0xff] %v595_v26   ;;  %v315_v36 = vmax.f32 %v290_v27, 0.0  ;;  %v316_v37 = vmax.f32 %v291_v28, 0.0  ;;  %v293_v39 = vadd.f32 %v732_v38, %v262_v29  ;;  %v265_v40 = vmul.f32 %v714_v20, %v234_v25 }
  0x2d   : > { %632 = vst [vmem:[%s753_s7 + $0x30] sm:$0xff] %v600_v31   ;;  %v317_v42 = vmax.f32 %v292_v32, 0.0  ;;  %v294_v43 = vadd.f32 %v732_v38, %v263_v33  ;;  %v295_v44 = vadd.f32 %v732_v38, %v264_v34  ;;  %v266_v45 = vmul.f32 %v714_v20, %v235_v30 }
  0x2e   : > { %v605_v47 = vpack.c.bf16 %v316_v37, %v315_v36  ;;  %v318_v48 = vmax.f32 %v293_v39, 0.0  ;;  %v296_v49 = vadd.f32 %v732_v38, %v265_v40  ;;  %v267_v50 = vmul.f32 %v714_v20, %v236_v35 }
  0x2f   : > { %v319_v51 = vmax.f32 %v294_v43, 0.0  ;;  %v320_v52 = vmax.f32 %v295_v44, 0.0  ;;  %v297_v53 = vadd.f32 %v732_v38, %v266_v45  ;;  %v268_v54 = vmul.f32 %v714_v20, %v237_v41 }
  0x30   : > { %633 = vst [vmem:[%s753_s7 + $0x38] sm:$0xff] %v605_v47   ;;  %v610_v55 = vpack.c.bf16 %v318_v48, %v317_v42  ;;  %v321_v56 = vmax.f32 %v296_v49, 0.0  ;;  %v298_v57 = vadd.f32 %v732_v38, %v267_v50  ;;  %v269_v58 = vmul.f32 %v714_v20, %v238_v46 }
  0x31   : > { %v615_v59 = vpack.c.bf16 %v320_v52, %v319_v51  ;;  %v322_v60 = vmax.f32 %v297_v53, 0.0  ;;  %v299_v61 = vadd.f32 %v732_v38, %v268_v54 }
  0x32   : > { %634 = vst [vmem:[%s753_s7 + $0x40] sm:$0xff] %v610_v55   ;;  %v323_v62 = vmax.f32 %v298_v57, 0.0  ;;  %v300_v63 = vadd.f32 %v732_v38, %v269_v58 }
  0x33   : > { %635 = vst [vmem:[%s753_s7 + $0x48] sm:$0xff] %v615_v59   ;;  %v620_v0 = vpack.c.bf16 %v322_v60, %v321_v56  ;;  %v324_v1 = vmax.f32 %v299_v61, 0.0 }
  0x34   : > { %v325_v2 = vmax.f32 %v300_v63, 0.0 }
  0x35   : > { %636 = vst [vmem:[%s753_s7 + $0x50] sm:$0xff] %v620_v0   ;;  %v625_v3 = vpack.c.bf16 %v324_v1, %v323_v62 }
  0x36   : > { %v566_v4 = vpack.c.bf16 %v325_v2, %v325_v2 }
  0x37   : > { %637 = vst [vmem:[%s753_s7 + $0x58] sm:$0xff] %v625_v3  }
  0x38   : > { %451 = vst [vmem:[%s753_s7 + $0x60] sm:$0xf] %v566_v4 }
  0x39 PF: > { %s14_s15 = sadd.s32 1, %s654_s15  }
  0x3a   : > { %p11_p4 = scmp.ge.s32.totalorder %s14_s15, 4  }
  0x3c   :  { %13 = sbr.rel (!%p11_p4) target bundleno = 1 (0x1), region = 66 }

// kernel: generator_forward.16
= control target key start
LH: loop header
LB: loop body
LE: loop exit
PB: predicated region body
PF: predicated region fallthrough
CT: control target
= control target key end

     0   :  { %s1878_s12 = smov 0   ;;  %s2281_s0 = inlined_call_operand.vmem [shape: bf16[464,512], index: 0, kind: input, shape index: {}]   ;;  %s2282_s1 = inlined_call_operand.vmem [shape: bf16[512,256], index: 1, kind: input, shape index: {}]   ;;  %s2283_s2 = inlined_call_operand.vmem [shape: f32[1,256], index: 2, kind: input, shape index: {}]   ;;  %s2284_s3 = inlined_call_operand.vmem [shape: f32[464,256], index: 3, kind: output, shape index: {}]  }
   0x1 LB: > { %s1405_s13 = sadd.s32 4294967295, %s1856_s12   ;;  %p1409_p0 = scmp.ge.s32.totalorder %s1856_s12, 1  ;;  %s1856_s12 = sphi %s1878_s12, %s13_s12  }
   0x2   : > { %p139_p1 = scmp.lt.s32.totalorder %s1856_s12, 3 }
   0x4   : > { %p140_p2 = pnand %p1409_p0, %p139_p1 }
   0x5   : > { %v1666_v0 = vld [vmem:[%s2282_s1 + $0x4] ss:$8 sps:$4 sm:$0xff] (!%p140_p2)   ;;  %v1670_v2 = vld [vmem:[%s2282_s1] ss:$8 sps:$4 sm:$0xff] (!%p140_p2)   ;;  %v1672_v4 = vld [vmem:[%s2282_s1 + $0x14] ss:$8 sps:$4 sm:$0xff] (!%p140_p2)  }
   0x6   : > { %143 = sbr.rel (%p140_p2) target bundleno = 400 (0x190), region = 32  ;;  %v1668_v1 = vld [vmem:[%s2282_s1 + $0x104] ss:$8 sps:$4 sm:$0xff] (!%p140_p2)   ;;  %927 = vmatprep.subr.bf16.mxu1 (!%p140_p2), %v1666_v0  ;;  %v1671_v3 = vld [vmem:[%s2282_s1 + $0x100] ss:$8 sps:$4 sm:$0xff] (!%p140_p2)  }
   0x7   : > { %1108 = vmatprep.subr.bf16.mxu0 (!%p140_p2), %v1668_v1  ;;  %928 = vmatpush1.bf16.msra.mxu1 (!%p140_p2), %v1670_v2  ;;  %v1674_v5 = vld [vmem:[%s2282_s1 + $0x114] ss:$8 sps:$4 sm:$0xff] (!%p140_p2)   ;;  %v1676_v6 = vld [vmem:[%s2282_s1 + $0x10] ss:$8 sps:$4 sm:$0xff] (!%p140_p2)   ;;  %v1678_v8 = vld [vmem:[%s2282_s1 + $0x24] ss:$8 sps:$4 sm:$0xff] (!%p140_p2)  }
   0x8   : > { %1109 = vmatpush1.bf16.msra.mxu0 (!%p140_p2), %v1671_v3  ;;  %929 = vmatprep.subr.bf16.mxu1 (!%p140_p2), %v1672_v4  ;;  %v1677_v7 = vld [vmem:[%s2282_s1 + $0x110] ss:$8 sps:$4 sm:$0xff] (!%p140_p2)   ;;  %v1680_v9 = vld [vmem:[%s2282_s1 + $0x124] ss:$8 sps:$4 sm:$0xff] (!%p140_p2)   ;;  %v1682_v10 = vld [vmem:[%s2282_s1 + $0x20] ss:$8 sps:$4 sm:$0xff] (!%p140_p2)  }
   0x9   : > { %1110 = vmatprep.subr.bf16.mxu0 (!%p140_p2), %v1674_v5  ;;  %v1683_v11 = vld [vmem:[%s2282_s1 + $0x120] ss:$8 sps:$4 sm:$0xff] (!%p140_p2)   ;;  %v1684_v12 = vld [vmem:[%s2282_s1 + $0x34] ss:$8 sps:$4 sm:$0xff] (!%p140_p2)   ;;  %v1688_v14 = vld [vmem:[%s2282_s1 + $0x30] ss:$8 sps:$4 sm:$0xff] (!%p140_p2)  }
   0xa   : > { %v1686_v13 = vld [vmem:[%s2282_s1 + $0x134] ss:$8 sps:$4 sm:$0xff] (!%p140_p2)   ;;  %v1689_v15 = vld [vmem:[%s2282_s1 + $0x130] ss:$8 sps:$4 sm:$0xff] (!%p140_p2)   ;;  %v1690_v16 = vld [vmem:[%s2282_s1 + $0x44] ss:$8 sps:$4 sm:$0xff] (!%p140_p2)  }
   0xb   : > { %930 = vmatpush1.bf16.msra.mxu1 (!%p140_p2), %v1676_v6  ;;  %v1692_v17 = vld [vmem:[%s2282_s1 + $0x144] ss:$8 sps:$4 sm:$0xff] (!%p140_p2)   ;;  %v1694_v18 = vld [vmem:[%s2282_s1 + $0x40] ss:$8 sps:$4 sm:$0xff] (!%p140_p2)   ;;  %v1696_v20 = vld [vmem:[%s2282_s1 + $0x54] ss:$8 sps:$4 sm:$0xff] (!%p140_p2)  }
   0xc   : > { %1111 = vmatpush1.bf16.msra.mxu0 (!%p140_p2), %v1677_v7  ;;  %931 = vmatprep.subr.bf16.mxu1 (!%p140_p2), %v1678_v8  ;;  %v1695_v19 = vld [vmem:[%s2282_s1 + $0x140] ss:$8 sps:$4 sm:$0xff] (!%p140_p2)   ;;  %v1698_v21 = vld [vmem:[%s2282_s1 + $0x154] ss:$8 sps:$4 sm:$0xff] (!%p140_p2)   ;;  %v1700_v22 = vld [vmem:[%s2282_s1 + $0x50] ss:$8 sps:$4 sm:$0xff] (!%p140_p2)  }
   0xd   : > { %1112 = vmatprep.subr.bf16.mxu0 %v1680_v9  ;;  %v1701_v23 = vld [vmem:[%s2282_s1 + $0x150] ss:$8 sps:$4 sm:$0xff]   ;;  %v1702_v24 = vld [vmem:[%s2282_s1 + $0x64] ss:$8 sps:$4 sm:$0xff]   ;;  %v1706_v26 = vld [vmem:[%s2282_s1 + $0x60] ss:$8 sps:$4 sm:$0xff]  }
   0xe   : > { %v1704_v25 = vld [vmem:[%s2282_s1 + $0x164] ss:$8 sps:$4 sm:$0xff]   ;;  %v1707_v27 = vld [vmem:[%s2282_s1 + $0x160] ss:$8 sps:$4 sm:$0xff]   ;;  %v1708_v28 = vld [vmem:[%s2282_s1 + $0x74] ss:$8 sps:$4 sm:$0xff]  }
   0xf   : > { %932 = vmatpush1.bf16.msra.mxu1 %v1682_v10  ;;  %v1710_v29 = vld [vmem:[%s2282_s1 + $0x174] ss:$8 sps:$4 sm:$0xff]   ;;  %s165_s24 = smul.u32 29, %s1405_s13  ;;  %v1712_v30 = vld [vmem:[%s2282_s1 + $0x70] ss:$8 sps:$4 sm:$0xff]  }
  0x10   : > { %1113 = vmatpush1.bf16.msra.mxu0 %v1683_v11  ;;  %933 = vmatprep.subr.bf16.mxu1 %v1684_v12  ;;  %v1713_v31 = vld [vmem:[%s2282_s1 + $0x170] ss:$8 sps:$4 sm:$0xff]   ;;  %v1714_v32 = vld [vmem:[%s2282_s1 + $0x84] ss:$8 sps:$4 sm:$0xff]   ;;  %v1718_v34 = vld [vmem:[%s2282_s1 + $0x80] ss:$8 sps:$4 sm:$0xff]  }
  0x11   : > { %1114 = vmatprep.subr.bf16.mxu0 %v1686_v13  ;;  %v1716_v33 = vld [vmem:[%s2282_s1 + $0x184] ss:$8 sps:$4 sm:$0xff]   ;;  %p166_p3 = scmp.lt.s32.totalorder %s165_s24, 57  ;;  %v1719_v35 = vld [vmem:[%s2282_s1 + $0x180] ss:$8 sps:$4 sm:$0xff]  }
  0x12   : > { %v1720_v36 = vld [vmem:[%s2282_s1 + $0x94] ss:$8 sps:$4 sm:$0xff]   ;;  %v1724_v38 = vld [vmem:[%s2282_s1 + $0x90] ss:$8 sps:$4 sm:$0xff]   ;;  %v1726_v40 = vld [vmem:[%s2282_s1 + $0xa4] ss:$8 sps:$4 sm:$0xff]  }
  0x13   : > { %934 = vmatpush1.bf16.msra.mxu1 %v1688_v14  ;;  %v1722_v37 = vld [vmem:[%s2282_s1 + $0x194] ss:$8 sps:$4 sm:$0xff]   ;;  %s2286_s24 = smov (!%p166_p3, %s165_s24), 57  ;;  %v1725_v39 = vld [vmem:[%s2282_s1 + $0x190] ss:$8 sps:$4 sm:$0xff]  }
  0x14   : > { %1115 = vmatpush1.bf16.msra.mxu0 %v1689_v15  ;;  %935 = vmatprep.subr.bf16.mxu1 %v1690_v16  ;;  %v1728_v41 = vld [vmem:[%s2282_s1 + $0x1a4] ss:$8 sps:$4 sm:$0xff]   ;;  %s1540_s23 = sshll.u32 %s2286_s24, 4  ;;  %v1730_v42 = vld [vmem:[%s2282_s1 + $0xa0] ss:$8 sps:$4 sm:$0xff]  }
  0x15   : > { %1116 = vmatprep.subr.bf16.mxu0 %v1692_v17  ;;  %v1731_v43 = vld [vmem:[%s2282_s1 + $0x1a0] ss:$8 sps:$4 sm:$0xff]   ;;  %v1732_v44 = vld [vmem:[%s2282_s1 + $0xb4] ss:$8 sps:$4 sm:$0xff]   ;;  %s2031_s13 = scalar_lea.vmem %s2281_s0, %s1540_s23  ;;  %v1736_v46 = vld [vmem:[%s2282_s1 + $0xb0] ss:$8 sps:$4 sm:$0xff]   ;;  %s2161_s28 = scalar_lea.vmem %s2284_s3, %s1540_s23 }
  0x16   : > { %v1734_v45 = vld [vmem:[%s2282_s1 + $0x1b4] ss:$8 sps:$4 sm:$0xff]   ;;  %v1737_v47 = vld [vmem:[%s2282_s1 + $0x1b0] ss:$8 sps:$4 sm:$0xff]   ;;  %v1738_v48 = vld [vmem:[%s2282_s1 + $0xc4] ss:$8 sps:$4 sm:$0xff]  }
  0x17   : > { %936 = vmatpush1.bf16.msra.mxu1 %v1694_v18  ;;  %v1764_v49 = vld [vmem:[%s2031_s13 + $0x4] ss:$16 sps:$4 sm:$0xff]   ;;  %v1767_v51 = vld [vmem:[%s2031_s13 + $0xc] ss:$16 sps:$4 sm:$0xff]   ;;  %v1742_v52 = vld [vmem:[%s2282_s1 + $0xc0] ss:$8 sps:$4 sm:$0xff]  }
  0x18   : > { %1117 = vmatpush1.bf16.msra.mxu0 %v1695_v19  ;;  %937 = vmatprep.subr.bf16.mxu1 %v1696_v20  ;;  %v1740_v50 = vld [vmem:[%s2282_s1 + $0x1c4] ss:$8 sps:$4 sm:$0xff]   ;;  %v1743_v53 = vld [vmem:[%s2282_s1 + $0x1c0] ss:$8 sps:$4 sm:$0xff]   ;;  %v1744_v54 = vld [vmem:[%s2282_s1 + $0xd4] ss:$8 sps:$4 sm:$0xff]  }
  0x19   : > { %1118 = vmatprep.subr.bf16.mxu0 %v1698_v21  ;;  %959 = vmatprep.mubr.bf16.mxu1 %v1764_v49  ;;  %v1746_v55 = vld [vmem:[%s2282_s1 + $0x1d4] ss:$8 sps:$4 sm:$0xff]   ;;  %v1748_v56 = vld [vmem:[%s2282_s1 + $0xd0] ss:$8 sps:$4 sm:$0xff]   ;;  %v1750_v58 = vld [vmem:[%s2282_s1 + $0xe4] ss:$8 sps:$4 sm:$0xff]  }
  0x1a   : > { %1140 = vmatprep.mubr.bf16.mxu0 %v1767_v51  ;;  %v1749_v57 = vld [vmem:[%s2282_s1 + $0x1d0] ss:$8 sps:$4 sm:$0xff]   ;;  %v1752_v59 = vld [vmem:[%s2282_s1 + $0x1e4] ss:$8 sps:$4 sm:$0xff]   ;;  %v1754_v60 = vld [vmem:[%s2282_s1 + $0xe0] ss:$8 sps:$4 sm:$0xff]  }
  0x1b   : > { %938 = vmatpush1.bf16.msra.mxu1 %v1700_v22  ;;  %v1755_v61 = vld [vmem:[%s2282_s1 + $0x1e0] ss:$8 sps:$4 sm:$0xff]   ;;  %v1756_v62 = vld [vmem:[%s2282_s1 + $0xf4] ss:$8 sps:$4 sm:$0xff]   ;;  %v1760_v0 = vld [vmem:[%s2282_s1 + $0xf0] ss:$8 sps:$4 sm:$0xff]  }
  0x1c   : > { %1119 = vmatpush1.bf16.msra.mxu0 %v1701_v23  ;;  %939 = vmatprep.subr.bf16.mxu1 %v1702_v24  ;;  %v1758_v63 = vld [vmem:[%s2282_s1 + $0x1f4] ss:$8 sps:$4 sm:$0xff]   ;;  %v1761_v1 = vld [vmem:[%s2282_s1 + $0x1f0] ss:$8 sps:$4 sm:$0xff]  }
  0x1d   : > { %1120 = vmatprep.subr.bf16.mxu0 %v1704_v25  ;;  %v1762_v2 = vld [vmem:[%s2031_s13] ss:$16 sps:$4 sm:$0xff]   ;;  %v1765_v3 = vld [vmem:[%s2031_s13 + $0x8] ss:$16 sps:$4 sm:$0xff]   ;;  %v1768_v4 = vld [vmem:[%s2031_s13 + $0x24] ss:$16 sps:$4 sm:$0xff]  }
  0x1e   : > { %v1770_v5 = vld [vmem:[%s2031_s13 + $0x2c] ss:$16 sps:$4 sm:$0xff]   ;;  %v1772_v6 = vld [vmem:[%s2031_s13 + $0x20] ss:$16 sps:$4 sm:$0xff]   ;;  %v1773_v7 = vld [vmem:[%s2031_s13 + $0x28] ss:$16 sps:$4 sm:$0xff]  }
  0x1f   : > { %940 = vmatpush1.bf16.msra.mxu1 %v1706_v26  ;;  %v1774_v8 = vld [vmem:[%s2031_s13 + $0x44] ss:$16 sps:$4 sm:$0xff]   ;;  %v1776_v9 = vld [vmem:[%s2031_s13 + $0x4c] ss:$16 sps:$4 sm:$0xff]   ;;  %v1778_v10 = vld [vmem:[%s2031_s13 + $0x40] ss:$16 sps:$4 sm:$0xff]  }
  0x20   : > { %1121 = vmatpush1.bf16.msra.mxu0 %v1707_v27  ;;  %941 = vmatprep.subr.bf16.mxu1 %v1708_v28  ;;  %v1779_v11 = vld [vmem:[%s2031_s13 + $0x48] ss:$16 sps:$4 sm:$0xff]   ;;  %v1780_v12 = vld [vmem:[%s2031_s13 + $0x64] ss:$16 sps:$4 sm:$0xff]   ;;  %v1782_v13 = vld [vmem:[%s2031_s13 + $0x6c] ss:$16 sps:$4 sm:$0xff]  }
  0x21   : > { %1122 = vmatprep.subr.bf16.mxu0 %v1710_v29  ;;  %v1784_v14 = vld [vmem:[%s2031_s13 + $0x60] ss:$16 sps:$4 sm:$0xff]   ;;  %v1785_v15 = vld [vmem:[%s2031_s13 + $0x68] ss:$16 sps:$4 sm:$0xff]   ;;  %v1786_v16 = vld [vmem:[%s2031_s13 + $0x84] ss:$16 sps:$4 sm:$0xff]  }
  0x22   : > { %v1788_v17 = vld [vmem:[%s2031_s13 + $0x8c] ss:$16 sps:$4 sm:$0xff]   ;;  %v1790_v18 = vld [vmem:[%s2031_s13 + $0x80] ss:$16 sps:$4 sm:$0xff]   ;;  %v1791_v19 = vld [vmem:[%s2031_s13 + $0x88] ss:$16 sps:$4 sm:$0xff]  }
  0x23   : > { %942 = vmatpush1.bf16.msra.mxu1 %v1712_v30  ;;  %v1792_v20 = vld [vmem:[%s2031_s13 + $0xa4] ss:$16 sps:$4 sm:$0xff]   ;;  %v1794_v21 = vld [vmem:[%s2031_s13 + $0xac] ss:$16 sps:$4 sm:$0xff]   ;;  %v1796_v22 = vld [vmem:[%s2031_s13 + $0xa0] ss:$16 sps:$4 sm:$0xff]  }
  0x24   : > { %1123 = vmatpush1.bf16.msra.mxu0 %v1713_v31  ;;  %943 = vmatprep.subr.bf16.mxu1 %v1714_v32  ;;  %v1797_v23 = vld [vmem:[%s2031_s13 + $0xa8] ss:$16 sps:$4 sm:$0xff]   ;;  %v1798_v24 = vld [vmem:[%s2031_s13 + $0xc4] ss:$16 sps:$4 sm:$0xff]   ;;  %v1800_v25 = vld [vmem:[%s2031_s13 + $0xcc] ss:$16 sps:$4 sm:$0xff]  }
  0x25   : > { %1124 = vmatprep.subr.bf16.mxu0 %v1716_v33  ;;  %v1802_v26 = vld [vmem:[%s2031_s13 + $0xc0] ss:$16 sps:$4 sm:$0xff]   ;;  %v1803_v27 = vld [vmem:[%s2031_s13 + $0xc8] ss:$16 sps:$4 sm:$0xff]   ;;  %v1804_v28 = vld [vmem:[%s2031_s13 + $0xe4] ss:$16 sps:$4 sm:$0xff]  }
  0x26   : > { %v1806_v29 = vld [vmem:[%s2031_s13 + $0xec] ss:$16 sps:$4 sm:$0xff]   ;;  %v1808_v30 = vld [vmem:[%s2031_s13 + $0xe0] ss:$16 sps:$4 sm:$0xff]   ;;  %v1809_v31 = vld [vmem:[%s2031_s13 + $0xe8] ss:$16 sps:$4 sm:$0xff]  }
  0x27   : > { %944 = vmatpush1.bf16.msra.mxu1 %v1718_v34  ;;  %v1810_v32 = vld [vmem:[%s2031_s13 + $0x104] ss:$16 sps:$4 sm:$0xff]   ;;  %v1812_v33 = vld [vmem:[%s2031_s13 + $0x10c] ss:$16 sps:$4 sm:$0xff]   ;;  %v1814_v34 = vld [vmem:[%s2031_s13 + $0x100] ss:$16 sps:$4 sm:$0xff]  }
  0x28   : > { %1125 = vmatpush1.bf16.msra.mxu0 %v1719_v35  ;;  %945 = vmatprep.subr.bf16.mxu1 %v1720_v36  ;;  %v1815_v35 = vld [vmem:[%s2031_s13 + $0x108] ss:$16 sps:$4 sm:$0xff]   ;;  %v1816_v36 = vld [vmem:[%s2031_s13 + $0x124] ss:$16 sps:$4 sm:$0xff]   ;;  %v1836_v49 = vld [vmem:[%s2031_s13 + $0x18c] ss:$16 sps:$4 sm:$0xff]  }
  0x29   : > { %1126 = vmatprep.subr.bf16.mxu0 %v1722_v37  ;;  %v1818_v37 = vld [vmem:[%s2031_s13 + $0x12c] ss:$16 sps:$4 sm:$0xff]   ;;  %v1839_v51 = vld [vmem:[%s2031_s13 + $0x188] ss:$16 sps:$4 sm:$0xff]  }
  0x2b   : > { %946 = vmatpush1.bf16.msra.mxu1 %v1724_v38  ;;  %v1820_v38 = vld [vmem:[%s2031_s13 + $0x120] ss:$16 sps:$4 sm:$0xff]  }
  0x2c   : > { %1127 = vmatpush1.bf16.msra.mxu0 %v1725_v39  ;;  %947 = vmatprep.subr.bf16.mxu1 %v1726_v40  ;;  %v1821_v39 = vld [vmem:[%s2031_s13 + $0x128] ss:$16 sps:$4 sm:$0xff]   ;;  %v1822_v40 = vld [vmem:[%s2031_s13 + $0x144] ss:$16 sps:$4 sm:$0xff]  }
  0x2d   : > { %1128 = vmatprep.subr.bf16.mxu0 %v1728_v41  ;;  %v1824_v41 = vld [vmem:[%s2031_s13 + $0x14c] ss:$16 sps:$4 sm:$0xff]  }
  0x2f   : > { %948 = vmatpush1.bf16.msra.mxu1 %v1730_v42  ;;  %v1826_v42 = vld [vmem:[%s2031_s13 + $0x140] ss:$16 sps:$4 sm:$0xff]  }
  0x30   : > { %1129 = vmatpush1.bf16.msra.mxu0 %v1731_v43  ;;  %949 = vmatprep.subr.bf16.mxu1 %v1732_v44  ;;  %v1827_v43 = vld [vmem:[%s2031_s13 + $0x148] ss:$16 sps:$4 sm:$0xff]   ;;  %v1828_v44 = vld [vmem:[%s2031_s13 + $0x164] ss:$16 sps:$4 sm:$0xff]  }
  0x31   : > { %1130 = vmatprep.subr.bf16.mxu0 %v1734_v45  ;;  %v1830_v45 = vld [vmem:[%s2031_s13 + $0x16c] ss:$16 sps:$4 sm:$0xff]  }
  0x33   : > { %950 = vmatpush1.bf16.msra.mxu1 %v1736_v46  ;;  %v1832_v46 = vld [vmem:[%s2031_s13 + $0x160] ss:$16 sps:$4 sm:$0xff]  }
  0x34   : > { %1131 = vmatpush1.bf16.msra.mxu0 %v1737_v47  ;;  %951 = vmatprep.subr.bf16.mxu1 %v1738_v48  ;;  %v1833_v47 = vld [vmem:[%s2031_s13 + $0x168] ss:$16 sps:$4 sm:$0xff]   ;;  %v1834_v48 = vld [vmem:[%s2031_s13 + $0x184] ss:$16 sps:$4 sm:$0xff]  }
  0x35   : > { %1132 = vmatprep.subr.bf16.mxu0 %v1740_v50  ;;  %v1838_v50 = vld [vmem:[%s2031_s13 + $0x180] ss:$16 sps:$4 sm:$0xff]  }
  0x37   : > { %952 = vmatpush1.bf16.msra.mxu1 %v1742_v52  ;;  %v1840_v52 = vld [vmem:[%s2031_s13 + $0x1a4] ss:$16 sps:$4 sm:$0xff]  }
  0x38   : > { %1133 = vmatpush1.bf16.msra.mxu0 %v1743_v53  ;;  %953 = vmatprep.subr.bf16.mxu1 %v1744_v54  ;;  %v1842_v53 = vld [vmem:[%s2031_s13 + $0x1ac] ss:$16 sps:$4 sm:$0xff]   ;;  %v235_v54 = vld [vmem:[%s2031_s13 + $0x1c0] sm:$0xff] }
  0x39   : > { %1134 = vmatprep.subr.bf16.mxu0 %v1746_v55  ;;  %v236_v55 = vld [vmem:[%s2031_s13 + $0x1c8] sm:$0xff] }
  0x3b   : > { %954 = vmatpush1.bf16.msra.mxu1 %v1748_v56  ;;  %v1844_v56 = vld [vmem:[%s2031_s13 + $0x1a0] ss:$16 sps:$4 sm:$0xff]  }
  0x3c   : > { %1135 = vmatpush1.bf16.msra.mxu0 %v1749_v57  ;;  %955 = vmatprep.subr.bf16.mxu1 %v1750_v58  ;;  %v1845_v57 = vld [vmem:[%s2031_s13 + $0x1a8] ss:$16 sps:$4 sm:$0xff]   ;;  %v1471_v58 = vcombine.high %v235_v54, %v235_v54 }
  0x3d   : > { %1136 = vmatprep.subr.bf16.mxu0 %v1752_v59  ;;  %v1473_v59 = vcombine.high %v236_v55, %v236_v55 }
  0x3f   : > { %956 = vmatpush1.bf16.msra.mxu1 %v1754_v60  ;;  %v1470_v60 = vcombine.low %v235_v54, %v235_v54 }
  0x40   : > { %1137 = vmatpush1.bf16.msra.mxu0 %v1755_v61  ;;  %957 = vmatprep.subr.bf16.mxu1 %v1756_v62  ;;  %v1472_v61 = vcombine.low %v236_v55, %v236_v55  ;;  %v303_v62 = vlaneseq }
  0x41   : > { %1138 = vmatprep.subr.bf16.mxu0 %v1758_v63 }
  0x42   : > { %v304_v63 = vshrl.u32 %v303_v62, 7 }
  0x43   : > { %958 = vmatpush1.bf16.msra.mxu1 %v1760_v0 }
  0x44   : > { %1139 = vmatpush1.bf16.msra.mxu0 %v1761_v1  ;;  %v305_v0 = vsub.s32 0, %v304_v63  ;;  %v301_v1 = vld [vmem:[%s2283_s2] sm:$0x3] }
  0x46   : > { %960 = vmatmul.mubr.bf16.vlgmr.msra.gmra.mrb[0].mxu1 %v1762_v2  ;;  %v309_v2 = vsub.s32 1, %v304_v63 }
  0x47   : > { %1141 = vmatmul.mubr.bf16.vlgmr.msra.gmra.mrb[0].mxu0 %v1765_v3  ;;  %969 = vmatprep.mubr.bf16.mxu1 %v1768_v4  ;;  %v2151_v3 = vrot.slane %v301_v1, %v305_v0 }
  0x48   : > { %1150 = vmatprep.mubr.bf16.mxu0 %v1770_v5  ;;  %v2153_v4 = vrot.slane %v301_v1, %v309_v2 }
  0x4e   : > { %970 = vmatmul.mubr.bf16.gmra.mrb[4].mxu1 %v1772_v6 }
  0x4f   : > { %1151 = vmatmul.mubr.bf16.gmra.mrb[4].mxu0 %v1773_v7  ;;  %979 = vmatprep.mubr.bf16.mxu1 %v1774_v8 }
  0x50   : > { %1160 = vmatprep.mubr.bf16.mxu0 %v1776_v9 }
  0x56   : > { %980 = vmatmul.mubr.bf16.gmra.mrb[8].mxu1 %v1778_v10 }
  0x57   : > { %1161 = vmatmul.mubr.bf16.gmra.mrb[8].mxu0 %v1779_v11  ;;  %989 = vmatprep.mubr.bf16.mxu1 %v1780_v12 }
  0x58   : > { %1170 = vmatprep.mubr.bf16.mxu0 %v1782_v13 }
  0x5e   : > { %990 = vmatmul.mubr.bf16.gmra.mrb[12].mxu1 %v1784_v14 }
  0x5f   : > { %1171 = vmatmul.mubr.bf16.gmra.mrb[12].mxu0 %v1785_v15  ;;  %999 = vmatprep.mubr.bf16.mxu1 %v1786_v16 }
  0x60   : > { %1180 = vmatprep.mubr.bf16.mxu0 %v1788_v17 }
  0x66   : > { %1000 = vmatmul.mubr.bf16.gmra.mrb[16].mxu1 %v1790_v18 }
  0x67   : > { %1181 = vmatmul.mubr.bf16.gmra.mrb[16].mxu0 %v1791_v19  ;;  %1009 = vmatprep.mubr.bf16.mxu1 %v1792_v20 }
  0x68   : > { %1190 = vmatprep.mubr.bf16.mxu0 %v1794_v21 }
  0x6e   : > { %1010 = vmatmul.mubr.bf16.gmra.mrb[20].mxu1 %v1796_v22 }
  0x6f   : > { %1191 = vmatmul.mubr.bf16.gmra.mrb[20].mxu0 %v1797_v23  ;;  %1019 = vmatprep.mubr.bf16.mxu1 %v1798_v24 }
  0x70   : > { %1200 = vmatprep.mubr.bf16.mxu0 %v1800_v25 }
  0x76   : > { %1020 = vmatmul.mubr.bf16.gmra.mrb[24].mxu1 %v1802_v26 }
  0x77   : > { %1201 = vmatmul.mubr.bf16.gmra.mrb[24].mxu0 %v1803_v27  ;;  %1029 = vmatprep.mubr.bf16.mxu1 %v1804_v28 }
  0x78   : > { %1210 = vmatprep.mubr.bf16.mxu0 %v1806_v29 }
  0x7e   : > { %1030 = vmatmul.mubr.bf16.gmra.mrb[28].mxu1 %v1808_v30 }
  0x7f   : > { %1211 = vmatmul.mubr.bf16.gmra.mrb[28].mxu0 %v1809_v31  ;;  %1039 = vmatprep.mubr.bf16.mxu1 %v1810_v32 }
  0x80   : > { %1220 = vmatprep.mubr.bf16.mxu0 %v1812_v33 }
  0x86   : > { %1040 = vmatmul.mubr.bf16.gmra.mrb[32].mxu1 %v1814_v34 }
  0x87   : > { %1221 = vmatmul.mubr.bf16.gmra.mrb[32].mxu0 %v1815_v35  ;;  %1049 = vmatprep.mubr.bf16.mxu1 %v1816_v36 }
  0x88   : > { %1230 = vmatprep.mubr.bf16.mxu0 %v1818_v37 }
  0x8e   : > { %1050 = vmatmul.mubr.bf16.gmra.mrb[36].mxu1 %v1820_v38 }
  0x8f   : > { %1231 = vmatmul.mubr.bf16.gmra.mrb[36].mxu0 %v1821_v39  ;;  %1059 = vmatprep.mubr.bf16.mxu1 %v1822_v40 }
  0x90   : > { %1240 = vmatprep.mubr.bf16.mxu0 %v1824_v41 }
  0x96   : > { %1060 = vmatmul.mubr.bf16.gmra.mrb[40].mxu1 %v1826_v42 }
  0x97   : > { %1241 = vmatmul.mubr.bf16.gmra.mrb[40].mxu0 %v1827_v43  ;;  %1069 = vmatprep.mubr.bf16.mxu1 %v1828_v44 }
  0x98   : > { %1250 = vmatprep.mubr.bf16.mxu0 %v1830_v45 }
  0x9e   : > { %1070 = vmatmul.mubr.bf16.gmra.mrb[44].mxu1 %v1832_v46 }
  0x9f   : > { %1251 = vmatmul.mubr.bf16.gmra.mrb[44].mxu0 %v1833_v47  ;;  %1079 = vmatprep.mubr.bf16.mxu1 %v1834_v48 }
  0xa0   : > { %1260 = vmatprep.mubr.bf16.mxu0 %v1836_v49 }
  0xa6   : > { %1080 = vmatmul.mubr.bf16.gmra.mrb[48].mxu1 %v1838_v50 }
  0xa7   : > { %1261 = vmatmul.mubr.bf16.gmra.mrb[48].mxu0 %v1839_v51  ;;  %1089 = vmatprep.mubr.bf16.mxu1 %v1840_v52 }
  0xa8   : > { %1270 = vmatprep.mubr.bf16.mxu0 %v1842_v53 }
  0xae   : > { %1090 = vmatmul.mubr.bf16.gmra.mrb[52].mxu1 %v1844_v56 }
  0xaf   : > { %1271 = vmatmul.mubr.bf16.gmra.mrb[52].mxu0 %v1845_v57  ;;  %1099 = vmatprep.mubr.bf16.mxu1 %v1471_v58 }
  0xb0   : > { %1280 = vmatprep.mubr.bf16.mxu0 %v1473_v59 }
  0xb6   : > { %1100 = vmatmul.mubr.bf16.gmra.mrb[56].mxu1 %v1470_v60 }
  0xb7   : > { %1281 = vmatmul.mubr.bf16.gmra.mrb[56].mxu0 %v1472_v61 }
 0x119   : > { %v961_v5 = vpop.f32.mrb[0].mxu1 }
 0x11a   : > { %v1142_v6 = vpop.f32.mrb[0].mxu0  ;;  %v962_v7 = vadd.f32 %v961_v5, %v2151_v3  ;;  %v963_v8 = vpop.f32.mrb[1].mxu1 }
 0x11b   : > { %v1144_v9 = vpop.f32.mrb[1].mxu0  ;;  %v964_v10 = vadd.f32 %v963_v8, %v2153_v4  ;;  %v965_v11 = vpop.f32.mrb[2].mxu1 }
 0x11c   : > { %v1146_v12 = vpop.f32.mrb[2].mxu0  ;;  %v1143_v13 = vadd.f32 %v1142_v6, %v962_v7  ;;  %v966_v14 = vadd.f32 %v965_v11, %v2151_v3  ;;  %v967_v15 = vpop.f32.mrb[3].mxu1 }
 0x11d   : > { %v1148_v16 = vpop.f32.mrb[3].mxu0  ;;  %v1145_v17 = vadd.f32 %v1144_v9, %v964_v10  ;;  %v968_v18 = vadd.f32 %v967_v15, %v2153_v4 }
 0x11e   : > { %1289 = vst [vmem:[%s2161_s28] sm:$0xff] %v1143_v13  ;;  %v1147_v19 = vadd.f32 %v1146_v12, %v966_v14 }
 0x11f   : > { %1290 = vst [vmem:[%s2161_s28 + $0x8] sm:$0xff] %v1145_v17  ;;  %v1149_v20 = vadd.f32 %v1148_v16, %v968_v18 }
 0x120   : > { %1291 = vst [vmem:[%s2161_s28 + $0x10] sm:$0xff] %v1147_v19 }
 0x121   : > { %1292 = vst [vmem:[%s2161_s28 + $0x18] sm:$0xff] %v1149_v20  ;;  %v971_v21 = vpop.f32.mrb[4].mxu1 }
 0x122   : > { %v1152_v22 = vpop.f32.mrb[4].mxu0  ;;  %v972_v23 = vadd.f32 %v971_v21, %v2151_v3  ;;  %v973_v24 = vpop.f32.mrb[5].mxu1 }
 0x123   : > { %v1154_v25 = vpop.f32.mrb[5].mxu0  ;;  %v974_v26 = vadd.f32 %v973_v24, %v2153_v4  ;;  %v975_v27 = vpop.f32.mrb[6].mxu1 }
 0x124   : > { %v1156_v28 = vpop.f32.mrb[6].mxu0  ;;  %v1153_v29 = vadd.f32 %v1152_v22, %v972_v23  ;;  %v976_v30 = vadd.f32 %v975_v27, %v2151_v3  ;;  %v977_v31 = vpop.f32.mrb[7].mxu1 }
 0x125   : > { %v1158_v32 = vpop.f32.mrb[7].mxu0  ;;  %v1155_v33 = vadd.f32 %v1154_v25, %v974_v26  ;;  %v978_v34 = vadd.f32 %v977_v31, %v2153_v4 }
 0x126   : > { %1293 = vst [vmem:[%s2161_s28 + $0x20] sm:$0xff] %v1153_v29  ;;  %v1157_v35 = vadd.f32 %v1156_v28, %v976_v30 }
 0x127   : > { %1294 = vst [vmem:[%s2161_s28 + $0x28] sm:$0xff] %v1155_v33  ;;  %v1159_v36 = vadd.f32 %v1158_v32, %v978_v34 }
 0x128   : > { %1295 = vst [vmem:[%s2161_s28 + $0x30] sm:$0xff] %v1157_v35 }
 0x129   : > { %1296 = vst [vmem:[%s2161_s28 + $0x38] sm:$0xff] %v1159_v36  ;;  %v981_v37 = vpop.f32.mrb[8].mxu1 }
 0x12a   : > { %v1162_v38 = vpop.f32.mrb[8].mxu0  ;;  %v982_v39 = vadd.f32 %v981_v37, %v2151_v3  ;;  %v983_v40 = vpop.f32.mrb[9].mxu1 }
 0x12b   : > { %v1164_v41 = vpop.f32.mrb[9].mxu0  ;;  %v984_v42 = vadd.f32 %v983_v40, %v2153_v4  ;;  %v985_v43 = vpop.f32.mrb[10].mxu1 }
 0x12c   : > { %v1166_v44 = vpop.f32.mrb[10].mxu0  ;;  %v1163_v45 = vadd.f32 %v1162_v38, %v982_v39  ;;  %v986_v46 = vadd.f32 %v985_v43, %v2151_v3  ;;  %v987_v47 = vpop.f32.mrb[11].mxu1 }
 0x12d   : > { %v1168_v48 = vpop.f32.mrb[11].mxu0  ;;  %v1165_v49 = vadd.f32 %v1164_v41, %v984_v42  ;;  %v988_v50 = vadd.f32 %v987_v47, %v2153_v4 }
 0x12e   : > { %1297 = vst [vmem:[%s2161_s28 + $0x40] sm:$0xff] %v1163_v45  ;;  %v1167_v51 = vadd.f32 %v1166_v44, %v986_v46 }
 0x12f   : > { %1298 = vst [vmem:[%s2161_s28 + $0x48] sm:$0xff] %v1165_v49  ;;  %v1169_v52 = vadd.f32 %v1168_v48, %v988_v50 }
 0x130   : > { %1299 = vst [vmem:[%s2161_s28 + $0x50] sm:$0xff] %v1167_v51 }
 0x131   : > { %1300 = vst [vmem:[%s2161_s28 + $0x58] sm:$0xff] %v1169_v52  ;;  %v991_v53 = vpop.f32.mrb[12].mxu1 }
 0x132   : > { %v1172_v54 = vpop.f32.mrb[12].mxu0  ;;  %v992_v55 = vadd.f32 %v991_v53, %v2151_v3  ;;  %v993_v56 = vpop.f32.mrb[13].mxu1 }
 0x133   : > { %v1174_v57 = vpop.f32.mrb[13].mxu0  ;;  %v994_v58 = vadd.f32 %v993_v56, %v2153_v4  ;;  %v995_v59 = vpop.f32.mrb[14].mxu1 }
 0x134   : > { %v1176_v60 = vpop.f32.mrb[14].mxu0  ;;  %v1173_v61 = vadd.f32 %v1172_v54, %v992_v55  ;;  %v996_v62 = vadd.f32 %v995_v59, %v2151_v3  ;;  %v997_v63 = vpop.f32.mrb[15].mxu1 }
 0x135   : > { %v1178_v0 = vpop.f32.mrb[15].mxu0  ;;  %v1175_v1 = vadd.f32 %v1174_v57, %v994_v58  ;;  %v998_v2 = vadd.f32 %v997_v63, %v2153_v4 }
 0x136   : > { %1301 = vst [vmem:[%s2161_s28 + $0x60] sm:$0xff] %v1173_v61  ;;  %v1177_v5 = vadd.f32 %v1176_v60, %v996_v62 }
 0x137   : > { %1302 = vst [vmem:[%s2161_s28 + $0x68] sm:$0xff] %v1175_v1  ;;  %v1179_v6 = vadd.f32 %v1178_v0, %v998_v2 }
 0x138   : > { %1303 = vst [vmem:[%s2161_s28 + $0x70] sm:$0xff] %v1177_v5 }
 0x139   : > { %1304 = vst [vmem:[%s2161_s28 + $0x78] sm:$0xff] %v1179_v6  ;;  %v1001_v7 = vpop.f32.mrb[16].mxu1 }
 0x13a   : > { %v1182_v8 = vpop.f32.mrb[16].mxu0  ;;  %v1002_v9 = vadd.f32 %v1001_v7, %v2151_v3  ;;  %v1003_v10 = vpop.f32.mrb[17].mxu1 }
 0x13b   : > { %v1184_v11 = vpop.f32.mrb[17].mxu0  ;;  %v1004_v12 = vadd.f32 %v1003_v10, %v2153_v4  ;;  %v1005_v13 = vpop.f32.mrb[18].mxu1 }
 0x13c   : > { %v1186_v14 = vpop.f32.mrb[18].mxu0  ;;  %v1183_v15 = vadd.f32 %v1182_v8, %v1002_v9  ;;  %v1006_v16 = vadd.f32 %v1005_v13, %v2151_v3  ;;  %v1007_v17 = vpop.f32.mrb[19].mxu1 }
 0x13d   : > { %v1188_v18 = vpop.f32.mrb[19].mxu0  ;;  %v1185_v19 = vadd.f32 %v1184_v11, %v1004_v12  ;;  %v1008_v20 = vadd.f32 %v1007_v17, %v2153_v4 }
 0x13e   : > { %1305 = vst [vmem:[%s2161_s28 + $0x80] sm:$0xff] %v1183_v15  ;;  %v1187_v21 = vadd.f32 %v1186_v14, %v1006_v16 }
 0x13f   : > { %1306 = vst [vmem:[%s2161_s28 + $0x88] sm:$0xff] %v1185_v19  ;;  %v1189_v22 = vadd.f32 %v1188_v18, %v1008_v20 }
 0x140   : > { %1307 = vst [vmem:[%s2161_s28 + $0x90] sm:$0xff] %v1187_v21 }
 0x141   : > { %1308 = vst [vmem:[%s2161_s28 + $0x98] sm:$0xff] %v1189_v22  ;;  %v1011_v23 = vpop.f32.mrb[20].mxu1 }
 0x142   : > { %v1192_v24 = vpop.f32.mrb[20].mxu0  ;;  %v1012_v25 = vadd.f32 %v1011_v23, %v2151_v3  ;;  %v1013_v26 = vpop.f32.mrb[21].mxu1 }
 0x143   : > { %v1194_v27 = vpop.f32.mrb[21].mxu0  ;;  %v1014_v28 = vadd.f32 %v1013_v26, %v2153_v4  ;;  %v1015_v29 = vpop.f32.mrb[22].mxu1 }
 0x144   : > { %v1196_v30 = vpop.f32.mrb[22].mxu0  ;;  %v1193_v31 = vadd.f32 %v1192_v24, %v1012_v25  ;;  %v1016_v32 = vadd.f32 %v1015_v29, %v2151_v3  ;;  %v1017_v33 = vpop.f32.mrb[23].mxu1 }
 0x145   : > { %v1198_v34 = vpop.f32.mrb[23].mxu0  ;;  %v1195_v35 = vadd.f32 %v1194_v27, %v1014_v28  ;;  %v1018_v36 = vadd.f32 %v1017_v33, %v2153_v4 }
 0x146   : > { %1309 = vst [vmem:[%s2161_s28 + $0xa0] sm:$0xff] %v1193_v31  ;;  %v1197_v37 = vadd.f32 %v1196_v30, %v1016_v32 }
 0x147   : > { %1310 = vst [vmem:[%s2161_s28 + $0xa8] sm:$0xff] %v1195_v35  ;;  %v1199_v38 = vadd.f32 %v1198_v34, %v1018_v36 }
 0x148   : > { %1311 = vst [vmem:[%s2161_s28 + $0xb0] sm:$0xff] %v1197_v37 }
 0x149   : > { %1312 = vst [vmem:[%s2161_s28 + $0xb8] sm:$0xff] %v1199_v38  ;;  %v1021_v39 = vpop.f32.mrb[24].mxu1 }
 0x14a   : > { %v1202_v40 = vpop.f32.mrb[24].mxu0  ;;  %v1022_v41 = vadd.f32 %v1021_v39, %v2151_v3  ;;  %v1023_v42 = vpop.f32.mrb[25].mxu1 }
 0x14b   : > { %v1204_v43 = vpop.f32.mrb[25].mxu0  ;;  %v1024_v44 = vadd.f32 %v1023_v42, %v2153_v4  ;;  %v1025_v45 = vpop.f32.mrb[26].mxu1 }
 0x14c   : > { %v1206_v46 = vpop.f32.mrb[26].mxu0  ;;  %v1203_v47 = vadd.f32 %v1202_v40, %v1022_v41  ;;  %v1026_v48 = vadd.f32 %v1025_v45, %v2151_v3  ;;  %v1027_v49 = vpop.f32.mrb[27].mxu1 }
 0x14d   : > { %v1208_v50 = vpop.f32.mrb[27].mxu0  ;;  %v1205_v51 = vadd.f32 %v1204_v43, %v1024_v44  ;;  %v1028_v52 = vadd.f32 %v1027_v49, %v2153_v4 }
 0x14e   : > { %1313 = vst [vmem:[%s2161_s28 + $0xc0] sm:$0xff] %v1203_v47  ;;  %v1207_v53 = vadd.f32 %v1206_v46, %v1026_v48 }
 0x14f   : > { %1314 = vst [vmem:[%s2161_s28 + $0xc8] sm:$0xff] %v1205_v51  ;;  %v1209_v54 = vadd.f32 %v1208_v50, %v1028_v52 }
 0x150   : > { %1315 = vst [vmem:[%s2161_s28 + $0xd0] sm:$0xff] %v1207_v53 }
 0x151   : > { %1316 = vst [vmem:[%s2161_s28 + $0xd8] sm:$0xff] %v1209_v54  ;;  %v1031_v55 = vpop.f32.mrb[28].mxu1 }
 0x152   : > { %v1212_v56 = vpop.f32.mrb[28].mxu0  ;;  %v1032_v57 = vadd.f32 %v1031_v55, %v2151_v3  ;;  %v1033_v58 = vpop.f32.mrb[29].mxu1 }
 0x153   : > { %v1214_v59 = vpop.f32.mrb[29].mxu0  ;;  %v1034_v60 = vadd.f32 %v1033_v58, %v2153_v4  ;;  %v1035_v61 = vpop.f32.mrb[30].mxu1 }
 0x154   : > { %v1216_v62 = vpop.f32.mrb[30].mxu0  ;;  %v1213_v63 = vadd.f32 %v1212_v56, %v1032_v57  ;;  %v1036_v0 = vadd.f32 %v1035_v61, %v2151_v3  ;;  %v1037_v1 = vpop.f32.mrb[31].mxu1 }
 0x155   : > { %v1218_v2 = vpop.f32.mrb[31].mxu0  ;;  %v1215_v5 = vadd.f32 %v1214_v59, %v1034_v60  ;;  %v1038_v6 = vadd.f32 %v1037_v1, %v2153_v4 }
 0x156   : > { %1317 = vst [vmem:[%s2161_s28 + $0xe0] sm:$0xff] %v1213_v63  ;;  %v1217_v7 = vadd.f32 %v1216_v62, %v1036_v0 }
 0x157   : > { %1318 = vst [vmem:[%s2161_s28 + $0xe8] sm:$0xff] %v1215_v5  ;;  %v1219_v8 = vadd.f32 %v1218_v2, %v1038_v6 }
 0x158   : > { %1319 = vst [vmem:[%s2161_s28 + $0xf0] sm:$0xff] %v1217_v7 }
 0x159   : > { %1320 = vst [vmem:[%s2161_s28 + $0xf8] sm:$0xff] %v1219_v8  ;;  %v1041_v9 = vpop.f32.mrb[32].mxu1 }
 0x15a   : > { %v1222_v10 = vpop.f32.mrb[32].mxu0  ;;  %v1042_v11 = vadd.f32 %v1041_v9, %v2151_v3  ;;  %v1043_v12 = vpop.f32.mrb[33].mxu1 }
 0x15b   : > { %v1224_v13 = vpop.f32.mrb[33].mxu0  ;;  %v1044_v14 = vadd.f32 %v1043_v12, %v2153_v4  ;;  %v1045_v15 = vpop.f32.mrb[34].mxu1 }
 0x15c   : > { %v1226_v16 = vpop.f32.mrb[34].mxu0  ;;  %v1223_v17 = vadd.f32 %v1222_v10, %v1042_v11  ;;  %v1046_v18 = vadd.f32 %v1045_v15, %v2151_v3  ;;  %v1047_v19 = vpop.f32.mrb[35].mxu1 }
 0x15d   : > { %v1228_v20 = vpop.f32.mrb[35].mxu0  ;;  %v1225_v21 = vadd.f32 %v1224_v13, %v1044_v14  ;;  %v1048_v22 = vadd.f32 %v1047_v19, %v2153_v4 }
 0x15e   : > { %1321 = vst [vmem:[%s2161_s28 + $0x100] sm:$0xff] %v1223_v17  ;;  %v1227_v23 = vadd.f32 %v1226_v16, %v1046_v18 }
 0x15f   : > { %1322 = vst [vmem:[%s2161_s28 + $0x108] sm:$0xff] %v1225_v21  ;;  %v1229_v24 = vadd.f32 %v1228_v20, %v1048_v22 }
 0x160   : > { %1323 = vst [vmem:[%s2161_s28 + $0x110] sm:$0xff] %v1227_v23 }
 0x161   : > { %1324 = vst [vmem:[%s2161_s28 + $0x118] sm:$0xff] %v1229_v24  ;;  %v1051_v25 = vpop.f32.mrb[36].mxu1 }
 0x162   : > { %v1232_v26 = vpop.f32.mrb[36].mxu0  ;;  %v1052_v27 = vadd.f32 %v1051_v25, %v2151_v3  ;;  %v1053_v28 = vpop.f32.mrb[37].mxu1 }
 0x163   : > { %v1234_v29 = vpop.f32.mrb[37].mxu0  ;;  %v1054_v30 = vadd.f32 %v1053_v28, %v2153_v4  ;;  %v1055_v31 = vpop.f32.mrb[38].mxu1 }
 0x164   : > { %v1236_v32 = vpop.f32.mrb[38].mxu0  ;;  %v1233_v33 = vadd.f32 %v1232_v26, %v1052_v27  ;;  %v1056_v34 = vadd.f32 %v1055_v31, %v2151_v3  ;;  %v1057_v35 = vpop.f32.mrb[39].mxu1 }
 0x165   : > { %v1238_v36 = vpop.f32.mrb[39].mxu0  ;;  %v1235_v37 = vadd.f32 %v1234_v29, %v1054_v30  ;;  %v1058_v38 = vadd.f32 %v1057_v35, %v2153_v4 }
 0x166   : > { %1325 = vst [vmem:[%s2161_s28 + $0x120] sm:$0xff] %v1233_v33  ;;  %v1237_v39 = vadd.f32 %v1236_v32, %v1056_v34 }
 0x167   : > { %1326 = vst [vmem:[%s2161_s28 + $0x128] sm:$0xff] %v1235_v37  ;;  %v1239_v40 = vadd.f32 %v1238_v36, %v1058_v38 }
 0x168   : > { %1327 = vst [vmem:[%s2161_s28 + $0x130] sm:$0xff] %v1237_v39 }
 0x169   : > { %1328 = vst [vmem:[%s2161_s28 + $0x138] sm:$0xff] %v1239_v40  ;;  %v1061_v41 = vpop.f32.mrb[40].mxu1 }
 0x16a   : > { %v1242_v42 = vpop.f32.mrb[40].mxu0  ;;  %v1062_v43 = vadd.f32 %v1061_v41, %v2151_v3  ;;  %v1063_v44 = vpop.f32.mrb[41].mxu1 }
 0x16b   : > { %v1244_v45 = vpop.f32.mrb[41].mxu0  ;;  %v1064_v46 = vadd.f32 %v1063_v44, %v2153_v4  ;;  %v1065_v47 = vpop.f32.mrb[42].mxu1 }
 0x16c   : > { %v1246_v48 = vpop.f32.mrb[42].mxu0  ;;  %v1243_v49 = vadd.f32 %v1242_v42, %v1062_v43  ;;  %v1066_v50 = vadd.f32 %v1065_v47, %v2151_v3  ;;  %v1067_v51 = vpop.f32.mrb[43].mxu1 }
 0x16d   : > { %v1248_v52 = vpop.f32.mrb[43].mxu0  ;;  %v1245_v53 = vadd.f32 %v1244_v45, %v1064_v46  ;;  %v1068_v54 = vadd.f32 %v1067_v51, %v2153_v4 }
 0x16e   : > { %1329 = vst [vmem:[%s2161_s28 + $0x140] sm:$0xff] %v1243_v49  ;;  %v1247_v55 = vadd.f32 %v1246_v48, %v1066_v50 }
 0x16f   : > { %1330 = vst [vmem:[%s2161_s28 + $0x148] sm:$0xff] %v1245_v53  ;;  %v1249_v56 = vadd.f32 %v1248_v52, %v1068_v54 }
 0x170   : > { %1331 = vst [vmem:[%s2161_s28 + $0x150] sm:$0xff] %v1247_v55 }
 0x171   : > { %1332 = vst [vmem:[%s2161_s28 + $0x158] sm:$0xff] %v1249_v56  ;;  %v1071_v57 = vpop.f32.mrb[44].mxu1 }
 0x172   : > { %v1252_v58 = vpop.f32.mrb[44].mxu0  ;;  %v1072_v59 = vadd.f32 %v1071_v57, %v2151_v3  ;;  %v1073_v60 = vpop.f32.mrb[45].mxu1 }
 0x173   : > { %v1254_v61 = vpop.f32.mrb[45].mxu0  ;;  %v1074_v62 = vadd.f32 %v1073_v60, %v2153_v4  ;;  %v1075_v63 = vpop.f32.mrb[46].mxu1 }
 0x174   : > { %v1256_v0 = vpop.f32.mrb[46].mxu0  ;;  %v1253_v1 = vadd.f32 %v1252_v58, %v1072_v59  ;;  %v1076_v2 = vadd.f32 %v1075_v63, %v2151_v3  ;;  %v1077_v5 = vpop.f32.mrb[47].mxu1 }
 0x175   : > { %v1258_v6 = vpop.f32.mrb[47].mxu0  ;;  %v1255_v7 = vadd.f32 %v1254_v61, %v1074_v62  ;;  %v1078_v8 = vadd.f32 %v1077_v5, %v2153_v4 }
 0x176   : > { %1333 = vst [vmem:[%s2161_s28 + $0x160] sm:$0xff] %v1253_v1  ;;  %v1257_v9 = vadd.f32 %v1256_v0, %v1076_v2 }
 0x177   : > { %1334 = vst [vmem:[%s2161_s28 + $0x168] sm:$0xff] %v1255_v7  ;;  %v1259_v10 = vadd.f32 %v1258_v6, %v1078_v8 }
 0x178   : > { %1335 = vst [vmem:[%s2161_s28 + $0x170] sm:$0xff] %v1257_v9 }
 0x179   : > { %1336 = vst [vmem:[%s2161_s28 + $0x178] sm:$0xff] %v1259_v10  ;;  %v1081_v11 = vpop.f32.mrb[48].mxu1 }
 0x17a   : > { %v1262_v12 = vpop.f32.mrb[48].mxu0  ;;  %v1082_v13 = vadd.f32 %v1081_v11, %v2151_v3  ;;  %v1083_v14 = vpop.f32.mrb[49].mxu1 }
 0x17b   : > { %v1264_v15 = vpop.f32.mrb[49].mxu0  ;;  %v1084_v16 = vadd.f32 %v1083_v14, %v2153_v4  ;;  %v1085_v17 = vpop.f32.mrb[50].mxu1 }
 0x17c   : > { %v1266_v18 = vpop.f32.mrb[50].mxu0  ;;  %v1263_v19 = vadd.f32 %v1262_v12, %v1082_v13  ;;  %v1086_v20 = vadd.f32 %v1085_v17, %v2151_v3  ;;  %v1087_v21 = vpop.f32.mrb[51].mxu1 }
 0x17d   : > { %v1268_v22 = vpop.f32.mrb[51].mxu0  ;;  %v1265_v23 = vadd.f32 %v1264_v15, %v1084_v16  ;;  %v1088_v24 = vadd.f32 %v1087_v21, %v2153_v4 }
 0x17e   : > { %1337 = vst [vmem:[%s2161_s28 + $0x180] sm:$0xff] %v1263_v19  ;;  %v1267_v25 = vadd.f32 %v1266_v18, %v1086_v20 }
 0x17f   : > { %1338 = vst [vmem:[%s2161_s28 + $0x188] sm:$0xff] %v1265_v23  ;;  %v1269_v26 = vadd.f32 %v1268_v22, %v1088_v24 }
 0x180   : > { %1339 = vst [vmem:[%s2161_s28 + $0x190] sm:$0xff] %v1267_v25 }
 0x181   : > { %1340 = vst [vmem:[%s2161_s28 + $0x198] sm:$0xff] %v1269_v26  ;;  %v1091_v27 = vpop.f32.mrb[52].mxu1 }
 0x182   : > { %v1272_v28 = vpop.f32.mrb[52].mxu0  ;;  %v1092_v29 = vadd.f32 %v1091_v27, %v2151_v3  ;;  %v1093_v30 = vpop.f32.mrb[53].mxu1 }
 0x183   : > { %v1274_v31 = vpop.f32.mrb[53].mxu0  ;;  %v1094_v32 = vadd.f32 %v1093_v30, %v2153_v4  ;;  %v1095_v33 = vpop.f32.mrb[54].mxu1 }
 0x184   : > { %v1276_v34 = vpop.f32.mrb[54].mxu0  ;;  %v1273_v35 = vadd.f32 %v1272_v28, %v1092_v29  ;;  %v1096_v36 = vadd.f32 %v1095_v33, %v2151_v3  ;;  %v1097_v37 = vpop.f32.mrb[55].mxu1 }
 0x185   : > { %v1278_v38 = vpop.f32.mrb[55].mxu0  ;;  %v1275_v39 = vadd.f32 %v1274_v31, %v1094_v32  ;;  %v1098_v40 = vadd.f32 %v1097_v37, %v2153_v4 }
 0x186   : > { %1341 = vst [vmem:[%s2161_s28 + $0x1a0] sm:$0xff] %v1273_v35  ;;  %v1277_v41 = vadd.f32 %v1276_v34, %v1096_v36 }
 0x187   : > { %1342 = vst [vmem:[%s2161_s28 + $0x1a8] sm:$0xff] %v1275_v39  ;;  %v1279_v42 = vadd.f32 %v1278_v38, %v1098_v40 }
 0x188   : > { %1343 = vst [vmem:[%s2161_s28 + $0x1b0] sm:$0xff] %v1277_v41 }
 0x189   : > { %1344 = vst [vmem:[%s2161_s28 + $0x1b8] sm:$0xff] %v1279_v42  ;;  %v1101_v43 = vpop.f32.mrb[56].mxu1 }
 0x18a   : > { %v1282_v44 = vpop.f32.mrb[56].mxu0  ;;  %v1102_v45 = vadd.f32 %v1101_v43, %v2151_v3  ;;  %v1103_v46 = vpop.f32.mrb[57].mxu1 }
 0x18b   : > { %v1284_v47 = vpop.f32.mrb[57].mxu0  ;;  %v1104_v48 = vadd.f32 %v1103_v46, %v2153_v4  ;;  %v1105_v49 = vpop.f32.mrb[58].mxu1 }
 0x18c   : > { %v1286_v50 = vpop.f32.mrb[58].mxu0  ;;  %v1283_v51 = vadd.f32 %v1282_v44, %v1102_v45  ;;  %v1106_v52 = vpop.f32.mrb[59].mxu1 }
 0x18d   : > { %v1287_v53 = vpop.f32.mrb[59].mxu0  ;;  %v1285_v54 = vadd.f32 %v1284_v47, %v1104_v48 }
 0x18e   : > { %1345 = vst [vmem:[%s2161_s28 + $0x1c0] sm:$0xff] %v1283_v51 }
 0x18f   : > { %1346 = vst [vmem:[%s2161_s28 + $0x1c8] sm:$0xff] %v1285_v54 }
 0x190 PF: > { %s13_s12 = sadd.s32 1, %s1856_s12  }
 0x191   : > { %p10_p4 = scmp.ge.s32.totalorder %s13_s12, 4  }
 0x193   :  { %12 = sbr.rel (!%p10_p4) target bundleno = 1 (0x1), region = 62 }

// kernel: generator_forward.17
= control target key start
LH: loop header
LB: loop body
LE: loop exit
PB: predicated region body
PF: predicated region fallthrough
CT: control target
= control target key end

     0   :  { %s486_s6 = smov 0   ;;  %s799_s0 = inlined_call_operand.vmem [shape: f32[1568,64], index: 0, kind: input, shape index: {}]   ;;  %s800_s1 = inlined_call_operand.vmem [shape: f32[8,64], index: 1, kind: output, shape index: {}]  }
   0x1 LB: > { %s450_s7 = sadd.s32 4294967295, %s473_s6   ;;  %p453_p0 = scmp.ge.s32.totalorder %s473_s6, 1  ;;  %s473_s6 = sphi %s486_s6, %s11_s6  }
   0x2   : > { %p83_p1 = scmp.lt.s32.totalorder %s473_s6, 5 }
   0x4   : > { %p84_p2 = pnand %p453_p0, %p83_p1 }
   0x5   : > { %s98_s8 = smul.u32 (!%p84_p2), 49, %s450_s7  ;;  %p455_p4 = scmp.ne.s32.totalorder (!%p84_p2), %s450_s7, 0 }
   0x6   : > { %87 = sbr.rel (%p84_p2) target bundleno = 147 (0x93), region = 24 }
   0x7   : > { %p99_p3 = scmp.lt.s32.totalorder (!%p84_p2), %s98_s8, 195 }
   0xd   : > { %s802_s8 = smov (!%p99_p3, %s98_s8), 195  ;;  %107 = sbr.rel (%p455_p4) target bundleno = 20 (0x14), region = 28 }
   0xe   : > { %s454_s9 = sshll.u32 %s802_s8, 3  ;;  %vm108_vm0 = vcmask (!%p455_p4), 523264   ;;  %v475_v0 = vmov (!%p455_p4), 0.0  }
   0xf   : > { %s497_s12 = scalar_lea.vmem %s799_s0, %s454_s9  ;;  %109 = vst.msk [vmem:[%s800_s1] sm:$0xff] (!%p455_p4), %vm108_vm0, %v475_v0 }
  0x14 PF: > { %v110_v1 = vld [vmem:[%s497_s12] sm:$0xff]  ;;  %v111_v2 = vld [vmem:[%s497_s12 + $0x8] sm:$0xff]  ;;  %v112_v3 = vld [vmem:[%s497_s12 + $0x10] sm:$0xff]  ;;  %vm159_vm1 = vcmask 523264   ;;  %vm415_vm2 = vcmask 1040384   ;;  %vm417_vm3 = vcmask 1041408  }
  0x15   : > { %v160_v4 = vsel %vm159_vm1, %v110_v1, 0.0  ;;  %v161_v5 = vsel %vm159_vm1, %v111_v2, 0.0  ;;  %v163_v6 = vsel %vm159_vm1, %v112_v3, 0.0  ;;  %v113_v7 = vld [vmem:[%s497_s12 + $0x18] sm:$0xff]  ;;  %v114_v10 = vld [vmem:[%s497_s12 + $0x20] sm:$0xff]  ;;  %v115_v13 = vld [vmem:[%s497_s12 + $0x28] sm:$0xff]  ;;  %v263_v43 = vmul.f32 %v110_v1, %v110_v1 }
  0x16   : > { %v162_v8 = vadd.f32 %v161_v5, %v160_v4  ;;  %v165_v9 = vsel %vm159_vm1, %v113_v7, 0.0  ;;  %v167_v12 = vsel %vm159_vm1, %v114_v10, 0.0  ;;  %v169_v15 = vsel %vm159_vm1, %v115_v13, 0.0  ;;  %v116_v16 = vld [vmem:[%s497_s12 + $0x30] sm:$0xff]  ;;  %v117_v19 = vld [vmem:[%s497_s12 + $0x38] sm:$0xff]  ;;  %v118_v22 = vld [vmem:[%s497_s12 + $0x40] sm:$0xff] }
  0x17   : > { %v171_v18 = vsel %vm159_vm1, %v116_v16, 0.0  ;;  %v173_v21 = vsel %vm159_vm1, %v117_v19, 0.0  ;;  %v175_v24 = vsel %vm159_vm1, %v118_v22, 0.0  ;;  %v119_v25 = vld [vmem:[%s497_s12 + $0x48] sm:$0xff]  ;;  %v523_v28 = vld [vmem:[%s497_s12 + $0x50] sm:$0xff]  ;;  %v528_v31 = vld [vmem:[%s497_s12 + $0x58] sm:$0xff]  ;;  %v264_v44 = vmul.f32 %v111_v2, %v111_v2 }
  0x18   : > { %v164_v11 = vadd.f32 %v163_v6, %v162_v8  ;;  %v177_v27 = vsel %vm159_vm1, %v119_v25, 0.0  ;;  %v179_v30 = vsel %vm159_vm1, %v523_v28, 0.0  ;;  %v181_v33 = vsel %vm159_vm1, %v528_v31, 0.0  ;;  %v533_v34 = vld [vmem:[%s497_s12 + $0x60] sm:$0xff]  ;;  %v538_v37 = vld [vmem:[%s497_s12 + $0x68] sm:$0xff]  ;;  %v543_v40 = vld [vmem:[%s497_s12 + $0x70] sm:$0xff] }
  0x19   : > { %v183_v36 = vsel %vm159_vm1, %v533_v34, 0.0  ;;  %v185_v39 = vsel %vm159_vm1, %v538_v37, 0.0  ;;  %v187_v42 = vsel %vm159_vm1, %v543_v40, 0.0  ;;  %v265_v45 = vmul.f32 %v112_v3, %v112_v3  ;;  %v548_v46 = vld [vmem:[%s497_s12 + $0x78] sm:$0xff]  ;;  %v551_v48 = vld [vmem:[%s497_s12 + $0x80] sm:$0xff]  ;;  %v561_v57 = vld [vmem:[%s497_s12 + $0x88] sm:$0xff] }
  0x1a   : > { %v166_v14 = vadd.f32 %v165_v9, %v164_v11  ;;  %v189_v49 = vsel %vm159_vm1, %v548_v46, 0.0  ;;  %v266_v50 = vmul.f32 %v113_v7, %v113_v7  ;;  %v191_v52 = vsel %vm159_vm1, %v551_v48, 0.0  ;;  %v567_v63 = vld [vmem:[%s497_s12 + $0x90] sm:$0xff]  ;;  %v573_v5 = vld [vmem:[%s497_s12 + $0x98] sm:$0xff]  ;;  %v579_v11 = vld [vmem:[%s497_s12 + $0xa0] sm:$0xff] }
  0x1b   : > { %v267_v53 = vmul.f32 %v114_v10, %v114_v10  ;;  %v312_v54 = vsel %vm159_vm1, %v263_v43, 0.0  ;;  %v313_v55 = vsel %vm159_vm1, %v264_v44, 0.0  ;;  %v315_v56 = vsel %vm159_vm1, %v265_v45, 0.0  ;;  %v615_v45 = vld [vmem:[%s497_s12 + $0xc8] sm:$0xff] }
  0x1c   : > { %v168_v17 = vadd.f32 %v167_v12, %v166_v14  ;;  %v314_v59 = vadd.f32 %v313_v55, %v312_v54  ;;  %v193_v60 = vsel %vm159_vm1, %v561_v57, 0.0  ;;  %v268_v61 = vmul.f32 %v115_v13, %v115_v13 }
  0x1d   : > { %v317_v62 = vsel %vm159_vm1, %v266_v50, 0.0  ;;  %v195_v2 = vsel %vm159_vm1, %v567_v63, 0.0  ;;  %v269_v3 = vmul.f32 %v116_v16, %v116_v16  ;;  %v319_v4 = vsel %vm159_vm1, %v267_v53, 0.0 }
  0x1e   : > { %v170_v20 = vadd.f32 %v169_v15, %v168_v17  ;;  %v316_v1 = vadd.f32 %v315_v56, %v314_v59  ;;  %v197_v8 = vsel %vm159_vm1, %v573_v5, 0.0  ;;  %v270_v9 = vmul.f32 %v117_v19, %v117_v19  ;;  %v585_v17 = vld [vmem:[%s497_s12 + $0xa8] sm:$0xff] }
  0x1f   : > { %v321_v10 = vsel %vm159_vm1, %v268_v61, 0.0  ;;  %v199_v14 = vsel %vm159_vm1, %v579_v11, 0.0  ;;  %v271_v15 = vmul.f32 %v118_v22, %v118_v22  ;;  %v323_v16 = vsel %vm159_vm1, %v269_v3, 0.0 }
  0x20   : > { %v172_v23 = vadd.f32 %v171_v18, %v170_v20  ;;  %v318_v7 = vadd.f32 %v317_v62, %v316_v1  ;;  %v201_v19 = vsel %vm159_vm1, %v585_v17, 0.0  ;;  %v275_v43 = vmul.f32 %v533_v34, %v533_v34 }
  0x21   : > { %v276_v50 = vmul.f32 %v538_v37, %v538_v37  ;;  %v277_v55 = vmul.f32 %v543_v40, %v543_v40  ;;  %v278_v61 = vmul.f32 %v548_v46, %v548_v46  ;;  %v279_v3 = vmul.f32 %v551_v48, %v551_v48 }
  0x22   : > { %v174_v26 = vadd.f32 %v173_v21, %v172_v23  ;;  %v320_v13 = vadd.f32 %v319_v4, %v318_v7  ;;  %v272_v21 = vmul.f32 %v119_v25, %v119_v25  ;;  %v325_v23 = vsel %vm159_vm1, %v270_v9, 0.0 }
  0x23   : > { %v335_v56 = vsel %vm159_vm1, %v275_v43, 0.0  ;;  %v337_v62 = vsel %vm159_vm1, %v276_v50, 0.0  ;;  %v339_v4 = vsel %vm159_vm1, %v277_v55, 0.0  ;;  %v280_v9 = vmul.f32 %v561_v57, %v561_v57 }
  0x24   : > { %v176_v29 = vadd.f32 %v175_v24, %v174_v26  ;;  %v322_v20 = vadd.f32 %v321_v10, %v320_v13  ;;  %v591_v24 = vld [vmem:[%s497_s12 + $0xb0] sm:$0xff]  ;;  %v341_v10 = vsel %vm159_vm1, %v278_v61, 0.0  ;;  %v288_v61 = vmul.f32 %v615_v45, %v615_v45 }
  0x25   : > { %v203_v22 = vsel %vm159_vm1, %v591_v24, 0.0  ;;  %v285_v43 = vmul.f32 %v591_v24, %v591_v24 }
  0x26   : > { %v178_v32 = vadd.f32 %v177_v27, %v176_v29  ;;  %v324_v27 = vadd.f32 %v323_v16, %v322_v20  ;;  %v273_v29 = vmul.f32 %v523_v28, %v523_v28  ;;  %v343_v16 = vsel %vm159_vm1, %v279_v3, 0.0 }
  0x28   : > { %v180_v35 = vadd.f32 %v179_v30, %v178_v32  ;;  %v327_v30 = vsel %vm159_vm1, %v271_v15, 0.0  ;;  %v599_v32 = vld [vmem:[%s497_s12 + $0xb8] sm:$0xff]  ;;  %v331_v44 = vsel %vm159_vm1, %v273_v29, 0.0  ;;  %v281_v15 = vmul.f32 %v567_v63, %v567_v63 }
  0x29   : > { %v205_v25 = vsel %vm159_vm1, %v599_v32, 0.0  ;;  %v283_v29 = vmul.f32 %v579_v11, %v579_v11  ;;  %v286_v50 = vmul.f32 %v599_v32, %v599_v32 }
  0x2a   : > { %v182_v38 = vadd.f32 %v181_v33, %v180_v35  ;;  %v326_v35 = vadd.f32 %v325_v23, %v324_v27  ;;  %v345_v23 = vsel %vm159_vm1, %v280_v9, 0.0 }
  0x2c   : > { %v184_v41 = vadd.f32 %v183_v36, %v182_v38  ;;  %v274_v36 = vmul.f32 %v528_v31, %v528_v31  ;;  %v329_v38 = vsel %vm159_vm1, %v272_v21, 0.0  ;;  %v209_v31 = vsel %vm159_vm1, %v615_v45, 0.0 }
  0x2d   : > { %v282_v21 = vmul.f32 %v573_v5, %v573_v5 }
  0x2e   : > { %v186_v47 = vadd.f32 %v185_v39, %v184_v41  ;;  %v607_v39 = vld [vmem:[%s497_s12 + $0xc0] sm:$0xff] }
  0x2f   : > { %v207_v28 = vsel %vm159_vm1, %v607_v39, 0.0  ;;  %v287_v55 = vmul.f32 %v607_v39, %v607_v39 }
  0x30   : > { %v188_v51 = vadd.f32 %v187_v42, %v186_v47  ;;  %v328_v42 = vadd.f32 %v327_v30, %v326_v35  ;;  %v347_v30 = vsel %vm159_vm1, %v281_v15, 0.0 }
  0x32   : > { %v190_v58 = vadd.f32 %v189_v49, %v188_v51  ;;  %v330_v49 = vadd.f32 %v329_v38, %v328_v42  ;;  %v333_v51 = vsel %vm159_vm1, %v274_v36, 0.0  ;;  %v284_v36 = vmul.f32 %v585_v17, %v585_v17 }
  0x33   : > { %v349_v38 = vsel %vm159_vm1, %v282_v21, 0.0 }
  0x34   : > { %v192_v0 = vadd.f32 %v191_v52, %v190_v58  ;;  %v623_v52 = vld [vmem:[%s497_s12 + $0xd0] sm:$0xff]  ;;  %v332_v54 = vadd.f32 %v331_v44, %v330_v49  ;;  %v631_v58 = vld [vmem:[%s497_s12 + $0xd8] sm:$0xff]  ;;  %v351_v44 = vsel %vm159_vm1, %v283_v29, 0.0 }
  0x35   : > { %v211_v34 = vsel %vm159_vm1, %v623_v52, 0.0  ;;  %v213_v37 = vsel %vm159_vm1, %v631_v58, 0.0  ;;  %v289_v3 = vmul.f32 %v623_v52, %v623_v52  ;;  %v290_v45 = vmul.f32 %v631_v58, %v631_v58  ;;  %v152_v29 = vld [vmem:[%s497_s12 + $0x150] sm:$0xff] }
  0x36   : > { %v194_v6 = vadd.f32 %v193_v60, %v192_v0  ;;  %v334_v60 = vadd.f32 %v333_v51, %v332_v54  ;;  %v639_v0 = vld [vmem:[%s497_s12 + $0xe0] sm:$0xff]  ;;  %v353_v51 = vsel %vm159_vm1, %v284_v36, 0.0 }
  0x37   : > { %v215_v40 = vsel %vm159_vm1, %v639_v0, 0.0  ;;  %v291_v52 = vmul.f32 %v639_v0, %v639_v0 }
  0x38   : > { %v196_v12 = vadd.f32 %v195_v2, %v194_v6  ;;  %v336_v2 = vadd.f32 %v335_v56, %v334_v60  ;;  %v647_v6 = vld [vmem:[%s497_s12 + $0xe8] sm:$0xff]  ;;  %v355_v56 = vsel %vm159_vm1, %v285_v43, 0.0 }
  0x39   : > { %v217_v46 = vsel %vm159_vm1, %v647_v6, 0.0  ;;  %v292_v58 = vmul.f32 %v647_v6, %v647_v6  ;;  %v367_v0 = vsel %vm159_vm1, %v291_v52, 0.0 }
  0x3a   : > { %v198_v18 = vadd.f32 %v197_v8, %v196_v12  ;;  %v338_v8 = vadd.f32 %v337_v62, %v336_v2  ;;  %v655_v12 = vld [vmem:[%s497_s12 + $0xf0] sm:$0xff]  ;;  %v357_v62 = vsel %vm159_vm1, %v286_v50, 0.0 }
  0x3b   : > { %v219_v48 = vsel %vm159_vm1, %v655_v12, 0.0  ;;  %v369_v6 = vsel %vm159_vm1, %v292_v58, 0.0 }
  0x3c   : > { %v200_v26 = vadd.f32 %v199_v14, %v198_v18  ;;  %v340_v14 = vadd.f32 %v339_v4, %v338_v8  ;;  %v663_v18 = vld [vmem:[%s497_s12 + $0xf8] sm:$0xff]  ;;  %v359_v4 = vsel %vm159_vm1, %v287_v55, 0.0 }
  0x3d   : > { %v221_v57 = vsel %vm159_vm1, %v663_v18, 0.0 }
  0x3e   : > { %v202_v33 = vadd.f32 %v201_v19, %v200_v26  ;;  %v342_v19 = vadd.f32 %v341_v10, %v340_v14  ;;  %v671_v26 = vld [vmem:[%s497_s12 + $0x100] sm:$0xff]  ;;  %v361_v10 = vsel %vm159_vm1, %v288_v61, 0.0 }
  0x3f   : > { %v223_v63 = vsel %vm159_vm1, %v671_v26, 0.0 }
  0x40   : > { %v204_v41 = vadd.f32 %v203_v22, %v202_v33  ;;  %v344_v22 = vadd.f32 %v343_v16, %v342_v19  ;;  %v679_v33 = vld [vmem:[%s497_s12 + $0x108] sm:$0xff]  ;;  %v363_v16 = vsel %vm159_vm1, %v289_v3, 0.0 }
  0x41   : > { %v225_v5 = vsel %vm159_vm1, %v679_v33, 0.0 }
  0x42   : > { %v206_v47 = vadd.f32 %v205_v25, %v204_v41  ;;  %v346_v25 = vadd.f32 %v345_v23, %v344_v22  ;;  %v687_v41 = vld [vmem:[%s497_s12 + $0x110] sm:$0xff]  ;;  %v365_v23 = vsel %vm159_vm1, %v290_v45, 0.0 }
  0x43   : > { %v227_v11 = vsel %vm159_vm1, %v687_v41, 0.0 }
  0x44   : > { %v208_v53 = vadd.f32 %v207_v28, %v206_v47  ;;  %v348_v28 = vadd.f32 %v347_v30, %v346_v25  ;;  %v695_v47 = vld [vmem:[%s497_s12 + $0x118] sm:$0xff]  ;;  %v243_v25 = vsel %vm159_vm1, %v152_v29, 0.0 }
  0x45   : > { %v229_v17 = vsel %vm159_vm1, %v695_v47, 0.0 }
  0x46   : > { %v210_v59 = vadd.f32 %v209_v31, %v208_v53  ;;  %v350_v31 = vadd.f32 %v349_v38, %v348_v28  ;;  %v703_v53 = vld [vmem:[%s497_s12 + $0x120] sm:$0xff]  ;;  %v295_v38 = vmul.f32 %v671_v26, %v671_v26 }
  0x47   : > { %v231_v24 = vsel %vm159_vm1, %v703_v53, 0.0  ;;  %v154_v26 = vld [vmem:[%s497_s12 + $0x160] sm:$0xff]  ;;  %v299_v55 = vmul.f32 %v703_v53, %v703_v53 }
  0x48   : > { %v212_v1 = vadd.f32 %v211_v34, %v210_v59  ;;  %v352_v34 = vadd.f32 %v351_v44, %v350_v31  ;;  %v711_v59 = vld [vmem:[%s497_s12 + $0x128] sm:$0xff]  ;;  %v296_v44 = vmul.f32 %v679_v33, %v679_v33  ;;  %v297_v31 = vmul.f32 %v687_v41, %v687_v41 }
  0x49   : > { %v233_v32 = vsel %vm159_vm1, %v711_v59, 0.0  ;;  %v155_v41 = vld [vmem:[%s497_s12 + $0x168] sm:$0xff]  ;;  %v300_v61 = vmul.f32 %v711_v59, %v711_v59  ;;  %v157_v59 = vld [vmem:[%s497_s12 + $0x178] sm:$0xff] }
  0x4a   : > { %v214_v7 = vadd.f32 %v213_v37, %v212_v1  ;;  %v354_v37 = vadd.f32 %v353_v51, %v352_v34  ;;  %v148_v1 = vld [vmem:[%s497_s12 + $0x130] sm:$0xff]  ;;  %v298_v34 = vmul.f32 %v695_v47, %v695_v47 }
  0x4b   : > { %v235_v39 = vsel %vm159_vm1, %v148_v1, 0.0 }
  0x4c   : > { %v216_v13 = vadd.f32 %v215_v40, %v214_v7  ;;  %v356_v40 = vadd.f32 %v355_v56, %v354_v37  ;;  %v149_v7 = vld [vmem:[%s497_s12 + $0x138] sm:$0xff]  ;;  %v379_v56 = vsel %vm159_vm1, %v297_v31, 0.0 }
  0x4d   : > { %v237_v9 = vsel %vm159_vm1, %v149_v7, 0.0 }
  0x4e   : > { %v218_v20 = vadd.f32 %v217_v46, %v216_v13  ;;  %v358_v46 = vadd.f32 %v357_v62, %v356_v40  ;;  %v150_v13 = vld [vmem:[%s497_s12 + $0x140] sm:$0xff]  ;;  %v381_v62 = vsel %vm159_vm1, %v298_v34, 0.0  ;;  %v383_v40 = vsel %vm159_vm1, %v299_v55, 0.0 }
  0x4f   : > { %v239_v15 = vsel %vm159_vm1, %v150_v13, 0.0  ;;  %v303_v45 = vmul.f32 %v150_v13, %v150_v13 }
  0x50   : > { %v220_v27 = vadd.f32 %v219_v48, %v218_v20  ;;  %v360_v48 = vadd.f32 %v359_v4, %v358_v46  ;;  %v151_v20 = vld [vmem:[%s497_s12 + $0x148] sm:$0xff]  ;;  %v385_v46 = vsel %vm159_vm1, %v300_v61, 0.0 }
  0x51   : > { %v241_v21 = vsel %vm159_vm1, %v151_v20, 0.0 }
  0x52   : > { %v222_v35 = vadd.f32 %v221_v57, %v220_v27  ;;  %v362_v57 = vadd.f32 %v361_v10, %v360_v48 }
  0x54   : > { %v224_v42 = vadd.f32 %v223_v63, %v222_v35  ;;  %v364_v22 = vadd.f32 %v363_v16, %v362_v57  ;;  %v293_v63 = vmul.f32 %v655_v12, %v655_v12  ;;  %v153_v12 = vld [vmem:[%s497_s12 + $0x158] sm:$0xff]  ;;  %v391_v57 = vsel %vm159_vm1, %v303_v45, 0.0 }
  0x55   : > { %v245_v43 = vsel %vm159_vm1, %v153_v12, 0.0  ;;  %v306_v13 = vmul.f32 %v153_v12, %v153_v12 }
  0x56   : > { %v226_v49 = vadd.f32 %v225_v5, %v224_v42  ;;  %v366_v35 = vadd.f32 %v365_v23, %v364_v22  ;;  %v294_v5 = vmul.f32 %v663_v18, %v663_v18  ;;  %v371_v42 = vsel %vm159_vm1, %v293_v63, 0.0 }
  0x57   : > { %v307_v63 = vmul.f32 %v154_v26, %v154_v26 }
  0x58   : > { %v228_v54 = vadd.f32 %v227_v11, %v226_v49  ;;  %v368_v36 = vadd.f32 %v367_v0, %v366_v35  ;;  %v373_v49 = vsel %vm159_vm1, %v294_v5, 0.0  ;;  %v308_v35 = vmul.f32 %v155_v41, %v155_v41 }
  0x5a   : > { %v230_v60 = vadd.f32 %v229_v17, %v228_v54  ;;  %v370_v11 = vadd.f32 %v369_v6, %v368_v36  ;;  %v375_v17 = vsel %vm159_vm1, %v295_v38, 0.0  ;;  %v247_v54 = vsel %vm159_vm1, %v154_v26, 0.0 }
  0x5b   : > { %v399_v6 = vsel %vm159_vm1, %v307_v63, 0.0  ;;  %v401_v12 = vsel %vm159_vm1, %v308_v35, 0.0 }
  0x5c   : > { %v232_v2 = vadd.f32 %v231_v24, %v230_v60  ;;  %v372_v18 = vadd.f32 %v371_v42, %v370_v11  ;;  %v377_v24 = vsel %vm159_vm1, %v296_v44, 0.0  ;;  %v310_v42 = vmul.f32 %v157_v59, %v157_v59 }
  0x5e   : > { %v234_v8 = vadd.f32 %v233_v32, %v232_v2  ;;  %v374_v51 = vadd.f32 %v373_v49, %v372_v18  ;;  %v249_v32 = vsel %vm159_vm1, %v155_v41, 0.0  ;;  %v301_v2 = vmul.f32 %v148_v1, %v148_v1 }
  0x5f   : > { %v253_v1 = vsel %vm159_vm1, %v157_v59, 0.0  ;;  %v405_v18 = vsel %vm159_vm1, %v310_v42, 0.0 }
  0x60   : > { %v236_v14 = vadd.f32 %v235_v39, %v234_v8  ;;  %v376_v33 = vadd.f32 %v375_v17, %v374_v51  ;;  %v156_v39 = vld [vmem:[%s497_s12 + $0x170] sm:$0xff]  ;;  %v302_v8 = vmul.f32 %v149_v7, %v149_v7  ;;  %v387_v10 = vsel %vm159_vm1, %v301_v2, 0.0 }
  0x61   : > { %v251_v4 = vsel %vm159_vm1, %v156_v39, 0.0  ;;  %v309_v5 = vmul.f32 %v156_v39, %v156_v39 }
  0x62   : > { %v238_v19 = vadd.f32 %v237_v9, %v236_v14  ;;  %v378_v37 = vadd.f32 %v377_v24, %v376_v33  ;;  %v389_v52 = vsel %vm159_vm1, %v302_v8, 0.0 }
  0x64   : > { %v240_v27 = vadd.f32 %v239_v15, %v238_v19  ;;  %v380_v47 = vadd.f32 %v379_v56, %v378_v37  ;;  %v304_v15 = vmul.f32 %v151_v20, %v151_v20  ;;  %v305_v19 = vmul.f32 %v152_v29, %v152_v29 }
  0x66   : > { %v242_v30 = vadd.f32 %v241_v21, %v240_v27  ;;  %v382_v53 = vadd.f32 %v381_v62, %v380_v47  ;;  %v158_v21 = vld [vmem:[%s497_s12 + $0x180] sm:$0xff]  ;;  %v393_v27 = vsel %vm159_vm1, %v304_v15, 0.0  ;;  %v395_v0 = vsel %vm159_vm1, %v305_v19, 0.0 }
  0x67   : > { %v255_v23 = vsel %vm159_vm1, %v158_v21, 0.0  ;;  %v311_v11 = vmul.f32 %v158_v21, %v158_v21 }
  0x68   : > { %v244_v28 = vadd.f32 %v243_v25, %v242_v30  ;;  %v384_v9 = vadd.f32 %v383_v40, %v382_v53  ;;  %v397_v25 = vsel %vm159_vm1, %v306_v13, 0.0 }
  0x69   : > { %v407_v17 = vsel %vm159_vm1, %v311_v11, 0.0 }
  0x6a   : > { %v246_v50 = vadd.f32 %v245_v43, %v244_v28  ;;  %v386_v48 = vadd.f32 %v385_v46, %v384_v9  ;;  %v403_v43 = vsel %vm159_vm1, %v309_v5, 0.0 }
  0x6c   : > { %v248_v60 = vadd.f32 %v247_v54, %v246_v50  ;;  %v388_v16 = vadd.f32 %v387_v10, %v386_v48 }
  0x6e   : > { %v250_v3 = vadd.f32 %v249_v32, %v248_v60  ;;  %v390_v58 = vadd.f32 %v389_v52, %v388_v16  ;;  %v419_v32 = vld [vmem:[%s800_s1] sm:$0xff] }
  0x70   : > { %v252_v14 = vadd.f32 %v251_v4, %v250_v3  ;;  %v392_v22 = vadd.f32 %v391_v57, %v390_v58 }
  0x72   : > { %v254_v7 = vadd.f32 %v253_v1, %v252_v14  ;;  %v394_v20 = vadd.f32 %v393_v27, %v392_v22 }
  0x74   : > { %v256_v30 = vadd.f32 %v255_v23, %v254_v7  ;;  %v396_v29 = vadd.f32 %v395_v0, %v394_v20 }
  0x76   : > { %v257_v36 = vrot.slane %v256_v30, 4  ;;  %v398_v38 = vadd.f32 %v397_v25, %v396_v29 }
  0x78   : > { %v400_v28 = vadd.f32 %v399_v6, %v398_v38  ;;  %v258_v44 = vadd.f32 %v257_v36, %v256_v30 }
  0x7a   : > { %v402_v49 = vadd.f32 %v401_v12, %v400_v28  ;;  %v259_v26 = vrot.slane %v258_v44, 2 }
  0x7c   : > { %v404_v31 = vadd.f32 %v403_v43, %v402_v49  ;;  %v260_v54 = vadd.f32 %v259_v26, %v258_v44 }
  0x7e   : > { %v406_v50 = vadd.f32 %v405_v18, %v404_v31  ;;  %v261_v33 = vrot.slane %v260_v54, 1 }
  0x80   : > { %v408_v51 = vadd.f32 %v407_v17, %v406_v50  ;;  %v262_v41 = vadd.f32 %v261_v33, %v260_v54 }
  0x82   : > { %v409_v34 = vrot.slane %v408_v51, 4 }
  0x84   : > { %v410_v24 = vadd.f32 %v409_v34, %v408_v51 }
  0x86   : > { %v411_v55 = vrot.slane %v410_v24, 2 }
  0x88   : > { %v412_v56 = vadd.f32 %v411_v55, %v410_v24 }
  0x8a   : > { %v413_v60 = vrot.slane %v412_v56, 1 }
  0x8c   : > { %v414_v37 = vadd.f32 %v413_v60, %v412_v56 }
  0x8e   : > { %v416_v61 = vsel %vm415_vm2, %v262_v41, %v414_v37 }
  0x8f   : > { %v418_v62 = vsel %vm417_vm3, %v416_v61, 0.0 }
  0x90   : > { %v420_v47 = vadd.f32 %v419_v32, %v418_v62 }
  0x92   : > { %421 = vst.msk [vmem:[%s800_s1] sm:$0xff] %vm159_vm1, %v420_v47 }
  0x93 PF: > { %s11_s6 = sadd.s32 1, %s473_s6  }
  0x94   : > { %p8_p5 = scmp.ge.s32.totalorder %s11_s6, 6  }
  0x96   :  { %10 = sbr.rel (!%p8_p5) target bundleno = 1 (0x1), region = 54 }

// kernel: generator_forward.18
= control target key start
LH: loop header
LB: loop body
LE: loop exit
PB: predicated region body
PF: predicated region fallthrough
CT: control target
= control target key end

     0   :  { %s875_s15 = smov 0   ;;  %s1161_s0 = inlined_call_operand.vmem [shape: f32[1568,64], index: 0, kind: input, shape index: {}]   ;;  %s1162_s1 = inlined_call_operand.vmem [shape: f32[8,64], index: 1, kind: input, shape index: {}]   ;;  %s1163_s2 = inlined_call_operand.vmem [shape: f32[1,64], index: 2, kind: input, shape index: {}]   ;;  %s1164_s3 = inlined_call_operand.vmem [shape: f32[1,64], index: 3, kind: input, shape index: {}]   ;;  %s1165_s4 = inlined_call_operand.vmem [shape: bf16[1568,64], index: 4, kind: output, shape index: {}]  }
   0x1 LB: > { %s725_s16 = sadd.s32 4294967295, %s848_s15   ;;  %p729_p0 = scmp.ge.s32.totalorder %s848_s15, 1  ;;  %s848_s15 = sphi %s875_s15, %s14_s15  }
   0x2   : > { %p163_p1 = scmp.lt.s32.totalorder %s848_s15, 5 }
   0x4   : > { %p164_p2 = pnand %p729_p0, %p163_p1 }
   0x5   : > { %v201_v0 = vld [vmem:[%s1162_s1] sm:$0x1] (!%p164_p2)  ;;  %v203_v1 = vld [vmem:[%s1162_s1 + $0x1] sm:$0x1] (!%p164_p2)  ;;  %s189_s21 = smul.u32 (!%p164_p2), 49, %s725_s16  ;;  %v264_v7 = vlaneseq (!%p164_p2)  ;;  %vm619_vm0 = vcmask (!%p164_p2), 519168  }
   0x6   : > { %167 = sbr.rel (%p164_p2) target bundleno = 89 (0x59), region = 36  ;;  %v202_v2 = vmul.f32 (!%p164_p2), 0.0006377551, %v201_v0  ;;  %v204_v3 = vmul.f32 (!%p164_p2), 0.0006377551, %v203_v1 }
   0x7   : > { %p190_p3 = scmp.lt.s32.totalorder (!%p164_p2), %s189_s21, 195  ;;  %v265_v8 = vshrl.u32 (!%p164_p2), %v264_v7, 7  ;;  %v207_v9 = vld [vmem:[%s1163_s2] sm:$0x1] (!%p164_p2) }
   0x8   : > { %v205_v4 = vmul.f32 (!%p164_p2), %v202_v2, %v202_v2  ;;  %v211_v13 = vld [vmem:[%s1164_s3] sm:$0x1] (!%p164_p2) }
   0x9   : > { %v266_v10 = vsub.s32 (!%p164_p2), 0, %v265_v8 }
   0xa   : > { %v206_v5 = vsub.f32 (!%p164_p2), %v204_v3, %v205_v4 }
   0xc   : > { %v208_v6 = vadd.f32 (!%p164_p2), 1e-05, %v206_v5 }
   0xd   : > { %s1167_s21 = smov (!%p190_p3, %s189_s21), 195 }
   0xe   : > { %840 = vrsqrt.f32 %v208_v6  ;;  %s730_s22 = sshll.u32 %s1167_s21, 3  ;;  %s731_s30 = sshll.u32 %s1167_s21, 2 }
   0xf   : > { %s895_s25 = scalar_lea.vmem %s1161_s0, %s730_s22  ;;  %s947_s7 = scalar_lea.vmem %s1165_s4, %s731_s30 }
  0x10   : > { %v214_v14 = vld [vmem:[%s895_s25] sm:$0xff]  ;;  %v215_v15 = vld [vmem:[%s895_s25 + $0x8] sm:$0xff]  ;;  %v216_v16 = vld [vmem:[%s895_s25 + $0x10] sm:$0xff] }
  0x11   : > { %v217_v17 = vld [vmem:[%s895_s25 + $0x18] sm:$0xff]  ;;  %v218_v18 = vld [vmem:[%s895_s25 + $0x20] sm:$0xff]  ;;  %v219_v21 = vld [vmem:[%s895_s25 + $0x28] sm:$0xff] }
  0x12   : > { %v220_v22 = vld [vmem:[%s895_s25 + $0x30] sm:$0xff]  ;;  %v221_v23 = vld [vmem:[%s895_s25 + $0x38] sm:$0xff]  ;;  %v222_v24 = vld [vmem:[%s895_s25 + $0x40] sm:$0xff] }
  0x13   : > { %v223_v25 = vld [vmem:[%s895_s25 + $0x48] sm:$0xff]  ;;  %v224_v26 = vld [vmem:[%s895_s25 + $0x50] sm:$0xff]  ;;  %v225_v31 = vld [vmem:[%s895_s25 + $0x58] sm:$0xff] }
  0x14   : > { %v226_v32 = vld [vmem:[%s895_s25 + $0x60] sm:$0xff]  ;;  %v227_v33 = vld [vmem:[%s895_s25 + $0x68] sm:$0xff]  ;;  %v229_v3 = vld [vmem:[%s895_s25 + $0x78] sm:$0xff] }
  0x18   : > { %v841_v11 = vpop.eup %840 }
  0x19   : > { %v210_v12 = vmul.f32 %v841_v11, %v207_v9 }
  0x1b   : > { %v212_v19 = vmul.f32 %v210_v12, %v202_v2  ;;  %v908_v20 = vrot.slane %v210_v12, %v266_v10  ;;  %v228_v2 = vld [vmem:[%s895_s25 + $0x70] sm:$0xff] }
  0x1d   : > { %v213_v27 = vsub.f32 %v211_v13, %v212_v19  ;;  %v269_v28 = vmul.f32 %v908_v20, %v214_v14  ;;  %v270_v29 = vmul.f32 %v908_v20, %v215_v15  ;;  %v271_v30 = vmul.f32 %v908_v20, %v216_v16 }
  0x1e   : > { %v272_v34 = vmul.f32 %v908_v20, %v217_v17  ;;  %v273_v35 = vmul.f32 %v908_v20, %v218_v18  ;;  %v274_v36 = vmul.f32 %v908_v20, %v219_v21  ;;  %v275_v37 = vmul.f32 %v908_v20, %v220_v22  ;;  %v230_v21 = vld [vmem:[%s895_s25 + $0x80] sm:$0xff] }
  0x1f   : > { %v926_v38 = vrot.slane %v213_v27, %v266_v10  ;;  %v276_v39 = vmul.f32 %v908_v20, %v221_v23  ;;  %v277_v40 = vmul.f32 %v908_v20, %v222_v24  ;;  %v278_v41 = vmul.f32 %v908_v20, %v223_v25  ;;  %v232_v27 = vld [vmem:[%s895_s25 + $0x90] sm:$0xff] }
  0x20   : > { %v279_v42 = vmul.f32 %v908_v20, %v224_v26  ;;  %v280_v43 = vmul.f32 %v908_v20, %v225_v31  ;;  %v281_v44 = vmul.f32 %v908_v20, %v226_v32  ;;  %v282_v45 = vmul.f32 %v908_v20, %v227_v33  ;;  %v231_v26 = vld [vmem:[%s895_s25 + $0x88] sm:$0xff]  ;;  %v234_v33 = vld [vmem:[%s895_s25 + $0xa0] sm:$0xff] }
  0x21   : > { %v324_v46 = vadd.f32 %v926_v38, %v269_v28  ;;  %v325_v47 = vadd.f32 %v926_v38, %v270_v29  ;;  %v326_v48 = vadd.f32 %v926_v38, %v271_v30  ;;  %v327_v49 = vadd.f32 %v926_v38, %v272_v34  ;;  %v233_v28 = vld [vmem:[%s895_s25 + $0x98] sm:$0xff]  ;;  %v235_v34 = vld [vmem:[%s895_s25 + $0xa8] sm:$0xff] }
  0x22   : > { %v328_v50 = vadd.f32 %v926_v38, %v273_v35  ;;  %v329_v51 = vadd.f32 %v926_v38, %v274_v36  ;;  %v330_v52 = vadd.f32 %v926_v38, %v275_v37  ;;  %v331_v53 = vadd.f32 %v926_v38, %v276_v39 }
  0x23   : > { %v373_v54 = vmax.f32 %v324_v46, 0.0  ;;  %v374_v55 = vmax.f32 %v325_v47, 0.0  ;;  %v375_v56 = vmax.f32 %v326_v48, 0.0  ;;  %v376_v57 = vmax.f32 %v327_v49, 0.0 }
  0x24   : > { %v377_v58 = vmax.f32 %v328_v50, 0.0  ;;  %v378_v59 = vmax.f32 %v329_v51, 0.0  ;;  %v379_v60 = vmax.f32 %v330_v52, 0.0  ;;  %v380_v61 = vmax.f32 %v331_v53, 0.0 }
  0x25   : > { %v783_v62 = vpack.c.bf16 %v373_v54, %v373_v54  ;;  %v784_v63 = vpack.c.bf16 %v374_v55, %v374_v55  ;;  %v785_v0 = vpack.c.bf16 %v375_v56, %v375_v56  ;;  %v786_v1 = vpack.c.bf16 %v376_v57, %v376_v57 }
  0x26   : > { %v787_v4 = vpack.c.bf16 %v377_v58, %v377_v58  ;;  %v788_v5 = vpack.c.bf16 %v378_v59, %v378_v59  ;;  %v789_v6 = vpack.c.bf16 %v379_v60, %v379_v60  ;;  %v790_v7 = vpack.c.bf16 %v380_v61, %v380_v61 }
  0x27   : > { %620 = vst.msk [vmem:[%s947_s7] sm:$0xf] %vm619_vm0, %v783_v62  ;;  %621 = vst.msk [vmem:[%s947_s7 + $0x4] sm:$0xf] %vm619_vm0, %v784_v63  ;;  %v332_v8 = vadd.f32 %v926_v38, %v277_v40  ;;  %v333_v9 = vadd.f32 %v926_v38, %v278_v41  ;;  %v334_v10 = vadd.f32 %v926_v38, %v279_v42  ;;  %v238_v62 = vld [vmem:[%s895_s25 + $0xc0] sm:$0xff] }
  0x28   : > { %622 = vst.msk [vmem:[%s947_s7 + $0x8] sm:$0xf] %vm619_vm0, %v785_v0  ;;  %623 = vst.msk [vmem:[%s947_s7 + $0xc] sm:$0xf] %vm619_vm0, %v786_v1  ;;  %v335_v11 = vadd.f32 %v926_v38, %v280_v43  ;;  %v336_v12 = vadd.f32 %v926_v38, %v281_v44  ;;  %v337_v13 = vadd.f32 %v926_v38, %v282_v45  ;;  %v236_v44 = vld [vmem:[%s895_s25 + $0xb0] sm:$0xff]  ;;  %v237_v45 = vld [vmem:[%s895_s25 + $0xb8] sm:$0xff] }
  0x29   : > { %624 = vst.msk [vmem:[%s947_s7 + $0x10] sm:$0xf] %vm619_vm0, %v787_v4  ;;  %625 = vst.msk [vmem:[%s947_s7 + $0x14] sm:$0xf] %vm619_vm0, %v788_v5  ;;  %v283_v14 = vmul.f32 %v908_v20, %v228_v2  ;;  %v284_v15 = vmul.f32 %v908_v20, %v229_v3  ;;  %v381_v16 = vmax.f32 %v332_v8, 0.0  ;;  %v382_v17 = vmax.f32 %v333_v9, 0.0 }
  0x2a   : > { %626 = vst.msk [vmem:[%s947_s7 + $0x18] sm:$0xf] %vm619_vm0, %v789_v6  ;;  %627 = vst.msk [vmem:[%s947_s7 + $0x1c] sm:$0xf] %vm619_vm0, %v790_v7  ;;  %v383_v18 = vmax.f32 %v334_v10, 0.0  ;;  %v384_v19 = vmax.f32 %v335_v11, 0.0  ;;  %v285_v40 = vmul.f32 %v908_v20, %v230_v21  ;;  %v286_v41 = vmul.f32 %v908_v20, %v231_v26 }
  0x2b   : > { %v385_v22 = vmax.f32 %v336_v12, 0.0  ;;  %v386_v23 = vmax.f32 %v337_v13, 0.0  ;;  %v338_v24 = vadd.f32 %v926_v38, %v283_v14  ;;  %v339_v25 = vadd.f32 %v926_v38, %v284_v15  ;;  %v239_v3 = vld [vmem:[%s895_s25 + $0xc8] sm:$0xff]  ;;  %v240_v4 = vld [vmem:[%s895_s25 + $0xd0] sm:$0xff]  ;;  %v241_v5 = vld [vmem:[%s895_s25 + $0xd8] sm:$0xff] }
  0x2c   : > { %v791_v29 = vpack.c.bf16 %v381_v16, %v381_v16  ;;  %v792_v30 = vpack.c.bf16 %v382_v17, %v382_v17  ;;  %v793_v31 = vpack.c.bf16 %v383_v18, %v383_v18  ;;  %v794_v32 = vpack.c.bf16 %v384_v19, %v384_v19  ;;  %v242_v10 = vld [vmem:[%s895_s25 + $0xe0] sm:$0xff]  ;;  %v243_v11 = vld [vmem:[%s895_s25 + $0xe8] sm:$0xff]  ;;  %v244_v21 = vld [vmem:[%s895_s25 + $0xf0] sm:$0xff] }
  0x2d   : > { %v795_v35 = vpack.c.bf16 %v385_v22, %v385_v22  ;;  %v796_v36 = vpack.c.bf16 %v386_v23, %v386_v23  ;;  %v387_v37 = vmax.f32 %v338_v24, 0.0  ;;  %v388_v39 = vmax.f32 %v339_v25, 0.0  ;;  %v245_v22 = vld [vmem:[%s895_s25 + $0xf8] sm:$0xff] }
  0x2e   : > { %628 = vst.msk [vmem:[%s947_s7 + $0x20] sm:$0xf] %vm619_vm0, %v791_v29  ;;  %629 = vst.msk [vmem:[%s947_s7 + $0x24] sm:$0xf] %vm619_vm0, %v792_v30  ;;  %v287_v42 = vmul.f32 %v908_v20, %v232_v27  ;;  %v288_v43 = vmul.f32 %v908_v20, %v233_v28  ;;  %v289_v48 = vmul.f32 %v908_v20, %v234_v33 }
  0x2f   : > { %630 = vst.msk [vmem:[%s947_s7 + $0x28] sm:$0xf] %vm619_vm0, %v793_v31  ;;  %631 = vst.msk [vmem:[%s947_s7 + $0x2c] sm:$0xf] %vm619_vm0, %v794_v32  ;;  %v797_v46 = vpack.c.bf16 %v387_v37, %v387_v37  ;;  %v798_v47 = vpack.c.bf16 %v388_v39, %v388_v39  ;;  %v290_v49 = vmul.f32 %v908_v20, %v235_v34 }
  0x30   : > { %632 = vst.msk [vmem:[%s947_s7 + $0x30] sm:$0xf] %vm619_vm0, %v795_v35  ;;  %633 = vst.msk [vmem:[%s947_s7 + $0x34] sm:$0xf] %vm619_vm0, %v796_v36  ;;  %v340_v50 = vadd.f32 %v926_v38, %v285_v40  ;;  %v341_v51 = vadd.f32 %v926_v38, %v286_v41  ;;  %v342_v52 = vadd.f32 %v926_v38, %v287_v42  ;;  %v246_v40 = vld [vmem:[%s895_s25 + $0x100] sm:$0xff] }
  0x31   : > { %v343_v53 = vadd.f32 %v926_v38, %v288_v43  ;;  %634 = vst.msk [vmem:[%s947_s7 + $0x38] sm:$0xf] %vm619_vm0, %v797_v46  ;;  %635 = vst.msk [vmem:[%s947_s7 + $0x3c] sm:$0xf] %vm619_vm0, %v798_v47  ;;  %v344_v54 = vadd.f32 %v926_v38, %v289_v48  ;;  %v345_v55 = vadd.f32 %v926_v38, %v290_v49  ;;  %v248_v46 = vld [vmem:[%s895_s25 + $0x110] sm:$0xff]  ;;  %v249_v47 = vld [vmem:[%s895_s25 + $0x118] sm:$0xff] }
  0x32   : > { %v291_v56 = vmul.f32 %v908_v20, %v236_v44  ;;  %v292_v57 = vmul.f32 %v908_v20, %v237_v45  ;;  %v389_v58 = vmax.f32 %v340_v50, 0.0  ;;  %v390_v59 = vmax.f32 %v341_v51, 0.0  ;;  %v247_v45 = vld [vmem:[%s895_s25 + $0x108] sm:$0xff] }
  0x33   : > { %v391_v60 = vmax.f32 %v342_v52, 0.0  ;;  %v392_v61 = vmax.f32 %v343_v53, 0.0  ;;  %v393_v63 = vmax.f32 %v344_v54, 0.0  ;;  %v394_v0 = vmax.f32 %v345_v55, 0.0  ;;  %v250_v52 = vld [vmem:[%s895_s25 + $0x120] sm:$0xff]  ;;  %v251_v53 = vld [vmem:[%s895_s25 + $0x128] sm:$0xff] }
  0x34   : > { %v346_v1 = vadd.f32 %v926_v38, %v291_v56  ;;  %v347_v2 = vadd.f32 %v926_v38, %v292_v57  ;;  %v799_v6 = vpack.c.bf16 %v389_v58, %v389_v58  ;;  %v800_v7 = vpack.c.bf16 %v390_v59, %v390_v59 }
  0x35   : > { %v801_v8 = vpack.c.bf16 %v391_v60, %v391_v60  ;;  %v802_v9 = vpack.c.bf16 %v392_v61, %v392_v61  ;;  %v803_v12 = vpack.c.bf16 %v393_v63, %v393_v63  ;;  %v804_v13 = vpack.c.bf16 %v394_v0, %v394_v0  ;;  %v253_v63 = vld [vmem:[%s895_s25 + $0x138] sm:$0xff] }
  0x36   : > { %v395_v14 = vmax.f32 %v346_v1, 0.0  ;;  %v396_v15 = vmax.f32 %v347_v2, 0.0  ;;  %636 = vst.msk [vmem:[%s947_s7 + $0x40] sm:$0xf] %vm619_vm0, %v799_v6  ;;  %637 = vst.msk [vmem:[%s947_s7 + $0x44] sm:$0xf] %vm619_vm0, %v800_v7  ;;  %v293_v16 = vmul.f32 %v908_v20, %v238_v62  ;;  %v294_v17 = vmul.f32 %v908_v20, %v239_v3 }
  0x37   : > { %638 = vst.msk [vmem:[%s947_s7 + $0x48] sm:$0xf] %vm619_vm0, %v801_v8  ;;  %639 = vst.msk [vmem:[%s947_s7 + $0x4c] sm:$0xf] %vm619_vm0, %v802_v9  ;;  %v295_v18 = vmul.f32 %v908_v20, %v240_v4  ;;  %v296_v19 = vmul.f32 %v908_v20, %v241_v5  ;;  %v297_v25 = vmul.f32 %v908_v20, %v242_v10  ;;  %v252_v62 = vld [vmem:[%s895_s25 + $0x130] sm:$0xff] }
  0x38   : > { %640 = vst.msk [vmem:[%s947_s7 + $0x50] sm:$0xf] %vm619_vm0, %v803_v12  ;;  %641 = vst.msk [vmem:[%s947_s7 + $0x54] sm:$0xf] %vm619_vm0, %v804_v13  ;;  %v805_v23 = vpack.c.bf16 %v395_v14, %v395_v14  ;;  %v806_v24 = vpack.c.bf16 %v396_v15, %v396_v15  ;;  %v298_v26 = vmul.f32 %v908_v20, %v243_v11 }
  0x39   : > { %v348_v27 = vadd.f32 %v926_v38, %v293_v16  ;;  %v349_v28 = vadd.f32 %v926_v38, %v294_v17  ;;  %v350_v29 = vadd.f32 %v926_v38, %v295_v18  ;;  %v351_v30 = vadd.f32 %v926_v38, %v296_v19  ;;  %v254_v16 = vld [vmem:[%s895_s25 + $0x140] sm:$0xff] }
  0x3a   : > { %642 = vst.msk [vmem:[%s947_s7 + $0x58] sm:$0xf] %vm619_vm0, %v805_v23  ;;  %643 = vst.msk [vmem:[%s947_s7 + $0x5c] sm:$0xf] %vm619_vm0, %v806_v24  ;;  %v352_v31 = vadd.f32 %v926_v38, %v297_v25  ;;  %v353_v32 = vadd.f32 %v926_v38, %v298_v26  ;;  %v299_v33 = vmul.f32 %v908_v20, %v244_v21  ;;  %v256_v23 = vld [vmem:[%s895_s25 + $0x150] sm:$0xff]  ;;  %v257_v24 = vld [vmem:[%s895_s25 + $0x158] sm:$0xff] }
  0x3b   : > { %v300_v34 = vmul.f32 %v908_v20, %v245_v22  ;;  %v397_v35 = vmax.f32 %v348_v27, 0.0  ;;  %v398_v36 = vmax.f32 %v349_v28, 0.0  ;;  %v399_v37 = vmax.f32 %v350_v29, 0.0  ;;  %v255_v22 = vld [vmem:[%s895_s25 + $0x148] sm:$0xff]  ;;  %v258_v29 = vld [vmem:[%s895_s25 + $0x160] sm:$0xff] }
  0x3c   : > { %v400_v39 = vmax.f32 %v351_v30, 0.0  ;;  %v401_v41 = vmax.f32 %v352_v31, 0.0  ;;  %v402_v42 = vmax.f32 %v353_v32, 0.0  ;;  %v354_v43 = vadd.f32 %v926_v38, %v299_v33  ;;  %v259_v30 = vld [vmem:[%s895_s25 + $0x168] sm:$0xff] }
  0x3d   : > { %v355_v44 = vadd.f32 %v926_v38, %v300_v34  ;;  %v807_v48 = vpack.c.bf16 %v397_v35, %v397_v35  ;;  %v808_v49 = vpack.c.bf16 %v398_v36, %v398_v36  ;;  %v809_v50 = vpack.c.bf16 %v399_v37, %v399_v37 }
  0x3e   : > { %v810_v51 = vpack.c.bf16 %v400_v39, %v400_v39  ;;  %v811_v54 = vpack.c.bf16 %v401_v41, %v401_v41  ;;  %v812_v55 = vpack.c.bf16 %v402_v42, %v402_v42  ;;  %v403_v56 = vmax.f32 %v354_v43, 0.0  ;;  %v261_v41 = vld [vmem:[%s895_s25 + $0x178] sm:$0xff] }
  0x3f   : > { %v404_v57 = vmax.f32 %v355_v44, 0.0  ;;  %644 = vst.msk [vmem:[%s947_s7 + $0x60] sm:$0xf] %vm619_vm0, %v807_v48  ;;  %645 = vst.msk [vmem:[%s947_s7 + $0x64] sm:$0xf] %vm619_vm0, %v808_v49  ;;  %v301_v58 = vmul.f32 %v908_v20, %v246_v40  ;;  %v302_v59 = vmul.f32 %v908_v20, %v247_v45  ;;  %v303_v60 = vmul.f32 %v908_v20, %v248_v46  ;;  %v260_v40 = vld [vmem:[%s895_s25 + $0x170] sm:$0xff] }
  0x40   : > { %646 = vst.msk [vmem:[%s947_s7 + $0x68] sm:$0xf] %vm619_vm0, %v809_v50  ;;  %647 = vst.msk [vmem:[%s947_s7 + $0x6c] sm:$0xf] %vm619_vm0, %v810_v51  ;;  %v304_v61 = vmul.f32 %v908_v20, %v249_v47  ;;  %v813_v0 = vpack.c.bf16 %v403_v56, %v403_v56  ;;  %v305_v2 = vmul.f32 %v908_v20, %v250_v52 }
  0x41   : > { %648 = vst.msk [vmem:[%s947_s7 + $0x70] sm:$0xf] %vm619_vm0, %v811_v54  ;;  %649 = vst.msk [vmem:[%s947_s7 + $0x74] sm:$0xf] %vm619_vm0, %v812_v55  ;;  %v814_v1 = vpack.c.bf16 %v404_v57, %v404_v57  ;;  %v306_v3 = vmul.f32 %v908_v20, %v251_v53  ;;  %v356_v4 = vadd.f32 %v926_v38, %v301_v58 }
  0x42   : > { %v357_v5 = vadd.f32 %v926_v38, %v302_v59  ;;  %v358_v6 = vadd.f32 %v926_v38, %v303_v60  ;;  %v359_v7 = vadd.f32 %v926_v38, %v304_v61  ;;  %650 = vst.msk [vmem:[%s947_s7 + $0x78] sm:$0xf] %vm619_vm0, %v813_v0  ;;  %v360_v8 = vadd.f32 %v926_v38, %v305_v2 }
  0x43   : > { %651 = vst.msk [vmem:[%s947_s7 + $0x7c] sm:$0xf] %vm619_vm0, %v814_v1  ;;  %v361_v9 = vadd.f32 %v926_v38, %v306_v3  ;;  %v307_v10 = vmul.f32 %v908_v20, %v252_v62  ;;  %v308_v11 = vmul.f32 %v908_v20, %v253_v63  ;;  %v405_v12 = vmax.f32 %v356_v4, 0.0  ;;  %v262_v62 = vld [vmem:[%s895_s25 + $0x180] sm:$0xff] }
  0x44   : > { %v406_v13 = vmax.f32 %v357_v5, 0.0  ;;  %v407_v14 = vmax.f32 %v358_v6, 0.0  ;;  %v408_v15 = vmax.f32 %v359_v7, 0.0  ;;  %v409_v17 = vmax.f32 %v360_v8, 0.0 }
  0x45   : > { %v410_v18 = vmax.f32 %v361_v9, 0.0  ;;  %v362_v19 = vadd.f32 %v926_v38, %v307_v10  ;;  %v363_v21 = vadd.f32 %v926_v38, %v308_v11  ;;  %v815_v25 = vpack.c.bf16 %v405_v12, %v405_v12 }
  0x46   : > { %v816_v26 = vpack.c.bf16 %v406_v13, %v406_v13  ;;  %v817_v27 = vpack.c.bf16 %v407_v14, %v407_v14  ;;  %v818_v28 = vpack.c.bf16 %v408_v15, %v408_v15  ;;  %v819_v31 = vpack.c.bf16 %v409_v17, %v409_v17 }
  0x47   : > { %v820_v32 = vpack.c.bf16 %v410_v18, %v410_v18  ;;  %v411_v33 = vmax.f32 %v362_v19, 0.0  ;;  %v412_v34 = vmax.f32 %v363_v21, 0.0  ;;  %652 = vst.msk [vmem:[%s947_s7 + $0x80] sm:$0xf] %vm619_vm0, %v815_v25  ;;  %v309_v35 = vmul.f32 %v908_v20, %v254_v16 }
  0x48   : > { %653 = vst.msk [vmem:[%s947_s7 + $0x84] sm:$0xf] %vm619_vm0, %v816_v26  ;;  %654 = vst.msk [vmem:[%s947_s7 + $0x88] sm:$0xf] %vm619_vm0, %v817_v27  ;;  %v310_v36 = vmul.f32 %v908_v20, %v255_v22  ;;  %v311_v37 = vmul.f32 %v908_v20, %v256_v23  ;;  %v312_v39 = vmul.f32 %v908_v20, %v257_v24 }
  0x49   : > { %655 = vst.msk [vmem:[%s947_s7 + $0x8c] sm:$0xf] %vm619_vm0, %v818_v28  ;;  %656 = vst.msk [vmem:[%s947_s7 + $0x90] sm:$0xf] %vm619_vm0, %v819_v31  ;;  %v821_v42 = vpack.c.bf16 %v411_v33, %v411_v33  ;;  %v822_v43 = vpack.c.bf16 %v412_v34, %v412_v34  ;;  %v313_v44 = vmul.f32 %v908_v20, %v258_v29 }
  0x4a   : > { %657 = vst.msk [vmem:[%s947_s7 + $0x94] sm:$0xf] %vm619_vm0, %v820_v32  ;;  %v314_v45 = vmul.f32 %v908_v20, %v259_v30  ;;  %v364_v46 = vadd.f32 %v926_v38, %v309_v35  ;;  %v365_v47 = vadd.f32 %v926_v38, %v310_v36  ;;  %v366_v48 = vadd.f32 %v926_v38, %v311_v37 }
  0x4b   : > { %v367_v49 = vadd.f32 %v926_v38, %v312_v39  ;;  %658 = vst.msk [vmem:[%s947_s7 + $0x98] sm:$0xf] %vm619_vm0, %v821_v42  ;;  %659 = vst.msk [vmem:[%s947_s7 + $0x9c] sm:$0xf] %vm619_vm0, %v822_v43  ;;  %v368_v50 = vadd.f32 %v926_v38, %v313_v44  ;;  %v315_v52 = vmul.f32 %v908_v20, %v260_v40 }
  0x4c   : > { %v369_v51 = vadd.f32 %v926_v38, %v314_v45  ;;  %v316_v53 = vmul.f32 %v908_v20, %v261_v41  ;;  %v413_v54 = vmax.f32 %v364_v46, 0.0  ;;  %v414_v55 = vmax.f32 %v365_v47, 0.0 }
  0x4d   : > { %v415_v56 = vmax.f32 %v366_v48, 0.0  ;;  %v416_v57 = vmax.f32 %v367_v49, 0.0  ;;  %v417_v58 = vmax.f32 %v368_v50, 0.0  ;;  %v370_v60 = vadd.f32 %v926_v38, %v315_v52 }
  0x4e   : > { %v418_v59 = vmax.f32 %v369_v51, 0.0  ;;  %v371_v61 = vadd.f32 %v926_v38, %v316_v53  ;;  %v823_v63 = vpack.c.bf16 %v413_v54, %v413_v54  ;;  %v824_v0 = vpack.c.bf16 %v414_v55, %v414_v55 }
  0x4f   : > { %v825_v1 = vpack.c.bf16 %v415_v56, %v415_v56  ;;  %v826_v2 = vpack.c.bf16 %v416_v57, %v416_v57  ;;  %v827_v3 = vpack.c.bf16 %v417_v58, %v417_v58  ;;  %v419_v5 = vmax.f32 %v370_v60, 0.0 }
  0x50   : > { %v828_v4 = vpack.c.bf16 %v418_v59, %v418_v59  ;;  %v420_v6 = vmax.f32 %v371_v61, 0.0  ;;  %660 = vst.msk [vmem:[%s947_s7 + $0xa0] sm:$0xf] %vm619_vm0, %v823_v63  ;;  %661 = vst.msk [vmem:[%s947_s7 + $0xa4] sm:$0xf] %vm619_vm0, %v824_v0  ;;  %v317_v7 = vmul.f32 %v908_v20, %v262_v62 }
  0x51   : > { %662 = vst.msk [vmem:[%s947_s7 + $0xa8] sm:$0xf] %vm619_vm0, %v825_v1  ;;  %663 = vst.msk [vmem:[%s947_s7 + $0xac] sm:$0xf] %vm619_vm0, %v826_v2  ;;  %v829_v8 = vpack.c.bf16 %v419_v5, %v419_v5 }
  0x52   : > { %664 = vst.msk [vmem:[%s947_s7 + $0xb0] sm:$0xf] %vm619_vm0, %v827_v3  ;;  %665 = vst.msk [vmem:[%s947_s7 + $0xb4] sm:$0xf] %vm619_vm0, %v828_v4  ;;  %v830_v9 = vpack.c.bf16 %v420_v6, %v420_v6  ;;  %v372_v10 = vadd.f32 %v926_v38, %v317_v7 }
  0x53   : > { %666 = vst.msk [vmem:[%s947_s7 + $0xb8] sm:$0xf] %vm619_vm0, %v829_v8 }
  0x54   : > { %667 = vst.msk [vmem:[%s947_s7 + $0xbc] sm:$0xf] %vm619_vm0, %v830_v9  ;;  %v421_v11 = vmax.f32 %v372_v10, 0.0 }
  0x56   : > { %v831_v12 = vpack.c.bf16 %v421_v11, %v421_v11 }
  0x58   : > { %668 = vst.msk [vmem:[%s947_s7 + $0xc0] sm:$0xf] %vm619_vm0, %v831_v12 }
  0x59 PF: > { %s14_s15 = sadd.s32 1, %s848_s15  }
  0x5a   : > { %p11_p4 = scmp.ge.s32.totalorder %s14_s15, 6  }
  0x5c   :  { %13 = sbr.rel (!%p11_p4) target bundleno = 1 (0x1), region = 66 }

// kernel: generator_forward.19
= control target key start
LH: loop header
LB: loop body
LE: loop exit
PB: predicated region body
PF: predicated region fallthrough
CT: control target
= control target key end

     0   :  { %s12212_s12 = smov 0   ;;  %s13956_s0 = inlined_call_operand.vmem [shape: bf16[1568,3136], index: 0, kind: input, shape index: {}]   ;;  %s13957_s1 = inlined_call_operand.vmem [shape: bf16[3136,128], index: 1, kind: input, shape index: {}]   ;;  %s13958_s2 = inlined_call_operand.vmem [shape: f32[1,128], index: 2, kind: input, shape index: {}]   ;;  %s13959_s3 = inlined_call_operand.vmem [shape: f32[1568,128], index: 3, kind: output, shape index: {}]  }
   0x1 LB: > { %s8723_s13 = sadd.s32 4294967295, %s12187_s12   ;;  %p8727_p0 = scmp.ge.s32.totalorder %s12187_s12, 1  ;;  %s12187_s12 = sphi %s12212_s12, %s13_s12  }
   0x2   : > { %p139_p1 = scmp.lt.s32.totalorder %s12187_s12, 5 }
   0x4   : > { %p140_p2 = pnand %p8727_p0, %p139_p1 }
   0x5   : > { %v10958_v0 = vld [vmem:[%s13957_s1] sm:$0xff] (!%p140_p2)   ;;  %v12189_v1 = vmov (!%p140_p2), 0   ;;  %v10960_v3 = vld [vmem:[%s13957_s1 + $0x8] sm:$0xff] (!%p140_p2)   ;;  %v10962_v5 = vld [vmem:[%s13957_s1 + $0x10] sm:$0xff] (!%p140_p2)   ;;  %s164_s5 = smul.u32 (!%p140_p2), 49, %s8723_s13  ;;  %vm12191_vm0 = vmmov (!%p140_p2), 0  }
   0x6   : > { %143 = sbr.rel (%p140_p2) target bundleno = 1593 (0x639), region = 32  ;;  %5553 = vmatprep.subr.bf16.mxu1 (!%p140_p2), %v12189_v1  ;;  %6945 = vmatprep.subr.bf16.mxu0 (!%p140_p2), %v12189_v1  ;;  %v10959_v2 = vld [vmem:[%s13957_s1 + $0x300] sm:$0xff] (!%p140_p2)   ;;  %v10961_v4 = vld [vmem:[%s13957_s1 + $0x308] sm:$0xff] (!%p140_p2)   ;;  %v10963_v6 = vld [vmem:[%s13957_s1 + $0x310] sm:$0xff] (!%p140_p2)   ;;  %vm5477_vm1 = vcmask (!%p140_p2), 523264  }
   0x7   : > { %5554 = vmatpush1.bf16.msra.mxu1 (!%p140_p2), %v10958_v0  ;;  %6946 = vmatpush1.bf16.msra.mxu0 (!%p140_p2), %v10959_v2  ;;  %v10964_v7 = vld [vmem:[%s13957_s1 + $0x18] sm:$0xff] (!%p140_p2)   ;;  %v10966_v9 = vld [vmem:[%s13957_s1 + $0x20] sm:$0xff] (!%p140_p2)   ;;  %v10968_v11 = vld [vmem:[%s13957_s1 + $0x28] sm:$0xff] (!%p140_p2)   ;;  %p165_p3 = scmp.lt.s32.totalorder (!%p140_p2), %s164_s5, 195 }
   0x8   : > { %5555 = vmatprep.subr.bf16.mxu1 (!%p140_p2), %v12189_v1  ;;  %6947 = vmatprep.subr.bf16.mxu0 (!%p140_p2), %v12189_v1  ;;  %v10965_v8 = vld [vmem:[%s13957_s1 + $0x318] sm:$0xff] (!%p140_p2)   ;;  %v10967_v10 = vld [vmem:[%s13957_s1 + $0x320] sm:$0xff] (!%p140_p2)   ;;  %v10969_v12 = vld [vmem:[%s13957_s1 + $0x328] sm:$0xff] (!%p140_p2)  }
   0x9   : > { %v10970_v13 = vld [vmem:[%s13957_s1 + $0x30] sm:$0xff] (!%p140_p2)   ;;  %v10972_v15 = vld [vmem:[%s13957_s1 + $0x38] sm:$0xff] (!%p140_p2)   ;;  %v10974_v17 = vld [vmem:[%s13957_s1 + $0x40] sm:$0xff] (!%p140_p2)  }
   0xa   : > { %v10971_v14 = vld [vmem:[%s13957_s1 + $0x330] sm:$0xff] (!%p140_p2)   ;;  %v10973_v16 = vld [vmem:[%s13957_s1 + $0x338] sm:$0xff] (!%p140_p2)   ;;  %v10975_v18 = vld [vmem:[%s13957_s1 + $0x340] sm:$0xff] (!%p140_p2)  }
   0xb   : > { %5556 = vmatpush1.bf16.msra.mxu1 (!%p140_p2), %v10960_v3  ;;  %6948 = vmatpush1.bf16.msra.mxu0 (!%p140_p2), %v10961_v4  ;;  %v10976_v20 = vld [vmem:[%s13957_s1 + $0x48] sm:$0xff] (!%p140_p2)   ;;  %v10978_v23 = vld [vmem:[%s13957_s1 + $0x50] sm:$0xff] (!%p140_p2)   ;;  %v10980_v25 = vld [vmem:[%s13957_s1 + $0x58] sm:$0xff] (!%p140_p2)  }
   0xc   : > { %5557 = vmatprep.subr.bf16.mxu1 (!%p140_p2), %v12189_v1  ;;  %6949 = vmatprep.subr.bf16.mxu0 (!%p140_p2), %v12189_v1  ;;  %v10977_v22 = vld [vmem:[%s13957_s1 + $0x348] sm:$0xff] (!%p140_p2)   ;;  %v10979_v24 = vld [vmem:[%s13957_s1 + $0x350] sm:$0xff] (!%p140_p2)   ;;  %v10981_v26 = vld [vmem:[%s13957_s1 + $0x358] sm:$0xff] (!%p140_p2)  }
   0xd   : > { %s13961_s5 = smov (!%p165_p3, %s164_s5), 195  ;;  %v10982_v27 = vld [vmem:[%s13957_s1 + $0x60] sm:$0xff]   ;;  %v10984_v29 = vld [vmem:[%s13957_s1 + $0x68] sm:$0xff]   ;;  %v10986_v31 = vld [vmem:[%s13957_s1 + $0x70] sm:$0xff]  }
   0xe   : > { %s10946_s19 = smul.u32 100, %s13961_s5  ;;  %v10983_v28 = vld [vmem:[%s13957_s1 + $0x360] sm:$0xff]   ;;  %v10985_v30 = vld [vmem:[%s13957_s1 + $0x368] sm:$0xff]   ;;  %v10987_v32 = vld [vmem:[%s13957_s1 + $0x370] sm:$0xff]  }
   0xf   : > { %5558 = vmatpush1.bf16.msra.mxu1 %v10962_v5  ;;  %6950 = vmatpush1.bf16.msra.mxu0 %v10963_v6  ;;  %v10988_v33 = vld [vmem:[%s13957_s1 + $0x78] sm:$0xff]   ;;  %v10996_v37 = vld [vmem:[%s13957_s1 + $0x380] sm:$0xff]   ;;  %v11004_v41 = vld [vmem:[%s13957_s1 + $0x388] sm:$0xff]  }
  0x10   : > { %5559 = vmatprep.subr.bf16.mxu1 %v12189_v1  ;;  %6951 = vmatprep.subr.bf16.mxu0 %v12189_v1  ;;  %s12295_s26 = scalar_lea.vmem %s13956_s0, %s10946_s19  ;;  %v10989_v34 = vld [vmem:[%s13957_s1 + $0x378] sm:$0xff]   ;;  %v10999_v39 = vld [vmem:[%s13957_s1 + $0x80] sm:$0xff]   ;;  %v11012_v42 = vld [vmem:[%s13957_s1 + $0x88] sm:$0xff]  }
  0x11   : > { %v10992_v19 = vld [vmem:[%s12295_s26 + $0x4] ss:$100 sps:$4 sm:$0xff]   ;;  %v10995_v21 = vld [vmem:[%s12295_s26 + $0x34] ss:$100 sps:$4 sm:$0xff]   ;;  %v10997_v38 = vld [vmem:[%s12295_s26 + $0xcc] ss:$100 sps:$4 sm:$0xff]  }
  0x12   : > { %5585 = vmatprep.mubr.bf16.mxu1 %v10992_v19  ;;  %6977 = vmatprep.mubr.bf16.mxu0 %v10995_v21  ;;  %v10990_v35 = vld [vmem:[%s12295_s26] ss:$100 sps:$4 sm:$0xff]   ;;  %v10993_v36 = vld [vmem:[%s12295_s26 + $0x30] ss:$100 sps:$4 sm:$0xff]   ;;  %v11002_v43 = vld [vmem:[%s12295_s26 + $0xc8] ss:$100 sps:$4 sm:$0xff]  }
  0x13   : > { %5560 = vmatpush1.bf16.msra.mxu1 %v10964_v7  ;;  %6952 = vmatpush1.bf16.msra.mxu0 %v10965_v8  ;;  %v11000_v40 = vld [vmem:[%s12295_s26 + $0xfc] ss:$100 sps:$4 sm:$0xff]   ;;  %v11005_v45 = vld [vmem:[%s13957_s1 + $0x390] sm:$0xff]   ;;  %v11008_v47 = vld [vmem:[%s12295_s26 + $0x1c4] ss:$100 sps:$4 sm:$0xff]  }
  0x14   : > { %5561 = vmatprep.subr.bf16.mxu1 %v12189_v1  ;;  %6953 = vmatprep.subr.bf16.mxu0 %v12189_v1  ;;  %v11003_v44 = vld [vmem:[%s12295_s26 + $0xf8] ss:$100 sps:$4 sm:$0xff]   ;;  %v11026_v48 = vld [vmem:[%s13957_s1 + $0x90] sm:$0xff]   ;;  %v11011_v52 = vld [vmem:[%s12295_s26 + $0x1c0] ss:$100 sps:$4 sm:$0xff]  }
  0x15   : > { %v11006_v46 = vld [vmem:[%s12295_s26 + $0x194] ss:$100 sps:$4 sm:$0xff]   ;;  %v11014_v53 = vld [vmem:[%s12295_s26 + $0x25c] ss:$100 sps:$4 sm:$0xff]   ;;  %v11016_v54 = vld [vmem:[%s12295_s26 + $0x28c] ss:$100 sps:$4 sm:$0xff]  }
  0x16   : > { %v11010_v49 = vld [vmem:[%s12295_s26 + $0x190] ss:$100 sps:$4 sm:$0xff]   ;;  %v11013_v50 = vld [vmem:[%s13957_s1 + $0x398] sm:$0xff]   ;;  %v11020_v55 = vld [vmem:[%s13957_s1 + $0x3a0] sm:$0xff]  }
  0x17   : > { %5562 = vmatpush1.bf16.msra.mxu1 %v10966_v9  ;;  %6954 = vmatpush1.bf16.msra.mxu0 %v10967_v10  ;;  %v11036_v51 = vld [vmem:[%s13957_s1 + $0x98] sm:$0xff]   ;;  %v11051_v56 = vld [vmem:[%s13957_s1 + $0xa0] sm:$0xff]   ;;  %v11028_v57 = vld [vmem:[%s13957_s1 + $0x3a8] sm:$0xff]  }
  0x18   : > { %5563 = vmatprep.subr.bf16.mxu1 %v12189_v1  ;;  %6955 = vmatprep.subr.bf16.mxu0 %v12189_v1  ;;  %v11018_v58 = vld [vmem:[%s12295_s26 + $0x258] ss:$100 sps:$4 sm:$0xff]   ;;  %v11019_v59 = vld [vmem:[%s12295_s26 + $0x288] ss:$100 sps:$4 sm:$0xff]   ;;  %v11035_v63 = vld [vmem:[%s13957_s1 + $0x3b0] sm:$0xff]  }
  0x19   : > { %v11060_v60 = vld [vmem:[%s13957_s1 + $0xa8] sm:$0xff]   ;;  %v11023_v62 = vld [vmem:[%s12295_s26 + $0x354] ss:$100 sps:$4 sm:$0xff]   ;;  %v11025_v2 = vld [vmem:[%s12295_s26 + $0x320] ss:$100 sps:$4 sm:$0xff]  }
  0x1a   : > { %v11021_v61 = vld [vmem:[%s12295_s26 + $0x324] ss:$100 sps:$4 sm:$0xff]   ;;  %v11075_v0 = vld [vmem:[%s13957_s1 + $0xb0] sm:$0xff]   ;;  %v11041_v3 = vld [vmem:[%s13957_s1 + $0x3b8] sm:$0xff]  }
  0x1b   : > { %5564 = vmatpush1.bf16.msra.mxu1 %v10968_v11  ;;  %6956 = vmatpush1.bf16.msra.mxu0 %v10969_v12  ;;  %v11027_v4 = vld [vmem:[%s12295_s26 + $0x350] ss:$100 sps:$4 sm:$0xff]   ;;  %v11086_v5 = vld [vmem:[%s13957_s1 + $0xb8] sm:$0xff]   ;;  %v11044_v8 = vld [vmem:[%s13957_s1 + $0x3c0] sm:$0xff]  }
  0x1c   : > { %5565 = vmatprep.subr.bf16.mxu1 %v12189_v1  ;;  %6957 = vmatprep.subr.bf16.mxu0 %v12189_v1  ;;  %v11029_v6 = vld [vmem:[%s12295_s26 + $0x3ec] ss:$100 sps:$4 sm:$0xff]   ;;  %v11031_v7 = vld [vmem:[%s12295_s26 + $0x41c] ss:$100 sps:$4 sm:$0xff]  }
  0x1d   : > { %v11099_v9 = vld [vmem:[%s13957_s1 + $0xc0] sm:$0xff]   ;;  %v11033_v10 = vld [vmem:[%s12295_s26 + $0x3e8] ss:$100 sps:$4 sm:$0xff]   ;;  %v11034_v12 = vld [vmem:[%s12295_s26 + $0x418] ss:$100 sps:$4 sm:$0xff]  }
  0x1e   : > { %v11052_v11 = vld [vmem:[%s13957_s1 + $0x3c8] sm:$0xff]   ;;  %v11042_v19 = vld [vmem:[%s12295_s26 + $0x4b0] ss:$100 sps:$4 sm:$0xff]   ;;  %v11045_v21 = vld [vmem:[%s12295_s26 + $0x57c] ss:$100 sps:$4 sm:$0xff]  }
  0x1f   : > { %5566 = vmatpush1.bf16.msra.mxu1 %v10970_v13  ;;  %6958 = vmatpush1.bf16.msra.mxu0 %v10971_v14  ;;  %v11037_v13 = vld [vmem:[%s12295_s26 + $0x4b4] ss:$100 sps:$4 sm:$0xff]   ;;  %v11039_v14 = vld [vmem:[%s12295_s26 + $0x4e4] ss:$100 sps:$4 sm:$0xff]  }
  0x20   : > { %5567 = vmatprep.subr.bf16.mxu1 %v12189_v1  ;;  %6959 = vmatprep.subr.bf16.mxu0 %v12189_v1 }
  0x23   : > { %5568 = vmatpush1.bf16.msra.mxu1 %v10972_v15  ;;  %6960 = vmatpush1.bf16.msra.mxu0 %v10973_v16  ;;  %v11112_v15 = vld [vmem:[%s13957_s1 + $0xc8] sm:$0xff]   ;;  %v11059_v16 = vld [vmem:[%s13957_s1 + $0x3d0] sm:$0xff]  }
  0x24   : > { %5569 = vmatprep.subr.bf16.mxu1 %v12189_v1  ;;  %6961 = vmatprep.subr.bf16.mxu0 %v12189_v1 }
  0x27   : > { %5570 = vmatpush1.bf16.msra.mxu1 %v10974_v17  ;;  %6962 = vmatpush1.bf16.msra.mxu0 %v10975_v18  ;;  %v11067_v17 = vld [vmem:[%s13957_s1 + $0x3d8] sm:$0xff]   ;;  %v11121_v18 = vld [vmem:[%s13957_s1 + $0xd0] sm:$0xff]  }
  0x28   : > { %5571 = vmatprep.subr.bf16.mxu1 %v12189_v1  ;;  %6963 = vmatprep.subr.bf16.mxu0 %v12189_v1 }
  0x2b   : > { %5572 = vmatpush1.bf16.msra.mxu1 %v10976_v20  ;;  %6964 = vmatpush1.bf16.msra.mxu0 %v10977_v22  ;;  %v11043_v20 = vld [vmem:[%s12295_s26 + $0x4e0] ss:$100 sps:$4 sm:$0xff]   ;;  %v11047_v22 = vld [vmem:[%s12295_s26 + $0x5ac] ss:$100 sps:$4 sm:$0xff]  }
  0x2c   : > { %5573 = vmatprep.subr.bf16.mxu1 %v12189_v1  ;;  %6965 = vmatprep.subr.bf16.mxu0 %v12189_v1 }
  0x2f   : > { %5574 = vmatpush1.bf16.msra.mxu1 %v10978_v23  ;;  %6966 = vmatpush1.bf16.msra.mxu0 %v10979_v24  ;;  %v11072_v23 = vld [vmem:[%s13957_s1 + $0x3e0] sm:$0xff]   ;;  %v11135_v24 = vld [vmem:[%s13957_s1 + $0xd8] sm:$0xff]  }
  0x30   : > { %5575 = vmatprep.subr.bf16.mxu1 %v12189_v1  ;;  %6967 = vmatprep.subr.bf16.mxu0 %v12189_v1 }
  0x33   : > { %5576 = vmatpush1.bf16.msra.mxu1 %v10980_v25  ;;  %6968 = vmatpush1.bf16.msra.mxu0 %v10981_v26  ;;  %v11076_v25 = vld [vmem:[%s13957_s1 + $0x3e8] sm:$0xff]   ;;  %v11049_v26 = vld [vmem:[%s12295_s26 + $0x578] ss:$100 sps:$4 sm:$0xff]  }
  0x34   : > { %5577 = vmatprep.subr.bf16.mxu1 %v12189_v1  ;;  %6969 = vmatprep.subr.bf16.mxu0 %v12189_v1 }
  0x37   : > { %5578 = vmatpush1.bf16.msra.mxu1 %v10982_v27  ;;  %6970 = vmatpush1.bf16.msra.mxu0 %v10983_v28  ;;  %v11050_v27 = vld [vmem:[%s12295_s26 + $0x5a8] ss:$100 sps:$4 sm:$0xff]  }
  0x38   : > { %5579 = vmatprep.subr.bf16.mxu1 %v12189_v1  ;;  %6971 = vmatprep.subr.bf16.mxu0 %v12189_v1  ;;  %v11053_v28 = vld [vmem:[%s12295_s26 + $0x644] ss:$100 sps:$4 sm:$0xff]  }
  0x3b   : > { %5580 = vmatpush1.bf16.msra.mxu1 %v10984_v29  ;;  %6972 = vmatpush1.bf16.msra.mxu0 %v10985_v30  ;;  %v11055_v29 = vld [vmem:[%s12295_s26 + $0x674] ss:$100 sps:$4 sm:$0xff]  }
  0x3c   : > { %5581 = vmatprep.subr.bf16.mxu1 %v12189_v1  ;;  %6973 = vmatprep.subr.bf16.mxu0 %v12189_v1  ;;  %v11083_v30 = vld [vmem:[%s13957_s1 + $0x3f0] sm:$0xff]  }
  0x3f   : > { %5582 = vmatpush1.bf16.msra.mxu1 %v10986_v31  ;;  %6974 = vmatpush1.bf16.msra.mxu0 %v10987_v32  ;;  %v11143_v31 = vld [vmem:[%s13957_s1 + $0xe0] sm:$0xff]   ;;  %v11091_v32 = vld [vmem:[%s13957_s1 + $0x3f8] sm:$0xff]  }
  0x40   : > { %5583 = vmatprep.subr.bf16.mxu1 %v12189_v1  ;;  %6975 = vmatprep.subr.bf16.mxu0 %v12189_v1 }
  0x43   : > { %5584 = vmatpush1.bf16.msra.mxu1 %v10988_v33  ;;  %6976 = vmatpush1.bf16.msra.mxu0 %v10989_v34  ;;  %v11057_v33 = vld [vmem:[%s12295_s26 + $0x640] ss:$100 sps:$4 sm:$0xff]   ;;  %v11058_v34 = vld [vmem:[%s12295_s26 + $0x670] ss:$100 sps:$4 sm:$0xff]  }
  0x44   : > { %5785 = vmatprep.subr.bf16.mxu1 %v12189_v1  ;;  %7177 = vmatprep.subr.bf16.mxu0 %v12189_v1 }
  0x46   : > { %5586 = vmatmul.mubr.bf16.vlgmr.msra.gmra.mrb[0].mxu1 %v10990_v35  ;;  %6978 = vmatmul.mubr.bf16.vlgmr.msra.gmra.mrb[0].mxu0 %v10993_v36  ;;  %v11061_v35 = vld [vmem:[%s12295_s26 + $0x70c] ss:$100 sps:$4 sm:$0xff]  }
  0x47   : > { %5593 = vmatprep.mubr.bf16.mxu1 %v10997_v38  ;;  %7178 = vmatpush1.bf16.msra.mxu0 %v10996_v37  ;;  %v11157_v36 = vld [vmem:[%s13957_s1 + $0xe8] sm:$0xff]   ;;  %v11063_v37 = vld [vmem:[%s12295_s26 + $0x73c] ss:$100 sps:$4 sm:$0xff]   ;;  %v11165_v38 = vld [vmem:[%s13957_s1 + $0xf0] sm:$0xff]  }
  0x48   : > { %5786 = vmatpush1.bf16.msra.mxu1 %v10999_v39  ;;  %6985 = vmatprep.mubr.bf16.mxu0 %v11000_v40  ;;  %v11065_v39 = vld [vmem:[%s12295_s26 + $0x708] ss:$100 sps:$4 sm:$0xff]   ;;  %v11066_v40 = vld [vmem:[%s12295_s26 + $0x738] ss:$100 sps:$4 sm:$0xff]  }
  0x49   : > { %7179 = vmatprep.subr.bf16.mxu0 %v12189_v1  ;;  %5787 = vmatprep.subr.bf16.mxu1 %v12189_v1 }
  0x4b   : > { %7180 = vmatpush1.bf16.msra.mxu0 %v11004_v41  ;;  %v11068_v41 = vld [vmem:[%s12295_s26 + $0x7d4] ss:$100 sps:$4 sm:$0xff]  }
  0x4c   : > { %5788 = vmatpush1.bf16.msra.mxu1 %v11012_v42  ;;  %7181 = vmatprep.subr.bf16.mxu0 %v12189_v1  ;;  %v11070_v42 = vld [vmem:[%s12295_s26 + $0x804] ss:$100 sps:$4 sm:$0xff]  }
  0x4d   : > { %5789 = vmatprep.subr.bf16.mxu1 %v12189_v1 }
  0x4e   : > { %5594 = vmatmul.mubr.bf16.gmra.mrb[4].mxu1 %v11002_v43  ;;  %6986 = vmatmul.mubr.bf16.gmra.mrb[4].mxu0 %v11003_v44  ;;  %v11178_v43 = vld [vmem:[%s13957_s1 + $0xf8] sm:$0xff]   ;;  %v11073_v44 = vld [vmem:[%s12295_s26 + $0x7d0] ss:$100 sps:$4 sm:$0xff]  }
  0x4f   : > { %5601 = vmatprep.mubr.bf16.mxu1 %v11006_v46  ;;  %7182 = vmatpush1.bf16.msra.mxu0 %v11005_v45  ;;  %v11074_v45 = vld [vmem:[%s12295_s26 + $0x800] ss:$100 sps:$4 sm:$0xff]  }
  0x50   : > { %6993 = vmatprep.mubr.bf16.mxu0 %v11008_v47  ;;  %7183 = vmatprep.subr.bf16.mxu0 %v12189_v1  ;;  %v11077_v46 = vld [vmem:[%s12295_s26 + $0x89c] ss:$100 sps:$4 sm:$0xff]   ;;  %v11079_v47 = vld [vmem:[%s12295_s26 + $0x8cc] ss:$100 sps:$4 sm:$0xff]  }
  0x51   : > { %5790 = vmatpush1.bf16.msra.mxu1 %v11026_v48  ;;  %v11081_v48 = vld [vmem:[%s12295_s26 + $0x898] ss:$100 sps:$4 sm:$0xff]  }
  0x52   : > { %5791 = vmatprep.subr.bf16.mxu1 %v12189_v1 }
  0x53   : > { %7184 = vmatpush1.bf16.msra.mxu0 %v11013_v50  ;;  %v11084_v50 = vld [vmem:[%s12295_s26 + $0x964] ss:$100 sps:$4 sm:$0xff]  }
  0x54   : > { %7185 = vmatprep.subr.bf16.mxu0 %v12189_v1 }
  0x55   : > { %5792 = vmatpush1.bf16.msra.mxu1 %v11036_v51  ;;  %v11087_v51 = vld [vmem:[%s12295_s26 + $0x994] ss:$100 sps:$4 sm:$0xff]  }
  0x56   : > { %5602 = vmatmul.mubr.bf16.gmra.mrb[8].mxu1 %v11010_v49  ;;  %5793 = vmatprep.subr.bf16.mxu1 %v12189_v1  ;;  %v11082_v49 = vld [vmem:[%s12295_s26 + $0x8c8] ss:$100 sps:$4 sm:$0xff]  }
  0x57   : > { %6994 = vmatmul.mubr.bf16.gmra.mrb[8].mxu0 %v11011_v52  ;;  %5609 = vmatprep.mubr.bf16.mxu1 %v11014_v53  ;;  %v11089_v52 = vld [vmem:[%s12295_s26 + $0x960] ss:$100 sps:$4 sm:$0xff]   ;;  %v11090_v53 = vld [vmem:[%s12295_s26 + $0x990] ss:$100 sps:$4 sm:$0xff]  }
  0x58   : > { %7001 = vmatprep.mubr.bf16.mxu0 %v11016_v54  ;;  %7186 = vmatpush1.bf16.msra.mxu0 %v11020_v55  ;;  %v11092_v54 = vld [vmem:[%s12295_s26 + $0xa2c] ss:$100 sps:$4 sm:$0xff]   ;;  %v11096_v55 = vld [vmem:[%s12295_s26 + $0x3c] ss:$100 sps:$4 sm:$0xff]  }
  0x59   : > { %7187 = vmatprep.subr.bf16.mxu0 %v12189_v1  ;;  %5794 = vmatpush1.bf16.msra.mxu1 %v11051_v56  ;;  %v11097_v56 = vld [vmem:[%s12295_s26 + $0xa28] ss:$100 sps:$4 sm:$0xff]  }
  0x5a   : > { %5795 = vmatprep.subr.bf16.mxu1 %v12189_v1 }
  0x5c   : > { %7188 = vmatpush1.bf16.msra.mxu0 %v11028_v57  ;;  %v11094_v57 = vld [vmem:[%s12295_s26 + $0x38] ss:$100 sps:$4 sm:$0xff]  }
  0x5d   : > { %7189 = vmatprep.subr.bf16.mxu0 %v12189_v1  ;;  %5796 = vmatpush1.bf16.msra.mxu1 %v11060_v60  ;;  %v11102_v60 = vld [vmem:[%s12295_s26 + $0x104] ss:$100 sps:$4 sm:$0xff]  }
  0x5e   : > { %5610 = vmatmul.mubr.bf16.gmra.mrb[12].mxu1 %v11018_v58  ;;  %5797 = vmatprep.subr.bf16.mxu1 %v12189_v1  ;;  %v11100_v58 = vld [vmem:[%s12295_s26 + $0xaf4] ss:$100 sps:$4 sm:$0xff]  }
  0x5f   : > { %7002 = vmatmul.mubr.bf16.gmra.mrb[12].mxu0 %v11019_v59  ;;  %5617 = vmatprep.mubr.bf16.mxu1 %v11021_v61  ;;  %v11098_v59 = vld [vmem:[%s13957_s1 + $0x400] sm:$0xff]   ;;  %v11104_v61 = vld [vmem:[%s12295_s26 + $0xaf0] ss:$100 sps:$4 sm:$0xff]  }
  0x60   : > { %7009 = vmatprep.mubr.bf16.mxu0 %v11023_v62  ;;  %7190 = vmatpush1.bf16.msra.mxu0 %v11035_v63  ;;  %v11106_v62 = vld [vmem:[%s13957_s1 + $0x408] sm:$0xff]   ;;  %v11105_v63 = vld [vmem:[%s12295_s26 + $0x100] ss:$100 sps:$4 sm:$0xff]  }
  0x61   : > { %7191 = vmatprep.subr.bf16.mxu0 %v12189_v1  ;;  %5798 = vmatpush1.bf16.msra.mxu1 %v11075_v0  ;;  %v11107_v0 = vld [vmem:[%s12295_s26 + $0xbbc] ss:$100 sps:$4 sm:$0xff]  }
  0x62   : > { %5799 = vmatprep.subr.bf16.mxu1 %v12189_v1 }
  0x64   : > { %7192 = vmatpush1.bf16.msra.mxu0 %v11041_v3  ;;  %v11120_v3 = vld [vmem:[%s13957_s1 + $0x410] sm:$0xff]  }
  0x65   : > { %7193 = vmatprep.subr.bf16.mxu0 %v12189_v1  ;;  %5800 = vmatpush1.bf16.msra.mxu1 %v11086_v5  ;;  %v11132_v5 = vld [vmem:[%s13957_s1 + $0x418] sm:$0xff]  }
  0x66   : > { %5618 = vmatmul.mubr.bf16.gmra.mrb[16].mxu1 %v11025_v2  ;;  %5801 = vmatprep.subr.bf16.mxu1 %v12189_v1  ;;  %v11109_v2 = vld [vmem:[%s12295_s26 + $0x1cc] ss:$100 sps:$4 sm:$0xff]  }
  0x67   : > { %7010 = vmatmul.mubr.bf16.gmra.mrb[16].mxu0 %v11027_v4  ;;  %5625 = vmatprep.mubr.bf16.mxu1 %v11029_v6  ;;  %v11111_v4 = vld [vmem:[%s12295_s26 + $0xbb8] ss:$100 sps:$4 sm:$0xff]   ;;  %v11113_v6 = vld [vmem:[%s12295_s26 + $0x1c8] ss:$100 sps:$4 sm:$0xff]  }
  0x68   : > { %7017 = vmatprep.mubr.bf16.mxu0 %v11031_v7  ;;  %7194 = vmatpush1.bf16.msra.mxu0 %v11044_v8  ;;  %v11114_v7 = vld [vmem:[%s12295_s26 + $0xc84] ss:$100 sps:$4 sm:$0xff]   ;;  %v11116_v8 = vld [vmem:[%s12295_s26 + $0x294] ss:$100 sps:$4 sm:$0xff]  }
  0x69   : > { %7195 = vmatprep.subr.bf16.mxu0 %v12189_v1  ;;  %5802 = vmatpush1.bf16.msra.mxu1 %v11099_v9  ;;  %v11142_v9 = vld [vmem:[%s13957_s1 + $0x420] sm:$0xff]  }
  0x6a   : > { %5803 = vmatprep.subr.bf16.mxu1 %v12189_v1 }
  0x6c   : > { %7196 = vmatpush1.bf16.msra.mxu0 %v11052_v11  ;;  %v11156_v11 = vld [vmem:[%s13957_s1 + $0x428] sm:$0xff]  }
  0x6d   : > { %7197 = vmatprep.subr.bf16.mxu0 %v12189_v1  ;;  %5804 = vmatpush1.bf16.msra.mxu1 %v11112_v15  ;;  %v11164_v15 = vld [vmem:[%s13957_s1 + $0x430] sm:$0xff]  }
  0x6e   : > { %5626 = vmatmul.mubr.bf16.gmra.mrb[20].mxu1 %v11033_v10  ;;  %5805 = vmatprep.subr.bf16.mxu1 %v12189_v1  ;;  %v11118_v10 = vld [vmem:[%s12295_s26 + $0xc80] ss:$100 sps:$4 sm:$0xff]  }
  0x6f   : > { %7018 = vmatmul.mubr.bf16.gmra.mrb[20].mxu0 %v11034_v12  ;;  %5633 = vmatprep.mubr.bf16.mxu1 %v11037_v13  ;;  %v11119_v12 = vld [vmem:[%s12295_s26 + $0x290] ss:$100 sps:$4 sm:$0xff]  }
  0x70   : > { %7025 = vmatprep.mubr.bf16.mxu0 %v11039_v14  ;;  %7198 = vmatpush1.bf16.msra.mxu0 %v11059_v16  ;;  %v11122_v13 = vld [vmem:[%s12295_s26 + $0xd4c] ss:$100 sps:$4 sm:$0xff]   ;;  %v11124_v14 = vld [vmem:[%s12295_s26 + $0x35c] ss:$100 sps:$4 sm:$0xff]  }
  0x71   : > { %7199 = vmatprep.subr.bf16.mxu0 %v12189_v1  ;;  %5806 = vmatpush1.bf16.msra.mxu1 %v11121_v18  ;;  %v11126_v16 = vld [vmem:[%s12295_s26 + $0xd48] ss:$100 sps:$4 sm:$0xff]   ;;  %v11127_v18 = vld [vmem:[%s12295_s26 + $0x358] ss:$100 sps:$4 sm:$0xff]  }
  0x72   : > { %5807 = vmatprep.subr.bf16.mxu1 %v12189_v1 }
  0x74   : > { %7200 = vmatpush1.bf16.msra.mxu0 %v11067_v17  ;;  %v11177_v17 = vld [vmem:[%s13957_s1 + $0x438] sm:$0xff]  }
  0x75   : > { %7201 = vmatprep.subr.bf16.mxu0 %v12189_v1  ;;  %5808 = vmatpush1.bf16.msra.mxu1 %v11135_v24  ;;  %v11134_v24 = vld [vmem:[%s12295_s26 + $0x420] ss:$100 sps:$4 sm:$0xff]  }
  0x76   : > { %5634 = vmatmul.mubr.bf16.gmra.mrb[24].mxu1 %v11042_v19  ;;  %5809 = vmatprep.subr.bf16.mxu1 %v12189_v1  ;;  %v11128_v19 = vld [vmem:[%s12295_s26 + $0xe14] ss:$100 sps:$4 sm:$0xff]  }
  0x77   : > { %7026 = vmatmul.mubr.bf16.gmra.mrb[24].mxu0 %v11043_v20  ;;  %5641 = vmatprep.mubr.bf16.mxu1 %v11045_v21  ;;  %v11130_v20 = vld [vmem:[%s12295_s26 + $0x424] ss:$100 sps:$4 sm:$0xff]  }
  0x78   : > { %7033 = vmatprep.mubr.bf16.mxu0 %v11047_v22  ;;  %7202 = vmatpush1.bf16.msra.mxu0 %v11072_v23  ;;  %v11185_v21 = vld [vmem:[%s13957_s1 + $0x440] sm:$0xff]   ;;  %v11133_v22 = vld [vmem:[%s12295_s26 + $0xe10] ss:$100 sps:$4 sm:$0xff]   ;;  %v11199_v23 = vld [vmem:[%s13957_s1 + $0x448] sm:$0xff]  }
  0x79   : > { %7203 = vmatprep.subr.bf16.mxu0 %v12189_v1  ;;  %5810 = vmatpush1.bf16.msra.mxu1 %v11143_v31  ;;  %v11144_v31 = vld [vmem:[%s12295_s26 + $0xfa4] ss:$100 sps:$4 sm:$0xff]  }
  0x7a   : > { %5811 = vmatprep.subr.bf16.mxu1 %v12189_v1 }
  0x7c   : > { %7204 = vmatpush1.bf16.msra.mxu0 %v11076_v25  ;;  %v11136_v25 = vld [vmem:[%s12295_s26 + $0xedc] ss:$100 sps:$4 sm:$0xff]  }
  0x7d   : > { %7205 = vmatprep.subr.bf16.mxu0 %v12189_v1  ;;  %5812 = vmatpush1.bf16.msra.mxu1 %v11157_v36  ;;  %v11149_v36 = vld [vmem:[%s12295_s26 + $0x5b0] ss:$100 sps:$4 sm:$0xff]  }
  0x7e   : > { %5642 = vmatmul.mubr.bf16.gmra.mrb[28].mxu1 %v11049_v26  ;;  %5813 = vmatprep.subr.bf16.mxu1 %v12189_v1  ;;  %v11138_v26 = vld [vmem:[%s12295_s26 + $0x4ec] ss:$100 sps:$4 sm:$0xff]  }
  0x7f   : > { %7034 = vmatmul.mubr.bf16.gmra.mrb[28].mxu0 %v11050_v27  ;;  %5649 = vmatprep.mubr.bf16.mxu1 %v11053_v28  ;;  %v11207_v27 = vld [vmem:[%s13957_s1 + $0x450] sm:$0xff]   ;;  %v11140_v28 = vld [vmem:[%s12295_s26 + $0xed8] ss:$100 sps:$4 sm:$0xff]  }
  0x80   : > { %7041 = vmatprep.mubr.bf16.mxu0 %v11055_v29  ;;  %7206 = vmatpush1.bf16.msra.mxu0 %v11083_v30  ;;  %v11221_v29 = vld [vmem:[%s13957_s1 + $0x458] sm:$0xff]   ;;  %v11141_v30 = vld [vmem:[%s12295_s26 + $0x4e8] ss:$100 sps:$4 sm:$0xff]  }
  0x81   : > { %7207 = vmatprep.subr.bf16.mxu0 %v12189_v1  ;;  %5814 = vmatpush1.bf16.msra.mxu1 %v11165_v38  ;;  %v11152_v38 = vld [vmem:[%s12295_s26 + $0x67c] ss:$100 sps:$4 sm:$0xff]  }
  0x82   : > { %5815 = vmatprep.subr.bf16.mxu1 %v12189_v1 }
  0x84   : > { %7208 = vmatpush1.bf16.msra.mxu0 %v11091_v32  ;;  %v11146_v32 = vld [vmem:[%s12295_s26 + $0x5b4] ss:$100 sps:$4 sm:$0xff]  }
  0x85   : > { %7409 = vmatprep.subr.bf16.mxu0 %v12189_v1  ;;  %5816 = vmatpush1.bf16.msra.mxu1 %v11178_v43  ;;  %v11158_v43 = vld [vmem:[%s12295_s26 + $0x1134] ss:$100 sps:$4 sm:$0xff]  }
  0x86   : > { %5650 = vmatmul.mubr.bf16.gmra.mrb[32].mxu1 %v11057_v33  ;;  %6017 = vmatprep.subr.bf16.mxu1 %v12189_v1  ;;  %v11233_v33 = vld [vmem:[%s13957_s1 + $0x460] sm:$0xff]  }
  0x87   : > { %7042 = vmatmul.mubr.bf16.gmra.mrb[32].mxu0 %v11058_v34  ;;  %5657 = vmatprep.mubr.bf16.mxu1 %v11061_v35  ;;  %v11148_v34 = vld [vmem:[%s12295_s26 + $0xfa0] ss:$100 sps:$4 sm:$0xff]   ;;  %v11243_v35 = vld [vmem:[%s13957_s1 + $0x468] sm:$0xff]  }
  0x88   : > { %7049 = vmatprep.mubr.bf16.mxu0 %v11063_v37  ;;  %v11150_v37 = vld [vmem:[%s12295_s26 + $0x106c] ss:$100 sps:$4 sm:$0xff]  }
  0x8e   : > { %5658 = vmatmul.mubr.bf16.gmra.mrb[36].mxu1 %v11065_v39  ;;  %v11257_v39 = vld [vmem:[%s13957_s1 + $0x470] sm:$0xff]  }
  0x8f   : > { %7050 = vmatmul.mubr.bf16.gmra.mrb[36].mxu0 %v11066_v40  ;;  %5665 = vmatprep.mubr.bf16.mxu1 %v11068_v41  ;;  %v11154_v40 = vld [vmem:[%s12295_s26 + $0x1068] ss:$100 sps:$4 sm:$0xff]   ;;  %v11265_v41 = vld [vmem:[%s13957_s1 + $0x478] sm:$0xff]  }
  0x90   : > { %7057 = vmatprep.mubr.bf16.mxu0 %v11070_v42  ;;  %v11155_v42 = vld [vmem:[%s12295_s26 + $0x678] ss:$100 sps:$4 sm:$0xff]  }
  0x96   : > { %5666 = vmatmul.mubr.bf16.gmra.mrb[40].mxu1 %v11073_v44  ;;  %v11160_v44 = vld [vmem:[%s12295_s26 + $0x744] ss:$100 sps:$4 sm:$0xff]  }
  0x97   : > { %7058 = vmatmul.mubr.bf16.gmra.mrb[40].mxu0 %v11074_v45  ;;  %5673 = vmatprep.mubr.bf16.mxu1 %v11077_v46  ;;  %v11162_v45 = vld [vmem:[%s12295_s26 + $0x1130] ss:$100 sps:$4 sm:$0xff]   ;;  %v11163_v46 = vld [vmem:[%s12295_s26 + $0x740] ss:$100 sps:$4 sm:$0xff]  }
  0x98   : > { %7065 = vmatprep.mubr.bf16.mxu0 %v11079_v47  ;;  %v11166_v47 = vld [vmem:[%s12295_s26 + $0x11fc] ss:$100 sps:$4 sm:$0xff]  }
  0x9e   : > { %5674 = vmatmul.mubr.bf16.gmra.mrb[44].mxu1 %v11081_v48  ;;  %v11168_v48 = vld [vmem:[%s12295_s26 + $0x80c] ss:$100 sps:$4 sm:$0xff]  }
  0x9f   : > { %7066 = vmatmul.mubr.bf16.gmra.mrb[44].mxu0 %v11082_v49  ;;  %5681 = vmatprep.mubr.bf16.mxu1 %v11084_v50  ;;  %v11170_v49 = vld [vmem:[%s12295_s26 + $0x11f8] ss:$100 sps:$4 sm:$0xff]   ;;  %v802_v50 = vld [vmem:[%s12295_s26 + $0x12c0] sm:$0xff] }
  0xa0   : > { %7073 = vmatprep.mubr.bf16.mxu0 %v11087_v51  ;;  %v11171_v51 = vld [vmem:[%s12295_s26 + $0x808] ss:$100 sps:$4 sm:$0xff]  }
  0xa6   : > { %5682 = vmatmul.mubr.bf16.gmra.mrb[48].mxu1 %v11089_v52  ;;  %v11173_v52 = vld [vmem:[%s12295_s26 + $0x8d4] ss:$100 sps:$4 sm:$0xff]  }
  0xa7   : > { %7074 = vmatmul.mubr.bf16.gmra.mrb[48].mxu0 %v11090_v53  ;;  %5689 = vmatprep.mubr.bf16.mxu1 %v11092_v54  ;;  %v9332_v53 = vcombine.high %v802_v50, %v802_v50  ;;  %v11176_v54 = vld [vmem:[%s12295_s26 + $0x8d0] ss:$100 sps:$4 sm:$0xff]  }
  0xa8   : > { %7209 = vmatprep.mubr.bf16.mxu0 %v11096_v55  ;;  %v11181_v55 = vld [vmem:[%s12295_s26 + $0xc] ss:$100 sps:$4 sm:$0xff]  }
  0xae   : > { %5690 = vmatmul.mubr.bf16.gmra.mrb[52].mxu1 %v11097_v56  ;;  %v9331_v56 = vcombine.low %v802_v50, %v802_v50  ;;  %v11253_v50 = vld [vmem:[%s12295_s26 + $0x116c] ss:$100 sps:$4 sm:$0xff]  }
  0xaf   : > { %7210 = vmatmul.mubr.bf16.vlgmr.msra.gmra.mrb[0].mxu0 %v11094_v57  ;;  %5697 = vmatprep.mubr.bf16.mxu1 %v11100_v58  ;;  %v11182_v57 = vld [vmem:[%s12295_s26 + $0x99c] ss:$100 sps:$4 sm:$0xff]   ;;  %v11179_v58 = vld [vmem:[%s12295_s26 + $0x8] ss:$100 sps:$4 sm:$0xff]  }
  0xb0   : > { %7410 = vmatpush1.bf16.msra.mxu0 %v11098_v59  ;;  %7217 = vmatprep.mubr.bf16.mxu0 %v11102_v60  ;;  %v11184_v59 = vld [vmem:[%s12295_s26 + $0x998] ss:$100 sps:$4 sm:$0xff]  }
  0xb1   : > { %7411 = vmatprep.subr.bf16.mxu0 %v12189_v1  ;;  %v11186_v60 = vld [vmem:[%s12295_s26 + $0xd4] ss:$100 sps:$4 sm:$0xff]  }
  0xb4   : > { %7412 = vmatpush1.bf16.msra.mxu0 %v11106_v62  ;;  %v11189_v62 = vld [vmem:[%s12295_s26 + $0xa64] ss:$100 sps:$4 sm:$0xff]  }
  0xb5   : > { %7413 = vmatprep.subr.bf16.mxu0 %v12189_v1 }
  0xb6   : > { %5698 = vmatmul.mubr.bf16.gmra.mrb[56].mxu1 %v11104_v61  ;;  %v11188_v61 = vld [vmem:[%s13957_s1 + $0x100] sm:$0xff]  }
  0xb7   : > { %7218 = vmatmul.mubr.bf16.gmra.mrb[4].mxu0 %v11105_v63  ;;  %5705 = vmatprep.mubr.bf16.mxu1 %v11107_v0  ;;  %v11191_v63 = vld [vmem:[%s12295_s26 + $0xd0] ss:$100 sps:$4 sm:$0xff]   ;;  %v11200_v0 = vld [vmem:[%s13957_s1 + $0x108] sm:$0xff]  }
  0xb8   : > { %7225 = vmatprep.mubr.bf16.mxu0 %v11109_v2  ;;  %7414 = vmatpush1.bf16.msra.mxu0 %v11120_v3  ;;  %v11192_v2 = vld [vmem:[%s12295_s26 + $0xa60] ss:$100 sps:$4 sm:$0xff]  }
  0xb9   : > { %7415 = vmatprep.subr.bf16.mxu0 %v12189_v1  ;;  %v11193_v3 = vld [vmem:[%s12295_s26 + $0x19c] ss:$100 sps:$4 sm:$0xff]  }
  0xbc   : > { %7416 = vmatpush1.bf16.msra.mxu0 %v11132_v5  ;;  %v11213_v5 = vld [vmem:[%s13957_s1 + $0x110] sm:$0xff]  }
  0xbd   : > { %7417 = vmatprep.subr.bf16.mxu0 %v12189_v1 }
  0xbe   : > { %5706 = vmatmul.mubr.bf16.gmra.mrb[60].mxu1 %v11111_v4  ;;  %v11195_v4 = vld [vmem:[%s12295_s26 + $0xb2c] ss:$100 sps:$4 sm:$0xff]  }
  0xbf   : > { %7226 = vmatmul.mubr.bf16.gmra.mrb[8].mxu0 %v11113_v6  ;;  %5713 = vmatprep.mubr.bf16.mxu1 %v11114_v7  ;;  %v11197_v6 = vld [vmem:[%s12295_s26 + $0x198] ss:$100 sps:$4 sm:$0xff]  }
  0xc0   : > { %7233 = vmatprep.mubr.bf16.mxu0 %v11116_v8  ;;  %7418 = vmatpush1.bf16.msra.mxu0 %v11142_v9  ;;  %v11222_v7 = vld [vmem:[%s13957_s1 + $0x118] sm:$0xff]   ;;  %v11198_v8 = vld [vmem:[%s12295_s26 + $0xb28] ss:$100 sps:$4 sm:$0xff]  }
  0xc1   : > { %7419 = vmatprep.subr.bf16.mxu0 %v12189_v1  ;;  %v11201_v9 = vld [vmem:[%s12295_s26 + $0x264] ss:$100 sps:$4 sm:$0xff]  }
  0xc4   : > { %7420 = vmatpush1.bf16.msra.mxu0 %v11156_v11  ;;  %v11236_v11 = vld [vmem:[%s13957_s1 + $0x120] sm:$0xff]  }
  0xc5   : > { %7421 = vmatprep.subr.bf16.mxu0 %v12189_v1 }
  0xc6   : > { %5714 = vmatmul.mubr.bf16.gmra.mrb[64].mxu1 %v11118_v10  ;;  %v11203_v10 = vld [vmem:[%s12295_s26 + $0xbf4] ss:$100 sps:$4 sm:$0xff]  }
  0xc7   : > { %7234 = vmatmul.mubr.bf16.gmra.mrb[12].mxu0 %v11119_v12  ;;  %5721 = vmatprep.mubr.bf16.mxu1 %v11122_v13  ;;  %v11205_v12 = vld [vmem:[%s12295_s26 + $0x260] ss:$100 sps:$4 sm:$0xff]   ;;  %v11244_v13 = vld [vmem:[%s13957_s1 + $0x128] sm:$0xff]  }
  0xc8   : > { %7241 = vmatprep.mubr.bf16.mxu0 %v11124_v14  ;;  %7422 = vmatpush1.bf16.msra.mxu0 %v11164_v15  ;;  %v11206_v14 = vld [vmem:[%s12295_s26 + $0xbf0] ss:$100 sps:$4 sm:$0xff]  }
  0xc9   : > { %7423 = vmatprep.subr.bf16.mxu0 %v12189_v1  ;;  %v11208_v15 = vld [vmem:[%s12295_s26 + $0x32c] ss:$100 sps:$4 sm:$0xff]  }
  0xcc   : > { %7424 = vmatpush1.bf16.msra.mxu0 %v11177_v17  ;;  %v11258_v17 = vld [vmem:[%s13957_s1 + $0x130] sm:$0xff]  }
  0xcd   : > { %7425 = vmatprep.subr.bf16.mxu0 %v12189_v1 }
  0xce   : > { %5722 = vmatmul.mubr.bf16.gmra.mrb[68].mxu1 %v11126_v16  ;;  %v11210_v16 = vld [vmem:[%s12295_s26 + $0xcbc] ss:$100 sps:$4 sm:$0xff]  }
  0xcf   : > { %7242 = vmatmul.mubr.bf16.gmra.mrb[16].mxu0 %v11127_v18  ;;  %5729 = vmatprep.mubr.bf16.mxu1 %v11128_v19  ;;  %v11212_v18 = vld [vmem:[%s12295_s26 + $0x328] ss:$100 sps:$4 sm:$0xff]   ;;  %v11268_v19 = vld [vmem:[%s13957_s1 + $0x138] sm:$0xff]  }
  0xd0   : > { %7249 = vmatprep.mubr.bf16.mxu0 %v11130_v20  ;;  %7426 = vmatpush1.bf16.msra.mxu0 %v11185_v21  ;;  %v11214_v20 = vld [vmem:[%s12295_s26 + $0xcb8] ss:$100 sps:$4 sm:$0xff]  }
  0xd1   : > { %7427 = vmatprep.subr.bf16.mxu0 %v12189_v1  ;;  %v11215_v21 = vld [vmem:[%s12295_s26 + $0x3f4] ss:$100 sps:$4 sm:$0xff]  }
  0xd4   : > { %7428 = vmatpush1.bf16.msra.mxu0 %v11199_v23  ;;  %v11279_v23 = vld [vmem:[%s13957_s1 + $0x140] sm:$0xff]  }
  0xd5   : > { %7429 = vmatprep.subr.bf16.mxu0 %v12189_v1 }
  0xd6   : > { %5730 = vmatmul.mubr.bf16.gmra.mrb[72].mxu1 %v11133_v22  ;;  %v11217_v22 = vld [vmem:[%s12295_s26 + $0xd84] ss:$100 sps:$4 sm:$0xff]  }
  0xd7   : > { %7250 = vmatmul.mubr.bf16.gmra.mrb[20].mxu0 %v11134_v24  ;;  %5737 = vmatprep.mubr.bf16.mxu1 %v11136_v25  ;;  %v11219_v24 = vld [vmem:[%s12295_s26 + $0x3f0] ss:$100 sps:$4 sm:$0xff]   ;;  %v11292_v25 = vld [vmem:[%s13957_s1 + $0x148] sm:$0xff]  }
  0xd8   : > { %7257 = vmatprep.mubr.bf16.mxu0 %v11138_v26  ;;  %7430 = vmatpush1.bf16.msra.mxu0 %v11207_v27  ;;  %v11220_v26 = vld [vmem:[%s12295_s26 + $0xd80] ss:$100 sps:$4 sm:$0xff]  }
  0xd9   : > { %7431 = vmatprep.subr.bf16.mxu0 %v12189_v1  ;;  %v11223_v27 = vld [vmem:[%s12295_s26 + $0x4bc] ss:$100 sps:$4 sm:$0xff]  }
  0xdc   : > { %7432 = vmatpush1.bf16.msra.mxu0 %v11221_v29  ;;  %v11301_v29 = vld [vmem:[%s13957_s1 + $0x150] sm:$0xff]  }
  0xdd   : > { %7433 = vmatprep.subr.bf16.mxu0 %v12189_v1 }
  0xde   : > { %5738 = vmatmul.mubr.bf16.gmra.mrb[76].mxu1 %v11140_v28  ;;  %v11225_v28 = vld [vmem:[%s12295_s26 + $0xe4c] ss:$100 sps:$4 sm:$0xff]  }
  0xdf   : > { %7258 = vmatmul.mubr.bf16.gmra.mrb[24].mxu0 %v11141_v30  ;;  %5745 = vmatprep.mubr.bf16.mxu1 %v11144_v31  ;;  %v11227_v30 = vld [vmem:[%s12295_s26 + $0x4b8] ss:$100 sps:$4 sm:$0xff]  }
  0xe0   : > { %7265 = vmatprep.mubr.bf16.mxu0 %v11146_v32  ;;  %7434 = vmatpush1.bf16.msra.mxu0 %v11233_v33  ;;  %v11315_v31 = vld [vmem:[%s13957_s1 + $0x158] sm:$0xff]   ;;  %v11228_v32 = vld [vmem:[%s12295_s26 + $0xe48] ss:$100 sps:$4 sm:$0xff]  }
  0xe1   : > { %7435 = vmatprep.subr.bf16.mxu0 %v12189_v1  ;;  %v11229_v33 = vld [vmem:[%s12295_s26 + $0x584] ss:$100 sps:$4 sm:$0xff]  }
  0xe4   : > { %7436 = vmatpush1.bf16.msra.mxu0 %v11243_v35  ;;  %v11323_v35 = vld [vmem:[%s13957_s1 + $0x160] sm:$0xff]  }
  0xe5   : > { %7437 = vmatprep.subr.bf16.mxu0 %v12189_v1 }
  0xe6   : > { %5746 = vmatmul.mubr.bf16.gmra.mrb[80].mxu1 %v11148_v34  ;;  %v11231_v34 = vld [vmem:[%s12295_s26 + $0xf14] ss:$100 sps:$4 sm:$0xff]  }
  0xe7   : > { %7266 = vmatmul.mubr.bf16.gmra.mrb[28].mxu0 %v11149_v36  ;;  %5753 = vmatprep.mubr.bf16.mxu1 %v11150_v37  ;;  %v11234_v36 = vld [vmem:[%s12295_s26 + $0x580] ss:$100 sps:$4 sm:$0xff]   ;;  %v11337_v37 = vld [vmem:[%s13957_s1 + $0x168] sm:$0xff]  }
  0xe8   : > { %7273 = vmatprep.mubr.bf16.mxu0 %v11152_v38  ;;  %7438 = vmatpush1.bf16.msra.mxu0 %v11257_v39  ;;  %v11235_v38 = vld [vmem:[%s12295_s26 + $0xf10] ss:$100 sps:$4 sm:$0xff]  }
  0xe9   : > { %7439 = vmatprep.subr.bf16.mxu0 %v12189_v1  ;;  %v11237_v39 = vld [vmem:[%s12295_s26 + $0x64c] ss:$100 sps:$4 sm:$0xff]  }
  0xec   : > { %7440 = vmatpush1.bf16.msra.mxu0 %v11265_v41  ;;  %v11345_v41 = vld [vmem:[%s13957_s1 + $0x170] sm:$0xff]  }
  0xed   : > { %7641 = vmatprep.subr.bf16.mxu0 %v12189_v1 }
  0xee   : > { %5754 = vmatmul.mubr.bf16.gmra.mrb[84].mxu1 %v11154_v40  ;;  %v11239_v40 = vld [vmem:[%s12295_s26 + $0xfdc] ss:$100 sps:$4 sm:$0xff]  }
  0xef   : > { %7274 = vmatmul.mubr.bf16.gmra.mrb[32].mxu0 %v11155_v42  ;;  %5761 = vmatprep.mubr.bf16.mxu1 %v11158_v43  ;;  %v11241_v42 = vld [vmem:[%s12295_s26 + $0x648] ss:$100 sps:$4 sm:$0xff]   ;;  %v11242_v43 = vld [vmem:[%s12295_s26 + $0xfd8] ss:$100 sps:$4 sm:$0xff]  }
  0xf0   : > { %7281 = vmatprep.mubr.bf16.mxu0 %v11160_v44  ;;  %v11245_v44 = vld [vmem:[%s12295_s26 + $0x714] ss:$100 sps:$4 sm:$0xff]  }
  0xf6   : > { %5762 = vmatmul.mubr.bf16.gmra.mrb[88].mxu1 %v11162_v45  ;;  %v11247_v45 = vld [vmem:[%s12295_s26 + $0x10a4] ss:$100 sps:$4 sm:$0xff]  }
  0xf7   : > { %7282 = vmatmul.mubr.bf16.gmra.mrb[36].mxu0 %v11163_v46  ;;  %5769 = vmatprep.mubr.bf16.mxu1 %v11166_v47  ;;  %v11358_v46 = vld [vmem:[%s13957_s1 + $0x178] sm:$0xff]   ;;  %v11249_v47 = vld [vmem:[%s12295_s26 + $0x710] ss:$100 sps:$4 sm:$0xff]  }
  0xf8   : > { %7289 = vmatprep.mubr.bf16.mxu0 %v11168_v48  ;;  %v11250_v48 = vld [vmem:[%s12295_s26 + $0x10a0] ss:$100 sps:$4 sm:$0xff]  }
  0xfe   : > { %5770 = vmatmul.mubr.bf16.gmra.mrb[92].mxu1 %v11170_v49  ;;  %v11251_v49 = vld [vmem:[%s12295_s26 + $0x7dc] ss:$100 sps:$4 sm:$0xff]  }
  0xff   : > { %7290 = vmatmul.mubr.bf16.gmra.mrb[40].mxu0 %v11171_v51  ;;  %5777 = vmatprep.mubr.bf16.mxu1 %v9332_v53  ;;  %v11255_v51 = vld [vmem:[%s12295_s26 + $0x7d8] ss:$100 sps:$4 sm:$0xff]   ;;  %v11259_v53 = vld [vmem:[%s12295_s26 + $0x8a4] ss:$100 sps:$4 sm:$0xff]  }
 0x100   : > { %7297 = vmatprep.mubr.bf16.mxu0 %v11173_v52  ;;  %v11256_v52 = vld [vmem:[%s12295_s26 + $0x1168] ss:$100 sps:$4 sm:$0xff]  }
 0x106   : > { %5778 = vmatmul.mubr.bf16.gmra.mrb[96].mxu1 %v9331_v56  ;;  %v809_v56 = vld [vmem:[%s12295_s26 + $0x12f8] sm:$0xff] }
 0x107   : > { %7298 = vmatmul.mubr.bf16.gmra.mrb[44].mxu0 %v11176_v54  ;;  %5817 = vmatprep.mubr.bf16.mxu1 %v11181_v55  ;;  %v11261_v54 = vld [vmem:[%s12295_s26 + $0x1234] ss:$100 sps:$4 sm:$0xff]   ;;  %v11263_v55 = vld [vmem:[%s12295_s26 + $0x8a0] ss:$100 sps:$4 sm:$0xff]  }
 0x108   : > { %7305 = vmatprep.mubr.bf16.mxu0 %v11182_v57  ;;  %v11264_v57 = vld [vmem:[%s12295_s26 + $0x1230] ss:$100 sps:$4 sm:$0xff]  }
 0x10e   : > { %5818 = vmatmul.mubr.bf16.vlgmr.msra.gmra.mrb[0].mxu1 %v11179_v58  ;;  %v11266_v58 = vld [vmem:[%s12295_s26 + $0x96c] ss:$100 sps:$4 sm:$0xff]  }
 0x10f   : > { %7306 = vmatmul.mubr.bf16.gmra.mrb[48].mxu0 %v11184_v59  ;;  %5825 = vmatprep.mubr.bf16.mxu1 %v11186_v60  ;;  %v9346_v59 = vcombine.high %v809_v56, %v809_v56  ;;  %v11270_v60 = vld [vmem:[%s12295_s26 + $0x968] ss:$100 sps:$4 sm:$0xff]  }
 0x110   : > { %6018 = vmatpush1.bf16.msra.mxu1 %v11188_v61  ;;  %7313 = vmatprep.mubr.bf16.mxu0 %v11189_v62  ;;  %v11272_v61 = vld [vmem:[%s12295_s26 + $0xa34] ss:$100 sps:$4 sm:$0xff]   ;;  %v11276_v62 = vld [vmem:[%s12295_s26 + $0x44] ss:$100 sps:$4 sm:$0xff]  }
 0x111   : > { %6019 = vmatprep.subr.bf16.mxu1 %v12189_v1 }
 0x114   : > { %6020 = vmatpush1.bf16.msra.mxu1 %v11200_v0  ;;  %v11277_v0 = vld [vmem:[%s12295_s26 + $0xa30] ss:$100 sps:$4 sm:$0xff]  }
 0x115   : > { %6021 = vmatprep.subr.bf16.mxu1 %v12189_v1 }
 0x116   : > { %5826 = vmatmul.mubr.bf16.gmra.mrb[4].mxu1 %v11191_v63  ;;  %v9345_v63 = vcombine.low %v809_v56, %v809_v56  ;;  %v11348_v56 = vld [vmem:[%s12295_s26 + $0x814] ss:$100 sps:$4 sm:$0xff]  }
 0x117   : > { %7314 = vmatmul.mubr.bf16.gmra.mrb[52].mxu0 %v11192_v2  ;;  %5833 = vmatprep.mubr.bf16.mxu1 %v11193_v3  ;;  %v11274_v2 = vld [vmem:[%s12295_s26 + $0x40] ss:$100 sps:$4 sm:$0xff]  }
 0x118   : > { %7321 = vmatprep.mubr.bf16.mxu0 %v11195_v4  ;;  %6022 = vmatpush1.bf16.msra.mxu1 %v11213_v5  ;;  %v11280_v3 = vld [vmem:[%s12295_s26 + $0xafc] ss:$100 sps:$4 sm:$0xff]   ;;  %v11282_v5 = vld [vmem:[%s12295_s26 + $0x10c] ss:$100 sps:$4 sm:$0xff]  }
 0x119   : > { %6023 = vmatprep.subr.bf16.mxu1 %v12189_v1  ;;  %v11278_v4 = vld [vmem:[%s13957_s1 + $0x480] sm:$0xff]  }
 0x11c   : > { %6024 = vmatpush1.bf16.msra.mxu1 %v11222_v7  ;;  %v11286_v7 = vld [vmem:[%s13957_s1 + $0x488] sm:$0xff]  }
 0x11d   : > { %6025 = vmatprep.subr.bf16.mxu1 %v12189_v1 }
 0x11e   : > { %5834 = vmatmul.mubr.bf16.gmra.mrb[8].mxu1 %v11197_v6  ;;  %v11284_v6 = vld [vmem:[%s12295_s26 + $0xaf8] ss:$100 sps:$4 sm:$0xff]  }
 0x11f   : > { %7322 = vmatmul.mubr.bf16.gmra.mrb[56].mxu0 %v11198_v8  ;;  %5841 = vmatprep.mubr.bf16.mxu1 %v11201_v9  ;;  %v11285_v8 = vld [vmem:[%s12295_s26 + $0x108] ss:$100 sps:$4 sm:$0xff]  }
 0x120   : > { %7329 = vmatprep.mubr.bf16.mxu0 %v11203_v10  ;;  %6026 = vmatpush1.bf16.msra.mxu1 %v11236_v11  ;;  %v11287_v9 = vld [vmem:[%s12295_s26 + $0xbc4] ss:$100 sps:$4 sm:$0xff]   ;;  %v11289_v10 = vld [vmem:[%s12295_s26 + $0x1d4] ss:$100 sps:$4 sm:$0xff]  }
 0x121   : > { %6027 = vmatprep.subr.bf16.mxu1 %v12189_v1  ;;  %v11300_v11 = vld [vmem:[%s13957_s1 + $0x490] sm:$0xff]  }
 0x124   : > { %6028 = vmatpush1.bf16.msra.mxu1 %v11244_v13  ;;  %v11312_v13 = vld [vmem:[%s13957_s1 + $0x498] sm:$0xff]  }
 0x125   : > { %6029 = vmatprep.subr.bf16.mxu1 %v12189_v1 }
 0x126   : > { %5842 = vmatmul.mubr.bf16.gmra.mrb[12].mxu1 %v11205_v12  ;;  %v11291_v12 = vld [vmem:[%s12295_s26 + $0xbc0] ss:$100 sps:$4 sm:$0xff]  }
 0x127   : > { %7330 = vmatmul.mubr.bf16.gmra.mrb[60].mxu0 %v11206_v14  ;;  %5849 = vmatprep.mubr.bf16.mxu1 %v11208_v15  ;;  %v11293_v14 = vld [vmem:[%s12295_s26 + $0x1d0] ss:$100 sps:$4 sm:$0xff]  }
 0x128   : > { %7337 = vmatprep.mubr.bf16.mxu0 %v11210_v16  ;;  %6030 = vmatpush1.bf16.msra.mxu1 %v11258_v17  ;;  %v11294_v15 = vld [vmem:[%s12295_s26 + $0xc8c] ss:$100 sps:$4 sm:$0xff]   ;;  %v11296_v16 = vld [vmem:[%s12295_s26 + $0x29c] ss:$100 sps:$4 sm:$0xff]  }
 0x129   : > { %6031 = vmatprep.subr.bf16.mxu1 %v12189_v1  ;;  %v11322_v17 = vld [vmem:[%s13957_s1 + $0x4a0] sm:$0xff]  }
 0x12c   : > { %6032 = vmatpush1.bf16.msra.mxu1 %v11268_v19  ;;  %v11336_v19 = vld [vmem:[%s13957_s1 + $0x4a8] sm:$0xff]  }
 0x12d   : > { %6033 = vmatprep.subr.bf16.mxu1 %v12189_v1 }
 0x12e   : > { %5850 = vmatmul.mubr.bf16.gmra.mrb[16].mxu1 %v11212_v18  ;;  %v11298_v18 = vld [vmem:[%s12295_s26 + $0xc88] ss:$100 sps:$4 sm:$0xff]  }
 0x12f   : > { %7338 = vmatmul.mubr.bf16.gmra.mrb[64].mxu0 %v11214_v20  ;;  %5857 = vmatprep.mubr.bf16.mxu1 %v11215_v21  ;;  %v11299_v20 = vld [vmem:[%s12295_s26 + $0x298] ss:$100 sps:$4 sm:$0xff]  }
 0x130   : > { %7345 = vmatprep.mubr.bf16.mxu0 %v11217_v22  ;;  %6034 = vmatpush1.bf16.msra.mxu1 %v11279_v23  ;;  %v11302_v21 = vld [vmem:[%s12295_s26 + $0xd54] ss:$100 sps:$4 sm:$0xff]   ;;  %v11304_v22 = vld [vmem:[%s12295_s26 + $0x364] ss:$100 sps:$4 sm:$0xff]  }
 0x131   : > { %6035 = vmatprep.subr.bf16.mxu1 %v12189_v1  ;;  %v11344_v23 = vld [vmem:[%s13957_s1 + $0x4b0] sm:$0xff]  }
 0x134   : > { %6036 = vmatpush1.bf16.msra.mxu1 %v11292_v25  ;;  %v11357_v25 = vld [vmem:[%s13957_s1 + $0x4b8] sm:$0xff]  }
 0x135   : > { %6037 = vmatprep.subr.bf16.mxu1 %v12189_v1 }
 0x136   : > { %5858 = vmatmul.mubr.bf16.gmra.mrb[20].mxu1 %v11219_v24  ;;  %v11306_v24 = vld [vmem:[%s12295_s26 + $0xd50] ss:$100 sps:$4 sm:$0xff]  }
 0x137   : > { %7346 = vmatmul.mubr.bf16.gmra.mrb[68].mxu0 %v11220_v26  ;;  %5865 = vmatprep.mubr.bf16.mxu1 %v11223_v27  ;;  %v11307_v26 = vld [vmem:[%s12295_s26 + $0x360] ss:$100 sps:$4 sm:$0xff]  }
 0x138   : > { %7353 = vmatprep.mubr.bf16.mxu0 %v11225_v28  ;;  %6038 = vmatpush1.bf16.msra.mxu1 %v11301_v29  ;;  %v11308_v27 = vld [vmem:[%s12295_s26 + $0xe1c] ss:$100 sps:$4 sm:$0xff]   ;;  %v11310_v28 = vld [vmem:[%s12295_s26 + $0x42c] ss:$100 sps:$4 sm:$0xff]  }
 0x139   : > { %6039 = vmatprep.subr.bf16.mxu1 %v12189_v1  ;;  %v11365_v29 = vld [vmem:[%s13957_s1 + $0x4c0] sm:$0xff]  }
 0x13c   : > { %6040 = vmatpush1.bf16.msra.mxu1 %v11315_v31  ;;  %v11379_v31 = vld [vmem:[%s13957_s1 + $0x4c8] sm:$0xff]  }
 0x13d   : > { %6041 = vmatprep.subr.bf16.mxu1 %v12189_v1 }
 0x13e   : > { %5866 = vmatmul.mubr.bf16.gmra.mrb[24].mxu1 %v11227_v30  ;;  %v11313_v30 = vld [vmem:[%s12295_s26 + $0xe18] ss:$100 sps:$4 sm:$0xff]  }
 0x13f   : > { %7354 = vmatmul.mubr.bf16.gmra.mrb[72].mxu0 %v11228_v32  ;;  %5873 = vmatprep.mubr.bf16.mxu1 %v11229_v33  ;;  %v11314_v32 = vld [vmem:[%s12295_s26 + $0x428] ss:$100 sps:$4 sm:$0xff]  }
 0x140   : > { %7361 = vmatprep.mubr.bf16.mxu0 %v11231_v34  ;;  %6042 = vmatpush1.bf16.msra.mxu1 %v11323_v35  ;;  %v11316_v33 = vld [vmem:[%s12295_s26 + $0xee4] ss:$100 sps:$4 sm:$0xff]   ;;  %v11318_v34 = vld [vmem:[%s12295_s26 + $0x4f4] ss:$100 sps:$4 sm:$0xff]  }
 0x141   : > { %6043 = vmatprep.subr.bf16.mxu1 %v12189_v1  ;;  %v11387_v35 = vld [vmem:[%s13957_s1 + $0x4d0] sm:$0xff]  }
 0x144   : > { %6044 = vmatpush1.bf16.msra.mxu1 %v11337_v37  ;;  %v11401_v37 = vld [vmem:[%s13957_s1 + $0x4d8] sm:$0xff]  }
 0x145   : > { %6045 = vmatprep.subr.bf16.mxu1 %v12189_v1 }
 0x146   : > { %5874 = vmatmul.mubr.bf16.gmra.mrb[28].mxu1 %v11234_v36  ;;  %v11320_v36 = vld [vmem:[%s12295_s26 + $0xee0] ss:$100 sps:$4 sm:$0xff]  }
 0x147   : > { %7362 = vmatmul.mubr.bf16.gmra.mrb[76].mxu0 %v11235_v38  ;;  %5881 = vmatprep.mubr.bf16.mxu1 %v11237_v39  ;;  %v11321_v38 = vld [vmem:[%s12295_s26 + $0x4f0] ss:$100 sps:$4 sm:$0xff]  }
 0x148   : > { %7369 = vmatprep.mubr.bf16.mxu0 %v11239_v40  ;;  %6046 = vmatpush1.bf16.msra.mxu1 %v11345_v41  ;;  %v11324_v39 = vld [vmem:[%s12295_s26 + $0xfac] ss:$100 sps:$4 sm:$0xff]   ;;  %v11326_v40 = vld [vmem:[%s12295_s26 + $0x5bc] ss:$100 sps:$4 sm:$0xff]  }
 0x149   : > { %6047 = vmatprep.subr.bf16.mxu1 %v12189_v1  ;;  %v11413_v41 = vld [vmem:[%s13957_s1 + $0x4e0] sm:$0xff]  }
 0x14c   : > { %6048 = vmatpush1.bf16.msra.mxu1 %v11358_v46  ;;  %v11332_v46 = vld [vmem:[%s12295_s26 + $0x684] ss:$100 sps:$4 sm:$0xff]  }
 0x14d   : > { %6249 = vmatprep.subr.bf16.mxu1 %v12189_v1 }
 0x14e   : > { %5882 = vmatmul.mubr.bf16.gmra.mrb[32].mxu1 %v11241_v42  ;;  %v11328_v42 = vld [vmem:[%s12295_s26 + $0xfa8] ss:$100 sps:$4 sm:$0xff]  }
 0x14f   : > { %7370 = vmatmul.mubr.bf16.gmra.mrb[80].mxu0 %v11242_v43  ;;  %5889 = vmatprep.mubr.bf16.mxu1 %v11245_v44  ;;  %v11423_v43 = vld [vmem:[%s13957_s1 + $0x4e8] sm:$0xff]   ;;  %v11329_v44 = vld [vmem:[%s12295_s26 + $0x5b8] ss:$100 sps:$4 sm:$0xff]  }
 0x150   : > { %7377 = vmatprep.mubr.bf16.mxu0 %v11247_v45  ;;  %v11330_v45 = vld [vmem:[%s12295_s26 + $0x1074] ss:$100 sps:$4 sm:$0xff]  }
 0x156   : > { %5890 = vmatmul.mubr.bf16.gmra.mrb[36].mxu1 %v11249_v47  ;;  %v11437_v47 = vld [vmem:[%s13957_s1 + $0x4f0] sm:$0xff]  }
 0x157   : > { %7378 = vmatmul.mubr.bf16.gmra.mrb[84].mxu0 %v11250_v48  ;;  %5897 = vmatprep.mubr.bf16.mxu1 %v11251_v49  ;;  %v11334_v48 = vld [vmem:[%s12295_s26 + $0x1070] ss:$100 sps:$4 sm:$0xff]   ;;  %v11445_v49 = vld [vmem:[%s13957_s1 + $0x4f8] sm:$0xff]  }
 0x158   : > { %7385 = vmatprep.mubr.bf16.mxu0 %v11253_v50  ;;  %v11335_v50 = vld [vmem:[%s12295_s26 + $0x680] ss:$100 sps:$4 sm:$0xff]  }
 0x15e   : > { %5898 = vmatmul.mubr.bf16.gmra.mrb[40].mxu1 %v11255_v51  ;;  %v11338_v51 = vld [vmem:[%s12295_s26 + $0x113c] ss:$100 sps:$4 sm:$0xff]  }
 0x15f   : > { %7386 = vmatmul.mubr.bf16.gmra.mrb[88].mxu0 %v11256_v52  ;;  %5905 = vmatprep.mubr.bf16.mxu1 %v11259_v53  ;;  %v11340_v52 = vld [vmem:[%s12295_s26 + $0x74c] ss:$100 sps:$4 sm:$0xff]   ;;  %v11342_v53 = vld [vmem:[%s12295_s26 + $0x1138] ss:$100 sps:$4 sm:$0xff]  }
 0x160   : > { %7393 = vmatprep.mubr.bf16.mxu0 %v11261_v54  ;;  %v11343_v54 = vld [vmem:[%s12295_s26 + $0x748] ss:$100 sps:$4 sm:$0xff]  }
 0x166   : > { %5906 = vmatmul.mubr.bf16.gmra.mrb[44].mxu1 %v11263_v55  ;;  %v11346_v55 = vld [vmem:[%s12295_s26 + $0x1204] ss:$100 sps:$4 sm:$0xff]  }
 0x167   : > { %7394 = vmatmul.mubr.bf16.gmra.mrb[92].mxu0 %v11264_v57  ;;  %5913 = vmatprep.mubr.bf16.mxu1 %v11266_v58  ;;  %v11350_v57 = vld [vmem:[%s12295_s26 + $0x1200] ss:$100 sps:$4 sm:$0xff]   ;;  %v803_v58 = vld [vmem:[%s12295_s26 + $0x12c8] sm:$0xff] }
 0x168   : > { %7401 = vmatprep.mubr.bf16.mxu0 %v9346_v59  ;;  %v11351_v59 = vld [vmem:[%s12295_s26 + $0x810] ss:$100 sps:$4 sm:$0xff]  }
 0x16e   : > { %5914 = vmatmul.mubr.bf16.gmra.mrb[48].mxu1 %v11270_v60  ;;  %v11353_v60 = vld [vmem:[%s12295_s26 + $0x8dc] ss:$100 sps:$4 sm:$0xff]  }
 0x16f   : > { %7402 = vmatmul.mubr.bf16.gmra.mrb[96].mxu0 %v9345_v63  ;;  %5921 = vmatprep.mubr.bf16.mxu1 %v11272_v61  ;;  %v9334_v61 = vcombine.high %v803_v58, %v803_v58  ;;  %v11361_v63 = vld [vmem:[%s12295_s26 + $0x14] ss:$100 sps:$4 sm:$0xff]  }
 0x170   : > { %7441 = vmatprep.mubr.bf16.mxu0 %v11276_v62  ;;  %v11356_v62 = vld [vmem:[%s12295_s26 + $0x8d8] ss:$100 sps:$4 sm:$0xff]  }
 0x176   : > { %5922 = vmatmul.mubr.bf16.gmra.mrb[52].mxu1 %v11277_v0  ;;  %v9333_v0 = vcombine.low %v803_v58, %v803_v58  ;;  %v11433_v58 = vld [vmem:[%s12295_s26 + $0x1174] ss:$100 sps:$4 sm:$0xff]  }
 0x177   : > { %7442 = vmatmul.mubr.bf16.vlgmr.msra.gmra.mrb[0].mxu0 %v11274_v2  ;;  %5929 = vmatprep.mubr.bf16.mxu1 %v11280_v3  ;;  %v11362_v2 = vld [vmem:[%s12295_s26 + $0x9a4] ss:$100 sps:$4 sm:$0xff]   ;;  %v11359_v3 = vld [vmem:[%s12295_s26 + $0x10] ss:$100 sps:$4 sm:$0xff]  }
 0x178   : > { %7642 = vmatpush1.bf16.msra.mxu0 %v11278_v4  ;;  %7449 = vmatprep.mubr.bf16.mxu0 %v11282_v5  ;;  %v11364_v4 = vld [vmem:[%s12295_s26 + $0x9a0] ss:$100 sps:$4 sm:$0xff]  }
 0x179   : > { %7643 = vmatprep.subr.bf16.mxu0 %v12189_v1  ;;  %v11366_v5 = vld [vmem:[%s12295_s26 + $0xdc] ss:$100 sps:$4 sm:$0xff]  }
 0x17c   : > { %7644 = vmatpush1.bf16.msra.mxu0 %v11286_v7  ;;  %v11369_v7 = vld [vmem:[%s12295_s26 + $0xa6c] ss:$100 sps:$4 sm:$0xff]  }
 0x17d   : > { %7645 = vmatprep.subr.bf16.mxu0 %v12189_v1 }
 0x17e   : > { %5930 = vmatmul.mubr.bf16.gmra.mrb[56].mxu1 %v11284_v6  ;;  %v11368_v6 = vld [vmem:[%s13957_s1 + $0x180] sm:$0xff]  }
 0x17f   : > { %7450 = vmatmul.mubr.bf16.gmra.mrb[4].mxu0 %v11285_v8  ;;  %5937 = vmatprep.mubr.bf16.mxu1 %v11287_v9  ;;  %v11371_v8 = vld [vmem:[%s12295_s26 + $0xd8] ss:$100 sps:$4 sm:$0xff]   ;;  %v11380_v9 = vld [vmem:[%s13957_s1 + $0x188] sm:$0xff]  }
 0x180   : > { %7457 = vmatprep.mubr.bf16.mxu0 %v11289_v10  ;;  %7646 = vmatpush1.bf16.msra.mxu0 %v11300_v11  ;;  %v11372_v10 = vld [vmem:[%s12295_s26 + $0xa68] ss:$100 sps:$4 sm:$0xff]  }
 0x181   : > { %7647 = vmatprep.subr.bf16.mxu0 %v12189_v1  ;;  %v11373_v11 = vld [vmem:[%s12295_s26 + $0x1a4] ss:$100 sps:$4 sm:$0xff]  }
 0x184   : > { %7648 = vmatpush1.bf16.msra.mxu0 %v11312_v13  ;;  %v11393_v13 = vld [vmem:[%s13957_s1 + $0x190] sm:$0xff]  }
 0x185   : > { %7649 = vmatprep.subr.bf16.mxu0 %v12189_v1 }
 0x186   : > { %5938 = vmatmul.mubr.bf16.gmra.mrb[60].mxu1 %v11291_v12  ;;  %v11375_v12 = vld [vmem:[%s12295_s26 + $0xb34] ss:$100 sps:$4 sm:$0xff]  }
 0x187   : > { %7458 = vmatmul.mubr.bf16.gmra.mrb[8].mxu0 %v11293_v14  ;;  %5945 = vmatprep.mubr.bf16.mxu1 %v11294_v15  ;;  %v11402_v14 = vld [vmem:[%s13957_s1 + $0x198] sm:$0xff]   ;;  %v11377_v15 = vld [vmem:[%s12295_s26 + $0x1a0] ss:$100 sps:$4 sm:$0xff]  }
 0x188   : > { %7465 = vmatprep.mubr.bf16.mxu0 %v11296_v16  ;;  %7650 = vmatpush1.bf16.msra.mxu0 %v11322_v17  ;;  %v11378_v16 = vld [vmem:[%s12295_s26 + $0xb30] ss:$100 sps:$4 sm:$0xff]  }
 0x189   : > { %7651 = vmatprep.subr.bf16.mxu0 %v12189_v1  ;;  %v11381_v17 = vld [vmem:[%s12295_s26 + $0x26c] ss:$100 sps:$4 sm:$0xff]  }
 0x18c   : > { %7652 = vmatpush1.bf16.msra.mxu0 %v11336_v19  ;;  %v11416_v19 = vld [vmem:[%s13957_s1 + $0x1a0] sm:$0xff]  }
 0x18d   : > { %7653 = vmatprep.subr.bf16.mxu0 %v12189_v1 }
 0x18e   : > { %5946 = vmatmul.mubr.bf16.gmra.mrb[64].mxu1 %v11298_v18  ;;  %v11383_v18 = vld [vmem:[%s12295_s26 + $0xbfc] ss:$100 sps:$4 sm:$0xff]  }
 0x18f   : > { %7466 = vmatmul.mubr.bf16.gmra.mrb[12].mxu0 %v11299_v20  ;;  %5953 = vmatprep.mubr.bf16.mxu1 %v11302_v21  ;;  %v11424_v20 = vld [vmem:[%s13957_s1 + $0x1a8] sm:$0xff]  }
 0x190   : > { %7473 = vmatprep.mubr.bf16.mxu0 %v11304_v22  ;;  %7654 = vmatpush1.bf16.msra.mxu0 %v11344_v23  ;;  %v11385_v21 = vld [vmem:[%s12295_s26 + $0x268] ss:$100 sps:$4 sm:$0xff]   ;;  %v11386_v22 = vld [vmem:[%s12295_s26 + $0xbf8] ss:$100 sps:$4 sm:$0xff]  }
 0x191   : > { %7655 = vmatprep.subr.bf16.mxu0 %v12189_v1  ;;  %v11388_v23 = vld [vmem:[%s12295_s26 + $0x334] ss:$100 sps:$4 sm:$0xff]  }
 0x194   : > { %7656 = vmatpush1.bf16.msra.mxu0 %v11357_v25  ;;  %v11438_v25 = vld [vmem:[%s13957_s1 + $0x1b0] sm:$0xff]  }
 0x195   : > { %7657 = vmatprep.subr.bf16.mxu0 %v12189_v1 }
 0x196   : > { %5954 = vmatmul.mubr.bf16.gmra.mrb[68].mxu1 %v11306_v24  ;;  %v11390_v24 = vld [vmem:[%s12295_s26 + $0xcc4] ss:$100 sps:$4 sm:$0xff]  }
 0x197   : > { %7474 = vmatmul.mubr.bf16.gmra.mrb[16].mxu0 %v11307_v26  ;;  %5961 = vmatprep.mubr.bf16.mxu1 %v11308_v27  ;;  %v11448_v26 = vld [vmem:[%s13957_s1 + $0x1b8] sm:$0xff]   ;;  %v11392_v27 = vld [vmem:[%s12295_s26 + $0x330] ss:$100 sps:$4 sm:$0xff]  }
 0x198   : > { %7481 = vmatprep.mubr.bf16.mxu0 %v11310_v28  ;;  %7658 = vmatpush1.bf16.msra.mxu0 %v11365_v29  ;;  %v11394_v28 = vld [vmem:[%s12295_s26 + $0xcc0] ss:$100 sps:$4 sm:$0xff]  }
 0x199   : > { %7659 = vmatprep.subr.bf16.mxu0 %v12189_v1  ;;  %v11395_v29 = vld [vmem:[%s12295_s26 + $0x3fc] ss:$100 sps:$4 sm:$0xff]  }
 0x19c   : > { %7660 = vmatpush1.bf16.msra.mxu0 %v11379_v31  ;;  %v11459_v31 = vld [vmem:[%s13957_s1 + $0x1c0] sm:$0xff]  }
 0x19d   : > { %7661 = vmatprep.subr.bf16.mxu0 %v12189_v1 }
 0x19e   : > { %5962 = vmatmul.mubr.bf16.gmra.mrb[72].mxu1 %v11313_v30  ;;  %v11397_v30 = vld [vmem:[%s12295_s26 + $0xd8c] ss:$100 sps:$4 sm:$0xff]  }
 0x19f   : > { %7482 = vmatmul.mubr.bf16.gmra.mrb[20].mxu0 %v11314_v32  ;;  %5969 = vmatprep.mubr.bf16.mxu1 %v11316_v33  ;;  %v11472_v32 = vld [vmem:[%s13957_s1 + $0x1c8] sm:$0xff]   ;;  %v11399_v33 = vld [vmem:[%s12295_s26 + $0x3f8] ss:$100 sps:$4 sm:$0xff]  }
 0x1a0   : > { %7489 = vmatprep.mubr.bf16.mxu0 %v11318_v34  ;;  %7662 = vmatpush1.bf16.msra.mxu0 %v11387_v35  ;;  %v11400_v34 = vld [vmem:[%s12295_s26 + $0xd88] ss:$100 sps:$4 sm:$0xff]  }
 0x1a1   : > { %7663 = vmatprep.subr.bf16.mxu0 %v12189_v1  ;;  %v11403_v35 = vld [vmem:[%s12295_s26 + $0x4c4] ss:$100 sps:$4 sm:$0xff]  }
 0x1a4   : > { %7664 = vmatpush1.bf16.msra.mxu0 %v11401_v37  ;;  %v11481_v37 = vld [vmem:[%s13957_s1 + $0x1d0] sm:$0xff]  }
 0x1a5   : > { %7665 = vmatprep.subr.bf16.mxu0 %v12189_v1 }
 0x1a6   : > { %5970 = vmatmul.mubr.bf16.gmra.mrb[76].mxu1 %v11320_v36  ;;  %v11405_v36 = vld [vmem:[%s12295_s26 + $0xe54] ss:$100 sps:$4 sm:$0xff]  }
 0x1a7   : > { %7490 = vmatmul.mubr.bf16.gmra.mrb[24].mxu0 %v11321_v38  ;;  %5977 = vmatprep.mubr.bf16.mxu1 %v11324_v39  ;;  %v11495_v38 = vld [vmem:[%s13957_s1 + $0x1d8] sm:$0xff]   ;;  %v11407_v39 = vld [vmem:[%s12295_s26 + $0x4c0] ss:$100 sps:$4 sm:$0xff]  }
 0x1a8   : > { %7497 = vmatprep.mubr.bf16.mxu0 %v11326_v40  ;;  %7666 = vmatpush1.bf16.msra.mxu0 %v11413_v41  ;;  %v11408_v40 = vld [vmem:[%s12295_s26 + $0xe50] ss:$100 sps:$4 sm:$0xff]  }
 0x1a9   : > { %7667 = vmatprep.subr.bf16.mxu0 %v12189_v1  ;;  %v11409_v41 = vld [vmem:[%s12295_s26 + $0x58c] ss:$100 sps:$4 sm:$0xff]  }
 0x1ac   : > { %7668 = vmatpush1.bf16.msra.mxu0 %v11423_v43  ;;  %v11503_v43 = vld [vmem:[%s13957_s1 + $0x1e0] sm:$0xff]  }
 0x1ad   : > { %7669 = vmatprep.subr.bf16.mxu0 %v12189_v1 }
 0x1ae   : > { %5978 = vmatmul.mubr.bf16.gmra.mrb[80].mxu1 %v11328_v42  ;;  %v11411_v42 = vld [vmem:[%s12295_s26 + $0xf1c] ss:$100 sps:$4 sm:$0xff]  }
 0x1af   : > { %7498 = vmatmul.mubr.bf16.gmra.mrb[28].mxu0 %v11329_v44  ;;  %5985 = vmatprep.mubr.bf16.mxu1 %v11330_v45  ;;  %v11517_v44 = vld [vmem:[%s13957_s1 + $0x1e8] sm:$0xff]  }
 0x1b0   : > { %7505 = vmatprep.mubr.bf16.mxu0 %v11332_v46  ;;  %7670 = vmatpush1.bf16.msra.mxu0 %v11437_v47  ;;  %v11414_v45 = vld [vmem:[%s12295_s26 + $0x588] ss:$100 sps:$4 sm:$0xff]   ;;  %v11415_v46 = vld [vmem:[%s12295_s26 + $0xf18] ss:$100 sps:$4 sm:$0xff]  }
 0x1b1   : > { %7671 = vmatprep.subr.bf16.mxu0 %v12189_v1  ;;  %v11417_v47 = vld [vmem:[%s12295_s26 + $0x654] ss:$100 sps:$4 sm:$0xff]  }
 0x1b4   : > { %7672 = vmatpush1.bf16.msra.mxu0 %v11445_v49  ;;  %v11525_v49 = vld [vmem:[%s13957_s1 + $0x1f0] sm:$0xff]  }
 0x1b5   : > { %7873 = vmatprep.subr.bf16.mxu0 %v12189_v1 }
 0x1b6   : > { %5986 = vmatmul.mubr.bf16.gmra.mrb[84].mxu1 %v11334_v48  ;;  %v11419_v48 = vld [vmem:[%s12295_s26 + $0xfe4] ss:$100 sps:$4 sm:$0xff]  }
 0x1b7   : > { %7506 = vmatmul.mubr.bf16.gmra.mrb[32].mxu0 %v11335_v50  ;;  %5993 = vmatprep.mubr.bf16.mxu1 %v11338_v51  ;;  %v11421_v50 = vld [vmem:[%s12295_s26 + $0x650] ss:$100 sps:$4 sm:$0xff]   ;;  %v11422_v51 = vld [vmem:[%s12295_s26 + $0xfe0] ss:$100 sps:$4 sm:$0xff]  }
 0x1b8   : > { %7513 = vmatprep.mubr.bf16.mxu0 %v11340_v52  ;;  %v11425_v52 = vld [vmem:[%s12295_s26 + $0x71c] ss:$100 sps:$4 sm:$0xff]  }
 0x1be   : > { %5994 = vmatmul.mubr.bf16.gmra.mrb[88].mxu1 %v11342_v53  ;;  %v11427_v53 = vld [vmem:[%s12295_s26 + $0x10ac] ss:$100 sps:$4 sm:$0xff]  }
 0x1bf   : > { %7514 = vmatmul.mubr.bf16.gmra.mrb[36].mxu0 %v11343_v54  ;;  %6001 = vmatprep.mubr.bf16.mxu1 %v11346_v55  ;;  %v11538_v54 = vld [vmem:[%s13957_s1 + $0x1f8] sm:$0xff]  }
 0x1c0   : > { %7521 = vmatprep.mubr.bf16.mxu0 %v11348_v56  ;;  %v11429_v55 = vld [vmem:[%s12295_s26 + $0x718] ss:$100 sps:$4 sm:$0xff]   ;;  %v11430_v56 = vld [vmem:[%s12295_s26 + $0x10a8] ss:$100 sps:$4 sm:$0xff]  }
 0x1c6   : > { %6002 = vmatmul.mubr.bf16.gmra.mrb[92].mxu1 %v11350_v57  ;;  %v11431_v57 = vld [vmem:[%s12295_s26 + $0x7e4] ss:$100 sps:$4 sm:$0xff]  }
 0x1c7   : > { %7522 = vmatmul.mubr.bf16.gmra.mrb[40].mxu0 %v11351_v59  ;;  %6009 = vmatprep.mubr.bf16.mxu1 %v9334_v61  ;;  %v11435_v59 = vld [vmem:[%s12295_s26 + $0x7e0] ss:$100 sps:$4 sm:$0xff]   ;;  %v11439_v61 = vld [vmem:[%s12295_s26 + $0x8ac] ss:$100 sps:$4 sm:$0xff]  }
 0x1c8   : > { %7529 = vmatprep.mubr.bf16.mxu0 %v11353_v60  ;;  %v11436_v60 = vld [vmem:[%s12295_s26 + $0x1170] ss:$100 sps:$4 sm:$0xff]  }
 0x1ce   : > { %6010 = vmatmul.mubr.bf16.gmra.mrb[96].mxu1 %v9333_v0  ;;  %v11443_v0 = vld [vmem:[%s12295_s26 + $0x8a8] ss:$100 sps:$4 sm:$0xff]  }
 0x1cf   : > { %7530 = vmatmul.mubr.bf16.gmra.mrb[44].mxu0 %v11356_v62  ;;  %6049 = vmatprep.mubr.bf16.mxu1 %v11361_v63  ;;  %v11441_v62 = vld [vmem:[%s12295_s26 + $0x123c] ss:$100 sps:$4 sm:$0xff]  }
 0x1d0   : > { %7537 = vmatprep.mubr.bf16.mxu0 %v11362_v2  ;;  %v810_v63 = vld [vmem:[%s12295_s26 + $0x1300] sm:$0xff]  ;;  %v11444_v2 = vld [vmem:[%s12295_s26 + $0x1238] ss:$100 sps:$4 sm:$0xff]  }
 0x1d6   : > { %6050 = vmatmul.mubr.bf16.vlgmr.msra.gmra.mrb[0].mxu1 %v11359_v3  ;;  %v11446_v3 = vld [vmem:[%s12295_s26 + $0x974] ss:$100 sps:$4 sm:$0xff]  }
 0x1d7   : > { %7538 = vmatmul.mubr.bf16.gmra.mrb[48].mxu0 %v11364_v4  ;;  %6057 = vmatprep.mubr.bf16.mxu1 %v11366_v5  ;;  %v9348_v4 = vcombine.high %v810_v63, %v810_v63  ;;  %v11450_v5 = vld [vmem:[%s12295_s26 + $0x970] ss:$100 sps:$4 sm:$0xff]  }
 0x1d8   : > { %6250 = vmatpush1.bf16.msra.mxu1 %v11368_v6  ;;  %7545 = vmatprep.mubr.bf16.mxu0 %v11369_v7  ;;  %v9347_v6 = vcombine.low %v810_v63, %v810_v63  ;;  %v11452_v7 = vld [vmem:[%s12295_s26 + $0xa3c] ss:$100 sps:$4 sm:$0xff]   ;;  %v11526_v63 = vld [vmem:[%s12295_s26 + $0x120c] ss:$100 sps:$4 sm:$0xff]  }
 0x1d9   : > { %6251 = vmatprep.subr.bf16.mxu1 %v12189_v1 }
 0x1dc   : > { %6252 = vmatpush1.bf16.msra.mxu1 %v11380_v9  ;;  %v11457_v9 = vld [vmem:[%s12295_s26 + $0xa38] ss:$100 sps:$4 sm:$0xff]  }
 0x1dd   : > { %6253 = vmatprep.subr.bf16.mxu1 %v12189_v1 }
 0x1de   : > { %6058 = vmatmul.mubr.bf16.gmra.mrb[4].mxu1 %v11371_v8  ;;  %v11456_v8 = vld [vmem:[%s12295_s26 + $0x4c] ss:$100 sps:$4 sm:$0xff]  }
 0x1df   : > { %7546 = vmatmul.mubr.bf16.gmra.mrb[52].mxu0 %v11372_v10  ;;  %6065 = vmatprep.mubr.bf16.mxu1 %v11373_v11  ;;  %v11454_v10 = vld [vmem:[%s12295_s26 + $0x48] ss:$100 sps:$4 sm:$0xff]  }
 0x1e0   : > { %7553 = vmatprep.mubr.bf16.mxu0 %v11375_v12  ;;  %6254 = vmatpush1.bf16.msra.mxu1 %v11393_v13  ;;  %v11460_v11 = vld [vmem:[%s12295_s26 + $0xb04] ss:$100 sps:$4 sm:$0xff]   ;;  %v11462_v13 = vld [vmem:[%s12295_s26 + $0x114] ss:$100 sps:$4 sm:$0xff]  }
 0x1e1   : > { %6255 = vmatprep.subr.bf16.mxu1 %v12189_v1  ;;  %v11458_v12 = vld [vmem:[%s13957_s1 + $0x500] sm:$0xff]  }
 0x1e4   : > { %6256 = vmatpush1.bf16.msra.mxu1 %v11402_v14  ;;  %v11466_v14 = vld [vmem:[%s13957_s1 + $0x508] sm:$0xff]  }
 0x1e5   : > { %6257 = vmatprep.subr.bf16.mxu1 %v12189_v1 }
 0x1e6   : > { %6066 = vmatmul.mubr.bf16.gmra.mrb[8].mxu1 %v11377_v15  ;;  %v11464_v15 = vld [vmem:[%s12295_s26 + $0xb00] ss:$100 sps:$4 sm:$0xff]  }
 0x1e7   : > { %7554 = vmatmul.mubr.bf16.gmra.mrb[56].mxu0 %v11378_v16  ;;  %6073 = vmatprep.mubr.bf16.mxu1 %v11381_v17  ;;  %v11465_v16 = vld [vmem:[%s12295_s26 + $0x110] ss:$100 sps:$4 sm:$0xff]  }
 0x1e8   : > { %7561 = vmatprep.mubr.bf16.mxu0 %v11383_v18  ;;  %6258 = vmatpush1.bf16.msra.mxu1 %v11416_v19  ;;  %v11467_v17 = vld [vmem:[%s12295_s26 + $0xbcc] ss:$100 sps:$4 sm:$0xff]   ;;  %v11469_v18 = vld [vmem:[%s12295_s26 + $0x1dc] ss:$100 sps:$4 sm:$0xff]  }
 0x1e9   : > { %6259 = vmatprep.subr.bf16.mxu1 %v12189_v1  ;;  %v11480_v19 = vld [vmem:[%s13957_s1 + $0x510] sm:$0xff]  }
 0x1ec   : > { %6260 = vmatpush1.bf16.msra.mxu1 %v11424_v20  ;;  %v11492_v20 = vld [vmem:[%s13957_s1 + $0x518] sm:$0xff]  }
 0x1ed   : > { %6261 = vmatprep.subr.bf16.mxu1 %v12189_v1 }
 0x1ee   : > { %6074 = vmatmul.mubr.bf16.gmra.mrb[12].mxu1 %v11385_v21  ;;  %v11471_v21 = vld [vmem:[%s12295_s26 + $0xbc8] ss:$100 sps:$4 sm:$0xff]  }
 0x1ef   : > { %7562 = vmatmul.mubr.bf16.gmra.mrb[60].mxu0 %v11386_v22  ;;  %6081 = vmatprep.mubr.bf16.mxu1 %v11388_v23  ;;  %v11473_v22 = vld [vmem:[%s12295_s26 + $0x1d8] ss:$100 sps:$4 sm:$0xff]  }
 0x1f0   : > { %7569 = vmatprep.mubr.bf16.mxu0 %v11390_v24  ;;  %6262 = vmatpush1.bf16.msra.mxu1 %v11438_v25  ;;  %v11474_v23 = vld [vmem:[%s12295_s26 + $0xc94] ss:$100 sps:$4 sm:$0xff]   ;;  %v11476_v24 = vld [vmem:[%s12295_s26 + $0x2a4] ss:$100 sps:$4 sm:$0xff]  }
 0x1f1   : > { %6263 = vmatprep.subr.bf16.mxu1 %v12189_v1  ;;  %v11502_v25 = vld [vmem:[%s13957_s1 + $0x520] sm:$0xff]  }
 0x1f4   : > { %6264 = vmatpush1.bf16.msra.mxu1 %v11448_v26  ;;  %v11516_v26 = vld [vmem:[%s13957_s1 + $0x528] sm:$0xff]  }
 0x1f5   : > { %6265 = vmatprep.subr.bf16.mxu1 %v12189_v1 }
 0x1f6   : > { %6082 = vmatmul.mubr.bf16.gmra.mrb[16].mxu1 %v11392_v27  ;;  %v11478_v27 = vld [vmem:[%s12295_s26 + $0xc90] ss:$100 sps:$4 sm:$0xff]  }
 0x1f7   : > { %7570 = vmatmul.mubr.bf16.gmra.mrb[64].mxu0 %v11394_v28  ;;  %6089 = vmatprep.mubr.bf16.mxu1 %v11395_v29  ;;  %v11479_v28 = vld [vmem:[%s12295_s26 + $0x2a0] ss:$100 sps:$4 sm:$0xff]  }
 0x1f8   : > { %7577 = vmatprep.mubr.bf16.mxu0 %v11397_v30  ;;  %6266 = vmatpush1.bf16.msra.mxu1 %v11459_v31  ;;  %v11482_v29 = vld [vmem:[%s12295_s26 + $0xd5c] ss:$100 sps:$4 sm:$0xff]   ;;  %v11484_v30 = vld [vmem:[%s12295_s26 + $0x36c] ss:$100 sps:$4 sm:$0xff]  }
 0x1f9   : > { %6267 = vmatprep.subr.bf16.mxu1 %v12189_v1  ;;  %v11524_v31 = vld [vmem:[%s13957_s1 + $0x530] sm:$0xff]  }
 0x1fc   : > { %6268 = vmatpush1.bf16.msra.mxu1 %v11472_v32  ;;  %v11537_v32 = vld [vmem:[%s13957_s1 + $0x538] sm:$0xff]  }
 0x1fd   : > { %6269 = vmatprep.subr.bf16.mxu1 %v12189_v1 }
 0x1fe   : > { %6090 = vmatmul.mubr.bf16.gmra.mrb[20].mxu1 %v11399_v33  ;;  %v11486_v33 = vld [vmem:[%s12295_s26 + $0xd58] ss:$100 sps:$4 sm:$0xff]  }
 0x1ff   : > { %7578 = vmatmul.mubr.bf16.gmra.mrb[68].mxu0 %v11400_v34  ;;  %6097 = vmatprep.mubr.bf16.mxu1 %v11403_v35  ;;  %v11487_v34 = vld [vmem:[%s12295_s26 + $0x368] ss:$100 sps:$4 sm:$0xff]  }
 0x200   : > { %7585 = vmatprep.mubr.bf16.mxu0 %v11405_v36  ;;  %6270 = vmatpush1.bf16.msra.mxu1 %v11481_v37  ;;  %v11488_v35 = vld [vmem:[%s12295_s26 + $0xe24] ss:$100 sps:$4 sm:$0xff]   ;;  %v11490_v36 = vld [vmem:[%s12295_s26 + $0x434] ss:$100 sps:$4 sm:$0xff]  }
 0x201   : > { %6271 = vmatprep.subr.bf16.mxu1 %v12189_v1  ;;  %v11545_v37 = vld [vmem:[%s13957_s1 + $0x540] sm:$0xff]  }
 0x204   : > { %6272 = vmatpush1.bf16.msra.mxu1 %v11495_v38  ;;  %v11559_v38 = vld [vmem:[%s13957_s1 + $0x548] sm:$0xff]  }
 0x205   : > { %6273 = vmatprep.subr.bf16.mxu1 %v12189_v1 }
 0x206   : > { %6098 = vmatmul.mubr.bf16.gmra.mrb[24].mxu1 %v11407_v39  ;;  %v11493_v39 = vld [vmem:[%s12295_s26 + $0xe20] ss:$100 sps:$4 sm:$0xff]  }
 0x207   : > { %7586 = vmatmul.mubr.bf16.gmra.mrb[72].mxu0 %v11408_v40  ;;  %6105 = vmatprep.mubr.bf16.mxu1 %v11409_v41  ;;  %v11494_v40 = vld [vmem:[%s12295_s26 + $0x430] ss:$100 sps:$4 sm:$0xff]  }
 0x208   : > { %7593 = vmatprep.mubr.bf16.mxu0 %v11411_v42  ;;  %6274 = vmatpush1.bf16.msra.mxu1 %v11503_v43  ;;  %v11496_v41 = vld [vmem:[%s12295_s26 + $0xeec] ss:$100 sps:$4 sm:$0xff]   ;;  %v11498_v42 = vld [vmem:[%s12295_s26 + $0x4fc] ss:$100 sps:$4 sm:$0xff]  }
 0x209   : > { %6275 = vmatprep.subr.bf16.mxu1 %v12189_v1  ;;  %v11567_v43 = vld [vmem:[%s13957_s1 + $0x550] sm:$0xff]  }
 0x20c   : > { %6276 = vmatpush1.bf16.msra.mxu1 %v11517_v44  ;;  %v11581_v44 = vld [vmem:[%s13957_s1 + $0x558] sm:$0xff]  }
 0x20d   : > { %6277 = vmatprep.subr.bf16.mxu1 %v12189_v1 }
 0x20e   : > { %6106 = vmatmul.mubr.bf16.gmra.mrb[28].mxu1 %v11414_v45  ;;  %v11500_v45 = vld [vmem:[%s12295_s26 + $0xee8] ss:$100 sps:$4 sm:$0xff]  }
 0x20f   : > { %7594 = vmatmul.mubr.bf16.gmra.mrb[76].mxu0 %v11415_v46  ;;  %6113 = vmatprep.mubr.bf16.mxu1 %v11417_v47  ;;  %v11501_v46 = vld [vmem:[%s12295_s26 + $0x4f8] ss:$100 sps:$4 sm:$0xff]  }
 0x210   : > { %7601 = vmatprep.mubr.bf16.mxu0 %v11419_v48  ;;  %6278 = vmatpush1.bf16.msra.mxu1 %v11525_v49  ;;  %v11504_v47 = vld [vmem:[%s12295_s26 + $0xfb4] ss:$100 sps:$4 sm:$0xff]   ;;  %v11506_v48 = vld [vmem:[%s12295_s26 + $0x5c4] ss:$100 sps:$4 sm:$0xff]  }
 0x211   : > { %6279 = vmatprep.subr.bf16.mxu1 %v12189_v1  ;;  %v11593_v49 = vld [vmem:[%s13957_s1 + $0x560] sm:$0xff]  }
 0x214   : > { %6280 = vmatpush1.bf16.msra.mxu1 %v11538_v54  ;;  %v11512_v54 = vld [vmem:[%s12295_s26 + $0x68c] ss:$100 sps:$4 sm:$0xff]  }
 0x215   : > { %6481 = vmatprep.subr.bf16.mxu1 %v12189_v1 }
 0x216   : > { %6114 = vmatmul.mubr.bf16.gmra.mrb[32].mxu1 %v11421_v50  ;;  %v11603_v50 = vld [vmem:[%s13957_s1 + $0x568] sm:$0xff]  }
 0x217   : > { %7602 = vmatmul.mubr.bf16.gmra.mrb[80].mxu0 %v11422_v51  ;;  %6121 = vmatprep.mubr.bf16.mxu1 %v11425_v52  ;;  %v11508_v51 = vld [vmem:[%s12295_s26 + $0xfb0] ss:$100 sps:$4 sm:$0xff]   ;;  %v11509_v52 = vld [vmem:[%s12295_s26 + $0x5c0] ss:$100 sps:$4 sm:$0xff]  }
 0x218   : > { %7609 = vmatprep.mubr.bf16.mxu0 %v11427_v53  ;;  %v11510_v53 = vld [vmem:[%s12295_s26 + $0x107c] ss:$100 sps:$4 sm:$0xff]  }
 0x21e   : > { %6122 = vmatmul.mubr.bf16.gmra.mrb[36].mxu1 %v11429_v55  ;;  %v11617_v55 = vld [vmem:[%s13957_s1 + $0x570] sm:$0xff]  }
 0x21f   : > { %7610 = vmatmul.mubr.bf16.gmra.mrb[84].mxu0 %v11430_v56  ;;  %6129 = vmatprep.mubr.bf16.mxu1 %v11431_v57  ;;  %v11625_v56 = vld [vmem:[%s13957_s1 + $0x578] sm:$0xff]  }
 0x220   : > { %7617 = vmatprep.mubr.bf16.mxu0 %v11433_v58  ;;  %v11514_v57 = vld [vmem:[%s12295_s26 + $0x1078] ss:$100 sps:$4 sm:$0xff]   ;;  %v11515_v58 = vld [vmem:[%s12295_s26 + $0x688] ss:$100 sps:$4 sm:$0xff]  }
 0x226   : > { %6130 = vmatmul.mubr.bf16.gmra.mrb[40].mxu1 %v11435_v59  ;;  %v11518_v59 = vld [vmem:[%s12295_s26 + $0x1144] ss:$100 sps:$4 sm:$0xff]  }
 0x227   : > { %7618 = vmatmul.mubr.bf16.gmra.mrb[88].mxu0 %v11436_v60  ;;  %6137 = vmatprep.mubr.bf16.mxu1 %v11439_v61  ;;  %v11520_v60 = vld [vmem:[%s12295_s26 + $0x754] ss:$100 sps:$4 sm:$0xff]   ;;  %v11522_v61 = vld [vmem:[%s12295_s26 + $0x1140] ss:$100 sps:$4 sm:$0xff]  }
 0x228   : > { %7625 = vmatprep.mubr.bf16.mxu0 %v11441_v62  ;;  %v11523_v62 = vld [vmem:[%s12295_s26 + $0x750] ss:$100 sps:$4 sm:$0xff]  }
 0x22e   : > { %6138 = vmatmul.mubr.bf16.gmra.mrb[44].mxu1 %v11443_v0  ;;  %v11528_v0 = vld [vmem:[%s12295_s26 + $0x81c] ss:$100 sps:$4 sm:$0xff]  }
 0x22f   : > { %7626 = vmatmul.mubr.bf16.gmra.mrb[92].mxu0 %v11444_v2  ;;  %6145 = vmatprep.mubr.bf16.mxu1 %v11446_v3  ;;  %v804_v2 = vld [vmem:[%s12295_s26 + $0x12d0] sm:$0xff]  ;;  %v11530_v3 = vld [vmem:[%s12295_s26 + $0x1208] ss:$100 sps:$4 sm:$0xff]  }
 0x230   : > { %7633 = vmatprep.mubr.bf16.mxu0 %v9348_v4  ;;  %v11531_v4 = vld [vmem:[%s12295_s26 + $0x818] ss:$100 sps:$4 sm:$0xff]  }
 0x236   : > { %6146 = vmatmul.mubr.bf16.gmra.mrb[48].mxu1 %v11450_v5  ;;  %v9336_v5 = vcombine.high %v804_v2, %v804_v2 }
 0x237   : > { %7634 = vmatmul.mubr.bf16.gmra.mrb[96].mxu0 %v9347_v6  ;;  %6153 = vmatprep.mubr.bf16.mxu1 %v11452_v7  ;;  %v11533_v6 = vld [vmem:[%s12295_s26 + $0x8e4] ss:$100 sps:$4 sm:$0xff]   ;;  %v9335_v7 = vcombine.low %v804_v2, %v804_v2  ;;  %v11611_v2 = vld [vmem:[%s12295_s26 + $0x7ec] ss:$100 sps:$4 sm:$0xff]  }
 0x238   : > { %7673 = vmatprep.mubr.bf16.mxu0 %v11456_v8  ;;  %v11536_v8 = vld [vmem:[%s12295_s26 + $0x8e0] ss:$100 sps:$4 sm:$0xff]  }
 0x23e   : > { %6154 = vmatmul.mubr.bf16.gmra.mrb[52].mxu1 %v11457_v9  ;;  %v11541_v9 = vld [vmem:[%s12295_s26 + $0x1c] ss:$100 sps:$4 sm:$0xff]  }
 0x23f   : > { %7674 = vmatmul.mubr.bf16.vlgmr.msra.gmra.mrb[0].mxu0 %v11454_v10  ;;  %6161 = vmatprep.mubr.bf16.mxu1 %v11460_v11  ;;  %v11542_v10 = vld [vmem:[%s12295_s26 + $0x9ac] ss:$100 sps:$4 sm:$0xff]   ;;  %v11539_v11 = vld [vmem:[%s12295_s26 + $0x18] ss:$100 sps:$4 sm:$0xff]  }
 0x240   : > { %7874 = vmatpush1.bf16.msra.mxu0 %v11458_v12  ;;  %7681 = vmatprep.mubr.bf16.mxu0 %v11462_v13  ;;  %v11544_v12 = vld [vmem:[%s12295_s26 + $0x9a8] ss:$100 sps:$4 sm:$0xff]  }
 0x241   : > { %7875 = vmatprep.subr.bf16.mxu0 %v12189_v1  ;;  %v11546_v13 = vld [vmem:[%s12295_s26 + $0xe4] ss:$100 sps:$4 sm:$0xff]  }
 0x244   : > { %7876 = vmatpush1.bf16.msra.mxu0 %v11466_v14  ;;  %v11548_v14 = vld [vmem:[%s13957_s1 + $0x200] sm:$0xff]  }
 0x245   : > { %7877 = vmatprep.subr.bf16.mxu0 %v12189_v1 }
 0x246   : > { %6162 = vmatmul.mubr.bf16.gmra.mrb[56].mxu1 %v11464_v15  ;;  %v11549_v15 = vld [vmem:[%s12295_s26 + $0xa74] ss:$100 sps:$4 sm:$0xff]  }
 0x247   : > { %7682 = vmatmul.mubr.bf16.gmra.mrb[4].mxu0 %v11465_v16  ;;  %6169 = vmatprep.mubr.bf16.mxu1 %v11467_v17  ;;  %v11560_v16 = vld [vmem:[%s13957_s1 + $0x208] sm:$0xff]   ;;  %v11551_v17 = vld [vmem:[%s12295_s26 + $0xe0] ss:$100 sps:$4 sm:$0xff]  }
 0x248   : > { %7689 = vmatprep.mubr.bf16.mxu0 %v11469_v18  ;;  %7878 = vmatpush1.bf16.msra.mxu0 %v11480_v19  ;;  %v11552_v18 = vld [vmem:[%s12295_s26 + $0xa70] ss:$100 sps:$4 sm:$0xff]  }
 0x249   : > { %7879 = vmatprep.subr.bf16.mxu0 %v12189_v1  ;;  %v11553_v19 = vld [vmem:[%s12295_s26 + $0x1ac] ss:$100 sps:$4 sm:$0xff]  }
 0x24c   : > { %7880 = vmatpush1.bf16.msra.mxu0 %v11492_v20  ;;  %v11555_v20 = vld [vmem:[%s12295_s26 + $0xb3c] ss:$100 sps:$4 sm:$0xff]  }
 0x24d   : > { %7881 = vmatprep.subr.bf16.mxu0 %v12189_v1 }
 0x24e   : > { %6170 = vmatmul.mubr.bf16.gmra.mrb[60].mxu1 %v11471_v21  ;;  %v11573_v21 = vld [vmem:[%s13957_s1 + $0x210] sm:$0xff]  }
 0x24f   : > { %7690 = vmatmul.mubr.bf16.gmra.mrb[8].mxu0 %v11473_v22  ;;  %6177 = vmatprep.mubr.bf16.mxu1 %v11474_v23  ;;  %v11582_v22 = vld [vmem:[%s13957_s1 + $0x218] sm:$0xff]   ;;  %v11557_v23 = vld [vmem:[%s12295_s26 + $0x1a8] ss:$100 sps:$4 sm:$0xff]  }
 0x250   : > { %7697 = vmatprep.mubr.bf16.mxu0 %v11476_v24  ;;  %7882 = vmatpush1.bf16.msra.mxu0 %v11502_v25  ;;  %v11558_v24 = vld [vmem:[%s12295_s26 + $0xb38] ss:$100 sps:$4 sm:$0xff]  }
 0x251   : > { %7883 = vmatprep.subr.bf16.mxu0 %v12189_v1  ;;  %v11561_v25 = vld [vmem:[%s12295_s26 + $0x274] ss:$100 sps:$4 sm:$0xff]  }
 0x254   : > { %7884 = vmatpush1.bf16.msra.mxu0 %v11516_v26  ;;  %v11563_v26 = vld [vmem:[%s12295_s26 + $0xc04] ss:$100 sps:$4 sm:$0xff]  }
 0x255   : > { %7885 = vmatprep.subr.bf16.mxu0 %v12189_v1 }
 0x256   : > { %6178 = vmatmul.mubr.bf16.gmra.mrb[64].mxu1 %v11478_v27  ;;  %v11596_v27 = vld [vmem:[%s13957_s1 + $0x220] sm:$0xff]  }
 0x257   : > { %7698 = vmatmul.mubr.bf16.gmra.mrb[12].mxu0 %v11479_v28  ;;  %6185 = vmatprep.mubr.bf16.mxu1 %v11482_v29  ;;  %v11604_v28 = vld [vmem:[%s13957_s1 + $0x228] sm:$0xff]   ;;  %v11565_v29 = vld [vmem:[%s12295_s26 + $0x270] ss:$100 sps:$4 sm:$0xff]  }
 0x258   : > { %7705 = vmatprep.mubr.bf16.mxu0 %v11484_v30  ;;  %7886 = vmatpush1.bf16.msra.mxu0 %v11524_v31  ;;  %v11566_v30 = vld [vmem:[%s12295_s26 + $0xc00] ss:$100 sps:$4 sm:$0xff]  }
 0x259   : > { %7887 = vmatprep.subr.bf16.mxu0 %v12189_v1  ;;  %v11568_v31 = vld [vmem:[%s12295_s26 + $0x33c] ss:$100 sps:$4 sm:$0xff]  }
 0x25c   : > { %7888 = vmatpush1.bf16.msra.mxu0 %v11537_v32  ;;  %v11570_v32 = vld [vmem:[%s12295_s26 + $0xccc] ss:$100 sps:$4 sm:$0xff]  }
 0x25d   : > { %7889 = vmatprep.subr.bf16.mxu0 %v12189_v1 }
 0x25e   : > { %6186 = vmatmul.mubr.bf16.gmra.mrb[68].mxu1 %v11486_v33  ;;  %v11618_v33 = vld [vmem:[%s13957_s1 + $0x230] sm:$0xff]  }
 0x25f   : > { %7706 = vmatmul.mubr.bf16.gmra.mrb[16].mxu0 %v11487_v34  ;;  %6193 = vmatprep.mubr.bf16.mxu1 %v11488_v35  ;;  %v11628_v34 = vld [vmem:[%s13957_s1 + $0x238] sm:$0xff]  }
 0x260   : > { %7713 = vmatprep.mubr.bf16.mxu0 %v11490_v36  ;;  %7890 = vmatpush1.bf16.msra.mxu0 %v11545_v37  ;;  %v11572_v35 = vld [vmem:[%s12295_s26 + $0x338] ss:$100 sps:$4 sm:$0xff]   ;;  %v11574_v36 = vld [vmem:[%s12295_s26 + $0xcc8] ss:$100 sps:$4 sm:$0xff]  }
 0x261   : > { %7891 = vmatprep.subr.bf16.mxu0 %v12189_v1  ;;  %v11575_v37 = vld [vmem:[%s12295_s26 + $0x404] ss:$100 sps:$4 sm:$0xff]  }
 0x264   : > { %7892 = vmatpush1.bf16.msra.mxu0 %v11559_v38  ;;  %v11577_v38 = vld [vmem:[%s12295_s26 + $0xd94] ss:$100 sps:$4 sm:$0xff]  }
 0x265   : > { %7893 = vmatprep.subr.bf16.mxu0 %v12189_v1 }
 0x266   : > { %6194 = vmatmul.mubr.bf16.gmra.mrb[72].mxu1 %v11493_v39  ;;  %v11639_v39 = vld [vmem:[%s13957_s1 + $0x240] sm:$0xff]  }
 0x267   : > { %7714 = vmatmul.mubr.bf16.gmra.mrb[20].mxu0 %v11494_v40  ;;  %6201 = vmatprep.mubr.bf16.mxu1 %v11496_v41  ;;  %v11652_v40 = vld [vmem:[%s13957_s1 + $0x248] sm:$0xff]   ;;  %v11579_v41 = vld [vmem:[%s12295_s26 + $0x400] ss:$100 sps:$4 sm:$0xff]  }
 0x268   : > { %7721 = vmatprep.mubr.bf16.mxu0 %v11498_v42  ;;  %7894 = vmatpush1.bf16.msra.mxu0 %v11567_v43  ;;  %v11580_v42 = vld [vmem:[%s12295_s26 + $0xd90] ss:$100 sps:$4 sm:$0xff]  }
 0x269   : > { %7895 = vmatprep.subr.bf16.mxu0 %v12189_v1  ;;  %v11583_v43 = vld [vmem:[%s12295_s26 + $0x4cc] ss:$100 sps:$4 sm:$0xff]  }
 0x26c   : > { %7896 = vmatpush1.bf16.msra.mxu0 %v11581_v44  ;;  %v11585_v44 = vld [vmem:[%s12295_s26 + $0xe5c] ss:$100 sps:$4 sm:$0xff]  }
 0x26d   : > { %7897 = vmatprep.subr.bf16.mxu0 %v12189_v1 }
 0x26e   : > { %6202 = vmatmul.mubr.bf16.gmra.mrb[76].mxu1 %v11500_v45  ;;  %v11661_v45 = vld [vmem:[%s13957_s1 + $0x250] sm:$0xff]  }
 0x26f   : > { %7722 = vmatmul.mubr.bf16.gmra.mrb[24].mxu0 %v11501_v46  ;;  %6209 = vmatprep.mubr.bf16.mxu1 %v11504_v47  ;;  %v11675_v46 = vld [vmem:[%s13957_s1 + $0x258] sm:$0xff]   ;;  %v11587_v47 = vld [vmem:[%s12295_s26 + $0x4c8] ss:$100 sps:$4 sm:$0xff]  }
 0x270   : > { %7729 = vmatprep.mubr.bf16.mxu0 %v11506_v48  ;;  %7898 = vmatpush1.bf16.msra.mxu0 %v11593_v49  ;;  %v11588_v48 = vld [vmem:[%s12295_s26 + $0xe58] ss:$100 sps:$4 sm:$0xff]  }
 0x271   : > { %7899 = vmatprep.subr.bf16.mxu0 %v12189_v1  ;;  %v11589_v49 = vld [vmem:[%s12295_s26 + $0x594] ss:$100 sps:$4 sm:$0xff]  }
 0x274   : > { %7900 = vmatpush1.bf16.msra.mxu0 %v11603_v50  ;;  %v11591_v50 = vld [vmem:[%s12295_s26 + $0xf24] ss:$100 sps:$4 sm:$0xff]  }
 0x275   : > { %7901 = vmatprep.subr.bf16.mxu0 %v12189_v1 }
 0x276   : > { %6210 = vmatmul.mubr.bf16.gmra.mrb[80].mxu1 %v11508_v51  ;;  %v11683_v51 = vld [vmem:[%s13957_s1 + $0x260] sm:$0xff]  }
 0x277   : > { %7730 = vmatmul.mubr.bf16.gmra.mrb[28].mxu0 %v11509_v52  ;;  %6217 = vmatprep.mubr.bf16.mxu1 %v11510_v53  ;;  %v11697_v52 = vld [vmem:[%s13957_s1 + $0x268] sm:$0xff]   ;;  %v11594_v53 = vld [vmem:[%s12295_s26 + $0x590] ss:$100 sps:$4 sm:$0xff]  }
 0x278   : > { %7737 = vmatprep.mubr.bf16.mxu0 %v11512_v54  ;;  %7902 = vmatpush1.bf16.msra.mxu0 %v11617_v55  ;;  %v11595_v54 = vld [vmem:[%s12295_s26 + $0xf20] ss:$100 sps:$4 sm:$0xff]  }
 0x279   : > { %7903 = vmatprep.subr.bf16.mxu0 %v12189_v1  ;;  %v11597_v55 = vld [vmem:[%s12295_s26 + $0x65c] ss:$100 sps:$4 sm:$0xff]  }
 0x27c   : > { %7904 = vmatpush1.bf16.msra.mxu0 %v11625_v56  ;;  %v11599_v56 = vld [vmem:[%s12295_s26 + $0xfec] ss:$100 sps:$4 sm:$0xff]  }
 0x27d   : > { %8105 = vmatprep.subr.bf16.mxu0 %v12189_v1 }
 0x27e   : > { %6218 = vmatmul.mubr.bf16.gmra.mrb[84].mxu1 %v11514_v57  ;;  %v11705_v57 = vld [vmem:[%s13957_s1 + $0x270] sm:$0xff]  }
 0x27f   : > { %7738 = vmatmul.mubr.bf16.gmra.mrb[32].mxu0 %v11515_v58  ;;  %6225 = vmatprep.mubr.bf16.mxu1 %v11518_v59  ;;  %v11601_v58 = vld [vmem:[%s12295_s26 + $0x658] ss:$100 sps:$4 sm:$0xff]   ;;  %v11602_v59 = vld [vmem:[%s12295_s26 + $0xfe8] ss:$100 sps:$4 sm:$0xff]  }
 0x280   : > { %7745 = vmatprep.mubr.bf16.mxu0 %v11520_v60  ;;  %v11605_v60 = vld [vmem:[%s12295_s26 + $0x724] ss:$100 sps:$4 sm:$0xff]  }
 0x286   : > { %6226 = vmatmul.mubr.bf16.gmra.mrb[88].mxu1 %v11522_v61  ;;  %v11607_v61 = vld [vmem:[%s12295_s26 + $0x10b4] ss:$100 sps:$4 sm:$0xff]  }
 0x287   : > { %7746 = vmatmul.mubr.bf16.gmra.mrb[36].mxu0 %v11523_v62  ;;  %6233 = vmatprep.mubr.bf16.mxu1 %v11526_v63  ;;  %v11718_v62 = vld [vmem:[%s13957_s1 + $0x278] sm:$0xff]   ;;  %v11609_v63 = vld [vmem:[%s12295_s26 + $0x720] ss:$100 sps:$4 sm:$0xff]  }
 0x288   : > { %7753 = vmatprep.mubr.bf16.mxu0 %v11528_v0  ;;  %v11610_v0 = vld [vmem:[%s12295_s26 + $0x10b0] ss:$100 sps:$4 sm:$0xff]  }
 0x28e   : > { %6234 = vmatmul.mubr.bf16.gmra.mrb[92].mxu1 %v11530_v3  ;;  %v11613_v3 = vld [vmem:[%s12295_s26 + $0x117c] ss:$100 sps:$4 sm:$0xff]  }
 0x28f   : > { %7754 = vmatmul.mubr.bf16.gmra.mrb[40].mxu0 %v11531_v4  ;;  %6241 = vmatprep.mubr.bf16.mxu1 %v9336_v5  ;;  %v11615_v4 = vld [vmem:[%s12295_s26 + $0x7e8] ss:$100 sps:$4 sm:$0xff]   ;;  %v11616_v5 = vld [vmem:[%s12295_s26 + $0x1178] ss:$100 sps:$4 sm:$0xff]  }
 0x290   : > { %7761 = vmatprep.mubr.bf16.mxu0 %v11533_v6  ;;  %v11619_v6 = vld [vmem:[%s12295_s26 + $0x8b4] ss:$100 sps:$4 sm:$0xff]  }
 0x296   : > { %6242 = vmatmul.mubr.bf16.gmra.mrb[96].mxu1 %v9335_v7  ;;  %v11621_v7 = vld [vmem:[%s12295_s26 + $0x1244] ss:$100 sps:$4 sm:$0xff]  }
 0x297   : > { %7762 = vmatmul.mubr.bf16.gmra.mrb[44].mxu0 %v11536_v8  ;;  %6281 = vmatprep.mubr.bf16.mxu1 %v11541_v9  ;;  %v811_v8 = vld [vmem:[%s12295_s26 + $0x1308] sm:$0xff]  ;;  %v11623_v9 = vld [vmem:[%s12295_s26 + $0x8b0] ss:$100 sps:$4 sm:$0xff]  }
 0x298   : > { %7769 = vmatprep.mubr.bf16.mxu0 %v11542_v10  ;;  %v11624_v10 = vld [vmem:[%s12295_s26 + $0x1240] ss:$100 sps:$4 sm:$0xff]  }
 0x29e   : > { %6282 = vmatmul.mubr.bf16.vlgmr.msra.gmra.mrb[0].mxu1 %v11539_v11  ;;  %v11626_v11 = vld [vmem:[%s12295_s26 + $0x97c] ss:$100 sps:$4 sm:$0xff]  }
 0x29f   : > { %7770 = vmatmul.mubr.bf16.gmra.mrb[48].mxu0 %v11544_v12  ;;  %6289 = vmatprep.mubr.bf16.mxu1 %v11546_v13  ;;  %v9350_v12 = vcombine.high %v811_v8, %v811_v8  ;;  %v11630_v13 = vld [vmem:[%s12295_s26 + $0x978] ss:$100 sps:$4 sm:$0xff]  }
 0x2a0   : > { %6482 = vmatpush1.bf16.msra.mxu1 %v11548_v14  ;;  %7777 = vmatprep.mubr.bf16.mxu0 %v11549_v15  ;;  %v9349_v14 = vcombine.low %v811_v8, %v811_v8  ;;  %v11632_v15 = vld [vmem:[%s12295_s26 + $0xa44] ss:$100 sps:$4 sm:$0xff]   ;;  %v11706_v8 = vld [vmem:[%s12295_s26 + $0x1214] ss:$100 sps:$4 sm:$0xff]  }
 0x2a1   : > { %6483 = vmatprep.subr.bf16.mxu1 %v12189_v1 }
 0x2a4   : > { %6484 = vmatpush1.bf16.msra.mxu1 %v11560_v16  ;;  %v11636_v16 = vld [vmem:[%s12295_s26 + $0x54] ss:$100 sps:$4 sm:$0xff]  }
 0x2a5   : > { %6485 = vmatprep.subr.bf16.mxu1 %v12189_v1 }
 0x2a6   : > { %6290 = vmatmul.mubr.bf16.gmra.mrb[4].mxu1 %v11551_v17  ;;  %v11637_v17 = vld [vmem:[%s12295_s26 + $0xa40] ss:$100 sps:$4 sm:$0xff]  }
 0x2a7   : > { %7778 = vmatmul.mubr.bf16.gmra.mrb[52].mxu0 %v11552_v18  ;;  %6297 = vmatprep.mubr.bf16.mxu1 %v11553_v19  ;;  %v11634_v18 = vld [vmem:[%s12295_s26 + $0x50] ss:$100 sps:$4 sm:$0xff]  }
 0x2a8   : > { %7785 = vmatprep.mubr.bf16.mxu0 %v11555_v20  ;;  %6486 = vmatpush1.bf16.msra.mxu1 %v11573_v21  ;;  %v11640_v19 = vld [vmem:[%s12295_s26 + $0xb0c] ss:$100 sps:$4 sm:$0xff]   ;;  %v11638_v20 = vld [vmem:[%s13957_s1 + $0x580] sm:$0xff]  }
 0x2a9   : > { %6487 = vmatprep.subr.bf16.mxu1 %v12189_v1  ;;  %v11642_v21 = vld [vmem:[%s12295_s26 + $0x11c] ss:$100 sps:$4 sm:$0xff]  }
 0x2ac   : > { %6488 = vmatpush1.bf16.msra.mxu1 %v11582_v22  ;;  %v11646_v22 = vld [vmem:[%s13957_s1 + $0x588] sm:$0xff]  }
 0x2ad   : > { %6489 = vmatprep.subr.bf16.mxu1 %v12189_v1 }
 0x2ae   : > { %6298 = vmatmul.mubr.bf16.gmra.mrb[8].mxu1 %v11557_v23  ;;  %v11644_v23 = vld [vmem:[%s12295_s26 + $0xb08] ss:$100 sps:$4 sm:$0xff]  }
 0x2af   : > { %7786 = vmatmul.mubr.bf16.gmra.mrb[56].mxu0 %v11558_v24  ;;  %6305 = vmatprep.mubr.bf16.mxu1 %v11561_v25  ;;  %v11645_v24 = vld [vmem:[%s12295_s26 + $0x118] ss:$100 sps:$4 sm:$0xff]  }
 0x2b0   : > { %7793 = vmatprep.mubr.bf16.mxu0 %v11563_v26  ;;  %6490 = vmatpush1.bf16.msra.mxu1 %v11596_v27  ;;  %v11647_v25 = vld [vmem:[%s12295_s26 + $0xbd4] ss:$100 sps:$4 sm:$0xff]   ;;  %v11649_v26 = vld [vmem:[%s12295_s26 + $0x1e4] ss:$100 sps:$4 sm:$0xff]  }
 0x2b1   : > { %6491 = vmatprep.subr.bf16.mxu1 %v12189_v1  ;;  %v11660_v27 = vld [vmem:[%s13957_s1 + $0x590] sm:$0xff]  }
 0x2b4   : > { %6492 = vmatpush1.bf16.msra.mxu1 %v11604_v28  ;;  %v11672_v28 = vld [vmem:[%s13957_s1 + $0x598] sm:$0xff]  }
 0x2b5   : > { %6493 = vmatprep.subr.bf16.mxu1 %v12189_v1 }
 0x2b6   : > { %6306 = vmatmul.mubr.bf16.gmra.mrb[12].mxu1 %v11565_v29  ;;  %v11651_v29 = vld [vmem:[%s12295_s26 + $0xbd0] ss:$100 sps:$4 sm:$0xff]  }
 0x2b7   : > { %7794 = vmatmul.mubr.bf16.gmra.mrb[60].mxu0 %v11566_v30  ;;  %6313 = vmatprep.mubr.bf16.mxu1 %v11568_v31  ;;  %v11653_v30 = vld [vmem:[%s12295_s26 + $0x1e0] ss:$100 sps:$4 sm:$0xff]  }
 0x2b8   : > { %7801 = vmatprep.mubr.bf16.mxu0 %v11570_v32  ;;  %6494 = vmatpush1.bf16.msra.mxu1 %v11618_v33  ;;  %v11654_v31 = vld [vmem:[%s12295_s26 + $0xc9c] ss:$100 sps:$4 sm:$0xff]   ;;  %v11656_v32 = vld [vmem:[%s12295_s26 + $0x2ac] ss:$100 sps:$4 sm:$0xff]  }
 0x2b9   : > { %6495 = vmatprep.subr.bf16.mxu1 %v12189_v1  ;;  %v11682_v33 = vld [vmem:[%s13957_s1 + $0x5a0] sm:$0xff]  }
 0x2bc   : > { %6496 = vmatpush1.bf16.msra.mxu1 %v11628_v34  ;;  %v11696_v34 = vld [vmem:[%s13957_s1 + $0x5a8] sm:$0xff]  }
 0x2bd   : > { %6497 = vmatprep.subr.bf16.mxu1 %v12189_v1 }
 0x2be   : > { %6314 = vmatmul.mubr.bf16.gmra.mrb[16].mxu1 %v11572_v35  ;;  %v11658_v35 = vld [vmem:[%s12295_s26 + $0xc98] ss:$100 sps:$4 sm:$0xff]  }
 0x2bf   : > { %7802 = vmatmul.mubr.bf16.gmra.mrb[64].mxu0 %v11574_v36  ;;  %6321 = vmatprep.mubr.bf16.mxu1 %v11575_v37  ;;  %v11659_v36 = vld [vmem:[%s12295_s26 + $0x2a8] ss:$100 sps:$4 sm:$0xff]  }
 0x2c0   : > { %7809 = vmatprep.mubr.bf16.mxu0 %v11577_v38  ;;  %6498 = vmatpush1.bf16.msra.mxu1 %v11639_v39  ;;  %v11662_v37 = vld [vmem:[%s12295_s26 + $0xd64] ss:$100 sps:$4 sm:$0xff]   ;;  %v11664_v38 = vld [vmem:[%s12295_s26 + $0x374] ss:$100 sps:$4 sm:$0xff]  }
 0x2c1   : > { %6499 = vmatprep.subr.bf16.mxu1 %v12189_v1  ;;  %v11704_v39 = vld [vmem:[%s13957_s1 + $0x5b0] sm:$0xff]  }
 0x2c4   : > { %6500 = vmatpush1.bf16.msra.mxu1 %v11652_v40  ;;  %v11717_v40 = vld [vmem:[%s13957_s1 + $0x5b8] sm:$0xff]  }
 0x2c5   : > { %6501 = vmatprep.subr.bf16.mxu1 %v12189_v1 }
 0x2c6   : > { %6322 = vmatmul.mubr.bf16.gmra.mrb[20].mxu1 %v11579_v41  ;;  %v11666_v41 = vld [vmem:[%s12295_s26 + $0xd60] ss:$100 sps:$4 sm:$0xff]  }
 0x2c7   : > { %7810 = vmatmul.mubr.bf16.gmra.mrb[68].mxu0 %v11580_v42  ;;  %6329 = vmatprep.mubr.bf16.mxu1 %v11583_v43  ;;  %v11667_v42 = vld [vmem:[%s12295_s26 + $0x370] ss:$100 sps:$4 sm:$0xff]  }
 0x2c8   : > { %7817 = vmatprep.mubr.bf16.mxu0 %v11585_v44  ;;  %6502 = vmatpush1.bf16.msra.mxu1 %v11661_v45  ;;  %v11668_v43 = vld [vmem:[%s12295_s26 + $0xe2c] ss:$100 sps:$4 sm:$0xff]   ;;  %v11670_v44 = vld [vmem:[%s12295_s26 + $0x43c] ss:$100 sps:$4 sm:$0xff]  }
 0x2c9   : > { %6503 = vmatprep.subr.bf16.mxu1 %v12189_v1  ;;  %v11725_v45 = vld [vmem:[%s13957_s1 + $0x5c0] sm:$0xff]  }
 0x2cc   : > { %6504 = vmatpush1.bf16.msra.mxu1 %v11675_v46  ;;  %v11739_v46 = vld [vmem:[%s13957_s1 + $0x5c8] sm:$0xff]  }
 0x2cd   : > { %6505 = vmatprep.subr.bf16.mxu1 %v12189_v1 }
 0x2ce   : > { %6330 = vmatmul.mubr.bf16.gmra.mrb[24].mxu1 %v11587_v47  ;;  %v11673_v47 = vld [vmem:[%s12295_s26 + $0xe28] ss:$100 sps:$4 sm:$0xff]  }
 0x2cf   : > { %7818 = vmatmul.mubr.bf16.gmra.mrb[72].mxu0 %v11588_v48  ;;  %6337 = vmatprep.mubr.bf16.mxu1 %v11589_v49  ;;  %v11674_v48 = vld [vmem:[%s12295_s26 + $0x438] ss:$100 sps:$4 sm:$0xff]  }
 0x2d0   : > { %7825 = vmatprep.mubr.bf16.mxu0 %v11591_v50  ;;  %6506 = vmatpush1.bf16.msra.mxu1 %v11683_v51  ;;  %v11676_v49 = vld [vmem:[%s12295_s26 + $0xef4] ss:$100 sps:$4 sm:$0xff]   ;;  %v11678_v50 = vld [vmem:[%s12295_s26 + $0x504] ss:$100 sps:$4 sm:$0xff]  }
 0x2d1   : > { %6507 = vmatprep.subr.bf16.mxu1 %v12189_v1  ;;  %v11747_v51 = vld [vmem:[%s13957_s1 + $0x5d0] sm:$0xff]  }
 0x2d4   : > { %6508 = vmatpush1.bf16.msra.mxu1 %v11697_v52  ;;  %v11761_v52 = vld [vmem:[%s13957_s1 + $0x5d8] sm:$0xff]  }
 0x2d5   : > { %6509 = vmatprep.subr.bf16.mxu1 %v12189_v1 }
 0x2d6   : > { %6338 = vmatmul.mubr.bf16.gmra.mrb[28].mxu1 %v11594_v53  ;;  %v11680_v53 = vld [vmem:[%s12295_s26 + $0xef0] ss:$100 sps:$4 sm:$0xff]  }
 0x2d7   : > { %7826 = vmatmul.mubr.bf16.gmra.mrb[76].mxu0 %v11595_v54  ;;  %6345 = vmatprep.mubr.bf16.mxu1 %v11597_v55  ;;  %v11681_v54 = vld [vmem:[%s12295_s26 + $0x500] ss:$100 sps:$4 sm:$0xff]  }
 0x2d8   : > { %7833 = vmatprep.mubr.bf16.mxu0 %v11599_v56  ;;  %6510 = vmatpush1.bf16.msra.mxu1 %v11705_v57  ;;  %v11684_v55 = vld [vmem:[%s12295_s26 + $0xfbc] ss:$100 sps:$4 sm:$0xff]   ;;  %v11686_v56 = vld [vmem:[%s12295_s26 + $0x5cc] ss:$100 sps:$4 sm:$0xff]  }
 0x2d9   : > { %6511 = vmatprep.subr.bf16.mxu1 %v12189_v1  ;;  %v11773_v57 = vld [vmem:[%s13957_s1 + $0x5e0] sm:$0xff]  }
 0x2dc   : > { %6512 = vmatpush1.bf16.msra.mxu1 %v11718_v62  ;;  %v11692_v62 = vld [vmem:[%s12295_s26 + $0x694] ss:$100 sps:$4 sm:$0xff]  }
 0x2dd   : > { %6713 = vmatprep.subr.bf16.mxu1 %v12189_v1 }
 0x2de   : > { %6346 = vmatmul.mubr.bf16.gmra.mrb[32].mxu1 %v11601_v58  ;;  %v11783_v58 = vld [vmem:[%s13957_s1 + $0x5e8] sm:$0xff]  }
 0x2df   : > { %7834 = vmatmul.mubr.bf16.gmra.mrb[80].mxu0 %v11602_v59  ;;  %6353 = vmatprep.mubr.bf16.mxu1 %v11605_v60  ;;  %v11688_v59 = vld [vmem:[%s12295_s26 + $0xfb8] ss:$100 sps:$4 sm:$0xff]   ;;  %v11689_v60 = vld [vmem:[%s12295_s26 + $0x5c8] ss:$100 sps:$4 sm:$0xff]  }
 0x2e0   : > { %7841 = vmatprep.mubr.bf16.mxu0 %v11607_v61  ;;  %v11690_v61 = vld [vmem:[%s12295_s26 + $0x1084] ss:$100 sps:$4 sm:$0xff]  }
 0x2e6   : > { %6354 = vmatmul.mubr.bf16.gmra.mrb[36].mxu1 %v11609_v63  ;;  %v11797_v63 = vld [vmem:[%s13957_s1 + $0x5f0] sm:$0xff]  }
 0x2e7   : > { %7842 = vmatmul.mubr.bf16.gmra.mrb[84].mxu0 %v11610_v0  ;;  %6361 = vmatprep.mubr.bf16.mxu1 %v11611_v2  ;;  %v11805_v0 = vld [vmem:[%s13957_s1 + $0x5f8] sm:$0xff]   ;;  %v11694_v2 = vld [vmem:[%s12295_s26 + $0x1080] ss:$100 sps:$4 sm:$0xff]  }
 0x2e8   : > { %7849 = vmatprep.mubr.bf16.mxu0 %v11613_v3  ;;  %v11695_v3 = vld [vmem:[%s12295_s26 + $0x690] ss:$100 sps:$4 sm:$0xff]  }
 0x2ee   : > { %6362 = vmatmul.mubr.bf16.gmra.mrb[40].mxu1 %v11615_v4  ;;  %v11698_v4 = vld [vmem:[%s12295_s26 + $0x114c] ss:$100 sps:$4 sm:$0xff]  }
 0x2ef   : > { %7850 = vmatmul.mubr.bf16.gmra.mrb[88].mxu0 %v11616_v5  ;;  %6369 = vmatprep.mubr.bf16.mxu1 %v11619_v6  ;;  %v11700_v5 = vld [vmem:[%s12295_s26 + $0x75c] ss:$100 sps:$4 sm:$0xff]   ;;  %v11702_v6 = vld [vmem:[%s12295_s26 + $0x1148] ss:$100 sps:$4 sm:$0xff]  }
 0x2f0   : > { %7857 = vmatprep.mubr.bf16.mxu0 %v11621_v7  ;;  %v11703_v7 = vld [vmem:[%s12295_s26 + $0x758] ss:$100 sps:$4 sm:$0xff]  }
 0x2f6   : > { %6370 = vmatmul.mubr.bf16.gmra.mrb[44].mxu1 %v11623_v9  ;;  %v11708_v9 = vld [vmem:[%s12295_s26 + $0x824] ss:$100 sps:$4 sm:$0xff]  }
 0x2f7   : > { %7858 = vmatmul.mubr.bf16.gmra.mrb[92].mxu0 %v11624_v10  ;;  %6377 = vmatprep.mubr.bf16.mxu1 %v11626_v11  ;;  %v805_v10 = vld [vmem:[%s12295_s26 + $0x12d8] sm:$0xff]  ;;  %v12190_v11 = vmov 0.0  }
 0x2f8   : > { %7865 = vmatprep.mubr.bf16.mxu0 %v9350_v12  ;;  %v11710_v12 = vld [vmem:[%s12295_s26 + $0x1210] ss:$100 sps:$4 sm:$0xff]  }
 0x2fe   : > { %6378 = vmatmul.mubr.bf16.gmra.mrb[48].mxu1 %v11630_v13  ;;  %v11711_v13 = vld [vmem:[%s12295_s26 + $0x820] ss:$100 sps:$4 sm:$0xff]  }
 0x2ff   : > { %7866 = vmatmul.mubr.bf16.gmra.mrb[96].mxu0 %v9349_v14  ;;  %6385 = vmatprep.mubr.bf16.mxu1 %v11632_v15  ;;  %v9338_v14 = vcombine.high %v805_v10, %v805_v10  ;;  %v11713_v15 = vld [vmem:[%s12295_s26 + $0x8ec] ss:$100 sps:$4 sm:$0xff]  }
 0x300   : > { %7905 = vmatprep.mubr.bf16.mxu0 %v11636_v16  ;;  %v9337_v16 = vcombine.low %v805_v10, %v805_v10  ;;  %v11790_v10 = vld [vmem:[%s12295_s26 + $0x10b8] ss:$100 sps:$4 sm:$0xff]  }
 0x306   : > { %6386 = vmatmul.mubr.bf16.gmra.mrb[52].mxu1 %v11637_v17  ;;  %v11716_v17 = vld [vmem:[%s12295_s26 + $0x8e8] ss:$100 sps:$4 sm:$0xff]  }
 0x307   : > { %7906 = vmatmul.mubr.bf16.vlgmr.msra.gmra.mrb[0].mxu0 %v11634_v18  ;;  %6393 = vmatprep.mubr.bf16.mxu1 %v11640_v19  ;;  %v11721_v18 = vld [vmem:[%s12295_s26 + $0x24] ss:$100 sps:$4 sm:$0xff]   ;;  %v11722_v19 = vld [vmem:[%s12295_s26 + $0x9b4] ss:$100 sps:$4 sm:$0xff]  }
 0x308   : > { %8106 = vmatpush1.bf16.msra.mxu0 %v11638_v20  ;;  %7913 = vmatprep.mubr.bf16.mxu0 %v11642_v21  ;;  %v11719_v20 = vld [vmem:[%s12295_s26 + $0x20] ss:$100 sps:$4 sm:$0xff]   ;;  %v11724_v21 = vld [vmem:[%s12295_s26 + $0x9b0] ss:$100 sps:$4 sm:$0xff]  }
 0x309   : > { %8107 = vmatprep.subr.bf16.mxu0 %v12189_v1 }
 0x30c   : > { %8108 = vmatpush1.bf16.msra.mxu0 %v11646_v22  ;;  %v11726_v22 = vld [vmem:[%s12295_s26 + $0xec] ss:$100 sps:$4 sm:$0xff]  }
 0x30d   : > { %8109 = vmatprep.subr.bf16.mxu0 %v12189_v1 }
 0x30e   : > { %6394 = vmatmul.mubr.bf16.gmra.mrb[56].mxu1 %v11644_v23  ;;  %v11728_v23 = vld [vmem:[%s13957_s1 + $0x280] sm:$0xff]  }
 0x30f   : > { %7914 = vmatmul.mubr.bf16.gmra.mrb[4].mxu0 %v11645_v24  ;;  %6401 = vmatprep.mubr.bf16.mxu1 %v11647_v25  ;;  %v11729_v24 = vld [vmem:[%s12295_s26 + $0xa7c] ss:$100 sps:$4 sm:$0xff]   ;;  %v11740_v25 = vld [vmem:[%s13957_s1 + $0x288] sm:$0xff]  }
 0x310   : > { %7921 = vmatprep.mubr.bf16.mxu0 %v11649_v26  ;;  %8110 = vmatpush1.bf16.msra.mxu0 %v11660_v27  ;;  %v11731_v26 = vld [vmem:[%s12295_s26 + $0xe8] ss:$100 sps:$4 sm:$0xff]   ;;  %v11732_v27 = vld [vmem:[%s12295_s26 + $0xa78] ss:$100 sps:$4 sm:$0xff]  }
 0x311   : > { %8111 = vmatprep.subr.bf16.mxu0 %v12189_v1 }
 0x314   : > { %8112 = vmatpush1.bf16.msra.mxu0 %v11672_v28  ;;  %v11733_v28 = vld [vmem:[%s12295_s26 + $0x1b4] ss:$100 sps:$4 sm:$0xff]  }
 0x315   : > { %8113 = vmatprep.subr.bf16.mxu0 %v12189_v1 }
 0x316   : > { %6402 = vmatmul.mubr.bf16.gmra.mrb[60].mxu1 %v11651_v29  ;;  %v11735_v29 = vld [vmem:[%s12295_s26 + $0xb44] ss:$100 sps:$4 sm:$0xff]  }
 0x317   : > { %7922 = vmatmul.mubr.bf16.gmra.mrb[8].mxu0 %v11653_v30  ;;  %6409 = vmatprep.mubr.bf16.mxu1 %v11654_v31  ;;  %v11753_v30 = vld [vmem:[%s13957_s1 + $0x290] sm:$0xff]   ;;  %v11762_v31 = vld [vmem:[%s13957_s1 + $0x298] sm:$0xff]  }
 0x318   : > { %7929 = vmatprep.mubr.bf16.mxu0 %v11656_v32  ;;  %8114 = vmatpush1.bf16.msra.mxu0 %v11682_v33  ;;  %v11737_v32 = vld [vmem:[%s12295_s26 + $0x1b0] ss:$100 sps:$4 sm:$0xff]   ;;  %v11738_v33 = vld [vmem:[%s12295_s26 + $0xb40] ss:$100 sps:$4 sm:$0xff]  }
 0x319   : > { %8115 = vmatprep.subr.bf16.mxu0 %v12189_v1 }
 0x31c   : > { %8116 = vmatpush1.bf16.msra.mxu0 %v11696_v34  ;;  %v11741_v34 = vld [vmem:[%s12295_s26 + $0x27c] ss:$100 sps:$4 sm:$0xff]  }
 0x31d   : > { %8117 = vmatprep.subr.bf16.mxu0 %v12189_v1 }
 0x31e   : > { %6410 = vmatmul.mubr.bf16.gmra.mrb[64].mxu1 %v11658_v35  ;;  %v11743_v35 = vld [vmem:[%s12295_s26 + $0xc0c] ss:$100 sps:$4 sm:$0xff]  }
 0x31f   : > { %7930 = vmatmul.mubr.bf16.gmra.mrb[12].mxu0 %v11659_v36  ;;  %6417 = vmatprep.mubr.bf16.mxu1 %v11662_v37  ;;  %v11776_v36 = vld [vmem:[%s13957_s1 + $0x2a0] sm:$0xff]   ;;  %v11784_v37 = vld [vmem:[%s13957_s1 + $0x2a8] sm:$0xff]  }
 0x320   : > { %7937 = vmatprep.mubr.bf16.mxu0 %v11664_v38  ;;  %8118 = vmatpush1.bf16.msra.mxu0 %v11704_v39  ;;  %v11745_v38 = vld [vmem:[%s12295_s26 + $0x278] ss:$100 sps:$4 sm:$0xff]   ;;  %v11746_v39 = vld [vmem:[%s12295_s26 + $0xc08] ss:$100 sps:$4 sm:$0xff]  }
 0x321   : > { %8119 = vmatprep.subr.bf16.mxu0 %v12189_v1 }
 0x324   : > { %8120 = vmatpush1.bf16.msra.mxu0 %v11717_v40  ;;  %v11748_v40 = vld [vmem:[%s12295_s26 + $0x344] ss:$100 sps:$4 sm:$0xff]  }
 0x325   : > { %8121 = vmatprep.subr.bf16.mxu0 %v12189_v1 }
 0x326   : > { %6418 = vmatmul.mubr.bf16.gmra.mrb[68].mxu1 %v11666_v41  ;;  %v11750_v41 = vld [vmem:[%s12295_s26 + $0xcd4] ss:$100 sps:$4 sm:$0xff]  }
 0x327   : > { %7938 = vmatmul.mubr.bf16.gmra.mrb[16].mxu0 %v11667_v42  ;;  %6425 = vmatprep.mubr.bf16.mxu1 %v11668_v43  ;;  %v11798_v42 = vld [vmem:[%s13957_s1 + $0x2b0] sm:$0xff]   ;;  %v11808_v43 = vld [vmem:[%s13957_s1 + $0x2b8] sm:$0xff]  }
 0x328   : > { %7945 = vmatprep.mubr.bf16.mxu0 %v11670_v44  ;;  %8122 = vmatpush1.bf16.msra.mxu0 %v11725_v45  ;;  %v11752_v44 = vld [vmem:[%s12295_s26 + $0x340] ss:$100 sps:$4 sm:$0xff]   ;;  %v11754_v45 = vld [vmem:[%s12295_s26 + $0xcd0] ss:$100 sps:$4 sm:$0xff]  }
 0x329   : > { %8123 = vmatprep.subr.bf16.mxu0 %v12189_v1 }
 0x32c   : > { %8124 = vmatpush1.bf16.msra.mxu0 %v11739_v46  ;;  %v11755_v46 = vld [vmem:[%s12295_s26 + $0x40c] ss:$100 sps:$4 sm:$0xff]  }
 0x32d   : > { %8125 = vmatprep.subr.bf16.mxu0 %v12189_v1 }
 0x32e   : > { %6426 = vmatmul.mubr.bf16.gmra.mrb[72].mxu1 %v11673_v47  ;;  %v11757_v47 = vld [vmem:[%s12295_s26 + $0xd9c] ss:$100 sps:$4 sm:$0xff]  }
 0x32f   : > { %7946 = vmatmul.mubr.bf16.gmra.mrb[20].mxu0 %v11674_v48  ;;  %6433 = vmatprep.mubr.bf16.mxu1 %v11676_v49  ;;  %v11819_v48 = vld [vmem:[%s13957_s1 + $0x2c0] sm:$0xff]   ;;  %v11831_v49 = vld [vmem:[%s13957_s1 + $0x2c8] sm:$0xff]  }
 0x330   : > { %7953 = vmatprep.mubr.bf16.mxu0 %v11678_v50  ;;  %8126 = vmatpush1.bf16.msra.mxu0 %v11747_v51  ;;  %v11759_v50 = vld [vmem:[%s12295_s26 + $0x408] ss:$100 sps:$4 sm:$0xff]   ;;  %v11760_v51 = vld [vmem:[%s12295_s26 + $0xd98] ss:$100 sps:$4 sm:$0xff]  }
 0x331   : > { %8127 = vmatprep.subr.bf16.mxu0 %v12189_v1 }
 0x334   : > { %8128 = vmatpush1.bf16.msra.mxu0 %v11761_v52  ;;  %v11763_v52 = vld [vmem:[%s12295_s26 + $0x4d4] ss:$100 sps:$4 sm:$0xff]  }
 0x335   : > { %8129 = vmatprep.subr.bf16.mxu0 %v12189_v1 }
 0x336   : > { %6434 = vmatmul.mubr.bf16.gmra.mrb[76].mxu1 %v11680_v53  ;;  %v11765_v53 = vld [vmem:[%s12295_s26 + $0xe64] ss:$100 sps:$4 sm:$0xff]  }
 0x337   : > { %7954 = vmatmul.mubr.bf16.gmra.mrb[24].mxu0 %v11681_v54  ;;  %6441 = vmatprep.mubr.bf16.mxu1 %v11684_v55  ;;  %v11839_v54 = vld [vmem:[%s13957_s1 + $0x2d0] sm:$0xff]   ;;  %v11852_v55 = vld [vmem:[%s13957_s1 + $0x2d8] sm:$0xff]  }
 0x338   : > { %7961 = vmatprep.mubr.bf16.mxu0 %v11686_v56  ;;  %8130 = vmatpush1.bf16.msra.mxu0 %v11773_v57  ;;  %v11767_v56 = vld [vmem:[%s12295_s26 + $0x4d0] ss:$100 sps:$4 sm:$0xff]   ;;  %v11768_v57 = vld [vmem:[%s12295_s26 + $0xe60] ss:$100 sps:$4 sm:$0xff]  }
 0x339   : > { %8131 = vmatprep.subr.bf16.mxu0 %v12189_v1 }
 0x33c   : > { %8132 = vmatpush1.bf16.msra.mxu0 %v11783_v58  ;;  %v11769_v58 = vld [vmem:[%s12295_s26 + $0x59c] ss:$100 sps:$4 sm:$0xff]  }
 0x33d   : > { %8133 = vmatprep.subr.bf16.mxu0 %v12189_v1 }
 0x33e   : > { %6442 = vmatmul.mubr.bf16.gmra.mrb[80].mxu1 %v11688_v59  ;;  %v11771_v59 = vld [vmem:[%s12295_s26 + $0xf2c] ss:$100 sps:$4 sm:$0xff]  }
 0x33f   : > { %7962 = vmatmul.mubr.bf16.gmra.mrb[28].mxu0 %v11689_v60  ;;  %6449 = vmatprep.mubr.bf16.mxu1 %v11690_v61  ;;  %v11860_v60 = vld [vmem:[%s13957_s1 + $0x2e0] sm:$0xff]   ;;  %v11873_v61 = vld [vmem:[%s13957_s1 + $0x2e8] sm:$0xff]  }
 0x340   : > { %7969 = vmatprep.mubr.bf16.mxu0 %v11692_v62  ;;  %8134 = vmatpush1.bf16.msra.mxu0 %v11797_v63  ;;  %v11774_v62 = vld [vmem:[%s12295_s26 + $0x598] ss:$100 sps:$4 sm:$0xff]   ;;  %v11775_v63 = vld [vmem:[%s12295_s26 + $0xf28] ss:$100 sps:$4 sm:$0xff]  }
 0x341   : > { %8135 = vmatprep.subr.bf16.mxu0 %v12189_v1 }
 0x344   : > { %8136 = vmatpush1.bf16.msra.mxu0 %v11805_v0  ;;  %v11777_v0 = vld [vmem:[%s12295_s26 + $0x664] ss:$100 sps:$4 sm:$0xff]  }
 0x345   : > { %9608 = vmatprep.subr.bf16.mxu0 %v12190_v11 }
 0x346   : > { %6450 = vmatmul.mubr.bf16.gmra.mrb[84].mxu1 %v11694_v2  ;;  %v11779_v2 = vld [vmem:[%s12295_s26 + $0xff4] ss:$100 sps:$4 sm:$0xff]  }
 0x347   : > { %7970 = vmatmul.mubr.bf16.gmra.mrb[32].mxu0 %v11695_v3  ;;  %6457 = vmatprep.mubr.bf16.mxu1 %v11698_v4  ;;  %v11880_v3 = vld [vmem:[%s13957_s1 + $0x2f0] sm:$0xff]   ;;  %v11781_v4 = vld [vmem:[%s12295_s26 + $0x660] ss:$100 sps:$4 sm:$0xff]  }
 0x348   : > { %7977 = vmatprep.mubr.bf16.mxu0 %v11700_v5  ;;  %v11782_v5 = vld [vmem:[%s12295_s26 + $0xff0] ss:$100 sps:$4 sm:$0xff]  }
 0x34e   : > { %6458 = vmatmul.mubr.bf16.gmra.mrb[88].mxu1 %v11702_v6  ;;  %v11785_v6 = vld [vmem:[%s12295_s26 + $0x72c] ss:$100 sps:$4 sm:$0xff]  }
 0x34f   : > { %7978 = vmatmul.mubr.bf16.gmra.mrb[36].mxu0 %v11703_v7  ;;  %6465 = vmatprep.mubr.bf16.mxu1 %v11706_v8  ;;  %v11787_v7 = vld [vmem:[%s12295_s26 + $0x10bc] ss:$100 sps:$4 sm:$0xff]  }
 0x350   : > { %7985 = vmatprep.mubr.bf16.mxu0 %v11708_v9  ;;  %v11892_v8 = vld [vmem:[%s13957_s1 + $0x2f8] sm:$0xff]   ;;  %v11789_v9 = vld [vmem:[%s12295_s26 + $0x728] ss:$100 sps:$4 sm:$0xff]  }
 0x356   : > { %6466 = vmatmul.mubr.bf16.gmra.mrb[92].mxu1 %v11710_v12  ;;  %v11791_v12 = vld [vmem:[%s12295_s26 + $0x7f4] ss:$100 sps:$4 sm:$0xff]  }
 0x357   : > { %7986 = vmatmul.mubr.bf16.gmra.mrb[40].mxu0 %v11711_v13  ;;  %6473 = vmatprep.mubr.bf16.mxu1 %v9338_v14  ;;  %v11793_v13 = vld [vmem:[%s12295_s26 + $0x1184] ss:$100 sps:$4 sm:$0xff]   ;;  %v11795_v14 = vld [vmem:[%s12295_s26 + $0x7f0] ss:$100 sps:$4 sm:$0xff]  }
 0x358   : > { %7993 = vmatprep.mubr.bf16.mxu0 %v11713_v15  ;;  %v11796_v15 = vld [vmem:[%s12295_s26 + $0x1180] ss:$100 sps:$4 sm:$0xff]  }
 0x35e   : > { %6474 = vmatmul.mubr.bf16.gmra.mrb[96].mxu1 %v9337_v16  ;;  %v11799_v16 = vld [vmem:[%s12295_s26 + $0x8bc] ss:$100 sps:$4 sm:$0xff]  }
 0x35f   : > { %7994 = vmatmul.mubr.bf16.gmra.mrb[44].mxu0 %v11716_v17  ;;  %6513 = vmatprep.mubr.bf16.mxu1 %v11721_v18  ;;  %v11801_v17 = vld [vmem:[%s12295_s26 + $0x124c] ss:$100 sps:$4 sm:$0xff]  }
 0x360   : > { %8001 = vmatprep.mubr.bf16.mxu0 %v11722_v19  ;;  %v812_v18 = vld [vmem:[%s12295_s26 + $0x1310] sm:$0xff]  ;;  %v11803_v19 = vld [vmem:[%s12295_s26 + $0x8b8] ss:$100 sps:$4 sm:$0xff]  }
 0x366   : > { %6514 = vmatmul.mubr.bf16.vlgmr.msra.gmra.mrb[0].mxu1 %v11719_v20  ;;  %v11804_v20 = vld [vmem:[%s12295_s26 + $0x1248] ss:$100 sps:$4 sm:$0xff]  }
 0x367   : > { %8002 = vmatmul.mubr.bf16.gmra.mrb[48].mxu0 %v11724_v21  ;;  %6521 = vmatprep.mubr.bf16.mxu1 %v11726_v22  ;;  %v11806_v21 = vld [vmem:[%s12295_s26 + $0x984] ss:$100 sps:$4 sm:$0xff]   ;;  %v9352_v22 = vcombine.high %v812_v18, %v812_v18 }
 0x368   : > { %6714 = vmatpush1.bf16.msra.mxu1 %v11728_v23  ;;  %8009 = vmatprep.mubr.bf16.mxu0 %v11729_v24  ;;  %v11810_v23 = vld [vmem:[%s12295_s26 + $0x980] ss:$100 sps:$4 sm:$0xff]   ;;  %v9351_v24 = vcombine.low %v812_v18, %v812_v18  ;;  %v11893_v18 = vld [vmem:[%s12295_s26 + $0x28] ss:$100 sps:$4 sm:$0xff]  }
 0x369   : > { %6715 = vmatprep.subr.bf16.mxu1 %v12189_v1 }
 0x36c   : > { %6716 = vmatpush1.bf16.msra.mxu1 %v11740_v25  ;;  %v11812_v25 = vld [vmem:[%s12295_s26 + $0xa4c] ss:$100 sps:$4 sm:$0xff]  }
 0x36d   : > { %6717 = vmatprep.subr.bf16.mxu1 %v12189_v1 }
 0x36e   : > { %6522 = vmatmul.mubr.bf16.gmra.mrb[4].mxu1 %v11731_v26  ;;  %v11816_v26 = vld [vmem:[%s12295_s26 + $0x5c] ss:$100 sps:$4 sm:$0xff]  }
 0x36f   : > { %8010 = vmatmul.mubr.bf16.gmra.mrb[52].mxu0 %v11732_v27  ;;  %6529 = vmatprep.mubr.bf16.mxu1 %v11733_v28  ;;  %v11817_v27 = vld [vmem:[%s12295_s26 + $0xa48] ss:$100 sps:$4 sm:$0xff]   ;;  %v11814_v28 = vld [vmem:[%s12295_s26 + $0x58] ss:$100 sps:$4 sm:$0xff]  }
 0x370   : > { %8017 = vmatprep.mubr.bf16.mxu0 %v11735_v29  ;;  %6718 = vmatpush1.bf16.msra.mxu1 %v11753_v30  ;;  %v11820_v29 = vld [vmem:[%s12295_s26 + $0xb14] ss:$100 sps:$4 sm:$0xff]   ;;  %v11818_v30 = vld [vmem:[%s13957_s1 + $0x600] sm:$0xff]  }
 0x371   : > { %6719 = vmatprep.subr.bf16.mxu1 %v12189_v1 }
 0x374   : > { %6720 = vmatpush1.bf16.msra.mxu1 %v11762_v31  ;;  %v11822_v31 = vld [vmem:[%s12295_s26 + $0x124] ss:$100 sps:$4 sm:$0xff]  }
 0x375   : > { %6721 = vmatprep.subr.bf16.mxu1 %v12189_v1 }
 0x376   : > { %6530 = vmatmul.mubr.bf16.gmra.mrb[8].mxu1 %v11737_v32  ;;  %v11859_v32 = vld [vmem:[%s13957_s1 + $0x608] sm:$0xff]  }
 0x377   : > { %8018 = vmatmul.mubr.bf16.gmra.mrb[56].mxu0 %v11738_v33  ;;  %6537 = vmatprep.mubr.bf16.mxu1 %v11741_v34  ;;  %v11824_v33 = vld [vmem:[%s12295_s26 + $0xb10] ss:$100 sps:$4 sm:$0xff]   ;;  %v11825_v34 = vld [vmem:[%s12295_s26 + $0x120] ss:$100 sps:$4 sm:$0xff]  }
 0x378   : > { %8025 = vmatprep.mubr.bf16.mxu0 %v11743_v35  ;;  %6722 = vmatpush1.bf16.msra.mxu1 %v11776_v36  ;;  %v11826_v35 = vld [vmem:[%s12295_s26 + $0xbdc] ss:$100 sps:$4 sm:$0xff]   ;;  %v11828_v36 = vld [vmem:[%s12295_s26 + $0x1ec] ss:$100 sps:$4 sm:$0xff]  }
 0x379   : > { %6723 = vmatprep.subr.bf16.mxu1 %v12189_v1 }
 0x37c   : > { %6724 = vmatpush1.bf16.msra.mxu1 %v11784_v37  ;;  %v11899_v37 = vld [vmem:[%s13957_s1 + $0x610] sm:$0xff]  }
 0x37d   : > { %6725 = vmatprep.subr.bf16.mxu1 %v12189_v1 }
 0x37e   : > { %6538 = vmatmul.mubr.bf16.gmra.mrb[12].mxu1 %v11745_v38  ;;  %v11830_v38 = vld [vmem:[%s12295_s26 + $0xbd8] ss:$100 sps:$4 sm:$0xff]  }
 0x37f   : > { %8026 = vmatmul.mubr.bf16.gmra.mrb[60].mxu0 %v11746_v39  ;;  %6545 = vmatprep.mubr.bf16.mxu1 %v11748_v40  ;;  %v11832_v39 = vld [vmem:[%s12295_s26 + $0x1e8] ss:$100 sps:$4 sm:$0xff]  }
 0x380   : > { %8033 = vmatprep.mubr.bf16.mxu0 %v11750_v41  ;;  %6726 = vmatpush1.bf16.msra.mxu1 %v11798_v42  ;;  %v11833_v40 = vld [vmem:[%s12295_s26 + $0xca4] ss:$100 sps:$4 sm:$0xff]   ;;  %v11835_v41 = vld [vmem:[%s12295_s26 + $0x2b4] ss:$100 sps:$4 sm:$0xff]  }
 0x381   : > { %6727 = vmatprep.subr.bf16.mxu1 %v12189_v1  ;;  %v11940_v42 = vld [vmem:[%s13957_s1 + $0x618] sm:$0xff]  }
 0x384   : > { %6728 = vmatpush1.bf16.msra.mxu1 %v11808_v43  ;;  %v11837_v43 = vld [vmem:[%s12295_s26 + $0xca0] ss:$100 sps:$4 sm:$0xff]  }
 0x385   : > { %6729 = vmatprep.subr.bf16.mxu1 %v12189_v1 }
 0x386   : > { %6546 = vmatmul.mubr.bf16.gmra.mrb[16].mxu1 %v11752_v44  ;;  %v11838_v44 = vld [vmem:[%s12295_s26 + $0x2b0] ss:$100 sps:$4 sm:$0xff]  }
 0x387   : > { %8034 = vmatmul.mubr.bf16.gmra.mrb[64].mxu0 %v11754_v45  ;;  %6553 = vmatprep.mubr.bf16.mxu1 %v11755_v46  ;;  %v11840_v45 = vld [vmem:[%s12295_s26 + $0xd6c] ss:$100 sps:$4 sm:$0xff]   ;;  %v11842_v46 = vld [vmem:[%s12295_s26 + $0x37c] ss:$100 sps:$4 sm:$0xff]  }
 0x388   : > { %8041 = vmatprep.mubr.bf16.mxu0 %v11757_v47  ;;  %6730 = vmatpush1.bf16.msra.mxu1 %v11819_v48  ;;  %v11844_v47 = vld [vmem:[%s12295_s26 + $0xd68] ss:$100 sps:$4 sm:$0xff]   ;;  %v11845_v48 = vld [vmem:[%s12295_s26 + $0x378] ss:$100 sps:$4 sm:$0xff]  }
 0x389   : > { %6731 = vmatprep.subr.bf16.mxu1 %v12189_v1 }
 0x38c   : > { %6732 = vmatpush1.bf16.msra.mxu1 %v11831_v49  ;;  %v11846_v49 = vld [vmem:[%s12295_s26 + $0xe34] ss:$100 sps:$4 sm:$0xff]  }
 0x38d   : > { %6733 = vmatprep.subr.bf16.mxu1 %v12189_v1 }
 0x38e   : > { %6554 = vmatmul.mubr.bf16.gmra.mrb[20].mxu1 %v11759_v50  ;;  %v11848_v50 = vld [vmem:[%s12295_s26 + $0x444] ss:$100 sps:$4 sm:$0xff]  }
 0x38f   : > { %8042 = vmatmul.mubr.bf16.gmra.mrb[68].mxu0 %v11760_v51  ;;  %6561 = vmatprep.mubr.bf16.mxu1 %v11763_v52  ;;  %v11850_v51 = vld [vmem:[%s12295_s26 + $0xe30] ss:$100 sps:$4 sm:$0xff]   ;;  %v11851_v52 = vld [vmem:[%s12295_s26 + $0x440] ss:$100 sps:$4 sm:$0xff]  }
 0x390   : > { %8049 = vmatprep.mubr.bf16.mxu0 %v11765_v53  ;;  %6734 = vmatpush1.bf16.msra.mxu1 %v11839_v54  ;;  %v11853_v53 = vld [vmem:[%s12295_s26 + $0xefc] ss:$100 sps:$4 sm:$0xff]   ;;  %v11855_v54 = vld [vmem:[%s12295_s26 + $0x50c] ss:$100 sps:$4 sm:$0xff]  }
 0x391   : > { %6735 = vmatprep.subr.bf16.mxu1 %v12189_v1 }
 0x394   : > { %6736 = vmatpush1.bf16.msra.mxu1 %v11852_v55  ;;  %v11857_v55 = vld [vmem:[%s12295_s26 + $0xef8] ss:$100 sps:$4 sm:$0xff]  }
 0x395   : > { %6737 = vmatprep.subr.bf16.mxu1 %v12189_v1 }
 0x396   : > { %6562 = vmatmul.mubr.bf16.gmra.mrb[24].mxu1 %v11767_v56  ;;  %v11858_v56 = vld [vmem:[%s12295_s26 + $0x508] ss:$100 sps:$4 sm:$0xff]  }
 0x397   : > { %8050 = vmatmul.mubr.bf16.gmra.mrb[72].mxu0 %v11768_v57  ;;  %6569 = vmatprep.mubr.bf16.mxu1 %v11769_v58  ;;  %v11861_v57 = vld [vmem:[%s12295_s26 + $0xfc4] ss:$100 sps:$4 sm:$0xff]   ;;  %v11863_v58 = vld [vmem:[%s12295_s26 + $0x5d4] ss:$100 sps:$4 sm:$0xff]  }
 0x398   : > { %8057 = vmatprep.mubr.bf16.mxu0 %v11771_v59  ;;  %6738 = vmatpush1.bf16.msra.mxu1 %v11860_v60  ;;  %v11865_v59 = vld [vmem:[%s12295_s26 + $0xfc0] ss:$100 sps:$4 sm:$0xff]   ;;  %v11866_v60 = vld [vmem:[%s12295_s26 + $0x5d0] ss:$100 sps:$4 sm:$0xff]  }
 0x399   : > { %6739 = vmatprep.subr.bf16.mxu1 %v12189_v1 }
 0x39c   : > { %6740 = vmatpush1.bf16.msra.mxu1 %v11873_v61  ;;  %v11867_v61 = vld [vmem:[%s12295_s26 + $0x108c] ss:$100 sps:$4 sm:$0xff]  }
 0x39d   : > { %6741 = vmatprep.subr.bf16.mxu1 %v12189_v1 }
 0x39e   : > { %6570 = vmatmul.mubr.bf16.gmra.mrb[28].mxu1 %v11774_v62  ;;  %v11869_v62 = vld [vmem:[%s12295_s26 + $0x69c] ss:$100 sps:$4 sm:$0xff]  }
 0x39f   : > { %8058 = vmatmul.mubr.bf16.gmra.mrb[76].mxu0 %v11775_v63  ;;  %6577 = vmatprep.mubr.bf16.mxu1 %v11777_v0  ;;  %v11871_v63 = vld [vmem:[%s12295_s26 + $0x1088] ss:$100 sps:$4 sm:$0xff]   ;;  %v11872_v0 = vld [vmem:[%s12295_s26 + $0x698] ss:$100 sps:$4 sm:$0xff]  }
 0x3a0   : > { %8065 = vmatprep.mubr.bf16.mxu0 %v11779_v2  ;;  %6742 = vmatpush1.bf16.msra.mxu1 %v11880_v3  ;;  %v11874_v2 = vld [vmem:[%s12295_s26 + $0x1154] ss:$100 sps:$4 sm:$0xff]   ;;  %v11876_v3 = vld [vmem:[%s12295_s26 + $0x764] ss:$100 sps:$4 sm:$0xff]  }
 0x3a1   : > { %6743 = vmatprep.subr.bf16.mxu1 %v12189_v1 }
 0x3a4   : > { %6744 = vmatpush1.bf16.msra.mxu1 %v11892_v8  ;;  %v806_v8 = vld [vmem:[%s12295_s26 + $0x12e0] sm:$0xff] }
 0x3a5   : > { %9716 = vmatprep.subr.bf16.mxu1 %v12189_v1 }
 0x3a6   : > { %6578 = vmatmul.mubr.bf16.gmra.mrb[32].mxu1 %v11781_v4  ;;  %v11878_v4 = vld [vmem:[%s12295_s26 + $0x1150] ss:$100 sps:$4 sm:$0xff]  }
 0x3a7   : > { %8066 = vmatmul.mubr.bf16.gmra.mrb[80].mxu0 %v11782_v5  ;;  %6585 = vmatprep.mubr.bf16.mxu1 %v11785_v6  ;;  %v11879_v5 = vld [vmem:[%s12295_s26 + $0x760] ss:$100 sps:$4 sm:$0xff]  }
 0x3a8   : > { %8073 = vmatprep.mubr.bf16.mxu0 %v11787_v7  ;;  %v11881_v6 = vld [vmem:[%s12295_s26 + $0x121c] ss:$100 sps:$4 sm:$0xff]   ;;  %v11883_v7 = vld [vmem:[%s12295_s26 + $0x82c] ss:$100 sps:$4 sm:$0xff]  }
 0x3ae   : > { %6586 = vmatmul.mubr.bf16.gmra.mrb[36].mxu1 %v11789_v9  ;;  %v11885_v9 = vld [vmem:[%s12295_s26 + $0x1218] ss:$100 sps:$4 sm:$0xff]  }
 0x3af   : > { %8074 = vmatmul.mubr.bf16.gmra.mrb[84].mxu0 %v11790_v10  ;;  %6593 = vmatprep.mubr.bf16.mxu1 %v11791_v12  ;;  %v11886_v10 = vld [vmem:[%s12295_s26 + $0x828] ss:$100 sps:$4 sm:$0xff]   ;;  %v9340_v12 = vcombine.high %v806_v8, %v806_v8 }
 0x3b0   : > { %8081 = vmatprep.mubr.bf16.mxu0 %v11793_v13  ;;  %v11888_v13 = vld [vmem:[%s12295_s26 + $0x8f4] ss:$100 sps:$4 sm:$0xff]  }
 0x3b6   : > { %6594 = vmatmul.mubr.bf16.gmra.mrb[40].mxu1 %v11795_v14  ;;  %v9339_v14 = vcombine.low %v806_v8, %v806_v8  ;;  %v11955_v8 = vld [vmem:[%s12295_s26 + $0x7fc] ss:$100 sps:$4 sm:$0xff]  }
 0x3b7   : > { %8082 = vmatmul.mubr.bf16.gmra.mrb[88].mxu0 %v11796_v15  ;;  %6601 = vmatprep.mubr.bf16.mxu1 %v11799_v16  ;;  %v11891_v15 = vld [vmem:[%s12295_s26 + $0x8f0] ss:$100 sps:$4 sm:$0xff]  }
 0x3b8   : > { %8089 = vmatprep.mubr.bf16.mxu0 %v11801_v17  ;;  %v11895_v16 = vld [vmem:[%s12295_s26 + $0x2c] ss:$100 sps:$4 sm:$0xff]   ;;  %v11896_v17 = vld [vmem:[%s12295_s26 + $0x9bc] ss:$100 sps:$4 sm:$0xff]  }
 0x3be   : > { %6602 = vmatmul.mubr.bf16.gmra.mrb[44].mxu1 %v11803_v19  ;;  %v11898_v19 = vld [vmem:[%s12295_s26 + $0x9b8] ss:$100 sps:$4 sm:$0xff]  }
 0x3bf   : > { %8090 = vmatmul.mubr.bf16.gmra.mrb[92].mxu0 %v11804_v20  ;;  %6609 = vmatprep.mubr.bf16.mxu1 %v11806_v21  ;;  %v11900_v20 = vld [vmem:[%s12295_s26 + $0xf4] ss:$100 sps:$4 sm:$0xff]   ;;  %v11902_v21 = vld [vmem:[%s12295_s26 + $0xa84] ss:$100 sps:$4 sm:$0xff]  }
 0x3c0   : > { %8097 = vmatprep.mubr.bf16.mxu0 %v9352_v22  ;;  %v12165_v22 = vld [vmem:[%s13957_s1 + $0x300] sm:$0xff]  }
 0x3c6   : > { %6610 = vmatmul.mubr.bf16.gmra.mrb[48].mxu1 %v11810_v23  ;;  %v11904_v23 = vld [vmem:[%s12295_s26 + $0xf0] ss:$100 sps:$4 sm:$0xff]  }
 0x3c7   : > { %8098 = vmatmul.mubr.bf16.gmra.mrb[96].mxu0 %v9351_v24  ;;  %6617 = vmatprep.mubr.bf16.mxu1 %v11812_v25  ;;  %v11905_v24 = vld [vmem:[%s12295_s26 + $0xa80] ss:$100 sps:$4 sm:$0xff]  }
 0x3c8   : > { %8137 = vmatprep.mubr.bf16.mxu0 %v11816_v26  ;;  %v11906_v25 = vld [vmem:[%s12295_s26 + $0x1bc] ss:$100 sps:$4 sm:$0xff]   ;;  %v11908_v26 = vld [vmem:[%s12295_s26 + $0xb4c] ss:$100 sps:$4 sm:$0xff]  }
 0x3ce   : > { %6618 = vmatmul.mubr.bf16.gmra.mrb[52].mxu1 %v11817_v27  ;;  %v12166_v27 = vld [vmem:[%s13957_s1 + $0x308] sm:$0xff]  }
 0x3cf   : > { %8138 = vmatmul.mubr.bf16.vlgmr.msra.gmra.mrb[0].mxu0 %v11814_v28  ;;  %6625 = vmatprep.mubr.bf16.mxu1 %v11820_v29  ;;  %v12167_v28 = vld [vmem:[%s13957_s1 + $0x310] sm:$0xff]   ;;  %v11910_v29 = vld [vmem:[%s12295_s26 + $0x1b8] ss:$100 sps:$4 sm:$0xff]  }
 0x3d0   : > { %9609 = vmatpush3.bf16.msra.mxu0 %v11818_v30  ;;  %8145 = vmatprep.mubr.bf16.mxu0 %v11822_v31  ;;  %v11911_v30 = vld [vmem:[%s12295_s26 + $0xb48] ss:$100 sps:$4 sm:$0xff]  }
 0x3d1   : > { %9610 = vmatprep.subr.bf16.mxu0 %v12190_v11  ;;  %v11912_v31 = vld [vmem:[%s12295_s26 + $0x284] ss:$100 sps:$4 sm:$0xff]  }
 0x3d4   : > { %9611 = vmatpush3.bf16.msra.mxu0 %v11859_v32  ;;  %v11914_v32 = vld [vmem:[%s12295_s26 + $0xc14] ss:$100 sps:$4 sm:$0xff]  }
 0x3d5   : > { %9612 = vmatprep.subr.bf16.mxu0 %v12190_v11 }
 0x3d6   : > { %6626 = vmatmul.mubr.bf16.gmra.mrb[56].mxu1 %v11824_v33  ;;  %v12168_v33 = vld [vmem:[%s13957_s1 + $0x318] sm:$0xff]  }
 0x3d7   : > { %8146 = vmatmul.mubr.bf16.gmra.mrb[4].mxu0 %v11825_v34  ;;  %6633 = vmatprep.mubr.bf16.mxu1 %v11826_v35  ;;  %v12169_v34 = vld [vmem:[%s13957_s1 + $0x320] sm:$0xff]  }
 0x3d8   : > { %8153 = vmatprep.mubr.bf16.mxu0 %v11828_v36  ;;  %9613 = vmatpush3.bf16.msra.mxu0 %v11899_v37  ;;  %v11916_v35 = vld [vmem:[%s12295_s26 + $0x280] ss:$100 sps:$4 sm:$0xff]   ;;  %v11917_v36 = vld [vmem:[%s12295_s26 + $0xc10] ss:$100 sps:$4 sm:$0xff]  }
 0x3d9   : > { %9614 = vmatprep.subr.bf16.mxu0 %v12190_v11  ;;  %v11918_v37 = vld [vmem:[%s12295_s26 + $0x34c] ss:$100 sps:$4 sm:$0xff]  }
 0x3dc   : > { %9615 = vmatpush3.bf16.msra.mxu0 %v11940_v42  ;;  %v11923_v42 = vld [vmem:[%s12295_s26 + $0xcd8] ss:$100 sps:$4 sm:$0xff]  }
 0x3de   : > { %6634 = vmatmul.mubr.bf16.gmra.mrb[60].mxu1 %v11830_v38  ;;  %v11920_v38 = vld [vmem:[%s12295_s26 + $0xcdc] ss:$100 sps:$4 sm:$0xff]  }
 0x3df   : > { %8154 = vmatmul.mubr.bf16.gmra.mrb[8].mxu0 %v11832_v39  ;;  %6641 = vmatprep.mubr.bf16.mxu1 %v11833_v40  ;;  %v12170_v39 = vld [vmem:[%s13957_s1 + $0x328] sm:$0xff]   ;;  %v12171_v40 = vld [vmem:[%s13957_s1 + $0x330] sm:$0xff]  }
 0x3e0   : > { %8161 = vmatprep.mubr.bf16.mxu0 %v11835_v41  ;;  %v11922_v41 = vld [vmem:[%s12295_s26 + $0x348] ss:$100 sps:$4 sm:$0xff]  }
 0x3e6   : > { %6642 = vmatmul.mubr.bf16.gmra.mrb[64].mxu1 %v11837_v43  ;;  %v11924_v43 = vld [vmem:[%s12295_s26 + $0x414] ss:$100 sps:$4 sm:$0xff]  }
 0x3e7   : > { %8162 = vmatmul.mubr.bf16.gmra.mrb[12].mxu0 %v11838_v44  ;;  %6649 = vmatprep.mubr.bf16.mxu1 %v11840_v45  ;;  %v11926_v44 = vld [vmem:[%s12295_s26 + $0xda4] ss:$100 sps:$4 sm:$0xff]   ;;  %v12172_v45 = vld [vmem:[%s13957_s1 + $0x338] sm:$0xff]  }
 0x3e8   : > { %8169 = vmatprep.mubr.bf16.mxu0 %v11842_v46  ;;  %v12173_v46 = vld [vmem:[%s13957_s1 + $0x340] sm:$0xff]  }
 0x3ee   : > { %6650 = vmatmul.mubr.bf16.gmra.mrb[68].mxu1 %v11844_v47  ;;  %v11928_v47 = vld [vmem:[%s12295_s26 + $0x410] ss:$100 sps:$4 sm:$0xff]  }
 0x3ef   : > { %8170 = vmatmul.mubr.bf16.gmra.mrb[16].mxu0 %v11845_v48  ;;  %6657 = vmatprep.mubr.bf16.mxu1 %v11846_v49  ;;  %v11929_v48 = vld [vmem:[%s12295_s26 + $0xda0] ss:$100 sps:$4 sm:$0xff]  }
 0x3f0   : > { %8177 = vmatprep.mubr.bf16.mxu0 %v11848_v50  ;;  %v11930_v49 = vld [vmem:[%s12295_s26 + $0x4dc] ss:$100 sps:$4 sm:$0xff]   ;;  %v11932_v50 = vld [vmem:[%s12295_s26 + $0xe6c] ss:$100 sps:$4 sm:$0xff]  }
 0x3f6   : > { %6658 = vmatmul.mubr.bf16.gmra.mrb[72].mxu1 %v11850_v51  ;;  %v12174_v51 = vld [vmem:[%s13957_s1 + $0x348] sm:$0xff]  }
 0x3f7   : > { %8178 = vmatmul.mubr.bf16.gmra.mrb[20].mxu0 %v11851_v52  ;;  %6665 = vmatprep.mubr.bf16.mxu1 %v11853_v53  ;;  %v12175_v52 = vld [vmem:[%s13957_s1 + $0x350] sm:$0xff]   ;;  %v11934_v53 = vld [vmem:[%s12295_s26 + $0x4d8] ss:$100 sps:$4 sm:$0xff]  }
 0x3f8   : > { %8185 = vmatprep.mubr.bf16.mxu0 %v11855_v54  ;;  %v11935_v54 = vld [vmem:[%s12295_s26 + $0xe68] ss:$100 sps:$4 sm:$0xff]  }
 0x3fe   : > { %6666 = vmatmul.mubr.bf16.gmra.mrb[76].mxu1 %v11857_v55  ;;  %v11936_v55 = vld [vmem:[%s12295_s26 + $0x5a4] ss:$100 sps:$4 sm:$0xff]  }
 0x3ff   : > { %8186 = vmatmul.mubr.bf16.gmra.mrb[24].mxu0 %v11858_v56  ;;  %6673 = vmatprep.mubr.bf16.mxu1 %v11861_v57  ;;  %v11938_v56 = vld [vmem:[%s12295_s26 + $0xf34] ss:$100 sps:$4 sm:$0xff]  }
 0x400   : > { %8193 = vmatprep.mubr.bf16.mxu0 %v11863_v58  ;;  %v12176_v57 = vld [vmem:[%s13957_s1 + $0x358] sm:$0xff]   ;;  %v12177_v58 = vld [vmem:[%s13957_s1 + $0x360] sm:$0xff]  }
 0x406   : > { %6674 = vmatmul.mubr.bf16.gmra.mrb[80].mxu1 %v11865_v59  ;;  %v11941_v59 = vld [vmem:[%s12295_s26 + $0x5a0] ss:$100 sps:$4 sm:$0xff]  }
 0x407   : > { %8194 = vmatmul.mubr.bf16.gmra.mrb[28].mxu0 %v11866_v60  ;;  %6681 = vmatprep.mubr.bf16.mxu1 %v11867_v61  ;;  %v11942_v60 = vld [vmem:[%s12295_s26 + $0xf30] ss:$100 sps:$4 sm:$0xff]  }
 0x408   : > { %8201 = vmatprep.mubr.bf16.mxu0 %v11869_v62  ;;  %v11943_v61 = vld [vmem:[%s12295_s26 + $0x66c] ss:$100 sps:$4 sm:$0xff]   ;;  %v11945_v62 = vld [vmem:[%s12295_s26 + $0xffc] ss:$100 sps:$4 sm:$0xff]  }
 0x40e   : > { %6682 = vmatmul.mubr.bf16.gmra.mrb[84].mxu1 %v11871_v63  ;;  %v12178_v63 = vld [vmem:[%s13957_s1 + $0x368] sm:$0xff]  }
 0x40f   : > { %8202 = vmatmul.mubr.bf16.gmra.mrb[32].mxu0 %v11872_v0  ;;  %6689 = vmatprep.mubr.bf16.mxu1 %v11874_v2  ;;  %v12179_v0 = vld [vmem:[%s13957_s1 + $0x370] sm:$0xff]   ;;  %v11947_v2 = vld [vmem:[%s12295_s26 + $0x668] ss:$100 sps:$4 sm:$0xff]  }
 0x410   : > { %8209 = vmatprep.mubr.bf16.mxu0 %v11876_v3  ;;  %v11948_v3 = vld [vmem:[%s12295_s26 + $0xff8] ss:$100 sps:$4 sm:$0xff]  }
 0x416   : > { %6690 = vmatmul.mubr.bf16.gmra.mrb[88].mxu1 %v11878_v4  ;;  %v11949_v4 = vld [vmem:[%s12295_s26 + $0x734] ss:$100 sps:$4 sm:$0xff]  }
 0x417   : > { %8210 = vmatmul.mubr.bf16.gmra.mrb[36].mxu0 %v11879_v5  ;;  %6697 = vmatprep.mubr.bf16.mxu1 %v11881_v6  ;;  %v11951_v5 = vld [vmem:[%s12295_s26 + $0x10c4] ss:$100 sps:$4 sm:$0xff]   ;;  %v12180_v6 = vld [vmem:[%s13957_s1 + $0x378] sm:$0xff]  }
 0x418   : > { %8217 = vmatprep.mubr.bf16.mxu0 %v11883_v7  ;;  %v11953_v7 = vld [vmem:[%s12295_s26 + $0x730] ss:$100 sps:$4 sm:$0xff]  }
 0x41e   : > { %6698 = vmatmul.mubr.bf16.gmra.mrb[92].mxu1 %v11885_v9  ;;  %v11957_v9 = vld [vmem:[%s12295_s26 + $0x118c] ss:$100 sps:$4 sm:$0xff]  }
 0x41f   : > { %8218 = vmatmul.mubr.bf16.gmra.mrb[40].mxu0 %v11886_v10  ;;  %6705 = vmatprep.mubr.bf16.mxu1 %v9340_v12  ;;  %v11959_v10 = vld [vmem:[%s12295_s26 + $0x7f8] ss:$100 sps:$4 sm:$0xff]   ;;  %v11960_v12 = vld [vmem:[%s12295_s26 + $0x1188] ss:$100 sps:$4 sm:$0xff]  }
 0x420   : > { %8225 = vmatprep.mubr.bf16.mxu0 %v11888_v13  ;;  %v11961_v13 = vld [vmem:[%s12295_s26 + $0x8c4] ss:$100 sps:$4 sm:$0xff]  }
 0x426   : > { %6706 = vmatmul.mubr.bf16.gmra.mrb[96].mxu1 %v9339_v14  ;;  %v11963_v14 = vld [vmem:[%s12295_s26 + $0x1254] ss:$100 sps:$4 sm:$0xff]  }
 0x427   : > { %8226 = vmatmul.mubr.bf16.gmra.mrb[44].mxu0 %v11891_v15  ;;  %6745 = vmatprep.mubr.bf16.mxu1 %v11895_v16  ;;  %v813_v15 = vld [vmem:[%s12295_s26 + $0x1318] sm:$0xff]  ;;  %v11965_v16 = vld [vmem:[%s12295_s26 + $0x8c0] ss:$100 sps:$4 sm:$0xff]  }
 0x428   : > { %8233 = vmatprep.mubr.bf16.mxu0 %v11896_v17  ;;  %v11966_v17 = vld [vmem:[%s12295_s26 + $0x1250] ss:$100 sps:$4 sm:$0xff]  }
 0x42e   : > { %6746 = vmatmul.mubr.bf16.vlgmr.msra.gmra.mrb[0].mxu1 %v11893_v18  ;;  %v11967_v18 = vld [vmem:[%s12295_s26 + $0x98c] ss:$100 sps:$4 sm:$0xff]  }
 0x42f   : > { %8234 = vmatmul.mubr.bf16.gmra.mrb[48].mxu0 %v11898_v19  ;;  %6753 = vmatprep.mubr.bf16.mxu1 %v11900_v20  ;;  %v9354_v19 = vcombine.high %v813_v15, %v813_v15  ;;  %v11970_v20 = vld [vmem:[%s12295_s26 + $0x988] ss:$100 sps:$4 sm:$0xff]  }
 0x430   : > { %9732 = vmatpush1.bf16.msra.mxu1 %v12165_v22  ;;  %8241 = vmatprep.mubr.bf16.mxu0 %v11902_v21  ;;  %v9353_v21 = vcombine.low %v813_v15, %v813_v15  ;;  %v11972_v22 = vld [vmem:[%s12295_s26 + $0xa54] ss:$100 sps:$4 sm:$0xff]   ;;  %v12035_v15 = vld [vmem:[%s12295_s26 + $0xd7c] ss:$100 sps:$4 sm:$0xff]  }
 0x431   : > { %9717 = vmatprep.subr.bf16.mxu1 %v12189_v1 }
 0x434   : > { %9733 = vmatpush1.bf16.msra.mxu1 %v12166_v27  ;;  %v11979_v27 = vld [vmem:[%s12295_s26 + $0x128] ss:$100 sps:$4 sm:$0xff]  }
 0x435   : > { %9718 = vmatprep.subr.bf16.mxu1 %v12189_v1 }
 0x436   : > { %6754 = vmatmul.mubr.bf16.gmra.mrb[4].mxu1 %v11904_v23  ;;  %v11974_v23 = vld [vmem:[%s12295_s26 + $0xa50] ss:$100 sps:$4 sm:$0xff]  }
 0x437   : > { %8242 = vmatmul.mubr.bf16.gmra.mrb[52].mxu0 %v11905_v24  ;;  %6761 = vmatprep.mubr.bf16.mxu1 %v11906_v25  ;;  %v11975_v24 = vld [vmem:[%s12295_s26 + $0x60] ss:$100 sps:$4 sm:$0xff]  }
 0x438   : > { %8249 = vmatprep.mubr.bf16.mxu0 %v11908_v26  ;;  %9734 = vmatpush1.bf16.msra.mxu1 %v12167_v28  ;;  %v11976_v25 = vld [vmem:[%s12295_s26 + $0xb1c] ss:$100 sps:$4 sm:$0xff]   ;;  %v11980_v28 = vld [vmem:[%s12295_s26 + $0xbe4] ss:$100 sps:$4 sm:$0xff]  }
 0x439   : > { %9719 = vmatprep.subr.bf16.mxu1 %v12189_v1  ;;  %v11978_v26 = vld [vmem:[%s12295_s26 + $0xb18] ss:$100 sps:$4 sm:$0xff]  }
 0x43c   : > { %9735 = vmatpush1.bf16.msra.mxu1 %v12168_v33  ;;  %v11987_v33 = vld [vmem:[%s12295_s26 + $0x2b8] ss:$100 sps:$4 sm:$0xff]  }
 0x43d   : > { %9720 = vmatprep.subr.bf16.mxu1 %v12189_v1 }
 0x43e   : > { %6762 = vmatmul.mubr.bf16.gmra.mrb[8].mxu1 %v11910_v29  ;;  %v11982_v29 = vld [vmem:[%s12295_s26 + $0xbe0] ss:$100 sps:$4 sm:$0xff]  }
 0x43f   : > { %8250 = vmatmul.mubr.bf16.gmra.mrb[56].mxu0 %v11911_v30  ;;  %6769 = vmatprep.mubr.bf16.mxu1 %v11912_v31  ;;  %v11983_v30 = vld [vmem:[%s12295_s26 + $0x1f0] ss:$100 sps:$4 sm:$0xff]  }
 0x440   : > { %8257 = vmatprep.mubr.bf16.mxu0 %v11914_v32  ;;  %9736 = vmatpush1.bf16.msra.mxu1 %v12169_v34  ;;  %v11984_v31 = vld [vmem:[%s12295_s26 + $0xcac] ss:$100 sps:$4 sm:$0xff]   ;;  %v11988_v34 = vld [vmem:[%s12295_s26 + $0xd74] ss:$100 sps:$4 sm:$0xff]  }
 0x441   : > { %9721 = vmatprep.subr.bf16.mxu1 %v12189_v1  ;;  %v11986_v32 = vld [vmem:[%s12295_s26 + $0xca8] ss:$100 sps:$4 sm:$0xff]  }
 0x444   : > { %9737 = vmatpush1.bf16.msra.mxu1 %v12170_v39  ;;  %v11995_v39 = vld [vmem:[%s12295_s26 + $0x448] ss:$100 sps:$4 sm:$0xff]  }
 0x445   : > { %9722 = vmatprep.subr.bf16.mxu1 %v12189_v1 }
 0x446   : > { %6770 = vmatmul.mubr.bf16.gmra.mrb[12].mxu1 %v11916_v35  ;;  %v11990_v35 = vld [vmem:[%s12295_s26 + $0xd70] ss:$100 sps:$4 sm:$0xff]  }
 0x447   : > { %8258 = vmatmul.mubr.bf16.gmra.mrb[60].mxu0 %v11917_v36  ;;  %6777 = vmatprep.mubr.bf16.mxu1 %v11918_v37  ;;  %v11991_v36 = vld [vmem:[%s12295_s26 + $0x380] ss:$100 sps:$4 sm:$0xff]  }
 0x448   : > { %8265 = vmatprep.mubr.bf16.mxu0 %v11920_v38  ;;  %9738 = vmatpush1.bf16.msra.mxu1 %v12171_v40  ;;  %v11992_v37 = vld [vmem:[%s12295_s26 + $0xe3c] ss:$100 sps:$4 sm:$0xff]   ;;  %v11996_v40 = vld [vmem:[%s12295_s26 + $0xf04] ss:$100 sps:$4 sm:$0xff]  }
 0x449   : > { %9723 = vmatprep.subr.bf16.mxu1 %v12189_v1  ;;  %v11994_v38 = vld [vmem:[%s12295_s26 + $0xe38] ss:$100 sps:$4 sm:$0xff]  }
 0x44c   : > { %9739 = vmatpush1.bf16.msra.mxu1 %v12172_v45  ;;  %v12003_v45 = vld [vmem:[%s12295_s26 + $0x5d8] ss:$100 sps:$4 sm:$0xff]  }
 0x44d   : > { %9724 = vmatprep.subr.bf16.mxu1 %v12189_v1 }
 0x44e   : > { %6778 = vmatmul.mubr.bf16.gmra.mrb[16].mxu1 %v11922_v41  ;;  %v11998_v41 = vld [vmem:[%s12295_s26 + $0xf00] ss:$100 sps:$4 sm:$0xff]  }
 0x44f   : > { %8266 = vmatmul.mubr.bf16.gmra.mrb[64].mxu0 %v11923_v42  ;;  %6785 = vmatprep.mubr.bf16.mxu1 %v11924_v43  ;;  %v11999_v42 = vld [vmem:[%s12295_s26 + $0x510] ss:$100 sps:$4 sm:$0xff]  }
 0x450   : > { %8273 = vmatprep.mubr.bf16.mxu0 %v11926_v44  ;;  %9740 = vmatpush1.bf16.msra.mxu1 %v12173_v46  ;;  %v12000_v43 = vld [vmem:[%s12295_s26 + $0xfcc] ss:$100 sps:$4 sm:$0xff]   ;;  %v12004_v46 = vld [vmem:[%s12295_s26 + $0x1094] ss:$100 sps:$4 sm:$0xff]  }
 0x451   : > { %9725 = vmatprep.subr.bf16.mxu1 %v12189_v1  ;;  %v12002_v44 = vld [vmem:[%s12295_s26 + $0xfc8] ss:$100 sps:$4 sm:$0xff]  }
 0x454   : > { %9741 = vmatpush1.bf16.msra.mxu1 %v12174_v51  ;;  %v12011_v51 = vld [vmem:[%s12295_s26 + $0x768] ss:$100 sps:$4 sm:$0xff]  }
 0x455   : > { %9726 = vmatprep.subr.bf16.mxu1 %v12189_v1 }
 0x456   : > { %6786 = vmatmul.mubr.bf16.gmra.mrb[20].mxu1 %v11928_v47  ;;  %v12006_v47 = vld [vmem:[%s12295_s26 + $0x1090] ss:$100 sps:$4 sm:$0xff]  }
 0x457   : > { %8274 = vmatmul.mubr.bf16.gmra.mrb[68].mxu0 %v11929_v48  ;;  %6793 = vmatprep.mubr.bf16.mxu1 %v11930_v49  ;;  %v12007_v48 = vld [vmem:[%s12295_s26 + $0x6a0] ss:$100 sps:$4 sm:$0xff]  }
 0x458   : > { %8281 = vmatprep.mubr.bf16.mxu0 %v11932_v50  ;;  %9742 = vmatpush1.bf16.msra.mxu1 %v12175_v52  ;;  %v12008_v49 = vld [vmem:[%s12295_s26 + $0x115c] ss:$100 sps:$4 sm:$0xff]   ;;  %v12012_v52 = vld [vmem:[%s12295_s26 + $0x1224] ss:$100 sps:$4 sm:$0xff]  }
 0x459   : > { %9727 = vmatprep.subr.bf16.mxu1 %v12189_v1  ;;  %v12010_v50 = vld [vmem:[%s12295_s26 + $0x1158] ss:$100 sps:$4 sm:$0xff]  }
 0x45c   : > { %9743 = vmatpush1.bf16.msra.mxu1 %v12176_v57 }
 0x45d   : > { %9728 = vmatprep.subr.bf16.mxu1 %v12189_v1 }
 0x45e   : > { %6794 = vmatmul.mubr.bf16.gmra.mrb[24].mxu1 %v11934_v53  ;;  %v807_v53 = vld [vmem:[%s12295_s26 + $0x12e8] sm:$0xff] }
 0x45f   : > { %8282 = vmatmul.mubr.bf16.gmra.mrb[72].mxu0 %v11935_v54  ;;  %6801 = vmatprep.mubr.bf16.mxu1 %v11936_v55  ;;  %v12014_v54 = vld [vmem:[%s12295_s26 + $0x1220] ss:$100 sps:$4 sm:$0xff]   ;;  %v12015_v55 = vld [vmem:[%s12295_s26 + $0x830] ss:$100 sps:$4 sm:$0xff]   ;;  %v9341_v57 = vcombine.low %v807_v53, %v807_v53 }
 0x460   : > { %8289 = vmatprep.mubr.bf16.mxu0 %v11938_v56  ;;  %9744 = vmatpush1.bf16.msra.mxu1 %v12177_v58  ;;  %v9342_v56 = vcombine.high %v807_v53, %v807_v53  ;;  %v12018_v58 = vld [vmem:[%s12295_s26 + $0x8f8] ss:$100 sps:$4 sm:$0xff]  }
 0x461   : > { %9729 = vmatprep.subr.bf16.mxu1 %v12189_v1 }
 0x464   : > { %9745 = vmatpush1.bf16.msra.mxu1 %v12178_v63  ;;  %v12025_v63 = vld [vmem:[%s12295_s26 + $0xb20] ss:$100 sps:$4 sm:$0xff]  }
 0x465   : > { %9730 = vmatprep.subr.bf16.mxu1 %v12189_v1 }
 0x466   : > { %6802 = vmatmul.mubr.bf16.gmra.mrb[28].mxu1 %v11941_v59  ;;  %v12021_v59 = vld [vmem:[%s12295_s26 + $0xa5c] ss:$100 sps:$4 sm:$0xff]  }
 0x467   : > { %8290 = vmatmul.mubr.bf16.gmra.mrb[76].mxu0 %v11942_v60  ;;  %6809 = vmatprep.mubr.bf16.mxu1 %v11943_v61  ;;  %v12019_v60 = vld [vmem:[%s12295_s26 + $0xa58] ss:$100 sps:$4 sm:$0xff]   ;;  %v12022_v61 = vld [vmem:[%s12295_s26 + $0x9c0] ss:$100 sps:$4 sm:$0xff]  }
 0x468   : > { %8297 = vmatprep.mubr.bf16.mxu0 %v11945_v62  ;;  %9746 = vmatpush1.bf16.msra.mxu1 %v12179_v0  ;;  %v12023_v62 = vld [vmem:[%s12295_s26 + $0xb24] ss:$100 sps:$4 sm:$0xff]  }
 0x469   : > { %9731 = vmatprep.subr.bf16.mxu1 %v12189_v1  ;;  %v11954_v1 = vld [vmem:[%s12295_s26 + $0x10c0] ss:$100 sps:$4 sm:$0xff]   ;;  %v12026_v0 = vld [vmem:[%s12295_s26 + $0xa88] ss:$100 sps:$4 sm:$0xff]  }
 0x46c   : > { %9747 = vmatpush1.bf16.msra.mxu1 %v12180_v6 }
 0x46e   : > { %6810 = vmatmul.mubr.bf16.gmra.mrb[32].mxu1 %v11947_v2  ;;  %v12027_v2 = vld [vmem:[%s12295_s26 + $0xbec] ss:$100 sps:$4 sm:$0xff]  }
 0x46f   : > { %8298 = vmatmul.mubr.bf16.gmra.mrb[80].mxu0 %v11948_v3  ;;  %6817 = vmatprep.mubr.bf16.mxu1 %v11949_v4 }
 0x470   : > { %8305 = vmatprep.mubr.bf16.mxu0 %v11951_v5  ;;  %v12029_v5 = vld [vmem:[%s12295_s26 + $0xbe8] ss:$100 sps:$4 sm:$0xff]  }
 0x476   : > { %6818 = vmatmul.mubr.bf16.gmra.mrb[36].mxu1 %v11953_v7  ;;  %v12030_v7 = vld [vmem:[%s12295_s26 + $0xb50] ss:$100 sps:$4 sm:$0xff]  }
 0x477   : > { %8306 = vmatmul.mubr.bf16.gmra.mrb[84].mxu0 %v11954_v1  ;;  %6825 = vmatprep.mubr.bf16.mxu1 %v11955_v8  ;;  %v12031_v1 = vld [vmem:[%s12295_s26 + $0xcb4] ss:$100 sps:$4 sm:$0xff]  }
 0x478   : > { %8313 = vmatprep.mubr.bf16.mxu0 %v11957_v9 }
 0x47e   : > { %6826 = vmatmul.mubr.bf16.gmra.mrb[40].mxu1 %v11959_v10 }
 0x47f   : > { %8314 = vmatmul.mubr.bf16.gmra.mrb[88].mxu0 %v11960_v12  ;;  %6833 = vmatprep.mubr.bf16.mxu1 %v11961_v13  ;;  %v12033_v12 = vld [vmem:[%s12295_s26 + $0xcb0] ss:$100 sps:$4 sm:$0xff]  }
 0x480   : > { %8321 = vmatprep.mubr.bf16.mxu0 %v11963_v14  ;;  %v12034_v14 = vld [vmem:[%s12295_s26 + $0xc18] ss:$100 sps:$4 sm:$0xff]  }
 0x486   : > { %6834 = vmatmul.mubr.bf16.gmra.mrb[44].mxu1 %v11965_v16 }
 0x487   : > { %8322 = vmatmul.mubr.bf16.gmra.mrb[92].mxu0 %v11966_v17  ;;  %6841 = vmatprep.mubr.bf16.mxu1 %v11967_v18 }
 0x488   : > { %8329 = vmatprep.mubr.bf16.mxu0 %v9354_v19  ;;  %v12037_v19 = vld [vmem:[%s12295_s26 + $0xd78] ss:$100 sps:$4 sm:$0xff]  }
 0x48e   : > { %6842 = vmatmul.mubr.bf16.gmra.mrb[48].mxu1 %v11970_v20 }
 0x48f   : > { %8330 = vmatmul.mubr.bf16.gmra.mrb[96].mxu0 %v9353_v21  ;;  %6849 = vmatprep.mubr.bf16.mxu1 %v11972_v22  ;;  %v12038_v21 = vld [vmem:[%s12295_s26 + $0xce0] ss:$100 sps:$4 sm:$0xff]  }
 0x490   : > { %9616 = vmatprep.mubr.msk.bf16.mxu0 %vm12191_vm0, %v12190_v11  ;;  %v12039_v22 = vld [vmem:[%s12295_s26 + $0xe44] ss:$100 sps:$4 sm:$0xff]  }
 0x496   : > { %6850 = vmatmul.mubr.bf16.gmra.mrb[52].mxu1 %v11974_v23 }
 0x497   : > { %9617 = vmatmul.mubr.msk.bf16.vlgmr.msra.gmra.mrb[0].mxu0 %vm5477_vm1, %v11975_v24  ;;  %6857 = vmatprep.mubr.bf16.mxu1 %v11976_v25 }
 0x498   : > { %9620 = vmatprep.mubr.msk.bf16.mxu0 %vm12191_vm0, %v12190_v11 }
 0x49e   : > { %6858 = vmatmul.mubr.bf16.gmra.mrb[56].mxu1 %v11978_v26  ;;  %v12041_v26 = vld [vmem:[%s12295_s26 + $0xe40] ss:$100 sps:$4 sm:$0xff]  }
 0x49f   : > { %9621 = vmatmul.mubr.msk.bf16.gmra.mrb[4].mxu0 %vm5477_vm1, %v11979_v27  ;;  %6865 = vmatprep.mubr.bf16.mxu1 %v11980_v28  ;;  %v12042_v28 = vld [vmem:[%s12295_s26 + $0xda8] ss:$100 sps:$4 sm:$0xff]  }
 0x4a0   : > { %9624 = vmatprep.mubr.msk.bf16.mxu0 %vm12191_vm0, %v12190_v11 }
 0x4a6   : > { %6866 = vmatmul.mubr.bf16.gmra.mrb[60].mxu1 %v11982_v29  ;;  %v12043_v29 = vld [vmem:[%s12295_s26 + $0xf0c] ss:$100 sps:$4 sm:$0xff]  }
 0x4a7   : > { %9625 = vmatmul.mubr.msk.bf16.gmra.mrb[8].mxu0 %vm5477_vm1, %v11983_v30  ;;  %6873 = vmatprep.mubr.bf16.mxu1 %v11984_v31 }
 0x4a8   : > { %9628 = vmatprep.mubr.msk.bf16.mxu0 %vm12191_vm0, %v12190_v11 }
 0x4ae   : > { %6874 = vmatmul.mubr.bf16.gmra.mrb[64].mxu1 %v11986_v32 }
 0x4af   : > { %9629 = vmatmul.mubr.msk.bf16.gmra.mrb[12].mxu0 %vm5477_vm1, %v11987_v33  ;;  %6881 = vmatprep.mubr.bf16.mxu1 %v11988_v34  ;;  %v12045_v33 = vld [vmem:[%s12295_s26 + $0xf08] ss:$100 sps:$4 sm:$0xff]  }
 0x4b0   : > { %9632 = vmatprep.mubr.msk.bf16.mxu0 %vm12191_vm0, %v12190_v11 }
 0x4b6   : > { %6882 = vmatmul.mubr.bf16.gmra.mrb[68].mxu1 %v11990_v35  ;;  %v12046_v35 = vld [vmem:[%s12295_s26 + $0xe70] ss:$100 sps:$4 sm:$0xff]  }
 0x4b7   : > { %9633 = vmatmul.mubr.msk.bf16.gmra.mrb[16].mxu0 %vm5477_vm1, %v11991_v36  ;;  %6889 = vmatprep.mubr.bf16.mxu1 %v11992_v37  ;;  %v12047_v36 = vld [vmem:[%s12295_s26 + $0xfd4] ss:$100 sps:$4 sm:$0xff]  }
 0x4b8   : > { %9636 = vmatprep.mubr.msk.bf16.mxu0 %vm12191_vm0, %v12190_v11 }
 0x4be   : > { %6890 = vmatmul.mubr.bf16.gmra.mrb[72].mxu1 %v11994_v38 }
 0x4bf   : > { %9637 = vmatmul.mubr.msk.bf16.gmra.mrb[20].mxu0 %vm5477_vm1, %v11995_v39  ;;  %6897 = vmatprep.mubr.bf16.mxu1 %v11996_v40  ;;  %v12049_v40 = vld [vmem:[%s12295_s26 + $0xfd0] ss:$100 sps:$4 sm:$0xff]  }
 0x4c0   : > { %9640 = vmatprep.mubr.msk.bf16.mxu0 %vm12191_vm0, %v12190_v11 }
 0x4c6   : > { %6898 = vmatmul.mubr.bf16.gmra.mrb[76].mxu1 %v11998_v41 }
 0x4c7   : > { %9641 = vmatmul.mubr.msk.bf16.gmra.mrb[24].mxu0 %vm5477_vm1, %v11999_v42  ;;  %6905 = vmatprep.mubr.bf16.mxu1 %v12000_v43  ;;  %v12050_v42 = vld [vmem:[%s12295_s26 + $0xf38] ss:$100 sps:$4 sm:$0xff]  }
 0x4c8   : > { %9644 = vmatprep.mubr.msk.bf16.mxu0 %vm12191_vm0, %v12190_v11  ;;  %v12051_v43 = vld [vmem:[%s12295_s26 + $0x109c] ss:$100 sps:$4 sm:$0xff]  }
 0x4ce   : > { %6906 = vmatmul.mubr.bf16.gmra.mrb[80].mxu1 %v12002_v44 }
 0x4cf   : > { %9645 = vmatmul.mubr.msk.bf16.gmra.mrb[28].mxu0 %vm5477_vm1, %v12003_v45  ;;  %6913 = vmatprep.mubr.bf16.mxu1 %v12004_v46 }
 0x4d0   : > { %9648 = vmatprep.mubr.msk.bf16.mxu0 %vm12191_vm0, %v12190_v11 }
 0x4d6   : > { %6914 = vmatmul.mubr.bf16.gmra.mrb[84].mxu1 %v12006_v47  ;;  %v12053_v47 = vld [vmem:[%s12295_s26 + $0x1098] ss:$100 sps:$4 sm:$0xff]  }
 0x4d7   : > { %9649 = vmatmul.mubr.msk.bf16.gmra.mrb[32].mxu0 %vm5477_vm1, %v12007_v48  ;;  %6921 = vmatprep.mubr.bf16.mxu1 %v12008_v49  ;;  %v12054_v49 = vld [vmem:[%s12295_s26 + $0x1000] ss:$100 sps:$4 sm:$0xff]  }
 0x4d8   : > { %9652 = vmatprep.mubr.msk.bf16.mxu0 %vm12191_vm0, %v12190_v11 }
 0x4de   : > { %6922 = vmatmul.mubr.bf16.gmra.mrb[88].mxu1 %v12010_v50  ;;  %v12055_v50 = vld [vmem:[%s12295_s26 + $0x1164] ss:$100 sps:$4 sm:$0xff]  }
 0x4df   : > { %9653 = vmatmul.mubr.msk.bf16.gmra.mrb[36].mxu0 %vm5477_vm1, %v12011_v51  ;;  %6929 = vmatprep.mubr.bf16.mxu1 %v12012_v52 }
 0x4e0   : > { %9656 = vmatprep.mubr.msk.bf16.mxu0 %vm12191_vm0, %v12190_v11 }
 0x4e6   : > { %6930 = vmatmul.mubr.bf16.gmra.mrb[92].mxu1 %v12014_v54  ;;  %v12057_v54 = vld [vmem:[%s12295_s26 + $0x1160] ss:$100 sps:$4 sm:$0xff]  }
 0x4e7   : > { %9657 = vmatmul.mubr.msk.bf16.gmra.mrb[40].mxu0 %vm5477_vm1, %v12015_v55  ;;  %6937 = vmatprep.mubr.bf16.mxu1 %v9342_v56  ;;  %v12058_v56 = vld [vmem:[%s12295_s26 + $0x10c8] ss:$100 sps:$4 sm:$0xff]  }
 0x4e8   : > { %9660 = vmatprep.mubr.msk.bf16.mxu0 %vm12191_vm0, %v12190_v11 }
 0x4ee   : > { %6938 = vmatmul.mubr.bf16.gmra.mrb[96].mxu1 %v9341_v57  ;;  %v12059_v57 = vld [vmem:[%s12295_s26 + $0x122c] ss:$100 sps:$4 sm:$0xff]  }
 0x4ef   : > { %9661 = vmatmul.mubr.msk.bf16.gmra.mrb[44].mxu0 %vm5477_vm1, %v12018_v58  ;;  %7081 = vmatprep.mubr.bf16.mxu1 %v12021_v59  ;;  %v808_v59 = vld [vmem:[%s12295_s26 + $0x12f0] sm:$0xff] }
 0x4f0   : > { %9664 = vmatprep.mubr.msk.bf16.mxu0 %vm12191_vm0, %v12190_v11 }
 0x4f6   : > { %7082 = vmatmul.mubr.bf16.vlgmr.msra.gmra.mrb[52].mxu1 %v12019_v60 }
 0x4f7   : > { %9665 = vmatmul.mubr.msk.bf16.gmra.mrb[48].mxu0 %vm5477_vm1, %v12022_v61  ;;  %7089 = vmatprep.mubr.bf16.mxu1 %v12023_v62  ;;  %v12061_v62 = vld [vmem:[%s12295_s26 + $0x1228] ss:$100 sps:$4 sm:$0xff]  }
 0x4f8   : > { %9668 = vmatprep.mubr.msk.bf16.mxu0 %vm12191_vm0, %v12190_v11 }
 0x4fe   : > { %7090 = vmatmul.mubr.bf16.gmra.mrb[56].mxu1 %v12025_v63 }
 0x4ff   : > { %9669 = vmatmul.mubr.msk.bf16.gmra.mrb[52].mxu0 %vm5477_vm1, %v12026_v0  ;;  %7097 = vmatprep.mubr.bf16.mxu1 %v12027_v2  ;;  %v12062_v0 = vld [vmem:[%s12295_s26 + $0x1190] ss:$100 sps:$4 sm:$0xff]   ;;  %v9344_v2 = vcombine.high %v808_v59, %v808_v59 }
 0x500   : > { %9672 = vmatprep.mubr.msk.bf16.mxu0 %vm12191_vm0, %v12190_v11 }
 0x501   : > { %v13706_v3 = vpop.f32.mrb[0].mxu1 }
 0x502   : > { %v6749_v4 = vpop.f32.mrb[1].mxu1 }
 0x503   : > { %v13709_v6 = vpop.f32.mrb[2].mxu1 }
 0x504   : > { %v6752_v8 = vpop.f32.mrb[3].mxu1 }
 0x506   : > { %7098 = vmatmul.mubr.bf16.gmra.mrb[60].mxu1 %v12029_v5 }
 0x507   : > { %9673 = vmatmul.mubr.msk.bf16.gmra.mrb[56].mxu0 %vm5477_vm1, %v12030_v7  ;;  %7105 = vmatprep.mubr.bf16.mxu1 %v12031_v1  ;;  %v9343_v1 = vcombine.low %v808_v59, %v808_v59 }
 0x508   : > { %9676 = vmatprep.mubr.msk.bf16.mxu0 %vm12191_vm0, %v12190_v11 }
 0x509   : > { %v13716_v9 = vpop.f32.mrb[4].mxu1 }
 0x50a   : > { %v6757_v10 = vpop.f32.mrb[5].mxu1 }
 0x50b   : > { %v13719_v13 = vpop.f32.mrb[6].mxu1  ;;  %v12065_v10 = vld [vmem:[%s12295_s26 + $0x1258] ss:$100 sps:$4 sm:$0xff]  }
 0x50c   : > { %v6760_v16 = vpop.f32.mrb[7].mxu1 }
 0x50e   : > { %7106 = vmatmul.mubr.bf16.gmra.mrb[64].mxu1 %v12033_v12 }
 0x50f   : > { %9677 = vmatmul.mubr.msk.bf16.gmra.mrb[60].mxu0 %vm5477_vm1, %v12034_v14  ;;  %7113 = vmatprep.mubr.bf16.mxu1 %v12035_v15 }
 0x510   : > { %9680 = vmatprep.mubr.msk.bf16.mxu0 %vm12191_vm0, %v12190_v11 }
 0x511   : > { %v13726_v17 = vpop.f32.mrb[8].mxu1 }
 0x512   : > { %v6765_v18 = vpop.f32.mrb[9].mxu1 }
 0x513   : > { %v13729_v20 = vpop.f32.mrb[10].mxu1  ;;  %v12066_v18 = vld [vmem:[%s12295_s26 + $0x1320] ss:$0 sps:$4 sm:$0xff]   ;;  %s8729_s26 = sshll.u32 %s13961_s5, 3 }
 0x514   : > { %v6768_v23 = vpop.f32.mrb[11].mxu1  ;;  %s13835_s11 = scalar_lea.vmem %s13959_s3, %s8729_s26 }
 0x516   : > { %7114 = vmatmul.mubr.bf16.gmra.mrb[68].mxu1 %v12037_v19 }
 0x517   : > { %9681 = vmatmul.mubr.msk.bf16.gmra.mrb[64].mxu0 %vm5477_vm1, %v12038_v21  ;;  %7121 = vmatprep.mubr.bf16.mxu1 %v12039_v22 }
 0x518   : > { %9684 = vmatprep.mubr.msk.bf16.mxu0 %vm12191_vm0, %v12190_v11 }
 0x519   : > { %v13736_v24 = vpop.f32.mrb[12].mxu1 }
 0x51a   : > { %v6773_v25 = vpop.f32.mrb[13].mxu1 }
 0x51b   : > { %v13739_v27 = vpop.f32.mrb[14].mxu1 }
 0x51c   : > { %v6776_v30 = vpop.f32.mrb[15].mxu1 }
 0x51d   : > { %v13821_v30 = vld [vmem:[%s13958_s2] ss:$0 sm:$0xff] }
 0x51e   : > { %7122 = vmatmul.mubr.bf16.gmra.mrb[72].mxu1 %v12041_v26 }
 0x51f   : > { %9685 = vmatmul.mubr.msk.bf16.gmra.mrb[68].mxu0 %vm5477_vm1, %v12042_v28  ;;  %7129 = vmatprep.mubr.bf16.mxu1 %v12043_v29 }
 0x520   : > { %9688 = vmatprep.mubr.msk.bf16.mxu0 %vm12191_vm0, %v12190_v11 }
 0x521   : > { %v13746_v31 = vpop.f32.mrb[16].mxu1 }
 0x522   : > { %v6781_v32 = vpop.f32.mrb[17].mxu1 }
 0x523   : > { %v13749_v34 = vpop.f32.mrb[18].mxu1  ;;  %v9748_v32 = vadd.f32 %v13821_v30, %v13706_v3 }
 0x524   : > { %v6784_v37 = vpop.f32.mrb[19].mxu1 }
 0x526   : > { %7130 = vmatmul.mubr.bf16.gmra.mrb[76].mxu1 %v12045_v33 }
 0x527   : > { %9689 = vmatmul.mubr.msk.bf16.gmra.mrb[72].mxu0 %vm5477_vm1, %v12046_v35  ;;  %7137 = vmatprep.mubr.bf16.mxu1 %v12047_v36  ;;  %v9750_v35 = vadd.f32 %v13821_v30, %v13709_v6 }
 0x528   : > { %9692 = vmatprep.mubr.msk.bf16.mxu0 %vm12191_vm0, %v12190_v11 }
 0x529   : > { %v13756_v38 = vpop.f32.mrb[20].mxu1 }
 0x52a   : > { %v6789_v39 = vpop.f32.mrb[21].mxu1 }
 0x52b   : > { %v13759_v41 = vpop.f32.mrb[22].mxu1 }
 0x52c   : > { %v6792_v44 = vpop.f32.mrb[23].mxu1 }
 0x52e   : > { %7138 = vmatmul.mubr.bf16.gmra.mrb[80].mxu1 %v12049_v40 }
 0x52f   : > { %9693 = vmatmul.mubr.msk.bf16.gmra.mrb[76].mxu0 %vm5477_vm1, %v12050_v42  ;;  %7145 = vmatprep.mubr.bf16.mxu1 %v12051_v43  ;;  %v9752_v43 = vadd.f32 %v13821_v30, %v13716_v9 }
 0x530   : > { %9696 = vmatprep.mubr.msk.bf16.mxu0 %vm12191_vm0, %v12190_v11 }
 0x531   : > { %v13766_v45 = vpop.f32.mrb[24].mxu1 }
 0x532   : > { %v6797_v46 = vpop.f32.mrb[25].mxu1 }
 0x533   : > { %v13769_v48 = vpop.f32.mrb[26].mxu1  ;;  %v9754_v46 = vadd.f32 %v13821_v30, %v13719_v13  ;;  %v9756_v13 = vadd.f32 %v13821_v30, %v13726_v17  ;;  %v9760_v17 = vadd.f32 %v13821_v30, %v13736_v24  ;;  %v9764_v24 = vadd.f32 %v13821_v30, %v13746_v31 }
 0x534   : > { %v6800_v51 = vpop.f32.mrb[27].mxu1  ;;  %v9768_v31 = vadd.f32 %v13821_v30, %v13756_v38  ;;  %v9772_v38 = vadd.f32 %v13821_v30, %v13766_v45 }
 0x536   : > { %7146 = vmatmul.mubr.bf16.gmra.mrb[84].mxu1 %v12053_v47 }
 0x537   : > { %9697 = vmatmul.mubr.msk.bf16.gmra.mrb[80].mxu0 %vm5477_vm1, %v12054_v49  ;;  %7153 = vmatprep.mubr.bf16.mxu1 %v12055_v50 }
 0x538   : > { %9700 = vmatprep.mubr.msk.bf16.mxu0 %vm12191_vm0, %v12190_v11 }
 0x539   : > { %v13776_v52 = vpop.f32.mrb[28].mxu1 }
 0x53a   : > { %v6805_v53 = vpop.f32.mrb[29].mxu1  ;;  %v9776_v45 = vadd.f32 %v13821_v30, %v13776_v52 }
 0x53b   : > { %v13779_v55 = vpop.f32.mrb[30].mxu1 }
 0x53c   : > { %v6808_v58 = vpop.f32.mrb[31].mxu1 }
 0x53e   : > { %7154 = vmatmul.mubr.bf16.gmra.mrb[88].mxu1 %v12057_v54  ;;  %v9758_v54 = vadd.f32 %v13821_v30, %v13729_v20  ;;  %v9762_v20 = vadd.f32 %v13821_v30, %v13739_v27  ;;  %v9766_v27 = vadd.f32 %v13821_v30, %v13749_v34  ;;  %v9770_v34 = vadd.f32 %v13821_v30, %v13759_v41 }
 0x53f   : > { %9701 = vmatmul.mubr.msk.bf16.gmra.mrb[84].mxu0 %vm5477_vm1, %v12058_v56  ;;  %7161 = vmatprep.mubr.bf16.mxu1 %v12059_v57  ;;  %v9774_v41 = vadd.f32 %v13821_v30, %v13769_v48  ;;  %v9778_v48 = vadd.f32 %v13821_v30, %v13779_v55 }
 0x540   : > { %9704 = vmatprep.mubr.msk.bf16.mxu0 %vm12191_vm0, %v12190_v11 }
 0x541   : > { %v13787_v60 = vpop.f32.mrb[32].mxu1 }
 0x542   : > { %v6813_v61 = vpop.f32.mrb[33].mxu1  ;;  %v9780_v52 = vadd.f32 %v13821_v30, %v13787_v60 }
 0x543   : > { %v13790_v63 = vpop.f32.mrb[34].mxu1 }
 0x544   : > { %v6816_v4 = vpop.f32.mrb[35].mxu1  ;;  %v9782_v55 = vadd.f32 %v13821_v30, %v13790_v63 }
 0x546   : > { %7162 = vmatmul.mubr.bf16.gmra.mrb[92].mxu1 %v12061_v62 }
 0x547   : > { %9705 = vmatmul.mubr.msk.bf16.gmra.mrb[88].mxu0 %vm5477_vm1, %v12062_v0  ;;  %7169 = vmatprep.mubr.bf16.mxu1 %v9344_v2 }
 0x548   : > { %9708 = vmatprep.mubr.msk.bf16.mxu0 %vm12191_vm0, %v12190_v11 }
 0x549   : > { %v13796_v5 = vpop.f32.mrb[36].mxu1 }
 0x54a   : > { %v6821_v7 = vpop.f32.mrb[37].mxu1  ;;  %v9784_v60 = vadd.f32 %v13821_v30, %v13796_v5 }
 0x54b   : > { %v13798_v8 = vpop.f32.mrb[38].mxu1 }
 0x54c   : > { %v6824_v12 = vpop.f32.mrb[39].mxu1  ;;  %v9786_v63 = vadd.f32 %v13821_v30, %v13798_v8 }
 0x54e   : > { %7170 = vmatmul.mubr.bf16.gmra.mrb[96].mxu1 %v9343_v1 }
 0x54f   : > { %9709 = vmatmul.mubr.msk.bf16.gmra.mrb[92].mxu0 %vm5477_vm1, %v12065_v10 }
 0x550   : > { %9712 = vmatprep.mubr.msk.bf16.mxu0 %vm12191_vm0, %v12190_v11 }
 0x551   : > { %v13804_v14 = vpop.f32.mrb[40].mxu1 }
 0x552   : > { %v6829_v15 = vpop.f32.mrb[41].mxu1  ;;  %v9788_v5 = vadd.f32 %v13821_v30, %v13804_v14 }
 0x553   : > { %v13806_v16 = vpop.f32.mrb[42].mxu1 }
 0x554   : > { %v6832_v19 = vpop.f32.mrb[43].mxu1  ;;  %v9790_v8 = vadd.f32 %v13821_v30, %v13806_v16 }
 0x557   : > { %9713 = vmatmul.mubr.msk.bf16.gmra.mrb[96].mxu0 %vm5477_vm1, %v12066_v18 }
 0x559   : > { %v13810_v21 = vpop.f32.mrb[44].mxu1 }
 0x55a   : > { %v6837_v22 = vpop.f32.mrb[45].mxu1 }
 0x55b   : > { %v13812_v23 = vpop.f32.mrb[46].mxu1 }
 0x55c   : > { %v6840_v25 = vpop.f32.mrb[47].mxu1  ;;  %v9794_v16 = vadd.f32 %v13821_v30, %v13812_v23 }
 0x561   : > { %v13814_v26 = vpop.f32.mrb[48].mxu1 }
 0x562   : > { %v6845_v28 = vpop.f32.mrb[49].mxu1 }
 0x563   : > { %v13816_v11 = vpop.f32.mrb[50].mxu1 }
 0x564   : > { %v6848_v29 = vpop.f32.mrb[51].mxu1  ;;  %v9798_v23 = vadd.f32 %v13821_v30, %v13816_v11 }
 0x56a   : > { %v8371_v33 = vpop.f32.mrb[0].mxu0 }
 0x56b   : > { %v9749_v36 = vadd.f32 %v9748_v32, %v8371_v33  ;;  %v9618_v37 = vpop.f32.mrb[1].mxu0 }
 0x56c   : > { %v8374_v39 = vpop.f32.mrb[2].mxu0 }
 0x56d   : > { %12067 = vtanh.f32 %v9749_v36  ;;  %v9751_v40 = vadd.f32 %v9750_v35, %v8374_v39  ;;  %v9619_v42 = vpop.f32.mrb[3].mxu0 }
 0x56f   : > { %12069 = vtanh.f32 %v9751_v40 }
 0x572   : > { %v8379_v44 = vpop.f32.mrb[4].mxu0 }
 0x573   : > { %v9753_v3 = vadd.f32 %v9752_v43, %v8379_v44  ;;  %v9622_v47 = vpop.f32.mrb[5].mxu0 }
 0x574   : > { %v8382_v49 = vpop.f32.mrb[6].mxu0 }
 0x575   : > { %12071 = vtanh.f32 %v9753_v3  ;;  %v9755_v6 = vadd.f32 %v9754_v46, %v8382_v49  ;;  %v9623_v50 = vpop.f32.mrb[7].mxu0 }
 0x577   : > { %v12068_v51 = vpop.eup %12067  ;;  %12073 = vtanh.f32 %v9755_v6 }
 0x578   : > { %8618 = vst [vmem:[%s13835_s11] sm:$0xff] %v12068_v51 }
 0x579   : > { %v12070_v9 = vpop.eup %12069 }
 0x57a   : > { %8619 = vst [vmem:[%s13835_s11 + $0x8] sm:$0xff] %v12070_v9  ;;  %v8387_v53 = vpop.f32.mrb[8].mxu0 }
 0x57b   : > { %v9757_v56 = vadd.f32 %v9756_v13, %v8387_v53  ;;  %v9626_v57 = vpop.f32.mrb[9].mxu0 }
 0x57c   : > { %v8390_v58 = vpop.f32.mrb[10].mxu0 }
 0x57d   : > { %12075 = vtanh.f32 %v9757_v56  ;;  %v9759_v59 = vadd.f32 %v9758_v54, %v8390_v58  ;;  %v9627_v61 = vpop.f32.mrb[11].mxu0 }
 0x57f   : > { %v12072_v62 = vpop.eup %12071  ;;  %12077 = vtanh.f32 %v9759_v59 }
 0x580   : > { %8620 = vst [vmem:[%s13835_s11 + $0x10] sm:$0xff] %v12072_v62 }
 0x581   : > { %v12074_v0 = vpop.eup %12073 }
 0x582   : > { %8621 = vst [vmem:[%s13835_s11 + $0x18] sm:$0xff] %v12074_v0  ;;  %v8395_v2 = vpop.f32.mrb[12].mxu0 }
 0x583   : > { %v9761_v4 = vadd.f32 %v9760_v17, %v8395_v2  ;;  %v9630_v7 = vpop.f32.mrb[13].mxu0 }
 0x584   : > { %v8398_v1 = vpop.f32.mrb[14].mxu0 }
 0x585   : > { %12079 = vtanh.f32 %v9761_v4  ;;  %v9763_v10 = vadd.f32 %v9762_v20, %v8398_v1  ;;  %v9631_v12 = vpop.f32.mrb[15].mxu0 }
 0x587   : > { %v12076_v15 = vpop.eup %12075  ;;  %12081 = vtanh.f32 %v9763_v10 }
 0x588   : > { %8622 = vst [vmem:[%s13835_s11 + $0x20] sm:$0xff] %v12076_v15 }
 0x589   : > { %v12078_v18 = vpop.eup %12077 }
 0x58a   : > { %8623 = vst [vmem:[%s13835_s11 + $0x28] sm:$0xff] %v12078_v18  ;;  %v8403_v19 = vpop.f32.mrb[16].mxu0 }
 0x58b   : > { %v9765_v22 = vadd.f32 %v9764_v24, %v8403_v19  ;;  %v9634_v25 = vpop.f32.mrb[17].mxu0 }
 0x58c   : > { %v8406_v28 = vpop.f32.mrb[18].mxu0 }
 0x58d   : > { %12083 = vtanh.f32 %v9765_v22  ;;  %v9767_v29 = vadd.f32 %v9766_v27, %v8406_v28  ;;  %v9635_v32 = vpop.f32.mrb[19].mxu0 }
 0x58f   : > { %v12080_v33 = vpop.eup %12079  ;;  %12085 = vtanh.f32 %v9767_v29 }
 0x590   : > { %8624 = vst [vmem:[%s13835_s11 + $0x30] sm:$0xff] %v12080_v33 }
 0x591   : > { %v12082_v35 = vpop.eup %12081 }
 0x592   : > { %8625 = vst [vmem:[%s13835_s11 + $0x38] sm:$0xff] %v12082_v35  ;;  %v8411_v36 = vpop.f32.mrb[20].mxu0 }
 0x593   : > { %v9769_v37 = vadd.f32 %v9768_v31, %v8411_v36  ;;  %v9638_v39 = vpop.f32.mrb[21].mxu0 }
 0x594   : > { %v8414_v40 = vpop.f32.mrb[22].mxu0 }
 0x595   : > { %12087 = vtanh.f32 %v9769_v37  ;;  %v9771_v42 = vadd.f32 %v9770_v34, %v8414_v40  ;;  %v9639_v43 = vpop.f32.mrb[23].mxu0  ;;  %v9792_v37 = vadd.f32 %v13821_v30, %v13810_v21 }
 0x597   : > { %v12084_v44 = vpop.eup %12083  ;;  %12089 = vtanh.f32 %v9771_v42 }
 0x598   : > { %8626 = vst [vmem:[%s13835_s11 + $0x40] sm:$0xff] %v12084_v44 }
 0x599   : > { %v12086_v46 = vpop.eup %12085 }
 0x59a   : > { %8627 = vst [vmem:[%s13835_s11 + $0x48] sm:$0xff] %v12086_v46  ;;  %v8419_v3 = vpop.f32.mrb[24].mxu0 }
 0x59b   : > { %v9773_v47 = vadd.f32 %v9772_v38, %v8419_v3  ;;  %v9642_v49 = vpop.f32.mrb[25].mxu0  ;;  %v9796_v3 = vadd.f32 %v13821_v30, %v13814_v26 }
 0x59c   : > { %v8422_v6 = vpop.f32.mrb[26].mxu0 }
 0x59d   : > { %12091 = vtanh.f32 %v9773_v47  ;;  %v9775_v50 = vadd.f32 %v9774_v41, %v8422_v6  ;;  %v9643_v51 = vpop.f32.mrb[27].mxu0 }
 0x59f   : > { %v12088_v9 = vpop.eup %12087  ;;  %12093 = vtanh.f32 %v9775_v50 }
 0x5a0   : > { %8628 = vst [vmem:[%s13835_s11 + $0x50] sm:$0xff] %v12088_v9 }
 0x5a1   : > { %v12090_v13 = vpop.eup %12089 }
 0x5a2   : > { %8629 = vst [vmem:[%s13835_s11 + $0x58] sm:$0xff] %v12090_v13  ;;  %v8427_v53 = vpop.f32.mrb[28].mxu0 }
 0x5a3   : > { %v9777_v54 = vadd.f32 %v9776_v45, %v8427_v53  ;;  %v9646_v56 = vpop.f32.mrb[29].mxu0 }
 0x5a4   : > { %v8430_v57 = vpop.f32.mrb[30].mxu0 }
 0x5a5   : > { %12095 = vtanh.f32 %v9777_v54  ;;  %v9779_v58 = vadd.f32 %v9778_v48, %v8430_v57  ;;  %v9647_v59 = vpop.f32.mrb[31].mxu0 }
 0x5a7   : > { %v12092_v61 = vpop.eup %12091  ;;  %12097 = vtanh.f32 %v9779_v58 }
 0x5a8   : > { %8630 = vst [vmem:[%s13835_s11 + $0x60] sm:$0xff] %v12092_v61 }
 0x5a9   : > { %v12094_v62 = vpop.eup %12093 }
 0x5aa   : > { %8631 = vst [vmem:[%s13835_s11 + $0x68] sm:$0xff] %v12094_v62  ;;  %v8435_v0 = vpop.f32.mrb[32].mxu0 }
 0x5ab   : > { %v9781_v17 = vadd.f32 %v9780_v52, %v8435_v0  ;;  %v9650_v2 = vpop.f32.mrb[33].mxu0 }
 0x5ac   : > { %v8438_v20 = vpop.f32.mrb[34].mxu0 }
 0x5ad   : > { %12099 = vtanh.f32 %v9781_v17  ;;  %v9783_v4 = vadd.f32 %v9782_v55, %v8438_v20  ;;  %v9651_v7 = vpop.f32.mrb[35].mxu0 }
 0x5af   : > { %v12096_v1 = vpop.eup %12095  ;;  %12101 = vtanh.f32 %v9783_v4 }
 0x5b0   : > { %8632 = vst [vmem:[%s13835_s11 + $0x70] sm:$0xff] %v12096_v1 }
 0x5b1   : > { %v12098_v10 = vpop.eup %12097 }
 0x5b2   : > { %8633 = vst [vmem:[%s13835_s11 + $0x78] sm:$0xff] %v12098_v10  ;;  %v8443_v12 = vpop.f32.mrb[36].mxu0 }
 0x5b3   : > { %v9785_v15 = vadd.f32 %v9784_v60, %v8443_v12  ;;  %v9654_v18 = vpop.f32.mrb[37].mxu0 }
 0x5b4   : > { %v8446_v24 = vpop.f32.mrb[38].mxu0 }
 0x5b5   : > { %12103 = vtanh.f32 %v9785_v15  ;;  %v9787_v19 = vadd.f32 %v9786_v63, %v8446_v24  ;;  %v9655_v27 = vpop.f32.mrb[39].mxu0 }
 0x5b7   : > { %v12100_v22 = vpop.eup %12099  ;;  %12105 = vtanh.f32 %v9787_v19 }
 0x5b8   : > { %8634 = vst [vmem:[%s13835_s11 + $0x80] sm:$0xff] %v12100_v22 }
 0x5b9   : > { %v12102_v25 = vpop.eup %12101 }
 0x5ba   : > { %8635 = vst [vmem:[%s13835_s11 + $0x88] sm:$0xff] %v12102_v25  ;;  %v8451_v28 = vpop.f32.mrb[40].mxu0 }
 0x5bb   : > { %v9789_v29 = vadd.f32 %v9788_v5, %v8451_v28  ;;  %v9658_v32 = vpop.f32.mrb[41].mxu0 }
 0x5bc   : > { %v8454_v33 = vpop.f32.mrb[42].mxu0 }
 0x5bd   : > { %12107 = vtanh.f32 %v9789_v29  ;;  %v9791_v35 = vadd.f32 %v9790_v8, %v8454_v33  ;;  %v9659_v31 = vpop.f32.mrb[43].mxu0 }
 0x5bf   : > { %v12104_v36 = vpop.eup %12103  ;;  %12109 = vtanh.f32 %v9791_v35 }
 0x5c0   : > { %8636 = vst [vmem:[%s13835_s11 + $0x90] sm:$0xff] %v12104_v36 }
 0x5c1   : > { %v12106_v34 = vpop.eup %12105 }
 0x5c2   : > { %8637 = vst [vmem:[%s13835_s11 + $0x98] sm:$0xff] %v12106_v34  ;;  %v8459_v14 = vpop.f32.mrb[44].mxu0 }
 0x5c3   : > { %v9793_v39 = vadd.f32 %v9792_v37, %v8459_v14  ;;  %v9662_v40 = vpop.f32.mrb[45].mxu0 }
 0x5c4   : > { %v8462_v42 = vpop.f32.mrb[46].mxu0 }
 0x5c5   : > { %12111 = vtanh.f32 %v9793_v39  ;;  %v9795_v43 = vadd.f32 %v9794_v16, %v8462_v42  ;;  %v9663_v44 = vpop.f32.mrb[47].mxu0 }
 0x5c7   : > { %v12108_v46 = vpop.eup %12107  ;;  %12113 = vtanh.f32 %v9795_v43 }
 0x5c8   : > { %8638 = vst [vmem:[%s13835_s11 + $0xa0] sm:$0xff] %v12108_v46 }
 0x5c9   : > { %v12110_v38 = vpop.eup %12109  ;;  %v7083_v21 = vpop.f32.mrb[52].mxu1 }
 0x5ca   : > { %8639 = vst [vmem:[%s13835_s11 + $0xa8] sm:$0xff] %v12110_v38  ;;  %v8467_v41 = vpop.f32.mrb[48].mxu0  ;;  %v7085_v47 = vpop.f32.mrb[53].mxu1  ;;  %v9800_v48 = vadd.f32 %v13821_v30, %v7083_v21 }
 0x5cb   : > { %v9797_v49 = vadd.f32 %v9796_v3, %v8467_v41  ;;  %v9666_v6 = vpop.f32.mrb[49].mxu0  ;;  %v7086_v50 = vpop.f32.mrb[54].mxu1 }
 0x5cc   : > { %v8470_v51 = vpop.f32.mrb[50].mxu0  ;;  %v7088_v9 = vpop.f32.mrb[55].mxu1  ;;  %v9802_v11 = vadd.f32 %v13821_v30, %v7086_v50 }
 0x5cd   : > { %12115 = vtanh.f32 %v9797_v49  ;;  %v9799_v13 = vadd.f32 %v9798_v23, %v8470_v51  ;;  %v9667_v45 = vpop.f32.mrb[51].mxu0 }
 0x5cf   : > { %v12112_v53 = vpop.eup %12111  ;;  %12117 = vtanh.f32 %v9799_v13 }
 0x5d0   : > { %8640 = vst [vmem:[%s13835_s11 + $0xb0] sm:$0xff] %v12112_v53 }
 0x5d1   : > { %v12114_v26 = vpop.eup %12113  ;;  %v7091_v54 = vpop.f32.mrb[56].mxu1 }
 0x5d2   : > { %8641 = vst [vmem:[%s13835_s11 + $0xb8] sm:$0xff] %v12114_v26  ;;  %v8475_v56 = vpop.f32.mrb[52].mxu0  ;;  %v7093_v57 = vpop.f32.mrb[57].mxu1  ;;  %v9804_v20 = vadd.f32 %v13821_v30, %v7091_v54 }
 0x5d3   : > { %v9801_v58 = vadd.f32 %v9800_v48, %v8475_v56  ;;  %v9670_v59 = vpop.f32.mrb[53].mxu0  ;;  %v7094_v61 = vpop.f32.mrb[58].mxu1 }
 0x5d4   : > { %v8478_v62 = vpop.f32.mrb[54].mxu0  ;;  %v7096_v52 = vpop.f32.mrb[59].mxu1  ;;  %v9806_v10 = vadd.f32 %v13821_v30, %v7094_v61 }
 0x5d5   : > { %12119 = vtanh.f32 %v9801_v58  ;;  %v9803_v0 = vadd.f32 %v9802_v11, %v8478_v62  ;;  %v9671_v55 = vpop.f32.mrb[55].mxu0 }
 0x5d7   : > { %v12116_v17 = vpop.eup %12115  ;;  %12121 = vtanh.f32 %v9803_v0 }
 0x5d8   : > { %8642 = vst [vmem:[%s13835_s11 + $0xc0] sm:$0xff] %v12116_v17 }
 0x5d9   : > { %v12118_v2 = vpop.eup %12117  ;;  %v7099_v4 = vpop.f32.mrb[60].mxu1 }
 0x5da   : > { %8643 = vst [vmem:[%s13835_s11 + $0xc8] sm:$0xff] %v12118_v2  ;;  %v8483_v7 = vpop.f32.mrb[56].mxu0  ;;  %v7101_v1 = vpop.f32.mrb[61].mxu1  ;;  %v9808_v25 = vadd.f32 %v13821_v30, %v7099_v4 }
 0x5db   : > { %v9805_v60 = vadd.f32 %v9804_v20, %v8483_v7  ;;  %v9674_v12 = vpop.f32.mrb[57].mxu0  ;;  %v7102_v63 = vpop.f32.mrb[62].mxu1 }
 0x5dc   : > { %v8486_v15 = vpop.f32.mrb[58].mxu0  ;;  %v7104_v18 = vpop.f32.mrb[63].mxu1  ;;  %v9810_v29 = vadd.f32 %v13821_v30, %v7102_v63 }
 0x5dd   : > { %12123 = vtanh.f32 %v9805_v60  ;;  %v9807_v24 = vadd.f32 %v9806_v10, %v8486_v15  ;;  %v9675_v19 = vpop.f32.mrb[59].mxu0 }
 0x5df   : > { %v12120_v27 = vpop.eup %12119  ;;  %12125 = vtanh.f32 %v9807_v24 }
 0x5e0   : > { %8644 = vst [vmem:[%s13835_s11 + $0xd0] sm:$0xff] %v12120_v27 }
 0x5e1   : > { %v12122_v22 = vpop.eup %12121  ;;  %v7107_v5 = vpop.f32.mrb[64].mxu1 }
 0x5e2   : > { %8645 = vst [vmem:[%s13835_s11 + $0xd8] sm:$0xff] %v12122_v22  ;;  %v8491_v28 = vpop.f32.mrb[60].mxu0  ;;  %v7109_v8 = vpop.f32.mrb[65].mxu1  ;;  %v9812_v39 = vadd.f32 %v13821_v30, %v7107_v5 }
 0x5e3   : > { %v9809_v32 = vadd.f32 %v9808_v25, %v8491_v28  ;;  %v9678_v33 = vpop.f32.mrb[61].mxu0  ;;  %v7110_v35 = vpop.f32.mrb[66].mxu1 }
 0x5e4   : > { %v8494_v31 = vpop.f32.mrb[62].mxu0  ;;  %v7112_v36 = vpop.f32.mrb[67].mxu1  ;;  %v9814_v44 = vadd.f32 %v13821_v30, %v7110_v35 }
 0x5e5   : > { %12127 = vtanh.f32 %v9809_v32  ;;  %v9811_v34 = vadd.f32 %v9810_v29, %v8494_v31  ;;  %v9679_v37 = vpop.f32.mrb[63].mxu0 }
 0x5e7   : > { %v12124_v14 = vpop.eup %12123  ;;  %12129 = vtanh.f32 %v9811_v34 }
 0x5e8   : > { %8646 = vst [vmem:[%s13835_s11 + $0xe0] sm:$0xff] %v12124_v14 }
 0x5e9   : > { %v12126_v16 = vpop.eup %12125  ;;  %v7115_v40 = vpop.f32.mrb[68].mxu1 }
 0x5ea   : > { %8647 = vst [vmem:[%s13835_s11 + $0xe8] sm:$0xff] %v12126_v16  ;;  %v8499_v42 = vpop.f32.mrb[64].mxu0  ;;  %v7117_v43 = vpop.f32.mrb[69].mxu1  ;;  %v9816_v50 = vadd.f32 %v13821_v30, %v7115_v40 }
 0x5eb   : > { %v9813_v46 = vadd.f32 %v9812_v39, %v8499_v42  ;;  %v9682_v38 = vpop.f32.mrb[65].mxu0  ;;  %v7118_v3 = vpop.f32.mrb[70].mxu1 }
 0x5ec   : > { %v8502_v21 = vpop.f32.mrb[66].mxu0  ;;  %v7120_v41 = vpop.f32.mrb[71].mxu1  ;;  %v9818_v45 = vadd.f32 %v13821_v30, %v7118_v3 }
 0x5ed   : > { %12131 = vtanh.f32 %v9813_v46  ;;  %v9815_v47 = vadd.f32 %v9814_v44, %v8502_v21  ;;  %v9683_v23 = vpop.f32.mrb[67].mxu0 }
 0x5ef   : > { %v12128_v49 = vpop.eup %12127  ;;  %12133 = vtanh.f32 %v9815_v47 }
 0x5f0   : > { %8648 = vst [vmem:[%s13835_s11 + $0xf0] sm:$0xff] %v12128_v49 }
 0x5f1   : > { %v12130_v6 = vpop.eup %12129  ;;  %v7123_v51 = vpop.f32.mrb[72].mxu1 }
 0x5f2   : > { %8649 = vst [vmem:[%s13835_s11 + $0xf8] sm:$0xff] %v12130_v6  ;;  %v8507_v9 = vpop.f32.mrb[68].mxu0  ;;  %v7125_v13 = vpop.f32.mrb[73].mxu1  ;;  %v9820_v61 = vadd.f32 %v13821_v30, %v7123_v51 }
 0x5f3   : > { %v9817_v53 = vadd.f32 %v9816_v50, %v8507_v9  ;;  %v9686_v26 = vpop.f32.mrb[69].mxu0  ;;  %v7126_v48 = vpop.f32.mrb[74].mxu1 }
 0x5f4   : > { %v8510_v54 = vpop.f32.mrb[70].mxu0  ;;  %v7128_v56 = vpop.f32.mrb[75].mxu1  ;;  %v9822_v55 = vadd.f32 %v13821_v30, %v7126_v48 }
 0x5f5   : > { %12135 = vtanh.f32 %v9817_v53  ;;  %v9819_v57 = vadd.f32 %v9818_v45, %v8510_v54  ;;  %v9687_v11 = vpop.f32.mrb[71].mxu0 }
 0x5f7   : > { %v12132_v58 = vpop.eup %12131  ;;  %12137 = vtanh.f32 %v9819_v57 }
 0x5f8   : > { %8650 = vst [vmem:[%s13835_s11 + $0x100] sm:$0xff] %v12132_v58 }
 0x5f9   : > { %v12134_v59 = vpop.eup %12133  ;;  %v7131_v62 = vpop.f32.mrb[76].mxu1 }
 0x5fa   : > { %8651 = vst [vmem:[%s13835_s11 + $0x108] sm:$0xff] %v12134_v59  ;;  %v8515_v52 = vpop.f32.mrb[72].mxu0  ;;  %v7133_v0 = vpop.f32.mrb[77].mxu1  ;;  %v9824_v63 = vadd.f32 %v13821_v30, %v7131_v62 }
 0x5fb   : > { %v9821_v17 = vadd.f32 %v9820_v61, %v8515_v52  ;;  %v9690_v2 = vpop.f32.mrb[73].mxu0  ;;  %v7134_v20 = vpop.f32.mrb[78].mxu1 }
 0x5fc   : > { %v8518_v4 = vpop.f32.mrb[74].mxu0  ;;  %v7136_v7 = vpop.f32.mrb[79].mxu1  ;;  %v9826_v19 = vadd.f32 %v13821_v30, %v7134_v20 }
 0x5fd   : > { %12139 = vtanh.f32 %v9821_v17  ;;  %v9823_v1 = vadd.f32 %v9822_v55, %v8518_v4  ;;  %v9691_v10 = vpop.f32.mrb[75].mxu0 }
 0x5ff   : > { %v12136_v60 = vpop.eup %12135  ;;  %12141 = vtanh.f32 %v9823_v1 }
 0x600   : > { %8652 = vst [vmem:[%s13835_s11 + $0x110] sm:$0xff] %v12136_v60 }
 0x601   : > { %v12138_v12 = vpop.eup %12137  ;;  %v7139_v15 = vpop.f32.mrb[80].mxu1 }
 0x602   : > { %8653 = vst [vmem:[%s13835_s11 + $0x118] sm:$0xff] %v12138_v12  ;;  %v8523_v18 = vpop.f32.mrb[76].mxu0  ;;  %v7141_v24 = vpop.f32.mrb[81].mxu1  ;;  %v9828_v35 = vadd.f32 %v13821_v30, %v7139_v15 }
 0x603   : > { %v9825_v27 = vadd.f32 %v9824_v63, %v8523_v18  ;;  %v9694_v22 = vpop.f32.mrb[77].mxu0  ;;  %v7142_v25 = vpop.f32.mrb[82].mxu1 }
 0x604   : > { %v8526_v5 = vpop.f32.mrb[78].mxu0  ;;  %v7144_v28 = vpop.f32.mrb[83].mxu1  ;;  %v9830_v37 = vadd.f32 %v13821_v30, %v7142_v25 }
 0x605   : > { %12143 = vtanh.f32 %v9825_v27  ;;  %v9827_v8 = vadd.f32 %v9826_v19, %v8526_v5  ;;  %v9695_v29 = vpop.f32.mrb[79].mxu0 }
 0x607   : > { %v12140_v32 = vpop.eup %12139  ;;  %12145 = vtanh.f32 %v9827_v8 }
 0x608   : > { %8654 = vst [vmem:[%s13835_s11 + $0x120] sm:$0xff] %v12140_v32 }
 0x609   : > { %v12142_v33 = vpop.eup %12141  ;;  %v7147_v31 = vpop.f32.mrb[84].mxu1 }
 0x60a   : > { %8655 = vst [vmem:[%s13835_s11 + $0x128] sm:$0xff] %v12142_v33  ;;  %v8531_v36 = vpop.f32.mrb[80].mxu0  ;;  %v7149_v34 = vpop.f32.mrb[85].mxu1  ;;  %v9832_v3 = vadd.f32 %v13821_v30, %v7147_v31 }
 0x60b   : > { %v9829_v14 = vadd.f32 %v9828_v35, %v8531_v36  ;;  %v9698_v16 = vpop.f32.mrb[81].mxu0  ;;  %v7150_v39 = vpop.f32.mrb[86].mxu1 }
 0x60c   : > { %v8534_v40 = vpop.f32.mrb[82].mxu0  ;;  %v7152_v42 = vpop.f32.mrb[87].mxu1  ;;  %v9834_v23 = vadd.f32 %v13821_v30, %v7150_v39 }
 0x60d   : > { %12147 = vtanh.f32 %v9829_v14  ;;  %v9831_v43 = vadd.f32 %v9830_v37, %v8534_v40  ;;  %v9699_v44 = vpop.f32.mrb[83].mxu0 }
 0x60f   : > { %v12144_v46 = vpop.eup %12143  ;;  %12149 = vtanh.f32 %v9831_v43 }
 0x610   : > { %8656 = vst [vmem:[%s13835_s11 + $0x130] sm:$0xff] %v12144_v46 }
 0x611   : > { %v12146_v38 = vpop.eup %12145  ;;  %v7155_v21 = vpop.f32.mrb[88].mxu1 }
 0x612   : > { %8657 = vst [vmem:[%s13835_s11 + $0x138] sm:$0xff] %v12146_v38  ;;  %v8539_v41 = vpop.f32.mrb[84].mxu0  ;;  %v7157_v47 = vpop.f32.mrb[89].mxu1  ;;  %v9836_v48 = vadd.f32 %v13821_v30, %v7155_v21 }
 0x613   : > { %v9833_v49 = vadd.f32 %v9832_v3, %v8539_v41  ;;  %v9702_v6 = vpop.f32.mrb[85].mxu0  ;;  %v7158_v50 = vpop.f32.mrb[90].mxu1 }
 0x614   : > { %v8542_v51 = vpop.f32.mrb[86].mxu0  ;;  %v7160_v9 = vpop.f32.mrb[91].mxu1  ;;  %v9838_v11 = vadd.f32 %v13821_v30, %v7158_v50 }
 0x615   : > { %12151 = vtanh.f32 %v9833_v49  ;;  %v9835_v13 = vadd.f32 %v9834_v23, %v8542_v51  ;;  %v9703_v45 = vpop.f32.mrb[87].mxu0 }
 0x617   : > { %v12148_v53 = vpop.eup %12147  ;;  %12153 = vtanh.f32 %v9835_v13 }
 0x618   : > { %8658 = vst [vmem:[%s13835_s11 + $0x140] sm:$0xff] %v12148_v53 }
 0x619   : > { %v12150_v26 = vpop.eup %12149  ;;  %v7163_v54 = vpop.f32.mrb[92].mxu1 }
 0x61a   : > { %8659 = vst [vmem:[%s13835_s11 + $0x148] sm:$0xff] %v12150_v26  ;;  %v8547_v56 = vpop.f32.mrb[88].mxu0  ;;  %v7165_v57 = vpop.f32.mrb[93].mxu1  ;;  %v9840_v20 = vadd.f32 %v13821_v30, %v7163_v54 }
 0x61b   : > { %v9837_v58 = vadd.f32 %v9836_v48, %v8547_v56  ;;  %v9706_v59 = vpop.f32.mrb[89].mxu0  ;;  %v7166_v61 = vpop.f32.mrb[94].mxu1 }
 0x61c   : > { %v8550_v62 = vpop.f32.mrb[90].mxu0  ;;  %v7168_v52 = vpop.f32.mrb[95].mxu1  ;;  %v9842_v10 = vadd.f32 %v13821_v30, %v7166_v61 }
 0x61d   : > { %12155 = vtanh.f32 %v9837_v58  ;;  %v9839_v0 = vadd.f32 %v9838_v11, %v8550_v62  ;;  %v9707_v55 = vpop.f32.mrb[91].mxu0 }
 0x61f   : > { %v12152_v17 = vpop.eup %12151  ;;  %12157 = vtanh.f32 %v9839_v0 }
 0x620   : > { %8660 = vst [vmem:[%s13835_s11 + $0x150] sm:$0xff] %v12152_v17 }
 0x621   : > { %v12154_v2 = vpop.eup %12153  ;;  %v7171_v4 = vpop.f32.mrb[96].mxu1 }
 0x622   : > { %8661 = vst [vmem:[%s13835_s11 + $0x158] sm:$0xff] %v12154_v2  ;;  %v8555_v7 = vpop.f32.mrb[92].mxu0  ;;  %v7173_v1 = vpop.f32.mrb[97].mxu1  ;;  %v9844_v25 = vadd.f32 %v13821_v30, %v7171_v4 }
 0x623   : > { %v9841_v60 = vadd.f32 %v9840_v20, %v8555_v7  ;;  %v9710_v12 = vpop.f32.mrb[93].mxu0  ;;  %v7174_v63 = vpop.f32.mrb[98].mxu1 }
 0x624   : > { %v8558_v15 = vpop.f32.mrb[94].mxu0  ;;  %v7175_v18 = vpop.f32.mrb[99].mxu1 }
 0x625   : > { %12159 = vtanh.f32 %v9841_v60  ;;  %v9843_v24 = vadd.f32 %v9842_v10, %v8558_v15  ;;  %v9711_v19 = vpop.f32.mrb[95].mxu0 }
 0x627   : > { %v12156_v27 = vpop.eup %12155  ;;  %12161 = vtanh.f32 %v9843_v24 }
 0x628   : > { %8662 = vst [vmem:[%s13835_s11 + $0x160] sm:$0xff] %v12156_v27 }
 0x629   : > { %v12158_v22 = vpop.eup %12157 }
 0x62a   : > { %8663 = vst [vmem:[%s13835_s11 + $0x168] sm:$0xff] %v12158_v22  ;;  %v8563_v5 = vpop.f32.mrb[96].mxu0 }
 0x62b   : > { %v9845_v28 = vadd.f32 %v9844_v25, %v8563_v5  ;;  %v9714_v8 = vpop.f32.mrb[97].mxu0 }
 0x62c   : > { %v8566_v29 = vpop.f32.mrb[98].mxu0 }
 0x62d   : > { %12163 = vtanh.f32 %v9845_v28  ;;  %v9715_v32 = vpop.f32.mrb[99].mxu0 }
 0x62f   : > { %v12160_v33 = vpop.eup %12159 }
 0x630   : > { %8664 = vst [vmem:[%s13835_s11 + $0x170] sm:$0xff] %v12160_v33 }
 0x631   : > { %v12162_v35 = vpop.eup %12161 }
 0x632   : > { %8665 = vst [vmem:[%s13835_s11 + $0x178] sm:$0xff] %v12162_v35 }
 0x637   : > { %v12164_v31 = vpop.eup %12163 }
 0x638   : > { %8666 = vst [vmem:[%s13835_s11 + $0x180] sm:$0xff] %v12164_v31 }
 0x639 PF: > { %s13_s12 = sadd.s32 1, %s12187_s12  }
 0x63a   : > { %p10_p4 = scmp.ge.s32.totalorder %s13_s12, 6  }
 0x63c   :  { %12 = sbr.rel (!%p10_p4) target bundleno = 1 (0x1), region = 62 }

</bundles_post_ra>
